<compile_context>
chip_gen: v5e
topology: v5e:2x2
jax: 0.10.0
libtpu: 0.0.40
codegen_flags: <defaults>
</compile_context>

<pallas_src>
import functools

import jax
import jax.numpy as jnp
from jax.experimental import pallas as pl
from jax.experimental.pallas import tpu as pltpu

_EPS = 1e-5
_LANE = 128


def _round_up(x, m):
    return (x + m - 1) // m * m


# --------------------- Pallas kernel: BN batch statistics --------------------


def _bn_stats_kernel(x_ref, sum_ref, ssq_ref):
    @pl.when(pl.program_id(0) == 0)
    def _init():
        sum_ref[...] = jnp.zeros_like(sum_ref)
        ssq_ref[...] = jnp.zeros_like(ssq_ref)

    x = x_ref[0].astype(jnp.float32)                    # (H, W, C)
    sum_ref[...] += jnp.sum(x, axis=(0, 1)).reshape(sum_ref.shape)
    ssq_ref[...] += jnp.sum(x * x, axis=(0, 1)).reshape(ssq_ref.shape)


def bn_batch_stats(x):
    """Single fused pass: per-channel (biased) mean/var over (N, H, W).  x: NHWC."""
    N, H, W, C = x.shape
    sums, ssqs = pl.pallas_call(
        _bn_stats_kernel,
        out_shape=(jax.ShapeDtypeStruct((1, C), jnp.float32),
                   jax.ShapeDtypeStruct((1, C), jnp.float32)),
        grid=(N,),
        in_specs=[pl.BlockSpec((1, H, W, C), lambda n: (n, 0, 0, 0))],
        out_specs=(pl.BlockSpec((1, C), lambda n: (0, 0)),
                   pl.BlockSpec((1, C), lambda n: (0, 0))),
        compiler_params=pltpu.CompilerParams(
            dimension_semantics=("arbitrary",)),
    )(x)
    count = N * H * W
    mean = sums[0] / count
    var = ssqs[0] / count - mean * mean
    return mean, var


# ------------------ Pallas kernel: fused affine+relu+conv(+add) --------------


def _make_conv_kernel(*, K, stride, pad, H, W, Hout, Wout, Cin, Cp, Cout,
                      has_shortcut, has_add):
    """Builds a kernel computing conv(relu(x*scale+bias)) for one image.

    Cin : real channel count of the HBM input block.
    Cp  : lane-padded channel count used for the VMEM scratches / weight rows.
    """
    HW = Hout * Wout

    def kernel(*refs):
        it = iter(refs)
        x_ref = next(it)
        s_ref = next(it)
        b_ref = next(it)
        w_ref = next(it)
        wsc_ref = next(it) if has_shortcut else None
        add_ref = next(it) if has_add else None
        o_ref = next(it)
        sc_ref = next(it) if has_shortcut else None
        xpad_ref = next(it)
        col_ref = next(it)

        # Fused BN-affine + ReLU on the input tile.  scale/bias stay f32 so BN
        # precision is preserved even if the activations are bf16.
        x = x_ref[0].astype(jnp.float32)                       # (H, W, Cin)
        a = jnp.maximum(x * s_ref[0] + b_ref[0], 0.0)
        a = a.astype(col_ref.dtype)

        # Zero-padded halo tile in VMEM (replaces a host-side jnp.pad HBM pass;
        # also lane-pads the channels from Cin to Cp).
        xpad_ref[...] = jnp.zeros_like(xpad_ref)
        xpad_ref[pad:pad + H, pad:pad + W, :Cin] = a

        # im2col: stage the K*K shifted patches as one lane-dense tile; the
        # column offsets are multiples of 128 so every write is lane-aligned.
        for ky in range(K):
            for kx in range(K):
                tap = ky * K + kx
                if stride == 1:
                    patch = xpad_ref[ky:ky + Hout, kx:kx + Wout, :]
                else:
                    patch = xpad_ref[ky:ky + (Hout - 1) * stride + 1,
                                     kx:kx + (Wout - 1) * stride + 1, :]
                    patch = patch[::stride, ::stride, :]
                col_ref[:, tap * Cp:(tap + 1) * Cp] = patch.reshape(HW, Cp)

        # Single MXU matmul over all taps: (HW, K*K*Cp) @ (K*K*Cp, Cout).
        res = jnp.dot(col_ref[...], w_ref[...],
                      preferred_element_type=jnp.float32)      # (HW, Cout) f32
        out = res.reshape(Hout, Wout, Cout)
        if has_add:
            out = out + add_ref[0].astype(jnp.float32)         # fused residual
        o_ref[0] = out.astype(o_ref.dtype)

        if has_shortcut:
            # Fused 1x1/stride-s shortcut conv: the centre im2col column *is*
            # the stride-decimated activation (K odd, pad == (K-1)//2).
            ct = pad * K + pad
            a_dec = col_ref[:, ct * Cp:(ct + 1) * Cp]          # (HW, Cp)
            sc = jnp.dot(a_dec, wsc_ref[...],
                         preferred_element_type=jnp.float32)
            sc_ref[0] = sc.reshape(Hout, Wout, Cout).astype(sc_ref.dtype)

    return kernel


def conv_block(x, scale, bias, w_mat, *, K, stride, pad, wsc=None, add=None):
    """conv(relu(x*scale+bias)) with optional fused 1x1 shortcut conv / residual add.

    x     : (N, H, W, Cin) NHWC activations (Cin may be < 128).
    w_mat : (K*K*Cp, Cout) zero-padded, reshaped HWIO weight (Cp, Cout lane mult.).
    wsc   : optional (Cp, Cout) 1x1 shortcut weight -> extra output.
    add   : optional (N, Hout, Wout, Cout) residual added to the main output.
    Returns a tuple of 1 or 2 NHWC arrays with Cout channels.
    """
    N, H, W, Cin = x.shape
    Cout = w_mat.shape[-1]
    assert w_mat.shape[0] % (K * K) == 0
    Cp = w_mat.shape[0] // (K * K)
    assert Cp >= Cin
    Hout = (H + 2 * pad - K) // stride + 1
    Wout = (W + 2 * pad - K) // stride + 1
    if wsc is not None:
        assert K % 2 == 1 and pad == (K - 1) // 2

    kernel = _make_conv_kernel(K=K, stride=stride, pad=pad, H=H, W=W,
                               Hout=Hout, Wout=Wout, Cin=Cin, Cp=Cp, Cout=Cout,
                               has_shortcut=wsc is not None,
                               has_add=add is not None)

    in_specs = [
        pl.BlockSpec((1, H, W, Cin), lambda n: (n, 0, 0, 0)),
        pl.BlockSpec((1, Cin), lambda n: (0, 0)),
        pl.BlockSpec((1, Cin), lambda n: (0, 0)),
        pl.BlockSpec((K * K * Cp, Cout), lambda n: (0, 0)),
    ]
    args = [x,
            scale.reshape(1, Cin).astype(jnp.float32),
            bias.reshape(1, Cin).astype(jnp.float32),
            w_mat.astype(x.dtype)]
    if wsc is not None:
        in_specs.append(pl.BlockSpec((Cp, Cout), lambda n: (0, 0)))
        args.append(wsc.astype(x.dtype))
    if add is not None:
        in_specs.append(pl.BlockSpec((1, Hout, Wout, Cout),
                                     lambda n: (n, 0, 0, 0)))
        args.append(add)

    out_shape = [jax.ShapeDtypeStruct((N, Hout, Wout, Cout), x.dtype)]
    out_specs = [pl.BlockSpec((1, Hout, Wout, Cout), lambda n: (n, 0, 0, 0))]
    if wsc is not None:
        out_shape.append(jax.ShapeDtypeStruct((N, Hout, Wout, Cout), x.dtype))
        out_specs.append(pl.BlockSpec((1, Hout, Wout, Cout),
                                      lambda n: (n, 0, 0, 0)))

    outs = pl.pallas_call(
        kernel,
        out_shape=tuple(out_shape),
        grid=(N,),
        in_specs=in_specs,
        out_specs=tuple(out_specs),
        scratch_shapes=[
            pltpu.VMEM((H + 2 * pad, W + 2 * pad, Cp), x.dtype),
            pltpu.VMEM((Hout * Wout, K * K * Cp), x.dtype),
        ],
        compiler_params=pltpu.CompilerParams(
            dimension_semantics=("parallel",)),
    )(*args)
    if not isinstance(outs, (tuple, list)):
        outs = (outs,)
    return tuple(outs)


# --------------------------- PreActBlock forward -----------------------------


def _pad_channels_1d(v, cp):
    return jnp.pad(v, (0, cp - v.shape[0]))


def _pad_conv_weight(w, cip, cop):
    """HWIO (K,K,Ci,Co) -> zero-padded (K*K*cip, cop) matmul weight."""
    K = w.shape[0]
    wp = jnp.pad(w, ((0, 0), (0, 0),
                     (0, cip - w.shape[2]), (0, cop - w.shape[3])))
    return wp.reshape(K * K * cip, cop)


@functools.partial(jax.jit, static_argnames=("stride",))
def preact_block_forward(x_nchw, params, stride=1):
    """PreActBlock forward pass.  Input/output NCHW (PyTorch layout)."""
    N, Cin, H, W = x_nchw.shape
    Cout = params["w1"].shape[-1]
    cip = _round_up(Cin, _LANE)
    cop = _round_up(Cout, _LANE)
    has_sc = (stride != 1) or (Cin != Cout)

    x = jnp.transpose(x_nchw, (0, 2, 3, 1))          # NCHW -> NHWC (glue)

    g1, be1 = params["gamma1"], params["beta1"]
    g2 = _pad_channels_1d(params["gamma2"], cop)
    be2 = _pad_channels_1d(params["beta2"], cop)
    w1 = _pad_conv_weight(params["w1"], cip, cop)
    w2 = _pad_conv_weight(params["w2"], cop, cop)
    wsc = _pad_conv_weight(params["wsc"], cip, cop) if has_sc else None

    # bn1: single-pass batch statistics, folded to per-channel scale/bias.
    mean1, var1 = bn_batch_stats(x)
    s1 = g1 * jax.lax.rsqrt(var1 + _EPS)
    b1 = be1 - mean1 * s1

    # conv1 (3x3, stride, pad=1) with fused bn1+relu; 1x1 shortcut conv fused
    # into the same kernel when the block changes shape.
    if has_sc:
        y1, shortcut = conv_block(x, s1, b1, w1, K=3, stride=stride, pad=1,
                                  wsc=wsc)
    else:
        (y1,) = conv_block(x, s1, b1, w1, K=3, stride=stride, pad=1)
        # Identity shortcut uses pre-activation x; lane-pad its channels to
        # match conv2's padded output channels.
        shortcut = jnp.pad(x, ((0, 0), (0, 0), (0, 0), (0, cop - Cin)))

    # bn2: single-pass batch statistics (padded channels are all-zero ->
    # scale/bias fold to 0 there), folded to scale/bias.
    mean2, var2 = bn_batch_stats(y1)
    s2 = g2 * jax.lax.rsqrt(var2 + _EPS)
    b2 = be2 - mean2 * s2

    # conv2 (3x3, stride=1, pad=1) with fused bn2+relu and fused residual add.
    (out,) = conv_block(y1, s2, b2, w2, K=3, stride=1, pad=1, add=shortcut)

    # Drop channel padding, back to NCHW (glue at the module boundary).
    out = out[..., :Cout]
    return jnp.transpose(out, (0, 3, 1, 2))


# ------------------------------- pure-JAX ref ---------------------------------


def _ref_forward(x_nchw, params, stride=1):
    x = jnp.transpose(x_nchw, (0, 2, 3, 1))
    Cin = x.shape[-1]
    Cout = params["w1"].shape[-1]

    def bn(v, g, b):
        m = jnp.mean(v, axis=(0, 1, 2))
        var = jnp.var(v, axis=(0, 1, 2))
        return (v - m) / jnp.sqrt(var + _EPS) * g + b

    def conv(v, w, s, pad):
        return jax.lax.conv_general_dilated(
            v, w, (s, s), [(pad, pad), (pad, pad)],
            dimension_numbers=("NHWC", "HWIO", "NHWC"),
            precision=jax.lax.Precision.HIGHEST)

    a = jax.nn.relu(bn(x, params["gamma1"], params["beta1"]))
    sc = conv(a, params["wsc"], stride, 0) if (stride != 1 or Cin != Cout) else x
    y1 = conv(a, params["w1"], stride, 1)
    z = jax.nn.relu(bn(y1, params["gamma2"], params["beta2"]))
    out = conv(z, params["w2"], 1, 1) + sc
    return jnp.transpose(out, (0, 3, 1, 2))


# ------------------------------------ main ------------------------------------

if __name__ == "__main__":
    master = jax.random.PRNGKey(0)
    keys = jax.random.split(master, 16)

    def make_params(ks, cin, cout):
        return {
            "w1": 0.1 * jax.random.normal(ks[0], (3, 3, cin, cout), jnp.float32),
            "w2": 0.1 * jax.random.normal(ks[1], (3, 3, cout, cout), jnp.float32),
            "wsc": 0.1 * jax.random.normal(ks[2], (1, 1, cin, cout), jnp.float32),
            "gamma1": 1.0 + 0.1 * jax.random.normal(ks[3], (cin,), jnp.float32),
            "beta1": 0.1 * jax.random.normal(ks[4], (cin,), jnp.float32),
            "gamma2": 1.0 + 0.1 * jax.random.normal(ks[5], (cout,), jnp.float32),
            "beta2": 0.1 * jax.random.normal(ks[6], (cout,), jnp.float32),
        }

    # Config 1: channel-expanding block -> exercises the fused 1x1 shortcut conv.
    N, Cin, H, W, Cout, stride = 2, 4, 16, 16, 8, 1
    x = jax.random.normal(keys[0], (N, Cin, H, W), jnp.float32)
    params = make_params(keys[1:8], Cin, Cout)
    out = jax.block_until_ready(preact_block_forward(x, params, stride=stride))
    ref = jax.block_until_ready(_ref_forward(x, params, stride=stride))
    assert out.shape == (N, Cout, H // stride, W // stride), out.shape
    assert jnp.allclose(out, ref, atol=2e-4, rtol=2e-4), float(
        jnp.max(jnp.abs(out - ref)))

    # Config 2: identity-shortcut block (Cin == Cout, stride 1).
    x2 = jax.random.normal(keys[8], (2, 8, 16, 16), jnp.float32)
    params2 = make_params(keys[9:16], 8, 8)
    out2 = jax.block_until_ready(preact_block_forward(x2, params2, stride=1))
    ref2 = jax.block_until_ready(_ref_forward(x2, params2, stride=1))
    assert out2.shape == (2, 8, 16, 16), out2.shape
    assert jnp.allclose(out2, ref2, atol=2e-4, rtol=2e-4), float(
        jnp.max(jnp.abs(out2 - ref2)))

    print("KERNEL_OK")
</pallas_src>

<mosaic_0001>
module attributes {stable_mosaic.version = 11 : i64} {
  func.func @_bn_stats_kernel(%arg0: i32, %arg1: memref<1x16x16x4xf32, #tpu.memory_space<vmem>>, %arg2: memref<1x4xf32, #tpu.memory_space<vmem>>, %arg3: memref<1x4xf32, #tpu.memory_space<vmem>>) attributes {dimension_semantics = [#tpu.dimension_semantics<arbitrary>], iteration_bounds = array<i64: 2>, scalar_prefetch = 0 : i64, scratch_operands = 0 : i64, tpu.core_type = #tpu.core_type<tc>, window_params = [{transform_indices = @transform_0, window_bounds = array<i64: 1, 16, 16, 4>}, {pipeline_mode = #tpu.pipeline_mode<synchronous>, transform_indices = @transform_1, window_bounds = array<i64: 1, 4>}, {pipeline_mode = #tpu.pipeline_mode<synchronous>, transform_indices = @transform_2, window_bounds = array<i64: 1, 4>}]} {
    %c0_i32 = arith.constant 0 : i32
    %0 = arith.cmpi eq, %arg0, %c0_i32 : i32
    %1 = arith.extui %0 : i1 to i32
    %c0_i32_0 = arith.constant 0 : i32
    %2 = arith.cmpi ne, %1, %c0_i32_0 : i32
    scf.if %2 {
      %cst_13 = arith.constant 0.000000e+00 : f32
      %16 = vector.broadcast %cst_13 : f32 to vector<1x4xf32>
      %c0_14 = arith.constant 0 : index
      %c0_15 = arith.constant 0 : index
      %17 = vector.load %arg2[%c0_14, %c0_15] : memref<1x4xf32, #tpu.memory_space<vmem>>, vector<1x4xf32>
      tpu.vector_store %arg2[%c0_14, %c0_15], %16 {strides = array<i32>} : memref<1x4xf32, #tpu.memory_space<vmem>>, vector<1x4xf32>,
      %cst_16 = arith.constant 0.000000e+00 : f32
      %18 = vector.broadcast %cst_16 : f32 to vector<1x4xf32>
      %c0_17 = arith.constant 0 : index
      %c0_18 = arith.constant 0 : index
      %19 = vector.load %arg3[%c0_17, %c0_18] : memref<1x4xf32, #tpu.memory_space<vmem>>, vector<1x4xf32>
      tpu.vector_store %arg3[%c0_17, %c0_18], %18 {strides = array<i32>} : memref<1x4xf32, #tpu.memory_space<vmem>>, vector<1x4xf32>,
    } else {
    }
    %c0 = arith.constant 0 : index
    %c0_1 = arith.constant 0 : index
    %c0_2 = arith.constant 0 : index
    %c0_3 = arith.constant 0 : index
    %3 = vector.load %arg1[%c0, %c0_1, %c0_2, %c0_3] : memref<1x16x16x4xf32, #tpu.memory_space<vmem>>, vector<1x16x16x4xf32>
    %4 = vector.shape_cast %3 : vector<1x16x16x4xf32> to vector<16x16x4xf32>
    %c0_4 = arith.constant 0 : index
    %c0_5 = arith.constant 0 : index
    %5 = vector.load %arg2[%c0_4, %c0_5] : memref<1x4xf32, #tpu.memory_space<vmem>>, vector<1x4xf32>
    %cst = arith.constant dense<0.000000e+00> : vector<4xf32>
    %6 = vector.multi_reduction <add>, %4, %cst [0, 1] : vector<16x16x4xf32> to vector<4xf32>
    %7 = vector.shape_cast %6 : vector<4xf32> to vector<1x4xf32>
    %8 = arith.addf %5, %7 : vector<1x4xf32>
    %c0_6 = arith.constant 0 : index
    %c0_7 = arith.constant 0 : index
    %9 = vector.load %arg2[%c0_6, %c0_7] : memref<1x4xf32, #tpu.memory_space<vmem>>, vector<1x4xf32>
    tpu.vector_store %arg2[%c0_6, %c0_7], %8 {strides = array<i32>} : memref<1x4xf32, #tpu.memory_space<vmem>>, vector<1x4xf32>,
    %c0_8 = arith.constant 0 : index
    %c0_9 = arith.constant 0 : index
    %10 = vector.load %arg3[%c0_8, %c0_9] : memref<1x4xf32, #tpu.memory_space<vmem>>, vector<1x4xf32>
    %11 = arith.mulf %4, %4 : vector<16x16x4xf32>
    %cst_10 = arith.constant dense<0.000000e+00> : vector<4xf32>
    %12 = vector.multi_reduction <add>, %11, %cst_10 [0, 1] : vector<16x16x4xf32> to vector<4xf32>
    %13 = vector.shape_cast %12 : vector<4xf32> to vector<1x4xf32>
    %14 = arith.addf %10, %13 : vector<1x4xf32>
    %c0_11 = arith.constant 0 : index
    %c0_12 = arith.constant 0 : index
    %15 = vector.load %arg3[%c0_11, %c0_12] : memref<1x4xf32, #tpu.memory_space<vmem>>, vector<1x4xf32>
    tpu.vector_store %arg3[%c0_11, %c0_12], %14 {strides = array<i32>} : memref<1x4xf32, #tpu.memory_space<vmem>>, vector<1x4xf32>,
    return
  }
  func.func @transform_0(%arg0: i32) -> (i32, i32, i32, i32) {
    %c0_i32 = arith.constant 0 : i32
    %c0_i32_0 = arith.constant 0 : i32
    %c0_i32_1 = arith.constant 0 : i32
    %c0_i32_2 = arith.constant 0 : i32
    return %arg0, %c0_i32, %c0_i32_0, %c0_i32_1 : i32, i32, i32, i32
  }
  func.func @transform_1(%arg0: i32) -> (i32, i32) {
    %c0_i32 = arith.constant 0 : i32
    %c0_i32_0 = arith.constant 0 : i32
    %c0_i32_1 = arith.constant 0 : i32
    return %c0_i32, %c0_i32_0 : i32, i32
  }
  func.func @transform_2(%arg0: i32) -> (i32, i32) {
    %c0_i32 = arith.constant 0 : i32
    %c0_i32_0 = arith.constant 0 : i32
    %c0_i32_1 = arith.constant 0 : i32
    return %c0_i32, %c0_i32_0 : i32, i32
  }
}

module attributes {stable_mosaic.version = 11 : i64} {
  func.func @kernel(%arg0: i32, %arg1: memref<1x16x16x4xf32, #tpu.memory_space<vmem>>, %arg2: memref<1x4xf32, #tpu.memory_space<vmem>>, %arg3: memref<1x4xf32, #tpu.memory_space<vmem>>, %arg4: memref<1152x128xf32, #tpu.memory_space<vmem>>, %arg5: memref<128x128xf32, #tpu.memory_space<vmem>>, %arg6: memref<1x16x16x128xf32, #tpu.memory_space<vmem>>, %arg7: memref<1x16x16x128xf32, #tpu.memory_space<vmem>>, %arg8: memref<18x18x128xf32, #tpu.memory_space<vmem>>, %arg9: memref<256x1152xf32, #tpu.memory_space<vmem>>) attributes {dimension_semantics = [#tpu.dimension_semantics<parallel>], iteration_bounds = array<i64: 2>, scalar_prefetch = 0 : i64, scratch_operands = 2 : i64, tpu.core_type = #tpu.core_type<tc>, window_params = [{transform_indices = @transform_0, window_bounds = array<i64: 1, 16, 16, 4>}, {pipeline_mode = #tpu.pipeline_mode<synchronous>, transform_indices = @transform_1, window_bounds = array<i64: 1, 4>}, {pipeline_mode = #tpu.pipeline_mode<synchronous>, transform_indices = @transform_2, window_bounds = array<i64: 1, 4>}, {pipeline_mode = #tpu.pipeline_mode<synchronous>, transform_indices = @transform_3, window_bounds = array<i64: 1152, 128>}, {pipeline_mode = #tpu.pipeline_mode<synchronous>, transform_indices = @transform_4, window_bounds = array<i64: 128, 128>}, {transform_indices = @transform_5, window_bounds = array<i64: 1, 16, 16, 128>}, {transform_indices = @transform_6, window_bounds = array<i64: 1, 16, 16, 128>}]} {
    %c0 = arith.constant 0 : index
    %c0_0 = arith.constant 0 : index
    %c0_1 = arith.constant 0 : index
    %c0_2 = arith.constant 0 : index
    %0 = vector.load %arg1[%c0, %c0_0, %c0_1, %c0_2] : memref<1x16x16x4xf32, #tpu.memory_space<vmem>>, vector<1x16x16x4xf32>
    %1 = vector.shape_cast %0 : vector<1x16x16x4xf32> to vector<16x16x4xf32>
    %c0_3 = arith.constant 0 : index
    %c0_4 = arith.constant 0 : index
    %2 = vector.load %arg2[%c0_3, %c0_4] : memref<1x4xf32, #tpu.memory_space<vmem>>, vector<1x4xf32>
    %3 = vector.shape_cast %2 : vector<1x4xf32> to vector<4xf32>
    %4 = vector.shape_cast %3 : vector<4xf32> to vector<1x1x4xf32>
    %5 = vector.broadcast %4 : vector<1x1x4xf32> to vector<16x16x4xf32>
    %6 = arith.mulf %1, %5 : vector<16x16x4xf32>
    %c0_5 = arith.constant 0 : index
    %c0_6 = arith.constant 0 : index
    %7 = vector.load %arg3[%c0_5, %c0_6] : memref<1x4xf32, #tpu.memory_space<vmem>>, vector<1x4xf32>
    %8 = vector.shape_cast %7 : vector<1x4xf32> to vector<4xf32>
    %9 = vector.shape_cast %8 : vector<4xf32> to vector<1x1x4xf32>
    %10 = vector.broadcast %9 : vector<1x1x4xf32> to vector<16x16x4xf32>
    %11 = arith.addf %6, %10 : vector<16x16x4xf32>
    %cst = arith.constant 0.000000e+00 : f32
    %12 = vector.broadcast %cst : f32 to vector<16x16x4xf32>
    %13 = arith.maximumf %11, %12 : vector<16x16x4xf32>
    %cst_7 = arith.constant 0.000000e+00 : f32
    %14 = vector.broadcast %cst_7 : f32 to vector<18x18x128xf32>
    %c0_8 = arith.constant 0 : index
    %c0_9 = arith.constant 0 : index
    %c0_10 = arith.constant 0 : index
    %15 = vector.load %arg8[%c0_8, %c0_9, %c0_10] : memref<18x18x128xf32, #tpu.memory_space<vmem>>, vector<18x18x128xf32>
    tpu.vector_store %arg8[%c0_8, %c0_9, %c0_10], %14 {strides = array<i32>} : memref<18x18x128xf32, #tpu.memory_space<vmem>>, vector<18x18x128xf32>,
    %c1 = arith.constant 1 : index
    %c1_11 = arith.constant 1 : index
    %c0_12 = arith.constant 0 : index
    %16 = vector.load %arg8[%c1, %c1_11, %c0_12] : memref<18x18x128xf32, #tpu.memory_space<vmem>>, vector<16x16x4xf32>
    tpu.vector_store %arg8[%c1, %c1_11, %c0_12], %13 {strides = array<i32>} : memref<18x18x128xf32, #tpu.memory_space<vmem>>, vector<16x16x4xf32>,
    %c0_13 = arith.constant 0 : index
    %c0_14 = arith.constant 0 : index
    %c0_15 = arith.constant 0 : index
    %17 = vector.load %arg8[%c0_13, %c0_14, %c0_15] : memref<18x18x128xf32, #tpu.memory_space<vmem>>, vector<16x16x128xf32>
    %18 = vector.shape_cast %17 : vector<16x16x128xf32> to vector<256x128xf32>
    %c0_16 = arith.constant 0 : index
    %c0_17 = arith.constant 0 : index
    %19 = vector.load %arg9[%c0_16, %c0_17] : memref<256x1152xf32, #tpu.memory_space<vmem>>, vector<256x128xf32>
    tpu.vector_store %arg9[%c0_16, %c0_17], %18 {strides = array<i32>} : memref<256x1152xf32, #tpu.memory_space<vmem>>, vector<256x128xf32>,
    %c0_18 = arith.constant 0 : index
    %c1_19 = arith.constant 1 : index
    %c0_20 = arith.constant 0 : index
    %20 = vector.load %arg8[%c0_18, %c1_19, %c0_20] : memref<18x18x128xf32, #tpu.memory_space<vmem>>, vector<16x16x128xf32>
    %21 = vector.shape_cast %20 : vector<16x16x128xf32> to vector<256x128xf32>
    %c0_21 = arith.constant 0 : index
    %c128 = arith.constant 128 : index
    %22 = vector.load %arg9[%c0_21, %c128] : memref<256x1152xf32, #tpu.memory_space<vmem>>, vector<256x128xf32>
    tpu.vector_store %arg9[%c0_21, %c128], %21 {strides = array<i32>} : memref<256x1152xf32, #tpu.memory_space<vmem>>, vector<256x128xf32>,
    %c0_22 = arith.constant 0 : index
    %c2 = arith.constant 2 : index
    %c0_23 = arith.constant 0 : index
    %23 = vector.load %arg8[%c0_22, %c2, %c0_23] : memref<18x18x128xf32, #tpu.memory_space<vmem>>, vector<16x16x128xf32>
    %24 = vector.shape_cast %23 : vector<16x16x128xf32> to vector<256x128xf32>
    %c0_24 = arith.constant 0 : index
    %c256 = arith.constant 256 : index
    %25 = vector.load %arg9[%c0_24, %c256] : memref<256x1152xf32, #tpu.memory_space<vmem>>, vector<256x128xf32>
    tpu.vector_store %arg9[%c0_24, %c256], %24 {strides = array<i32>} : memref<256x1152xf32, #tpu.memory_space<vmem>>, vector<256x128xf32>,
    %c1_25 = arith.constant 1 : index
    %c0_26 = arith.constant 0 : index
    %c0_27 = arith.constant 0 : index
    %26 = vector.load %arg8[%c1_25, %c0_26, %c0_27] : memref<18x18x128xf32, #tpu.memory_space<vmem>>, vector<16x16x128xf32>
    %27 = vector.shape_cast %26 : vector<16x16x128xf32> to vector<256x128xf32>
    %c0_28 = arith.constant 0 : index
    %c384 = arith.constant 384 : index
    %28 = vector.load %arg9[%c0_28, %c384] : memref<256x1152xf32, #tpu.memory_space<vmem>>, vector<256x128xf32>
    tpu.vector_store %arg9[%c0_28, %c384], %27 {strides = array<i32>} : memref<256x1152xf32, #tpu.memory_space<vmem>>, vector<256x128xf32>,
    %c1_29 = arith.constant 1 : index
    %c1_30 = arith.constant 1 : index
    %c0_31 = arith.constant 0 : index
    %29 = vector.load %arg8[%c1_29, %c1_30, %c0_31] : memref<18x18x128xf32, #tpu.memory_space<vmem>>, vector<16x16x128xf32>
    %30 = vector.shape_cast %29 : vector<16x16x128xf32> to vector<256x128xf32>
    %c0_32 = arith.constant 0 : index
    %c512 = arith.constant 512 : index
    %31 = vector.load %arg9[%c0_32, %c512] : memref<256x1152xf32, #tpu.memory_space<vmem>>, vector<256x128xf32>
    tpu.vector_store %arg9[%c0_32, %c512], %30 {strides = array<i32>} : memref<256x1152xf32, #tpu.memory_space<vmem>>, vector<256x128xf32>,
    %c1_33 = arith.constant 1 : index
    %c2_34 = arith.constant 2 : index
    %c0_35 = arith.constant 0 : index
    %32 = vector.load %arg8[%c1_33, %c2_34, %c0_35] : memref<18x18x128xf32, #tpu.memory_space<vmem>>, vector<16x16x128xf32>
    %33 = vector.shape_cast %32 : vector<16x16x128xf32> to vector<256x128xf32>
    %c0_36 = arith.constant 0 : index
    %c640 = arith.constant 640 : index
    %34 = vector.load %arg9[%c0_36, %c640] : memref<256x1152xf32, #tpu.memory_space<vmem>>, vector<256x128xf32>
    tpu.vector_store %arg9[%c0_36, %c640], %33 {strides = array<i32>} : memref<256x1152xf32, #tpu.memory_space<vmem>>, vector<256x128xf32>,
    %c2_37 = arith.constant 2 : index
    %c0_38 = arith.constant 0 : index
    %c0_39 = arith.constant 0 : index
    %35 = vector.load %arg8[%c2_37, %c0_38, %c0_39] : memref<18x18x128xf32, #tpu.memory_space<vmem>>, vector<16x16x128xf32>
    %36 = vector.shape_cast %35 : vector<16x16x128xf32> to vector<256x128xf32>
    %c0_40 = arith.constant 0 : index
    %c768 = arith.constant 768 : index
    %37 = vector.load %arg9[%c0_40, %c768] : memref<256x1152xf32, #tpu.memory_space<vmem>>, vector<256x128xf32>
    tpu.vector_store %arg9[%c0_40, %c768], %36 {strides = array<i32>} : memref<256x1152xf32, #tpu.memory_space<vmem>>, vector<256x128xf32>,
    %c2_41 = arith.constant 2 : index
    %c1_42 = arith.constant 1 : index
    %c0_43 = arith.constant 0 : index
    %38 = vector.load %arg8[%c2_41, %c1_42, %c0_43] : memref<18x18x128xf32, #tpu.memory_space<vmem>>, vector<16x16x128xf32>
    %39 = vector.shape_cast %38 : vector<16x16x128xf32> to vector<256x128xf32>
    %c0_44 = arith.constant 0 : index
    %c896 = arith.constant 896 : index
    %40 = vector.load %arg9[%c0_44, %c896] : memref<256x1152xf32, #tpu.memory_space<vmem>>, vector<256x128xf32>
    tpu.vector_store %arg9[%c0_44, %c896], %39 {strides = array<i32>} : memref<256x1152xf32, #tpu.memory_space<vmem>>, vector<256x128xf32>,
    %c2_45 = arith.constant 2 : index
    %c2_46 = arith.constant 2 : index
    %c0_47 = arith.constant 0 : index
    %41 = vector.load %arg8[%c2_45, %c2_46, %c0_47] : memref<18x18x128xf32, #tpu.memory_space<vmem>>, vector<16x16x128xf32>
    %42 = vector.shape_cast %41 : vector<16x16x128xf32> to vector<256x128xf32>
    %c0_48 = arith.constant 0 : index
    %c1024 = arith.constant 1024 : index
    %43 = vector.load %arg9[%c0_48, %c1024] : memref<256x1152xf32, #tpu.memory_space<vmem>>, vector<256x128xf32>
    tpu.vector_store %arg9[%c0_48, %c1024], %42 {strides = array<i32>} : memref<256x1152xf32, #tpu.memory_space<vmem>>, vector<256x128xf32>,
    %c0_49 = arith.constant 0 : index
    %c0_50 = arith.constant 0 : index
    %44 = vector.load %arg9[%c0_49, %c0_50] : memref<256x1152xf32, #tpu.memory_space<vmem>>, vector<256x1152xf32>
    %c0_51 = arith.constant 0 : index
    %c0_52 = arith.constant 0 : index
    %45 = vector.load %arg4[%c0_51, %c0_52] : memref<1152x128xf32, #tpu.memory_space<vmem>>, vector<1152x128xf32>
    %cst_53 = arith.constant dense<0.000000e+00> : vector<256x128xf32>
    %46 = tpu.matmul %44, %45, %cst_53 {dimension_numbers = #tpu.dot_dimension_numbers<[1], [0], [0], [1], [0, 0, 1, 1], [], []>} : vector<256x1152xf32>, vector<1152x128xf32>, vector<256x128xf32> -> vector<256x128xf32>
    %47 = vector.shape_cast %46 : vector<256x128xf32> to vector<16x16x128xf32>
    %c0_54 = arith.constant 0 : index
    %c0_55 = arith.constant 0 : index
    %c0_56 = arith.constant 0 : index
    %c0_57 = arith.constant 0 : index
    %48 = vector.load %arg6[%c0_54, %c0_55, %c0_56, %c0_57] : memref<1x16x16x128xf32, #tpu.memory_space<vmem>>, vector<1x16x16x128xf32>
    %49 = vector.shape_cast %48 : vector<1x16x16x128xf32> to vector<16x16x128xf32>
    %50 = vector.shape_cast %47 : vector<16x16x128xf32> to vector<1x16x16x128xf32>
    tpu.vector_store %arg6[%c0_54, %c0_55, %c0_56, %c0_57], %50 {strides = array<i32>} : memref<1x16x16x128xf32, #tpu.memory_space<vmem>>, vector<1x16x16x128xf32>,
    %c0_58 = arith.constant 0 : index
    %c512_59 = arith.constant 512 : index
    %51 = vector.load %arg9[%c0_58, %c512_59] : memref<256x1152xf32, #tpu.memory_space<vmem>>, vector<256x128xf32>
    %c0_60 = arith.constant 0 : index
    %c0_61 = arith.constant 0 : index
    %52 = vector.load %arg5[%c0_60, %c0_61] : memref<128x128xf32, #tpu.memory_space<vmem>>, vector<128x128xf32>
    %cst_62 = arith.constant dense<0.000000e+00> : vector<256x128xf32>
    %53 = tpu.matmul %51, %52, %cst_62 {dimension_numbers = #tpu.dot_dimension_numbers<[1], [0], [0], [1], [0, 0, 1, 1], [], []>} : vector<256x128xf32>, vector<128x128xf32>, vector<256x128xf32> -> vector<256x128xf32>
    %54 = vector.shape_cast %53 : vector<256x128xf32> to vector<16x16x128xf32>
    %c0_63 = arith.constant 0 : index
    %c0_64 = arith.constant 0 : index
    %c0_65 = arith.constant 0 : index
    %c0_66 = arith.constant 0 : index
    %55 = vector.load %arg7[%c0_63, %c0_64, %c0_65, %c0_66] : memref<1x16x16x128xf32, #tpu.memory_space<vmem>>, vector<1x16x16x128xf32>
    %56 = vector.shape_cast %55 : vector<1x16x16x128xf32> to vector<16x16x128xf32>
    %57 = vector.shape_cast %54 : vector<16x16x128xf32> to vector<1x16x16x128xf32>
    tpu.vector_store %arg7[%c0_63, %c0_64, %c0_65, %c0_66], %57 {strides = array<i32>} : memref<1x16x16x128xf32, #tpu.memory_space<vmem>>, vector<1x16x16x128xf32>,
    return
  }
  func.func @transform_0(%arg0: i32) -> (i32, i32, i32, i32) {
    %c0_i32 = arith.constant 0 : i32
    %c0_i32_0 = arith.constant 0 : i32
    %c0_i32_1 = arith.constant 0 : i32
    %c0_i32_2 = arith.constant 0 : i32
    return %arg0, %c0_i32, %c0_i32_0, %c0_i32_1 : i32, i32, i32, i32
  }
  func.func @transform_1(%arg0: i32) -> (i32, i32) {
    %c0_i32 = arith.constant 0 : i32
    %c0_i32_0 = arith.constant 0 : i32
    %c0_i32_1 = arith.constant 0 : i32
    return %c0_i32, %c0_i32_0 : i32, i32
  }
  func.func @transform_2(%arg0: i32) -> (i32, i32) {
    %c0_i32 = arith.constant 0 : i32
    %c0_i32_0 = arith.constant 0 : i32
    %c0_i32_1 = arith.constant 0 : i32
    return %c0_i32, %c0_i32_0 : i32, i32
  }
  func.func @transform_3(%arg0: i32) -> (i32, i32) {
    %c0_i32 = arith.constant 0 : i32
    %c0_i32_0 = arith.constant 0 : i32
    %c0_i32_1 = arith.constant 0 : i32
    return %c0_i32, %c0_i32_0 : i32, i32
  }
  func.func @transform_4(%arg0: i32) -> (i32, i32) {
    %c0_i32 = arith.constant 0 : i32
    %c0_i32_0 = arith.constant 0 : i32
    %c0_i32_1 = arith.constant 0 : i32
    return %c0_i32, %c0_i32_0 : i32, i32
  }
  func.func @transform_5(%arg0: i32) -> (i32, i32, i32, i32) {
    %c0_i32 = arith.constant 0 : i32
    %c0_i32_0 = arith.constant 0 : i32
    %c0_i32_1 = arith.constant 0 : i32
    %c0_i32_2 = arith.constant 0 : i32
    return %arg0, %c0_i32, %c0_i32_0, %c0_i32_1 : i32, i32, i32, i32
  }
  func.func @transform_6(%arg0: i32) -> (i32, i32, i32, i32) {
    %c0_i32 = arith.constant 0 : i32
    %c0_i32_0 = arith.constant 0 : i32
    %c0_i32_1 = arith.constant 0 : i32
    %c0_i32_2 = arith.constant 0 : i32
    return %arg0, %c0_i32, %c0_i32_0, %c0_i32_1 : i32, i32, i32, i32
  }
}

module attributes {stable_mosaic.version = 11 : i64} {
  func.func @_bn_stats_kernel(%arg0: i32, %arg1: memref<1x16x16x128xf32, #tpu.memory_space<vmem>>, %arg2: memref<1x128xf32, #tpu.memory_space<vmem>>, %arg3: memref<1x128xf32, #tpu.memory_space<vmem>>) attributes {dimension_semantics = [#tpu.dimension_semantics<arbitrary>], iteration_bounds = array<i64: 2>, scalar_prefetch = 0 : i64, scratch_operands = 0 : i64, tpu.core_type = #tpu.core_type<tc>, window_params = [{transform_indices = @transform_0, window_bounds = array<i64: 1, 16, 16, 128>}, {pipeline_mode = #tpu.pipeline_mode<synchronous>, transform_indices = @transform_1, window_bounds = array<i64: 1, 128>}, {pipeline_mode = #tpu.pipeline_mode<synchronous>, transform_indices = @transform_2, window_bounds = array<i64: 1, 128>}]} {
    %c0_i32 = arith.constant 0 : i32
    %0 = arith.cmpi eq, %arg0, %c0_i32 : i32
    %1 = arith.extui %0 : i1 to i32
    %c0_i32_0 = arith.constant 0 : i32
    %2 = arith.cmpi ne, %1, %c0_i32_0 : i32
    scf.if %2 {
      %cst_13 = arith.constant 0.000000e+00 : f32
      %16 = vector.broadcast %cst_13 : f32 to vector<1x128xf32>
      %c0_14 = arith.constant 0 : index
      %c0_15 = arith.constant 0 : index
      %17 = vector.load %arg2[%c0_14, %c0_15] : memref<1x128xf32, #tpu.memory_space<vmem>>, vector<1x128xf32>
      tpu.vector_store %arg2[%c0_14, %c0_15], %16 {strides = array<i32>} : memref<1x128xf32, #tpu.memory_space<vmem>>, vector<1x128xf32>,
      %cst_16 = arith.constant 0.000000e+00 : f32
      %18 = vector.broadcast %cst_16 : f32 to vector<1x128xf32>
      %c0_17 = arith.constant 0 : index
      %c0_18 = arith.constant 0 : index
      %19 = vector.load %arg3[%c0_17, %c0_18] : memref<1x128xf32, #tpu.memory_space<vmem>>, vector<1x128xf32>
      tpu.vector_store %arg3[%c0_17, %c0_18], %18 {strides = array<i32>} : memref<1x128xf32, #tpu.memory_space<vmem>>, vector<1x128xf32>,
    } else {
    }
    %c0 = arith.constant 0 : index
    %c0_1 = arith.constant 0 : index
    %c0_2 = arith.constant 0 : index
    %c0_3 = arith.constant 0 : index
    %3 = vector.load %arg1[%c0, %c0_1, %c0_2, %c0_3] : memref<1x16x16x128xf32, #tpu.memory_space<vmem>>, vector<1x16x16x128xf32>
    %4 = vector.shape_cast %3 : vector<1x16x16x128xf32> to vector<16x16x128xf32>
    %c0_4 = arith.constant 0 : index
    %c0_5 = arith.constant 0 : index
    %5 = vector.load %arg2[%c0_4, %c0_5] : memref<1x128xf32, #tpu.memory_space<vmem>>, vector<1x128xf32>
    %cst = arith.constant dense<0.000000e+00> : vector<128xf32>
    %6 = vector.multi_reduction <add>, %4, %cst [0, 1] : vector<16x16x128xf32> to vector<128xf32>
    %7 = vector.shape_cast %6 : vector<128xf32> to vector<1x128xf32>
    %8 = arith.addf %5, %7 : vector<1x128xf32>
    %c0_6 = arith.constant 0 : index
    %c0_7 = arith.constant 0 : index
    %9 = vector.load %arg2[%c0_6, %c0_7] : memref<1x128xf32, #tpu.memory_space<vmem>>, vector<1x128xf32>
    tpu.vector_store %arg2[%c0_6, %c0_7], %8 {strides = array<i32>} : memref<1x128xf32, #tpu.memory_space<vmem>>, vector<1x128xf32>,
    %c0_8 = arith.constant 0 : index
    %c0_9 = arith.constant 0 : index
    %10 = vector.load %arg3[%c0_8, %c0_9] : memref<1x128xf32, #tpu.memory_space<vmem>>, vector<1x128xf32>
    %11 = arith.mulf %4, %4 : vector<16x16x128xf32>
    %cst_10 = arith.constant dense<0.000000e+00> : vector<128xf32>
    %12 = vector.multi_reduction <add>, %11, %cst_10 [0, 1] : vector<16x16x128xf32> to vector<128xf32>
    %13 = vector.shape_cast %12 : vector<128xf32> to vector<1x128xf32>
    %14 = arith.addf %10, %13 : vector<1x128xf32>
    %c0_11 = arith.constant 0 : index
    %c0_12 = arith.constant 0 : index
    %15 = vector.load %arg3[%c0_11, %c0_12] : memref<1x128xf32, #tpu.memory_space<vmem>>, vector<1x128xf32>
    tpu.vector_store %arg3[%c0_11, %c0_12], %14 {strides = array<i32>} : memref<1x128xf32, #tpu.memory_space<vmem>>, vector<1x128xf32>,
    return
  }
  func.func @transform_0(%arg0: i32) -> (i32, i32, i32, i32) {
    %c0_i32 = arith.constant 0 : i32
    %c0_i32_0 = arith.constant 0 : i32
    %c0_i32_1 = arith.constant 0 : i32
    %c0_i32_2 = arith.constant 0 : i32
    return %arg0, %c0_i32, %c0_i32_0, %c0_i32_1 : i32, i32, i32, i32
  }
  func.func @transform_1(%arg0: i32) -> (i32, i32) {
    %c0_i32 = arith.constant 0 : i32
    %c0_i32_0 = arith.constant 0 : i32
    %c0_i32_1 = arith.constant 0 : i32
    return %c0_i32, %c0_i32_0 : i32, i32
  }
  func.func @transform_2(%arg0: i32) -> (i32, i32) {
    %c0_i32 = arith.constant 0 : i32
    %c0_i32_0 = arith.constant 0 : i32
    %c0_i32_1 = arith.constant 0 : i32
    return %c0_i32, %c0_i32_0 : i32, i32
  }
}

module attributes {stable_mosaic.version = 11 : i64} {
  func.func @kernel(%arg0: i32, %arg1: memref<1x16x16x128xf32, #tpu.memory_space<vmem>>, %arg2: memref<1x128xf32, #tpu.memory_space<vmem>>, %arg3: memref<1x128xf32, #tpu.memory_space<vmem>>, %arg4: memref<1152x128xf32, #tpu.memory_space<vmem>>, %arg5: memref<1x16x16x128xf32, #tpu.memory_space<vmem>>, %arg6: memref<1x16x16x128xf32, #tpu.memory_space<vmem>>, %arg7: memref<18x18x128xf32, #tpu.memory_space<vmem>>, %arg8: memref<256x1152xf32, #tpu.memory_space<vmem>>) attributes {dimension_semantics = [#tpu.dimension_semantics<parallel>], iteration_bounds = array<i64: 2>, scalar_prefetch = 0 : i64, scratch_operands = 2 : i64, tpu.core_type = #tpu.core_type<tc>, window_params = [{transform_indices = @transform_0, window_bounds = array<i64: 1, 16, 16, 128>}, {pipeline_mode = #tpu.pipeline_mode<synchronous>, transform_indices = @transform_1, window_bounds = array<i64: 1, 128>}, {pipeline_mode = #tpu.pipeline_mode<synchronous>, transform_indices = @transform_2, window_bounds = array<i64: 1, 128>}, {pipeline_mode = #tpu.pipeline_mode<synchronous>, transform_indices = @transform_3, window_bounds = array<i64: 1152, 128>}, {transform_indices = @transform_4, window_bounds = array<i64: 1, 16, 16, 128>}, {transform_indices = @transform_5, window_bounds = array<i64: 1, 16, 16, 128>}]} {
    %c0 = arith.constant 0 : index
    %c0_0 = arith.constant 0 : index
    %c0_1 = arith.constant 0 : index
    %c0_2 = arith.constant 0 : index
    %0 = vector.load %arg1[%c0, %c0_0, %c0_1, %c0_2] : memref<1x16x16x128xf32, #tpu.memory_space<vmem>>, vector<1x16x16x128xf32>
    %1 = vector.shape_cast %0 : vector<1x16x16x128xf32> to vector<16x16x128xf32>
    %c0_3 = arith.constant 0 : index
    %c0_4 = arith.constant 0 : index
    %2 = vector.load %arg2[%c0_3, %c0_4] : memref<1x128xf32, #tpu.memory_space<vmem>>, vector<1x128xf32>
    %3 = vector.shape_cast %2 : vector<1x128xf32> to vector<128xf32>
    %4 = vector.shape_cast %3 : vector<128xf32> to vector<1x1x128xf32>
    %5 = vector.broadcast %4 : vector<1x1x128xf32> to vector<16x16x128xf32>
    %6 = arith.mulf %1, %5 : vector<16x16x128xf32>
    %c0_5 = arith.constant 0 : index
    %c0_6 = arith.constant 0 : index
    %7 = vector.load %arg3[%c0_5, %c0_6] : memref<1x128xf32, #tpu.memory_space<vmem>>, vector<1x128xf32>
    %8 = vector.shape_cast %7 : vector<1x128xf32> to vector<128xf32>
    %9 = vector.shape_cast %8 : vector<128xf32> to vector<1x1x128xf32>
    %10 = vector.broadcast %9 : vector<1x1x128xf32> to vector<16x16x128xf32>
    %11 = arith.addf %6, %10 : vector<16x16x128xf32>
    %cst = arith.constant 0.000000e+00 : f32
    %12 = vector.broadcast %cst : f32 to vector<16x16x128xf32>
    %13 = arith.maximumf %11, %12 : vector<16x16x128xf32>
    %cst_7 = arith.constant 0.000000e+00 : f32
    %14 = vector.broadcast %cst_7 : f32 to vector<18x18x128xf32>
    %c0_8 = arith.constant 0 : index
    %c0_9 = arith.constant 0 : index
    %c0_10 = arith.constant 0 : index
    %15 = vector.load %arg7[%c0_8, %c0_9, %c0_10] : memref<18x18x128xf32, #tpu.memory_space<vmem>>, vector<18x18x128xf32>
    tpu.vector_store %arg7[%c0_8, %c0_9, %c0_10], %14 {strides = array<i32>} : memref<18x18x128xf32, #tpu.memory_space<vmem>>, vector<18x18x128xf32>,
    %c1 = arith.constant 1 : index
    %c1_11 = arith.constant 1 : index
    %c0_12 = arith.constant 0 : index
    %16 = vector.load %arg7[%c1, %c1_11, %c0_12] : memref<18x18x128xf32, #tpu.memory_space<vmem>>, vector<16x16x128xf32>
    tpu.vector_store %arg7[%c1, %c1_11, %c0_12], %13 {strides = array<i32>} : memref<18x18x128xf32, #tpu.memory_space<vmem>>, vector<16x16x128xf32>,
    %c0_13 = arith.constant 0 : index
    %c0_14 = arith.constant 0 : index
    %c0_15 = arith.constant 0 : index
    %17 = vector.load %arg7[%c0_13, %c0_14, %c0_15] : memref<18x18x128xf32, #tpu.memory_space<vmem>>, vector<16x16x128xf32>
    %18 = vector.shape_cast %17 : vector<16x16x128xf32> to vector<256x128xf32>
    %c0_16 = arith.constant 0 : index
    %c0_17 = arith.constant 0 : index
    %19 = vector.load %arg8[%c0_16, %c0_17] : memref<256x1152xf32, #tpu.memory_space<vmem>>, vector<256x128xf32>
    tpu.vector_store %arg8[%c0_16, %c0_17], %18 {strides = array<i32>} : memref<256x1152xf32, #tpu.memory_space<vmem>>, vector<256x128xf32>,
    %c0_18 = arith.constant 0 : index
    %c1_19 = arith.constant 1 : index
    %c0_20 = arith.constant 0 : index
    %20 = vector.load %arg7[%c0_18, %c1_19, %c0_20] : memref<18x18x128xf32, #tpu.memory_space<vmem>>, vector<16x16x128xf32>
    %21 = vector.shape_cast %20 : vector<16x16x128xf32> to vector<256x128xf32>
    %c0_21 = arith.constant 0 : index
    %c128 = arith.constant 128 : index
    %22 = vector.load %arg8[%c0_21, %c128] : memref<256x1152xf32, #tpu.memory_space<vmem>>, vector<256x128xf32>
    tpu.vector_store %arg8[%c0_21, %c128], %21 {strides = array<i32>} : memref<256x1152xf32, #tpu.memory_space<vmem>>, vector<256x128xf32>,
    %c0_22 = arith.constant 0 : index
    %c2 = arith.constant 2 : index
    %c0_23 = arith.constant 0 : index
    %23 = vector.load %arg7[%c0_22, %c2, %c0_23] : memref<18x18x128xf32, #tpu.memory_space<vmem>>, vector<16x16x128xf32>
    %24 = vector.shape_cast %23 : vector<16x16x128xf32> to vector<256x128xf32>
    %c0_24 = arith.constant 0 : index
    %c256 = arith.constant 256 : index
    %25 = vector.load %arg8[%c0_24, %c256] : memref<256x1152xf32, #tpu.memory_space<vmem>>, vector<256x128xf32>
    tpu.vector_store %arg8[%c0_24, %c256], %24 {strides = array<i32>} : memref<256x1152xf32, #tpu.memory_space<vmem>>, vector<256x128xf32>,
    %c1_25 = arith.constant 1 : index
    %c0_26 = arith.constant 0 : index
    %c0_27 = arith.constant 0 : index
    %26 = vector.load %arg7[%c1_25, %c0_26, %c0_27] : memref<18x18x128xf32, #tpu.memory_space<vmem>>, vector<16x16x128xf32>
    %27 = vector.shape_cast %26 : vector<16x16x128xf32> to vector<256x128xf32>
    %c0_28 = arith.constant 0 : index
    %c384 = arith.constant 384 : index
    %28 = vector.load %arg8[%c0_28, %c384] : memref<256x1152xf32, #tpu.memory_space<vmem>>, vector<256x128xf32>
    tpu.vector_store %arg8[%c0_28, %c384], %27 {strides = array<i32>} : memref<256x1152xf32, #tpu.memory_space<vmem>>, vector<256x128xf32>,
    %c1_29 = arith.constant 1 : index
    %c1_30 = arith.constant 1 : index
    %c0_31 = arith.constant 0 : index
    %29 = vector.load %arg7[%c1_29, %c1_30, %c0_31] : memref<18x18x128xf32, #tpu.memory_space<vmem>>, vector<16x16x128xf32>
    %30 = vector.shape_cast %29 : vector<16x16x128xf32> to vector<256x128xf32>
    %c0_32 = arith.constant 0 : index
    %c512 = arith.constant 512 : index
    %31 = vector.load %arg8[%c0_32, %c512] : memref<256x1152xf32, #tpu.memory_space<vmem>>, vector<256x128xf32>
    tpu.vector_store %arg8[%c0_32, %c512], %30 {strides = array<i32>} : memref<256x1152xf32, #tpu.memory_space<vmem>>, vector<256x128xf32>,
    %c1_33 = arith.constant 1 : index
    %c2_34 = arith.constant 2 : index
    %c0_35 = arith.constant 0 : index
    %32 = vector.load %arg7[%c1_33, %c2_34, %c0_35] : memref<18x18x128xf32, #tpu.memory_space<vmem>>, vector<16x16x128xf32>
    %33 = vector.shape_cast %32 : vector<16x16x128xf32> to vector<256x128xf32>
    %c0_36 = arith.constant 0 : index
    %c640 = arith.constant 640 : index
    %34 = vector.load %arg8[%c0_36, %c640] : memref<256x1152xf32, #tpu.memory_space<vmem>>, vector<256x128xf32>
    tpu.vector_store %arg8[%c0_36, %c640], %33 {strides = array<i32>} : memref<256x1152xf32, #tpu.memory_space<vmem>>, vector<256x128xf32>,
    %c2_37 = arith.constant 2 : index
    %c0_38 = arith.constant 0 : index
    %c0_39 = arith.constant 0 : index
    %35 = vector.load %arg7[%c2_37, %c0_38, %c0_39] : memref<18x18x128xf32, #tpu.memory_space<vmem>>, vector<16x16x128xf32>
    %36 = vector.shape_cast %35 : vector<16x16x128xf32> to vector<256x128xf32>
    %c0_40 = arith.constant 0 : index
    %c768 = arith.constant 768 : index
    %37 = vector.load %arg8[%c0_40, %c768] : memref<256x1152xf32, #tpu.memory_space<vmem>>, vector<256x128xf32>
    tpu.vector_store %arg8[%c0_40, %c768], %36 {strides = array<i32>} : memref<256x1152xf32, #tpu.memory_space<vmem>>, vector<256x128xf32>,
    %c2_41 = arith.constant 2 : index
    %c1_42 = arith.constant 1 : index
    %c0_43 = arith.constant 0 : index
    %38 = vector.load %arg7[%c2_41, %c1_42, %c0_43] : memref<18x18x128xf32, #tpu.memory_space<vmem>>, vector<16x16x128xf32>
    %39 = vector.shape_cast %38 : vector<16x16x128xf32> to vector<256x128xf32>
    %c0_44 = arith.constant 0 : index
    %c896 = arith.constant 896 : index
    %40 = vector.load %arg8[%c0_44, %c896] : memref<256x1152xf32, #tpu.memory_space<vmem>>, vector<256x128xf32>
    tpu.vector_store %arg8[%c0_44, %c896], %39 {strides = array<i32>} : memref<256x1152xf32, #tpu.memory_space<vmem>>, vector<256x128xf32>,
    %c2_45 = arith.constant 2 : index
    %c2_46 = arith.constant 2 : index
    %c0_47 = arith.constant 0 : index
    %41 = vector.load %arg7[%c2_45, %c2_46, %c0_47] : memref<18x18x128xf32, #tpu.memory_space<vmem>>, vector<16x16x128xf32>
    %42 = vector.shape_cast %41 : vector<16x16x128xf32> to vector<256x128xf32>
    %c0_48 = arith.constant 0 : index
    %c1024 = arith.constant 1024 : index
    %43 = vector.load %arg8[%c0_48, %c1024] : memref<256x1152xf32, #tpu.memory_space<vmem>>, vector<256x128xf32>
    tpu.vector_store %arg8[%c0_48, %c1024], %42 {strides = array<i32>} : memref<256x1152xf32, #tpu.memory_space<vmem>>, vector<256x128xf32>,
    %c0_49 = arith.constant 0 : index
    %c0_50 = arith.constant 0 : index
    %44 = vector.load %arg8[%c0_49, %c0_50] : memref<256x1152xf32, #tpu.memory_space<vmem>>, vector<256x1152xf32>
    %c0_51 = arith.constant 0 : index
    %c0_52 = arith.constant 0 : index
    %45 = vector.load %arg4[%c0_51, %c0_52] : memref<1152x128xf32, #tpu.memory_space<vmem>>, vector<1152x128xf32>
    %cst_53 = arith.constant dense<0.000000e+00> : vector<256x128xf32>
    %46 = tpu.matmul %44, %45, %cst_53 {dimension_numbers = #tpu.dot_dimension_numbers<[1], [0], [0], [1], [0, 0, 1, 1], [], []>} : vector<256x1152xf32>, vector<1152x128xf32>, vector<256x128xf32> -> vector<256x128xf32>
    %47 = vector.shape_cast %46 : vector<256x128xf32> to vector<16x16x128xf32>
    %c0_54 = arith.constant 0 : index
    %c0_55 = arith.constant 0 : index
    %c0_56 = arith.constant 0 : index
    %c0_57 = arith.constant 0 : index
    %48 = vector.load %arg5[%c0_54, %c0_55, %c0_56, %c0_57] : memref<1x16x16x128xf32, #tpu.memory_space<vmem>>, vector<1x16x16x128xf32>
    %49 = vector.shape_cast %48 : vector<1x16x16x128xf32> to vector<16x16x128xf32>
    %50 = arith.addf %47, %49 : vector<16x16x128xf32>
    %c0_58 = arith.constant 0 : index
    %c0_59 = arith.constant 0 : index
    %c0_60 = arith.constant 0 : index
    %c0_61 = arith.constant 0 : index
    %51 = vector.load %arg6[%c0_58, %c0_59, %c0_60, %c0_61] : memref<1x16x16x128xf32, #tpu.memory_space<vmem>>, vector<1x16x16x128xf32>
    %52 = vector.shape_cast %51 : vector<1x16x16x128xf32> to vector<16x16x128xf32>
    %53 = vector.shape_cast %50 : vector<16x16x128xf32> to vector<1x16x16x128xf32>
    tpu.vector_store %arg6[%c0_58, %c0_59, %c0_60, %c0_61], %53 {strides = array<i32>} : memref<1x16x16x128xf32, #tpu.memory_space<vmem>>, vector<1x16x16x128xf32>,
    return
  }
  func.func @transform_0(%arg0: i32) -> (i32, i32, i32, i32) {
    %c0_i32 = arith.constant 0 : i32
    %c0_i32_0 = arith.constant 0 : i32
    %c0_i32_1 = arith.constant 0 : i32
    %c0_i32_2 = arith.constant 0 : i32
    return %arg0, %c0_i32, %c0_i32_0, %c0_i32_1 : i32, i32, i32, i32
  }
  func.func @transform_1(%arg0: i32) -> (i32, i32) {
    %c0_i32 = arith.constant 0 : i32
    %c0_i32_0 = arith.constant 0 : i32
    %c0_i32_1 = arith.constant 0 : i32
    return %c0_i32, %c0_i32_0 : i32, i32
  }
  func.func @transform_2(%arg0: i32) -> (i32, i32) {
    %c0_i32 = arith.constant 0 : i32
    %c0_i32_0 = arith.constant 0 : i32
    %c0_i32_1 = arith.constant 0 : i32
    return %c0_i32, %c0_i32_0 : i32, i32
  }
  func.func @transform_3(%arg0: i32) -> (i32, i32) {
    %c0_i32 = arith.constant 0 : i32
    %c0_i32_0 = arith.constant 0 : i32
    %c0_i32_1 = arith.constant 0 : i32
    return %c0_i32, %c0_i32_0 : i32, i32
  }
  func.func @transform_4(%arg0: i32) -> (i32, i32, i32, i32) {
    %c0_i32 = arith.constant 0 : i32
    %c0_i32_0 = arith.constant 0 : i32
    %c0_i32_1 = arith.constant 0 : i32
    %c0_i32_2 = arith.constant 0 : i32
    return %arg0, %c0_i32, %c0_i32_0, %c0_i32_1 : i32, i32, i32, i32
  }
  func.func @transform_5(%arg0: i32) -> (i32, i32, i32, i32) {
    %c0_i32 = arith.constant 0 : i32
    %c0_i32_0 = arith.constant 0 : i32
    %c0_i32_1 = arith.constant 0 : i32
    %c0_i32_2 = arith.constant 0 : i32
    return %arg0, %c0_i32, %c0_i32_0, %c0_i32_1 : i32, i32, i32, i32
  }
}

</mosaic_0001>

<bundles_post_ra>
// kernel: preact_block_forward.4
= control target key start
LH: loop header
LB: loop body
LE: loop exit
PB: predicated region body
PF: predicated region fallthrough
CT: control target
= control target key end

     0   :  { %s421_s9 = smov 0   ;;  %s551_s0 = inlined_call_operand.vmem [shape: f32[2,16,16,4], index: 0, kind: input, shape index: {}]   ;;  %s552_s1 = inlined_call_operand.vmem [shape: f32[1,4], index: 1, kind: output, shape index: {0}]   ;;  %s553_s2 = inlined_call_operand.vmem [shape: f32[1,4], index: 2, kind: output, shape index: {1}]  }
   0x1 LB: > { %s378_s10 = sadd.s32 4294967295, %s403_s9   ;;  %p381_p0 = scmp.ge.s32.totalorder %s403_s9, 1  ;;  %s403_s9 = sphi %s421_s9, %s13_s9  }
   0x2   : > { %p105_p1 = scmp.lt.s32.totalorder %s403_s9, 3 }
   0x4   : > { %p106_p2 = pnand %p381_p0, %p105_p1 }
   0x5   : > { %p122_p3 = scmp.lt.s32.totalorder (!%p106_p2), %s378_s10, 1  ;;  %p384_p4 = scmp.ne.s32.totalorder (!%p106_p2), %s378_s10, 0 }
   0x6   : > { %109 = sbr.rel (%p106_p2) target bundleno = 103 (0x67), region = 24 }
   0xb   : > { %s123_s11 = scalar_select %p122_p3, %s378_s10, 1 }
   0xc   : > { %130 = sbr.rel (%p384_p4) target bundleno = 20 (0x14), region = 28 }
   0xd   : > { %s387_s12 = sshll.u32 %s123_s11, 8 }
   0xe   : > { %s432_s15 = scalar_lea.vmem %s551_s0, %s387_s12 }
  0x11   : > { %vm131_vm0 = vcmask 24576   ;;  %v405_v0 = vmov 0.0  }
  0x12   : > { %132 = vst.msk [vmem:[%s552_s1] sm:$0x1] %vm131_vm0, %v405_v0 }
  0x13   : > { %133 = vst.msk [vmem:[%s553_s2] sm:$0x1] %vm131_vm0, %v405_v0 }
  0x14 PF: > { %v134_v1 = vld [vmem:[%s432_s15] sm:$0xff]  ;;  %v135_v2 = vld [vmem:[%s432_s15 + $0x8] sm:$0xff]  ;;  %v136_v3 = vld [vmem:[%s432_s15 + $0x10] sm:$0xff]  ;;  %vm167_vm1 = vcmask 31744   ;;  %vm238_vm2 = vcmask 24576  }
  0x15   : > { %v168_v4 = vsel %vm167_vm1, %v134_v1, 0.0  ;;  %v169_v5 = vsel %vm167_vm1, %v135_v2, 0.0  ;;  %v171_v6 = vsel %vm167_vm1, %v136_v3, 0.0  ;;  %v137_v7 = vld [vmem:[%s432_s15 + $0x18] sm:$0xff]  ;;  %v138_v10 = vld [vmem:[%s432_s15 + $0x20] sm:$0xff]  ;;  %v139_v13 = vld [vmem:[%s432_s15 + $0x28] sm:$0xff]  ;;  %v241_v21 = vmul.f32 %v134_v1, %v134_v1 }
  0x16   : > { %v170_v8 = vadd.f32 %v169_v5, %v168_v4  ;;  %v173_v9 = vsel %vm167_vm1, %v137_v7, 0.0  ;;  %v175_v12 = vsel %vm167_vm1, %v138_v10, 0.0  ;;  %v177_v15 = vsel %vm167_vm1, %v139_v13, 0.0  ;;  %v140_v16 = vld [vmem:[%s432_s15 + $0x30] sm:$0xff]  ;;  %v141_v19 = vld [vmem:[%s432_s15 + $0x38] sm:$0xff]  ;;  %v142_v25 = vld [vmem:[%s432_s15 + $0x40] sm:$0xff] }
  0x17   : > { %v179_v18 = vsel %vm167_vm1, %v140_v16, 0.0  ;;  %v181_v22 = vsel %vm167_vm1, %v141_v19, 0.0  ;;  %v242_v23 = vmul.f32 %v135_v2, %v135_v2  ;;  %v243_v24 = vmul.f32 %v136_v3, %v136_v3  ;;  %v143_v29 = vld [vmem:[%s432_s15 + $0x48] sm:$0xff]  ;;  %v144_v36 = vld [vmem:[%s432_s15 + $0x50] sm:$0xff]  ;;  %v145_v42 = vld [vmem:[%s432_s15 + $0x58] sm:$0xff] }
  0x18   : > { %v172_v11 = vadd.f32 %v171_v6, %v170_v8  ;;  %v183_v27 = vsel %vm167_vm1, %v142_v25, 0.0  ;;  %v244_v28 = vmul.f32 %v137_v7, %v137_v7  ;;  %v273_v31 = vsel %vm167_vm1, %v241_v21, 0.0  ;;  %v146_v48 = vld [vmem:[%s432_s15 + $0x60] sm:$0xff]  ;;  %v147_v54 = vld [vmem:[%s432_s15 + $0x68] sm:$0xff]  ;;  %v148_v60 = vld [vmem:[%s432_s15 + $0x70] sm:$0xff] }
  0x19   : > { %v185_v32 = vsel %vm167_vm1, %v143_v29, 0.0  ;;  %v245_v33 = vmul.f32 %v138_v10, %v138_v10  ;;  %v274_v34 = vsel %vm167_vm1, %v242_v23, 0.0  ;;  %v276_v35 = vsel %vm167_vm1, %v243_v24, 0.0  ;;  %v149_v2 = vld [vmem:[%s432_s15 + $0x78] sm:$0xff]  ;;  %v150_v8 = vld [vmem:[%s432_s15 + $0x80] sm:$0xff] }
  0x1a   : > { %v174_v14 = vadd.f32 %v173_v9, %v172_v11  ;;  %v275_v38 = vadd.f32 %v274_v34, %v273_v31  ;;  %v187_v39 = vsel %vm167_vm1, %v144_v36, 0.0  ;;  %v246_v40 = vmul.f32 %v139_v13, %v139_v13 }
  0x1b   : > { %v278_v41 = vsel %vm167_vm1, %v244_v28, 0.0  ;;  %v189_v45 = vsel %vm167_vm1, %v145_v42, 0.0  ;;  %v247_v46 = vmul.f32 %v140_v16, %v140_v16  ;;  %v280_v47 = vsel %vm167_vm1, %v245_v33, 0.0 }
  0x1c   : > { %v176_v17 = vadd.f32 %v175_v12, %v174_v14  ;;  %v277_v44 = vadd.f32 %v276_v35, %v275_v38  ;;  %v191_v51 = vsel %vm167_vm1, %v146_v48, 0.0  ;;  %v248_v52 = vmul.f32 %v141_v19, %v141_v19  ;;  %v151_v14 = vld [vmem:[%s432_s15 + $0x88] sm:$0xff] }
  0x1d   : > { %v282_v53 = vsel %vm167_vm1, %v246_v40, 0.0  ;;  %v193_v57 = vsel %vm167_vm1, %v147_v54, 0.0  ;;  %v249_v58 = vmul.f32 %v142_v25, %v142_v25  ;;  %v284_v59 = vsel %vm167_vm1, %v247_v46, 0.0  ;;  %v155_v38 = vld [vmem:[%s432_s15 + $0xa8] sm:$0xff] }
  0x1e   : > { %v178_v20 = vadd.f32 %v177_v15, %v176_v17  ;;  %v279_v50 = vadd.f32 %v278_v41, %v277_v44  ;;  %v195_v63 = vsel %vm167_vm1, %v148_v60, 0.0  ;;  %v250_v0 = vmul.f32 %v143_v29, %v143_v29  ;;  %v156_v44 = vld [vmem:[%s432_s15 + $0xb0] sm:$0xff] }
  0x1f   : > { %v286_v1 = vsel %vm167_vm1, %v248_v52, 0.0  ;;  %v197_v5 = vsel %vm167_vm1, %v149_v2, 0.0  ;;  %v251_v6 = vmul.f32 %v144_v36, %v144_v36  ;;  %v288_v7 = vsel %vm167_vm1, %v249_v58, 0.0 }
  0x20   : > { %v180_v26 = vadd.f32 %v179_v18, %v178_v20  ;;  %v281_v56 = vadd.f32 %v280_v47, %v279_v50  ;;  %v199_v11 = vsel %vm167_vm1, %v150_v8, 0.0  ;;  %v252_v12 = vmul.f32 %v145_v42, %v145_v42  ;;  %v152_v20 = vld [vmem:[%s432_s15 + $0x90] sm:$0xff]  ;;  %v157_v50 = vld [vmem:[%s432_s15 + $0xb8] sm:$0xff] }
  0x21   : > { %v290_v13 = vsel %vm167_vm1, %v250_v0, 0.0  ;;  %v201_v17 = vsel %vm167_vm1, %v151_v14, 0.0  ;;  %v253_v18 = vmul.f32 %v146_v48, %v146_v48  ;;  %v292_v19 = vsel %vm167_vm1, %v251_v6, 0.0 }
  0x22   : > { %v182_v30 = vadd.f32 %v181_v22, %v180_v26  ;;  %v283_v62 = vadd.f32 %v282_v53, %v281_v56  ;;  %v203_v23 = vsel %vm167_vm1, %v152_v20, 0.0  ;;  %v254_v24 = vmul.f32 %v147_v54, %v147_v54  ;;  %v153_v26 = vld [vmem:[%s432_s15 + $0x98] sm:$0xff]  ;;  %v158_v56 = vld [vmem:[%s432_s15 + $0xc0] sm:$0xff] }
  0x23   : > { %v294_v25 = vsel %vm167_vm1, %v252_v12, 0.0  ;;  %v205_v29 = vsel %vm167_vm1, %v153_v26, 0.0  ;;  %v296_v31 = vsel %vm167_vm1, %v253_v18, 0.0  ;;  %v256_v36 = vmul.f32 %v149_v2, %v149_v2 }
  0x24   : > { %v184_v37 = vadd.f32 %v183_v27, %v182_v30  ;;  %v285_v4 = vadd.f32 %v284_v59, %v283_v62  ;;  %v255_v30 = vmul.f32 %v148_v60, %v148_v60  ;;  %v209_v41 = vsel %vm167_vm1, %v155_v38, 0.0  ;;  %v159_v62 = vld [vmem:[%s432_s15 + $0xc8] sm:$0xff] }
  0x25   : > { %v257_v42 = vmul.f32 %v150_v8, %v150_v8  ;;  %v211_v47 = vsel %vm167_vm1, %v156_v44, 0.0  ;;  %v258_v48 = vmul.f32 %v151_v14, %v151_v14  ;;  %v213_v53 = vsel %vm167_vm1, %v157_v50, 0.0 }
  0x26   : > { %v186_v43 = vadd.f32 %v185_v32, %v184_v37  ;;  %v287_v10 = vadd.f32 %v286_v1, %v285_v4  ;;  %v154_v32 = vld [vmem:[%s432_s15 + $0xa0] sm:$0xff]  ;;  %v298_v37 = vsel %vm167_vm1, %v254_v24, 0.0  ;;  %v259_v54 = vmul.f32 %v152_v20, %v152_v20  ;;  %v160_v4 = vld [vmem:[%s432_s15 + $0xd0] sm:$0xff] }
  0x27   : > { %v207_v35 = vsel %vm167_vm1, %v154_v32, 0.0  ;;  %v215_v59 = vsel %vm167_vm1, %v158_v56, 0.0  ;;  %v260_v60 = vmul.f32 %v153_v26, %v153_v26  ;;  %v217_v1 = vsel %vm167_vm1, %v159_v62, 0.0 }
  0x28   : > { %v188_v49 = vadd.f32 %v187_v39, %v186_v43  ;;  %v289_v16 = vadd.f32 %v288_v7, %v287_v10  ;;  %v300_v43 = vsel %vm167_vm1, %v255_v30, 0.0  ;;  %v261_v2 = vmul.f32 %v154_v32, %v154_v32  ;;  %v161_v10 = vld [vmem:[%s432_s15 + $0xd8] sm:$0xff] }
  0x29   : > { %v219_v7 = vsel %vm167_vm1, %v160_v4, 0.0  ;;  %v262_v8 = vmul.f32 %v155_v38, %v155_v38  ;;  %v263_v14 = vmul.f32 %v156_v44, %v156_v44  ;;  %v264_v20 = vmul.f32 %v157_v50, %v157_v50 }
  0x2a   : > { %v190_v55 = vadd.f32 %v189_v45, %v188_v49  ;;  %v291_v22 = vadd.f32 %v290_v13, %v289_v16  ;;  %v302_v49 = vsel %vm167_vm1, %v256_v36, 0.0  ;;  %v221_v13 = vsel %vm167_vm1, %v161_v10, 0.0  ;;  %v162_v16 = vld [vmem:[%s432_s15 + $0xe0] sm:$0xff] }
  0x2b   : > { %v265_v26 = vmul.f32 %v158_v56, %v158_v56  ;;  %v266_v32 = vmul.f32 %v159_v62, %v159_v62  ;;  %v267_v38 = vmul.f32 %v160_v4, %v160_v4 }
  0x2c   : > { %v192_v61 = vadd.f32 %v191_v51, %v190_v55  ;;  %v293_v28 = vadd.f32 %v292_v19, %v291_v22  ;;  %v304_v55 = vsel %vm167_vm1, %v257_v42, 0.0  ;;  %v223_v19 = vsel %vm167_vm1, %v162_v16, 0.0  ;;  %v163_v22 = vld [vmem:[%s432_s15 + $0xe8] sm:$0xff] }
  0x2d   : > { %v268_v42 = vmul.f32 %v161_v10, %v161_v10  ;;  %v270_v50 = vmul.f32 %v163_v22, %v163_v22 }
  0x2e   : > { %v194_v3 = vadd.f32 %v193_v57, %v192_v61  ;;  %v295_v34 = vadd.f32 %v294_v25, %v293_v28  ;;  %v306_v61 = vsel %vm167_vm1, %v258_v48, 0.0  ;;  %v225_v25 = vsel %vm167_vm1, %v163_v22, 0.0  ;;  %v164_v28 = vld [vmem:[%s432_s15 + $0xf0] sm:$0xff] }
  0x30   : > { %v196_v9 = vadd.f32 %v195_v63, %v194_v3  ;;  %v297_v40 = vadd.f32 %v296_v31, %v295_v34  ;;  %v308_v3 = vsel %vm167_vm1, %v259_v54, 0.0  ;;  %v227_v31 = vsel %vm167_vm1, %v164_v28, 0.0  ;;  %v165_v34 = vld [vmem:[%s432_s15 + $0xf8] sm:$0xff] }
  0x31   : > { %v271_v54 = vmul.f32 %v164_v28, %v164_v28 }
  0x32   : > { %v198_v15 = vadd.f32 %v197_v5, %v196_v9  ;;  %v299_v46 = vadd.f32 %v298_v37, %v297_v40  ;;  %v310_v9 = vsel %vm167_vm1, %v260_v60, 0.0  ;;  %v229_v37 = vsel %vm167_vm1, %v165_v34, 0.0 }
  0x33   : > { %v332_v62 = vsel %vm167_vm1, %v271_v54, 0.0 }
  0x34   : > { %v200_v21 = vadd.f32 %v199_v11, %v198_v15  ;;  %v301_v52 = vadd.f32 %v300_v43, %v299_v46  ;;  %v312_v15 = vsel %vm167_vm1, %v261_v2, 0.0  ;;  %v322_v43 = vsel %vm167_vm1, %v266_v32, 0.0 }
  0x35   : > { %v269_v46 = vmul.f32 %v162_v16, %v162_v16 }
  0x36   : > { %v202_v27 = vadd.f32 %v201_v17, %v200_v21  ;;  %v303_v58 = vadd.f32 %v302_v49, %v301_v52  ;;  %v314_v21 = vsel %vm167_vm1, %v262_v8, 0.0 }
  0x38   : > { %v204_v33 = vadd.f32 %v203_v23, %v202_v27  ;;  %v305_v0 = vadd.f32 %v304_v55, %v303_v58  ;;  %v316_v27 = vsel %vm167_vm1, %v263_v14, 0.0  ;;  %v328_v55 = vsel %vm167_vm1, %v269_v46, 0.0 }
  0x39   : > { %v272_v58 = vmul.f32 %v165_v34, %v165_v34 }
  0x3a   : > { %v206_v39 = vadd.f32 %v205_v29, %v204_v33  ;;  %v307_v6 = vadd.f32 %v306_v61, %v305_v0  ;;  %v318_v33 = vsel %vm167_vm1, %v264_v20, 0.0 }
  0x3b   : > { %v334_v2 = vsel %vm167_vm1, %v272_v58, 0.0 }
  0x3c   : > { %v208_v45 = vadd.f32 %v207_v35, %v206_v39  ;;  %v309_v12 = vadd.f32 %v308_v3, %v307_v6  ;;  %v320_v39 = vsel %vm167_vm1, %v265_v26, 0.0 }
  0x3e   : > { %v210_v51 = vadd.f32 %v209_v41, %v208_v45  ;;  %v311_v18 = vadd.f32 %v310_v9, %v309_v12  ;;  %v240_v12 = vld [vmem:[%s553_s2] sm:$0x1] }
  0x40   : > { %v212_v57 = vadd.f32 %v211_v47, %v210_v51  ;;  %v313_v24 = vadd.f32 %v312_v15, %v311_v18  ;;  %v324_v47 = vsel %vm167_vm1, %v267_v38, 0.0  ;;  %v326_v51 = vsel %vm167_vm1, %v268_v42, 0.0 }
  0x42   : > { %v214_v63 = vadd.f32 %v213_v53, %v212_v57  ;;  %v315_v30 = vadd.f32 %v314_v21, %v313_v24 }
  0x44   : > { %v216_v5 = vadd.f32 %v215_v59, %v214_v63  ;;  %v317_v36 = vadd.f32 %v316_v27, %v315_v30  ;;  %v330_v59 = vsel %vm167_vm1, %v270_v50, 0.0 }
  0x46   : > { %v218_v11 = vadd.f32 %v217_v1, %v216_v5  ;;  %v319_v41 = vadd.f32 %v318_v33, %v317_v36  ;;  %v166_v1 = vld [vmem:[%s552_s1] sm:$0x1] }
  0x48   : > { %v220_v17 = vadd.f32 %v219_v7, %v218_v11  ;;  %v321_v45 = vadd.f32 %v320_v39, %v319_v41 }
  0x4a   : > { %v222_v23 = vadd.f32 %v221_v13, %v220_v17  ;;  %v323_v49 = vadd.f32 %v322_v43, %v321_v45 }
  0x4c   : > { %v224_v29 = vadd.f32 %v223_v19, %v222_v23  ;;  %v325_v53 = vadd.f32 %v324_v47, %v323_v49 }
  0x4e   : > { %v226_v35 = vadd.f32 %v225_v25, %v224_v29  ;;  %v327_v57 = vadd.f32 %v326_v51, %v325_v53 }
  0x50   : > { %v228_v40 = vadd.f32 %v227_v31, %v226_v35  ;;  %v329_v61 = vadd.f32 %v328_v55, %v327_v57 }
  0x52   : > { %v230_v44 = vadd.f32 %v229_v37, %v228_v40  ;;  %v331_v0 = vadd.f32 %v330_v59, %v329_v61 }
  0x54   : > { %v231_v48 = vrot.slane %v230_v44, 4  ;;  %v333_v4 = vadd.f32 %v332_v62, %v331_v0 }
  0x56   : > { %v232_v52 = vadd.f32 %v231_v48, %v230_v44  ;;  %v335_v6 = vadd.f32 %v334_v2, %v333_v4 }
  0x58   : > { %v233_v56 = vrot.slane %v232_v52, 2  ;;  %v336_v7 = vrot.slane %v335_v6, 4 }
  0x5a   : > { %v234_v60 = vadd.f32 %v233_v56, %v232_v52  ;;  %v337_v8 = vadd.f32 %v336_v7, %v335_v6 }
  0x5c   : > { %v235_v63 = vrot.slane %v234_v60, 1  ;;  %v338_v9 = vrot.slane %v337_v8, 2 }
  0x5e   : > { %v236_v3 = vadd.f32 %v235_v63, %v234_v60  ;;  %v339_v10 = vadd.f32 %v338_v9, %v337_v8 }
  0x60   : > { %v237_v5 = vadd.f32 %v236_v3, %v166_v1  ;;  %v340_v11 = vrot.slane %v339_v10, 1 }
  0x62   : > { %239 = vst.msk [vmem:[%s552_s1] sm:$0x1] %vm238_vm2, %v237_v5  ;;  %v341_v13 = vadd.f32 %v340_v11, %v339_v10 }
  0x64   : > { %v342_v14 = vadd.f32 %v341_v13, %v240_v12 }
  0x66   : > { %343 = vst.msk [vmem:[%s553_s2] sm:$0x1] %vm238_vm2, %v342_v14 }
  0x67 PF: > { %s13_s9 = sadd.s32 1, %s403_s9  }
  0x68   : > { %p10_p5 = scmp.ge.s32.totalorder %s13_s9, 4  }
  0x6a   :  { %12 = sbr.rel (!%p10_p5) target bundleno = 1 (0x1), region = 62 }

// kernel: preact_block_forward.6
= control target key start
LH: loop header
LB: loop body
LE: loop exit
PB: predicated region body
PF: predicated region fallthrough
CT: control target
= control target key end

     0   :  { %s354_s9 = smov 0   ;;  %s420_s0 = inlined_call_operand.vmem [shape: f32[2,16,16,128], index: 0, kind: input, shape index: {}]   ;;  %s421_s1 = inlined_call_operand.vmem [shape: f32[1,128], index: 1, kind: output, shape index: {0}]   ;;  %s422_s2 = inlined_call_operand.vmem [shape: f32[1,128], index: 2, kind: output, shape index: {1}]  }
   0x1 LB: > { %s311_s10 = sadd.s32 4294967295, %s336_s9   ;;  %p314_p0 = scmp.ge.s32.totalorder %s336_s9, 1  ;;  %s336_s9 = sphi %s354_s9, %s13_s9  }
   0x2   : > { %p105_p1 = scmp.lt.s32.totalorder %s336_s9, 3 }
   0x4   : > { %p106_p2 = pnand %p314_p0, %p105_p1 }
   0x5   : > { %p122_p3 = scmp.lt.s32.totalorder (!%p106_p2), %s311_s10, 1  ;;  %p317_p4 = scmp.ne.s32.totalorder (!%p106_p2), %s311_s10, 0 }
   0x6   : > { %109 = sbr.rel (%p106_p2) target bundleno = 100 (0x64), region = 24 }
   0xb   : > { %s123_s11 = scalar_select %p122_p3, %s311_s10, 1 }
   0xc   : > { %130 = sbr.rel (%p317_p4) target bundleno = 20 (0x14), region = 28 }
   0xd   : > { %s320_s12 = sshll.u32 %s123_s11, 8 }
   0xe   : > { %s365_s15 = scalar_lea.vmem %s420_s0, %s320_s12 }
  0x11   : > { %v338_v0 = vmov 0.0  }
  0x12   : > { %131 = vst [vmem:[%s421_s1] sm:$0x1] %v338_v0 }
  0x13   : > { %132 = vst [vmem:[%s422_s2] sm:$0x1] %v338_v0 }
  0x14 PF: > { %v133_v1 = vld [vmem:[%s365_s15] sm:$0xff]  ;;  %v134_v2 = vld [vmem:[%s365_s15 + $0x8] sm:$0xff]  ;;  %v135_v3 = vld [vmem:[%s365_s15 + $0x10] sm:$0xff] }
  0x15   : > { %v136_v4 = vld [vmem:[%s365_s15 + $0x18] sm:$0xff]  ;;  %v166_v5 = vadd.f32 %v134_v2, %v133_v1  ;;  %v206_v6 = vmul.f32 %v133_v1, %v133_v1  ;;  %v207_v7 = vmul.f32 %v134_v2, %v134_v2  ;;  %v208_v8 = vmul.f32 %v135_v3, %v135_v3  ;;  %v137_v9 = vld [vmem:[%s365_s15 + $0x20] sm:$0xff]  ;;  %v138_v13 = vld [vmem:[%s365_s15 + $0x28] sm:$0xff] }
  0x16   : > { %v209_v11 = vmul.f32 %v136_v4, %v136_v4  ;;  %v210_v15 = vmul.f32 %v137_v9, %v137_v9  ;;  %v139_v17 = vld [vmem:[%s365_s15 + $0x30] sm:$0xff]  ;;  %v211_v19 = vmul.f32 %v138_v13, %v138_v13  ;;  %v140_v21 = vld [vmem:[%s365_s15 + $0x38] sm:$0xff]  ;;  %v141_v25 = vld [vmem:[%s365_s15 + $0x40] sm:$0xff] }
  0x17   : > { %v167_v10 = vadd.f32 %v166_v5, %v135_v3  ;;  %v238_v12 = vadd.f32 %v207_v7, %v206_v6  ;;  %v212_v23 = vmul.f32 %v139_v17, %v139_v17  ;;  %v213_v27 = vmul.f32 %v140_v21, %v140_v21  ;;  %v142_v29 = vld [vmem:[%s365_s15 + $0x48] sm:$0xff]  ;;  %v143_v33 = vld [vmem:[%s365_s15 + $0x50] sm:$0xff]  ;;  %v144_v37 = vld [vmem:[%s365_s15 + $0x58] sm:$0xff] }
  0x18   : > { %v214_v31 = vmul.f32 %v141_v25, %v141_v25  ;;  %v215_v35 = vmul.f32 %v142_v29, %v142_v29  ;;  %v216_v39 = vmul.f32 %v143_v33, %v143_v33  ;;  %v145_v41 = vld [vmem:[%s365_s15 + $0x60] sm:$0xff]  ;;  %v217_v43 = vmul.f32 %v144_v37, %v144_v37  ;;  %v146_v45 = vld [vmem:[%s365_s15 + $0x68] sm:$0xff]  ;;  %v147_v49 = vld [vmem:[%s365_s15 + $0x70] sm:$0xff] }
  0x19   : > { %v168_v14 = vadd.f32 %v167_v10, %v136_v4  ;;  %v239_v16 = vadd.f32 %v238_v12, %v208_v8  ;;  %v218_v47 = vmul.f32 %v145_v41, %v145_v41  ;;  %v219_v51 = vmul.f32 %v146_v45, %v146_v45  ;;  %v148_v53 = vld [vmem:[%s365_s15 + $0x78] sm:$0xff]  ;;  %v149_v57 = vld [vmem:[%s365_s15 + $0x80] sm:$0xff]  ;;  %v150_v61 = vld [vmem:[%s365_s15 + $0x88] sm:$0xff] }
  0x1a   : > { %v220_v55 = vmul.f32 %v147_v49, %v147_v49  ;;  %v221_v59 = vmul.f32 %v148_v53, %v148_v53  ;;  %v222_v63 = vmul.f32 %v149_v57, %v149_v57  ;;  %v151_v1 = vld [vmem:[%s365_s15 + $0x90] sm:$0xff]  ;;  %v223_v3 = vmul.f32 %v150_v61, %v150_v61  ;;  %v152_v5 = vld [vmem:[%s365_s15 + $0x98] sm:$0xff] }
  0x1b   : > { %v169_v18 = vadd.f32 %v168_v14, %v137_v9  ;;  %v240_v20 = vadd.f32 %v239_v16, %v209_v11  ;;  %v224_v7 = vmul.f32 %v151_v1, %v151_v1  ;;  %v153_v9 = vld [vmem:[%s365_s15 + $0xa0] sm:$0xff]  ;;  %v225_v11 = vmul.f32 %v152_v5, %v152_v5 }
  0x1d   : > { %v170_v22 = vadd.f32 %v169_v18, %v138_v13  ;;  %v241_v24 = vadd.f32 %v240_v20, %v210_v15  ;;  %v154_v13 = vld [vmem:[%s365_s15 + $0xa8] sm:$0xff]  ;;  %v226_v15 = vmul.f32 %v153_v9, %v153_v9 }
  0x1f   : > { %v171_v26 = vadd.f32 %v170_v22, %v139_v17  ;;  %v242_v28 = vadd.f32 %v241_v24, %v211_v19  ;;  %v155_v17 = vld [vmem:[%s365_s15 + $0xb0] sm:$0xff]  ;;  %v227_v19 = vmul.f32 %v154_v13, %v154_v13 }
  0x21   : > { %v172_v30 = vadd.f32 %v171_v26, %v140_v21  ;;  %v243_v32 = vadd.f32 %v242_v28, %v212_v23  ;;  %v156_v21 = vld [vmem:[%s365_s15 + $0xb8] sm:$0xff]  ;;  %v228_v23 = vmul.f32 %v155_v17, %v155_v17 }
  0x23   : > { %v173_v34 = vadd.f32 %v172_v30, %v141_v25  ;;  %v244_v36 = vadd.f32 %v243_v32, %v213_v27  ;;  %v157_v25 = vld [vmem:[%s365_s15 + $0xc0] sm:$0xff]  ;;  %v229_v27 = vmul.f32 %v156_v21, %v156_v21 }
  0x25   : > { %v174_v38 = vadd.f32 %v173_v34, %v142_v29  ;;  %v245_v40 = vadd.f32 %v244_v36, %v214_v31  ;;  %v158_v29 = vld [vmem:[%s365_s15 + $0xc8] sm:$0xff]  ;;  %v230_v31 = vmul.f32 %v157_v25, %v157_v25 }
  0x27   : > { %v175_v42 = vadd.f32 %v174_v38, %v143_v33  ;;  %v246_v44 = vadd.f32 %v245_v40, %v215_v35  ;;  %v159_v33 = vld [vmem:[%s365_s15 + $0xd0] sm:$0xff]  ;;  %v231_v35 = vmul.f32 %v158_v29, %v158_v29 }
  0x29   : > { %v176_v46 = vadd.f32 %v175_v42, %v144_v37  ;;  %v247_v48 = vadd.f32 %v246_v44, %v216_v39  ;;  %v160_v37 = vld [vmem:[%s365_s15 + $0xd8] sm:$0xff]  ;;  %v232_v39 = vmul.f32 %v159_v33, %v159_v33 }
  0x2b   : > { %v177_v50 = vadd.f32 %v176_v46, %v145_v41  ;;  %v248_v52 = vadd.f32 %v247_v48, %v217_v43  ;;  %v161_v41 = vld [vmem:[%s365_s15 + $0xe0] sm:$0xff]  ;;  %v233_v43 = vmul.f32 %v160_v37, %v160_v37 }
  0x2d   : > { %v178_v54 = vadd.f32 %v177_v50, %v146_v45  ;;  %v249_v56 = vadd.f32 %v248_v52, %v218_v47  ;;  %v162_v45 = vld [vmem:[%s365_s15 + $0xe8] sm:$0xff]  ;;  %v234_v47 = vmul.f32 %v161_v41, %v161_v41 }
  0x2f   : > { %v179_v58 = vadd.f32 %v178_v54, %v147_v49  ;;  %v250_v60 = vadd.f32 %v249_v56, %v219_v51  ;;  %v163_v49 = vld [vmem:[%s365_s15 + $0xf0] sm:$0xff]  ;;  %v235_v51 = vmul.f32 %v162_v45, %v162_v45 }
  0x31   : > { %v180_v62 = vadd.f32 %v179_v58, %v148_v53  ;;  %v251_v0 = vadd.f32 %v250_v60, %v220_v55  ;;  %v164_v53 = vld [vmem:[%s365_s15 + $0xf8] sm:$0xff]  ;;  %v236_v55 = vmul.f32 %v163_v49, %v163_v49 }
  0x32   : > { %v237_v58 = vmul.f32 %v164_v53, %v164_v53 }
  0x33   : > { %v181_v2 = vadd.f32 %v180_v62, %v149_v57  ;;  %v252_v4 = vadd.f32 %v251_v0, %v221_v59 }
  0x35   : > { %v182_v6 = vadd.f32 %v181_v2, %v150_v61  ;;  %v253_v8 = vadd.f32 %v252_v4, %v222_v63 }
  0x37   : > { %v183_v10 = vadd.f32 %v182_v6, %v151_v1  ;;  %v254_v12 = vadd.f32 %v253_v8, %v223_v3 }
  0x39   : > { %v184_v14 = vadd.f32 %v183_v10, %v152_v5  ;;  %v255_v16 = vadd.f32 %v254_v12, %v224_v7  ;;  %v165_v7 = vld [vmem:[%s421_s1] sm:$0x1] }
  0x3a   : > { %v205_v12 = vld [vmem:[%s422_s2] sm:$0x1] }
  0x3b   : > { %v185_v18 = vadd.f32 %v184_v14, %v153_v9  ;;  %v256_v20 = vadd.f32 %v255_v16, %v225_v11 }
  0x3d   : > { %v186_v22 = vadd.f32 %v185_v18, %v154_v13  ;;  %v257_v24 = vadd.f32 %v256_v20, %v226_v15 }
  0x3f   : > { %v187_v26 = vadd.f32 %v186_v22, %v155_v17  ;;  %v258_v28 = vadd.f32 %v257_v24, %v227_v19 }
  0x41   : > { %v188_v30 = vadd.f32 %v187_v26, %v156_v21  ;;  %v259_v32 = vadd.f32 %v258_v28, %v228_v23 }
  0x43   : > { %v189_v34 = vadd.f32 %v188_v30, %v157_v25  ;;  %v260_v36 = vadd.f32 %v259_v32, %v229_v27 }
  0x45   : > { %v190_v38 = vadd.f32 %v189_v34, %v158_v29  ;;  %v261_v40 = vadd.f32 %v260_v36, %v230_v31 }
  0x47   : > { %v191_v42 = vadd.f32 %v190_v38, %v159_v33  ;;  %v262_v44 = vadd.f32 %v261_v40, %v231_v35 }
  0x49   : > { %v192_v46 = vadd.f32 %v191_v42, %v160_v37  ;;  %v263_v48 = vadd.f32 %v262_v44, %v232_v39 }
  0x4b   : > { %v193_v50 = vadd.f32 %v192_v46, %v161_v41  ;;  %v264_v52 = vadd.f32 %v263_v48, %v233_v43 }
  0x4d   : > { %v194_v54 = vadd.f32 %v193_v50, %v162_v45  ;;  %v265_v56 = vadd.f32 %v264_v52, %v234_v47 }
  0x4f   : > { %v195_v57 = vadd.f32 %v194_v54, %v163_v49  ;;  %v266_v59 = vadd.f32 %v265_v56, %v235_v51 }
  0x51   : > { %v196_v60 = vadd.f32 %v195_v57, %v164_v53  ;;  %v267_v61 = vadd.f32 %v266_v59, %v236_v55 }
  0x53   : > { %v197_v62 = vrot.slane %v196_v60, 4  ;;  %v268_v63 = vadd.f32 %v267_v61, %v237_v58 }
  0x55   : > { %v198_v0 = vadd.f32 %v197_v62, %v196_v60  ;;  %v269_v1 = vrot.slane %v268_v63, 4 }
  0x57   : > { %v199_v2 = vrot.slane %v198_v0, 2  ;;  %v270_v3 = vadd.f32 %v269_v1, %v268_v63 }
  0x59   : > { %v200_v4 = vadd.f32 %v199_v2, %v198_v0  ;;  %v271_v5 = vrot.slane %v270_v3, 2 }
  0x5b   : > { %v201_v6 = vrot.slane %v200_v4, 1  ;;  %v272_v8 = vadd.f32 %v271_v5, %v270_v3 }
  0x5d   : > { %v202_v9 = vadd.f32 %v201_v6, %v200_v4  ;;  %v273_v10 = vrot.slane %v272_v8, 1 }
  0x5f   : > { %v203_v11 = vadd.f32 %v202_v9, %v165_v7  ;;  %v274_v13 = vadd.f32 %v273_v10, %v272_v8 }
  0x61   : > { %204 = vst [vmem:[%s421_s1] sm:$0x1] %v203_v11  ;;  %v275_v14 = vadd.f32 %v274_v13, %v205_v12 }
  0x63   : > { %276 = vst [vmem:[%s422_s2] sm:$0x1] %v275_v14 }
  0x64 PF: > { %s13_s9 = sadd.s32 1, %s336_s9  }
  0x65   : > { %p10_p5 = scmp.ge.s32.totalorder %s13_s9, 4  }
  0x67   :  { %12 = sbr.rel (!%p10_p5) target bundleno = 1 (0x1), region = 62 }

// kernel: preact_block_forward.5
= control target key start
LH: loop header
LB: loop body
LE: loop exit
PB: predicated region body
PF: predicated region fallthrough
CT: control target
= control target key end

     0   :  { %s2959_s21 = smov 0   ;;  %s4225_s0 = inlined_call_operand.vmem [shape: f32[2,16,16,4], index: 0, kind: input, shape index: {}]   ;;  %s4226_s1 = inlined_call_operand.vmem [shape: f32[1,4], index: 1, kind: input, shape index: {}]   ;;  %s4227_s2 = inlined_call_operand.vmem [shape: f32[1,4], index: 2, kind: input, shape index: {}]   ;;  %s4228_s3 = inlined_call_operand.vmem [shape: f32[1152,128], index: 3, kind: input, shape index: {}]   ;;  %s4229_s4 = inlined_call_operand.vmem [shape: f32[128,128], index: 4, kind: input, shape index: {}]   ;;  %s4230_s5 = inlined_call_operand.vmem [shape: f32[2,16,16,128], index: 5, kind: output, shape index: {0}]   ;;  %s4231_s6 = inlined_call_operand.vmem [shape: f32[2,16,16,128], index: 6, kind: output, shape index: {1}]  }
   0x1 LB: > { %s2828_s22 = sadd.s32 4294967295, %s2921_s21   ;;  %p2832_p0 = scmp.ge.s32.totalorder %s2921_s21, 1  ;;  %s2921_s21 = sphi %s2959_s21, %s17_s21  }
   0x2   : > { %p215_p1 = scmp.lt.s32.totalorder %s2921_s21, 3 }
   0x4   : > { %p216_p2 = pnand %p2832_p0, %p215_p1 }
   0x6   : > { %219 = sbr.rel (%p216_p2) target bundleno = 838 (0x346), region = 40 }
   0xb   : > { %v1369_v0 = vld [vmem:[%s4228_s3 + $0x78] sm:$0xff]  ;;  %v1368_v2 = vld [vmem:[%s4228_s3 + $0x70] sm:$0xff]  ;;  %p250_p3 = scmp.lt.s32.totalorder %s2828_s22, 1  ;;  %v2923_v4 = vmov 0.0   ;;  %v1367_v5 = vld [vmem:[%s4228_s3 + $0x68] sm:$0xff]  ;;  %vm456_vm0 = vcmask 31744  }
   0xc   : > { %v1385_v1 = vld [vmem:[%s4228_s3 + $0xf8] sm:$0xff]  ;;  %2844 = vmatpush.msra.mxu2 %v1369_v0  ;;  %v1384_v3 = vld [vmem:[%s4228_s3 + $0xf0] sm:$0xff]  ;;  %425 = vst [vmem:[#allocation2 + $0xc0] sm:$0xff] %v2923_v4  ;;  %v1383_v6 = vld [vmem:[%s4228_s3 + $0xe8] sm:$0xff]  ;;  %1498 = vmatpush.msra.mxu0 %v1369_v0 }
   0xd   : > { %2860 = vmatpush.msra.mxu3 %v1385_v1  ;;  %1611 = vmatpush.msra.mxu1 %v1385_v1  ;;  %s4292_s22 = smov (!%p250_p3, %s2828_s22), 1  ;;  %426 = vst [vmem:[#allocation2 + $0xc8] sm:$0xff] %v2923_v4  ;;  %v1366_v7 = vld [vmem:[%s4228_s3 + $0x60] sm:$0xff]  ;;  %v1365_v9 = vld [vmem:[%s4228_s3 + $0x58] sm:$0xff]  ;;  %v1364_v11 = vld [vmem:[%s4228_s3 + $0x50] sm:$0xff] }
   0xe   : > { %2845 = vmatpush.msra.mxu2 %v1368_v2  ;;  %401 = vst [vmem:[#allocation2] sm:$0xff] %v2923_v4  ;;  %v1382_v8 = vld [vmem:[%s4228_s3 + $0xe0] sm:$0xff]  ;;  %1499 = vmatpush.msra.mxu0 %v1368_v2  ;;  %s2994_s15 = sshll.u32 %s4292_s22, 8  ;;  %v1381_v10 = vld [vmem:[%s4228_s3 + $0xd8] sm:$0xff]  ;;  %v1380_v12 = vld [vmem:[%s4228_s3 + $0xd0] sm:$0xff] }
   0xf   : > { %2861 = vmatpush.msra.mxu3 %v1384_v3  ;;  %1612 = vmatpush.msra.mxu1 %v1384_v3  ;;  %402 = vst [vmem:[#allocation2 + $0x8] sm:$0xff] %v2923_v4  ;;  %s3009_s23 = scalar_lea.vmem %s4225_s0, %s2994_s15  ;;  %v1363_v13 = vld [vmem:[%s4228_s3 + $0x48] sm:$0xff]  ;;  %v3031_v16 = vld [vmem:[%s4226_s1] ss:$0 sm:$0xff]  ;;  %v1361_v21 = vld [vmem:[%s4228_s3 + $0x38] sm:$0xff]  ;;  %s4075_s16 = scalar_lea.vmem %s4231_s6, %s2994_s15 }
  0x10   : > { %2846 = vmatpush.msra.mxu2 %v1367_v5  ;;  %403 = vst [vmem:[#allocation2 + $0x10] sm:$0x3] %v2923_v4  ;;  %1500 = vmatpush.msra.mxu0 %v1367_v5  ;;  %v1379_v14 = vld [vmem:[%s4228_s3 + $0xc8] sm:$0xff]  ;;  %v279_v15 = vld [vmem:[%s3009_s23 + $0x70] sm:$0xff]  ;;  %v1362_v17 = vld [vmem:[%s4228_s3 + $0x40] sm:$0xff]  ;;  %s4089_s19 = scalar_lea.vmem %s4230_s5, %s2994_s15 }
  0x11   : > { %2862 = vmatpush.msra.mxu3 %v1383_v6  ;;  %1613 = vmatpush.msra.mxu1 %v1383_v6  ;;  %404 = vst [vmem:[#allocation2 + $0x18] sm:$0xff] %v2923_v4  ;;  %v1378_v18 = vld [vmem:[%s4228_s3 + $0xc0] sm:$0xff]  ;;  %v315_v20 = vmul.f32 %v3031_v16, %v279_v15  ;;  %v1377_v22 = vld [vmem:[%s4228_s3 + $0xb8] sm:$0xff]  ;;  %v1360_v24 = vld [vmem:[%s4228_s3 + $0x30] sm:$0xff] }
  0x12   : > { %2847 = vmatpush.msra.mxu2 %v1366_v7  ;;  %405 = vst [vmem:[#allocation2 + $0x20] sm:$0xff] %v2923_v4  ;;  %1501 = vmatpush.msra.mxu0 %v1366_v7  ;;  %v3042_v19 = vld [vmem:[%s4227_s2] ss:$0 sm:$0xff]  ;;  %v1376_v25 = vld [vmem:[%s4228_s3 + $0xb0] sm:$0xff]  ;;  %v1359_v27 = vld [vmem:[%s4228_s3 + $0x28] sm:$0xff] }
  0x13   : > { %2863 = vmatpush.msra.mxu3 %v1382_v8  ;;  %1614 = vmatpush.msra.mxu1 %v1382_v8  ;;  %406 = vst [vmem:[#allocation2 + $0x28] sm:$0x3] %v2923_v4  ;;  %v351_v23 = vadd.f32 %v3042_v19, %v315_v20  ;;  %v1375_v28 = vld [vmem:[%s4228_s3 + $0xa8] sm:$0xff]  ;;  %v1358_v29 = vld [vmem:[%s4228_s3 + $0x20] sm:$0xff]  ;;  %v1357_v31 = vld [vmem:[%s4228_s3 + $0x18] sm:$0xff] }
  0x14   : > { %2848 = vmatpush.msra.mxu2 %v1365_v9  ;;  %407 = vst [vmem:[#allocation2 + $0x30] sm:$0xff] %v2923_v4  ;;  %1502 = vmatpush.msra.mxu0 %v1365_v9  ;;  %v1374_v30 = vld [vmem:[%s4228_s3 + $0xa0] sm:$0xff]  ;;  %v1373_v32 = vld [vmem:[%s4228_s3 + $0x98] sm:$0xff]  ;;  %v1356_v33 = vld [vmem:[%s4228_s3 + $0x10] sm:$0xff] }
  0x15   : > { %2864 = vmatpush.msra.mxu3 %v1381_v10  ;;  %1615 = vmatpush.msra.mxu1 %v1381_v10  ;;  %408 = vst [vmem:[#allocation2 + $0x38] sm:$0xff] %v2923_v4  ;;  %v383_v26 = vmax.f32 %v351_v23, 0.0  ;;  %v1372_v34 = vld [vmem:[%s4228_s3 + $0x90] sm:$0xff]  ;;  %v1355_v35 = vld [vmem:[%s4228_s3 + $0x8] sm:$0xff]  ;;  %v1354_v37 = vld [vmem:[%s4228_s3] sm:$0xff] }
  0x16   : > { %2849 = vmatpush.msra.mxu2 %v1364_v11  ;;  %1503 = vmatpush.msra.mxu0 %v1364_v11  ;;  %409 = vst [vmem:[#allocation2 + $0x40] sm:$0x3] %v2923_v4  ;;  %v1371_v36 = vld [vmem:[%s4228_s3 + $0x88] sm:$0xff]  ;;  %v1370_v38 = vld [vmem:[%s4228_s3 + $0x80] sm:$0xff]  ;;  %v1401_v41 = vld [vmem:[%s4228_s3 + $0x178] sm:$0xff] }
  0x17   : > { %2865 = vmatpush.msra.mxu3 %v1380_v12  ;;  %1616 = vmatpush.msra.mxu1 %v1380_v12  ;;  %410 = vst [vmem:[#allocation2 + $0x48] sm:$0xff] %v2923_v4  ;;  %v1417_v42 = vld [vmem:[%s4228_s3 + $0x1f8] sm:$0xff]  ;;  %v1400_v43 = vld [vmem:[%s4228_s3 + $0x170] sm:$0xff]  ;;  %v553_v44 = vld [vmem:[#allocation2 + $0x1] sm:$0xff] }
  0x18   : > { %2850 = vmatpush.msra.mxu2 %v1363_v13  ;;  %1504 = vmatpush.msra.mxu0 %v1363_v13  ;;  %411 = vst [vmem:[#allocation2 + $0x50] sm:$0xff] %v2923_v4  ;;  %v1416_v45 = vld [vmem:[%s4228_s3 + $0x1f0] sm:$0xff]  ;;  %v1433_v46 = vld [vmem:[%s4228_s3 + $0x278] sm:$0xff]  ;;  %v1399_v48 = vld [vmem:[%s4228_s3 + $0x168] sm:$0xff] }
  0x19   : > { %2866 = vmatpush.msra.mxu3 %v1379_v14  ;;  %1617 = vmatpush.msra.mxu1 %v1379_v14  ;;  %412 = vst [vmem:[#allocation2 + $0x58] sm:$0x3] %v2923_v4  ;;  %v1449_v47 = vld [vmem:[%s4228_s3 + $0x2f8] sm:$0xff]  ;;  %v554_v49 = vld [vmem:[#allocation2 + $0x9] sm:$0xff]  ;;  %v281_v54 = vld [vmem:[%s3009_s23 + $0x80] sm:$0xff] }
  0x1a   : > { %2851 = vmatpush.msra.mxu2 %v1362_v17  ;;  %1505 = vmatpush.msra.mxu0 %v1362_v17  ;;  %413 = vst [vmem:[#allocation2 + $0x60] sm:$0xff] %v2923_v4  ;;  %v1415_v50 = vld [vmem:[%s4228_s3 + $0x1e8] sm:$0xff]  ;;  %v280_v51 = vld [vmem:[%s3009_s23 + $0x78] sm:$0xff]  ;;  %v1432_v52 = vld [vmem:[%s4228_s3 + $0x270] sm:$0xff]  ;;  %v317_v58 = vmul.f32 %v3031_v16, %v281_v54 }
  0x1b   : > { %2867 = vmatpush.msra.mxu3 %v1378_v18  ;;  %1618 = vmatpush.msra.mxu1 %v1378_v18  ;;  %414 = vst [vmem:[#allocation2 + $0x68] sm:$0xff] %v2923_v4  ;;  %v1448_v53 = vld [vmem:[%s4228_s3 + $0x2f0] sm:$0xff]  ;;  %v282_v55 = vld [vmem:[%s3009_s23 + $0x88] sm:$0xff]  ;;  %v316_v56 = vmul.f32 %v3031_v16, %v280_v51  ;;  %v265_v57 = vld [vmem:[%s3009_s23] sm:$0xff] }
  0x1c   : > { %2852 = vmatpush.msra.mxu2 %v1361_v21  ;;  %1506 = vmatpush.msra.mxu0 %v1361_v21  ;;  %415 = vst [vmem:[#allocation2 + $0x70] sm:$0x3] %v2923_v4  ;;  %v283_v59 = vld [vmem:[%s3009_s23 + $0x90] sm:$0xff]  ;;  %v318_v60 = vmul.f32 %v3031_v16, %v282_v55  ;;  %v266_v61 = vld [vmem:[%s3009_s23 + $0x8] sm:$0xff]  ;;  %v301_v62 = vmul.f32 %v3031_v16, %v265_v57  ;;  %v1398_v0 = vld [vmem:[%s4228_s3 + $0x160] sm:$0xff] }
  0x1d   : > { %2868 = vmatpush.msra.mxu3 %v1377_v22  ;;  %1619 = vmatpush.msra.mxu1 %v1377_v22  ;;  %471 = vst.msk [vmem:[#allocation2 + $0xc1] sm:$0xff] %vm456_vm0, %v383_v26  ;;  %v352_v63 = vadd.f32 %v3042_v19, %v316_v56  ;;  %v1414_v1 = vld [vmem:[%s4228_s3 + $0x1e0] sm:$0xff]  ;;  %v1431_v2 = vld [vmem:[%s4228_s3 + $0x268] sm:$0xff]  ;;  %v319_v3 = vmul.f32 %v3031_v16, %v283_v59  ;;  %v284_v8 = vld [vmem:[%s3009_s23 + $0x98] sm:$0xff] }
  0x1e   : > { %2853 = vmatpush.msra.mxu2 %v1360_v24  ;;  %1507 = vmatpush.msra.mxu0 %v1360_v24  ;;  %416 = vst [vmem:[#allocation2 + $0x78] sm:$0xff] %v2923_v4  ;;  %v353_v5 = vadd.f32 %v3042_v19, %v317_v58  ;;  %v1447_v6 = vld [vmem:[%s4228_s3 + $0x2e8] sm:$0xff]  ;;  %v302_v7 = vmul.f32 %v3031_v16, %v266_v61  ;;  %v267_v12 = vld [vmem:[%s3009_s23 + $0x10] sm:$0xff]  ;;  %v1413_v26 = vld [vmem:[%s4228_s3 + $0x1d8] sm:$0xff] }
  0x1f   : > { %2869 = vmatpush.msra.mxu3 %v1376_v25  ;;  %1620 = vmatpush.msra.mxu1 %v1376_v25  ;;  %417 = vst [vmem:[#allocation2 + $0x80] sm:$0xff] %v2923_v4  ;;  %v354_v9 = vadd.f32 %v3042_v19, %v318_v60  ;;  %v320_v10 = vmul.f32 %v3031_v16, %v284_v8  ;;  %v384_v13 = vmax.f32 %v352_v63, 0.0  ;;  %v1397_v25 = vld [vmem:[%s4228_s3 + $0x158] sm:$0xff]  ;;  %v269_v51 = vld [vmem:[%s3009_s23 + $0x20] sm:$0xff]  ;;  %v1395_v56 = vld [vmem:[%s4228_s3 + $0x148] sm:$0xff] }
  0x20   : > { %2854 = vmatpush.msra.mxu2 %v1359_v27  ;;  %1508 = vmatpush.msra.mxu0 %v1359_v27  ;;  %418 = vst [vmem:[#allocation2 + $0x88] sm:$0x3] %v2923_v4  ;;  %v337_v11 = vadd.f32 %v3042_v19, %v301_v62  ;;  %v355_v14 = vadd.f32 %v3042_v19, %v319_v3  ;;  %v385_v17 = vmax.f32 %v353_v5, 0.0  ;;  %v1430_v27 = vld [vmem:[%s4228_s3 + $0x260] sm:$0xff]  ;;  %v1411_v57 = vld [vmem:[%s4228_s3 + $0x1c8] sm:$0xff]  ;;  %v1428_v58 = vld [vmem:[%s4228_s3 + $0x250] sm:$0xff] }
  0x21   : > { %2870 = vmatpush.msra.mxu3 %v1375_v28  ;;  %1621 = vmatpush.msra.mxu1 %v1375_v28  ;;  %419 = vst [vmem:[#allocation2 + $0x90] sm:$0xff] %v2923_v4  ;;  %v303_v15 = vmul.f32 %v3031_v16, %v267_v12  ;;  %v338_v18 = vadd.f32 %v3042_v19, %v302_v7  ;;  %v386_v20 = vmax.f32 %v354_v9, 0.0  ;;  %v1446_v28 = vld [vmem:[%s4228_s3 + $0x2e0] sm:$0xff]  ;;  %v1444_v60 = vld [vmem:[%s4228_s3 + $0x2d0] sm:$0xff] }
  0x22   : > { %2855 = vmatpush.msra.mxu2 %v1358_v29  ;;  %420 = vst [vmem:[#allocation2 + $0x98] sm:$0xff] %v2923_v4  ;;  %1509 = vmatpush.msra.mxu0 %v1358_v29  ;;  %v356_v21 = vadd.f32 %v3042_v19, %v320_v10  ;;  %v369_v22 = vmax.f32 %v337_v11, 0.0  ;;  %v387_v24 = vmax.f32 %v355_v14, 0.0  ;;  %v285_v29 = vld [vmem:[%s3009_s23 + $0xa0] sm:$0xff]  ;;  %v287_v63 = vld [vmem:[%s3009_s23 + $0xb0] sm:$0xff] }
  0x23   : > { %2871 = vmatpush.msra.mxu3 %v1374_v30  ;;  %1622 = vmatpush.msra.mxu1 %v1374_v30  ;;  %421 = vst [vmem:[#allocation2 + $0xa0] sm:$0x3] %v2923_v4  ;;  %v339_v23 = vadd.f32 %v3042_v19, %v303_v15  ;;  %v1394_v11 = vld [vmem:[%s4228_s3 + $0x140] sm:$0xff]  ;;  %v1443_v15 = vld [vmem:[%s4228_s3 + $0x2c8] sm:$0xff] }
  0x24   : > { %2856 = vmatpush.msra.mxu2 %v1357_v31  ;;  %422 = vst [vmem:[#allocation2 + $0xa8] sm:$0xff] %v2923_v4  ;;  %1510 = vmatpush.msra.mxu0 %v1357_v31  ;;  %v505_v39 = vld [vmem:[#allocation2 + $0xc0] sm:$0xff]  ;;  %v388_v30 = vmax.f32 %v356_v21, 0.0  ;;  %v321_v31 = vmul.f32 %v3031_v16, %v285_v29 }
  0x25   : > { %2872 = vmatpush.msra.mxu3 %v1373_v32  ;;  %1623 = vmatpush.msra.mxu1 %v1373_v32  ;;  %423 = vst [vmem:[#allocation2 + $0xb0] sm:$0xff] %v2923_v4  ;;  %v569_v40 = vld [vmem:[#allocation2 + $0xc1] sm:$0xff]  ;;  %v371_v32 = vmax.f32 %v339_v23, 0.0 }
  0x26   : > { %2857 = vmatpush.msra.mxu2 %v1356_v33  ;;  %424 = vst [vmem:[#allocation2 + $0xb8] sm:$0x3] %v2923_v4  ;;  %1511 = vmatpush.msra.mxu0 %v1356_v33  ;;  %v268_v33 = vld [vmem:[%s3009_s23 + $0x18] sm:$0xff]  ;;  %v1410_v12 = vld [vmem:[%s4228_s3 + $0x1c0] sm:$0xff] }
  0x27   : > { %2873 = vmatpush.msra.mxu3 %v1372_v34  ;;  %1624 = vmatpush.msra.mxu1 %v1372_v34  ;;  %427 = vst [vmem:[#allocation2 + $0xd0] sm:$0x3] %v2923_v4  ;;  %v357_v34 = vadd.f32 %v3042_v19, %v321_v31  ;;  %v1426_v31 = vld [vmem:[%s4228_s3 + $0x240] sm:$0xff] }
  0x28   : > { %2858 = vmatpush.msra.mxu2 %v1355_v35  ;;  %428 = vst [vmem:[#allocation2 + $0xd8] sm:$0xff] %v2923_v4  ;;  %1512 = vmatpush.msra.mxu0 %v1355_v35  ;;  %v304_v35 = vmul.f32 %v3031_v16, %v268_v33  ;;  %v289_v33 = vld [vmem:[%s3009_s23 + $0xc0] sm:$0xff] }
  0x29   : > { %2874 = vmatpush.msra.mxu3 %v1371_v36  ;;  %1625 = vmatpush.msra.mxu1 %v1371_v36  ;;  %429 = vst [vmem:[#allocation2 + $0xe0] sm:$0xff] %v2923_v4  ;;  %v389_v36 = vmax.f32 %v357_v34, 0.0  ;;  %v325_v34 = vmul.f32 %v3031_v16, %v289_v33 }
  0x2a   : > { %2859 = vmatpush.msra.mxu2 %v1354_v37  ;;  %430 = vst [vmem:[#allocation2 + $0xe8] sm:$0x3] %v2923_v4  ;;  %1513 = vmatpush.msra.mxu0 %v1354_v37  ;;  %v340_v37 = vadd.f32 %v3042_v19, %v304_v35  ;;  %v272_v35 = vld [vmem:[%s3009_s23 + $0x38] sm:$0xff] }
  0x2b   : > { %2875 = vmatpush.msra.mxu3 %v1370_v38  ;;  %1562 = vmatmul.f32.vlgmr.msra.gmra.mxu2 %v505_v39  ;;  %431 = vst [vmem:[#allocation2 + $0xf0] sm:$0xff] %v2923_v4 }
  0x2c   : > { %1675 = vmatmul.f32.vlgmr.msra.gmra.mxu3 %v569_v40  ;;  %1724 = vmatpush.msrb.mxu2 %v1401_v41  ;;  %432 = vst [vmem:[#allocation2 + $0xf8] sm:$0xff] %v2923_v4  ;;  %v1396_v40 = vld [vmem:[%s4228_s3 + $0x150] sm:$0xff]  ;;  %v372_v41 = vmax.f32 %v340_v37, 0.0 }
  0x2d   : > { %1837 = vmatpush.msrb.mxu3 %v1417_v42  ;;  %1626 = vmatpush.msra.mxu1 %v1370_v38  ;;  %433 = vst [vmem:[#allocation2 + $0x100] sm:$0x3] %v2923_v4  ;;  %v1412_v42 = vld [vmem:[%s4228_s3 + $0x1d0] sm:$0xff] }
  0x2e   : > { %1725 = vmatpush.msrb.mxu2 %v1400_v43  ;;  %1514 = vmatmul.f32.vlgmr.msra.gmra.mxu0 %v2923_v4  ;;  %434 = vst [vmem:[#allocation2 + $0x108] sm:$0xff] %v2923_v4 }
  0x2f   : > { %1627 = vmatmul.f32.vlgmr.msra.gmra.mxu1 %v553_v44  ;;  %1838 = vmatpush.msrb.mxu3 %v1416_v45  ;;  %435 = vst [vmem:[#allocation2 + $0x110] sm:$0xff] %v2923_v4  ;;  %v1429_v45 = vld [vmem:[%s4228_s3 + $0x258] sm:$0xff] }
  0x30   : > { %1950 = vmatpush.msrb.mxu0 %v1433_v46  ;;  %2063 = vmatpush.msrb.mxu1 %v1449_v47  ;;  %436 = vst [vmem:[#allocation2 + $0x118] sm:$0x3] %v2923_v4  ;;  %v1445_v46 = vld [vmem:[%s4228_s3 + $0x2d8] sm:$0xff]  ;;  %v286_v47 = vld [vmem:[%s3009_s23 + $0xa8] sm:$0xff] }
  0x31   : > { %437 = vst [vmem:[#allocation2 + $0x120] sm:$0xff] %v2923_v4  ;;  %1726 = vmatpush.msrb.mxu2 %v1399_v48  ;;  %1839 = vmatpush.msrb.mxu3 %v1415_v50  ;;  %v322_v50 = vmul.f32 %v3031_v16, %v286_v47  ;;  %v1408_v47 = vld [vmem:[%s4228_s3 + $0x1b0] sm:$0xff] }
  0x32   : > { %438 = vst [vmem:[#allocation2 + $0x128] sm:$0xff] %v2923_v4  ;;  %2064 = vmatpush.msrb.mxu1 %v1448_v53  ;;  %1951 = vmatpush.msrb.mxu0 %v1432_v52  ;;  %v305_v52 = vmul.f32 %v3031_v16, %v269_v51  ;;  %v290_v51 = vld [vmem:[%s3009_s23 + $0xc8] sm:$0xff] }
  0x33   : > { %439 = vst [vmem:[#allocation2 + $0x130] sm:$0x3] %v2923_v4  ;;  %1727 = vmatpush.msrb.mxu2 %v1398_v0  ;;  %1840 = vmatpush.msrb.mxu3 %v1414_v1  ;;  %v358_v55 = vadd.f32 %v3042_v19, %v322_v50  ;;  %v323_v0 = vmul.f32 %v3031_v16, %v287_v63  ;;  %v270_v1 = vld [vmem:[%s3009_s23 + $0x28] sm:$0xff]  ;;  %v1441_v50 = vld [vmem:[%s4228_s3 + $0x2b8] sm:$0xff] }
  0x34   : > { %440 = vst [vmem:[#allocation2 + $0x138] sm:$0xff] %v2923_v4  ;;  %1952 = vmatpush.msrb.mxu0 %v1431_v2  ;;  %2065 = vmatpush.msrb.mxu1 %v1447_v6  ;;  %v341_v59 = vadd.f32 %v3042_v19, %v305_v52  ;;  %v306_v2 = vmul.f32 %v3031_v16, %v270_v1 }
  0x35   : > { %441 = vst [vmem:[#allocation2 + $0x140] sm:$0xff] %v2923_v4  ;;  %1728 = vmatpush.msrb.mxu2 %v1397_v25  ;;  %1841 = vmatpush.msrb.mxu3 %v1413_v26  ;;  %v390_v61 = vmax.f32 %v358_v55, 0.0  ;;  %v359_v6 = vadd.f32 %v3042_v19, %v323_v0  ;;  %v326_v52 = vmul.f32 %v3031_v16, %v290_v51  ;;  %v273_v55 = vld [vmem:[%s3009_s23 + $0x40] sm:$0xff]  ;;  %v1391_v0 = vld [vmem:[%s4228_s3 + $0x128] sm:$0xff] }
  0x36   : > { %1517 = vmatmul.f32.gmra.mxu0 %v2923_v4  ;;  %442 = vst [vmem:[#allocation2 + $0x148] sm:$0x3] %v2923_v4  ;;  %2066 = vmatpush.msrb.mxu1 %v1446_v28  ;;  %v373_v62 = vmax.f32 %v341_v59, 0.0  ;;  %v342_v7 = vadd.f32 %v3042_v19, %v306_v2  ;;  %v1393_v28 = vld [vmem:[%s4228_s3 + $0x138] sm:$0xff]  ;;  %v1407_v2 = vld [vmem:[%s4228_s3 + $0x1a8] sm:$0xff] }
  0x37   : > { %1630 = vmatmul.f32.gmra.mxu1 %v554_v49  ;;  %443 = vst [vmem:[#allocation2 + $0x150] sm:$0xff] %v2923_v4  ;;  %1953 = vmatpush.msrb.mxu0 %v1430_v27  ;;  %v391_v10 = vmax.f32 %v359_v6, 0.0  ;;  %v362_v59 = vadd.f32 %v3042_v19, %v326_v52  ;;  %v291_v6 = vld [vmem:[%s3009_s23 + $0xd0] sm:$0xff] }
  0x38   : > { %444 = vst [vmem:[#allocation2 + $0x158] sm:$0xff] %v2923_v4  ;;  %1729 = vmatpush.msrb.mxu2 %v1396_v40  ;;  %1842 = vmatpush.msrb.mxu3 %v1412_v42  ;;  %v374_v14 = vmax.f32 %v342_v7, 0.0  ;;  %v327_v7 = vmul.f32 %v3031_v16, %v291_v6  ;;  %v277_v6 = vld [vmem:[%s3009_s23 + $0x60] sm:$0xff] }
  0x39   : > { %445 = vst [vmem:[#allocation2 + $0x160] sm:$0x3] %v2923_v4  ;;  %1954 = vmatpush.msrb.mxu0 %v1429_v45  ;;  %2067 = vmatpush.msrb.mxu1 %v1445_v46  ;;  %v1392_v46 = vld [vmem:[%s4228_s3 + $0x130] sm:$0xff] }
  0x3a   : > { %446 = vst [vmem:[#allocation2 + $0x168] sm:$0xff] %v2923_v4  ;;  %1730 = vmatpush.msrb.mxu2 %v1395_v56  ;;  %1843 = vmatpush.msrb.mxu3 %v1411_v57  ;;  %v309_v56 = vmul.f32 %v3031_v16, %v273_v55 }
  0x3b   : > { %447 = vst [vmem:[#allocation2 + $0x170] sm:$0xff] %v2923_v4  ;;  %1955 = vmatpush.msrb.mxu0 %v1428_v58  ;;  %2068 = vmatpush.msrb.mxu1 %v1444_v60 }
  0x3c   : > { %448 = vst [vmem:[#allocation2 + $0x178] sm:$0x3] %v2923_v4  ;;  %1731 = vmatpush.msrb.mxu2 %v1394_v11  ;;  %1844 = vmatpush.msrb.mxu3 %v1410_v12  ;;  %v345_v60 = vadd.f32 %v3042_v19, %v309_v56 }
  0x3d   : > { %449 = vst [vmem:[#allocation2 + $0x180] sm:$0xff] %v2923_v4  ;;  %2069 = vmatpush.msrb.mxu1 %v1443_v15 }
  0x3e   : > { %450 = vst [vmem:[#allocation2 + $0x188] sm:$0xff] %v2923_v4  ;;  %1732 = vmatpush.msrb.mxu2 %v1393_v28  ;;  %v377_v1 = vmax.f32 %v345_v60, 0.0  ;;  %v1388_v60 = vld [vmem:[%s4228_s3 + $0x110] sm:$0xff] }
  0x3f   : > { %451 = vst [vmem:[#allocation2 + $0x190] sm:$0x3] %v2923_v4 }
  0x40   : > { %452 = vst [vmem:[#allocation2 + $0x198] sm:$0xff] %v2923_v4  ;;  %1733 = vmatpush.msrb.mxu2 %v1392_v46  ;;  %v1438_v46 = vld [vmem:[%s4228_s3 + $0x2a0] sm:$0xff] }
  0x41   : > { %453 = vst [vmem:[#allocation2 + $0x1a0] sm:$0xff] %v2923_v4 }
  0x42   : > { %454 = vst [vmem:[#allocation2 + $0x1a8] sm:$0x3] %v2923_v4  ;;  %v370_v4 = vmax.f32 %v338_v18, 0.0  ;;  %1734 = vmatpush.msrb.mxu2 %v1391_v0  ;;  %v1404_v0 = vld [vmem:[%s4228_s3 + $0x190] sm:$0xff] }
  0x43   : > { %472 = vst.msk [vmem:[#allocation2 + $0xc9] sm:$0xff] %vm456_vm0, %v384_v13  ;;  %v1427_v13 = vld [vmem:[%s4228_s3 + $0x248] sm:$0xff] }
  0x44   : > { %473 = vst.msk [vmem:[#allocation2 + $0xd9] sm:$0xff] %vm456_vm0, %v385_v17  ;;  %v288_v17 = vld [vmem:[%s3009_s23 + $0xb8] sm:$0xff]  ;;  %1956 = vmatpush.msrb.mxu0 %v1427_v13 }
  0x45   : > { %474 = vst.msk [vmem:[#allocation2 + $0xe1] sm:$0xff] %vm456_vm0, %v386_v20  ;;  %v324_v18 = vmul.f32 %v3031_v16, %v288_v17  ;;  %v271_v20 = vld [vmem:[%s3009_s23 + $0x30] sm:$0xff] }
  0x46   : > { %457 = vst.msk [vmem:[#allocation2 + $0x19] sm:$0xff] %vm456_vm0, %v369_v22  ;;  %v307_v22 = vmul.f32 %v3031_v16, %v271_v20  ;;  %1957 = vmatpush.msrb.mxu0 %v1426_v31 }
  0x47   : > { %475 = vst.msk [vmem:[#allocation2 + $0xf1] sm:$0xff] %vm456_vm0, %v387_v24  ;;  %v360_v21 = vadd.f32 %v3042_v19, %v324_v18 }
  0x48   : > { %458 = vst.msk [vmem:[#allocation2 + $0x21] sm:$0xff] %vm456_vm0, %v370_v4  ;;  %v343_v26 = vadd.f32 %v3042_v19, %v307_v22 }
  0x49   : > { %476 = vst.msk [vmem:[#allocation2 + $0xf9] sm:$0xff] %vm456_vm0, %v388_v30  ;;  %v392_v25 = vmax.f32 %v360_v21, 0.0  ;;  %v1409_v30 = vld [vmem:[%s4228_s3 + $0x1b8] sm:$0xff]  ;;  %v1390_v21 = vld [vmem:[%s4228_s3 + $0x120] sm:$0xff] }
  0x4a   : > { %v506_v38 = vld [vmem:[#allocation2 + $0xc8] sm:$0xff]  ;;  %459 = vst.msk [vmem:[#allocation2 + $0x31] sm:$0xff] %vm456_vm0, %v371_v32  ;;  %v375_v29 = vmax.f32 %v343_v26, 0.0  ;;  %1845 = vmatpush.msrb.mxu3 %v1409_v30  ;;  %v1442_v32 = vld [vmem:[%s4228_s3 + $0x2c0] sm:$0xff]  ;;  %1735 = vmatpush.msrb.mxu2 %v1390_v21  ;;  %v292_v26 = vld [vmem:[%s3009_s23 + $0xd8] sm:$0xff] }
  0x4b   : > { %v570_v39 = vld [vmem:[#allocation2 + $0xc9] sm:$0xff]  ;;  %1565 = vmatmul.f32.gmra.mxu2 %v506_v38  ;;  %477 = vst.msk [vmem:[#allocation2 + $0x109] sm:$0xff] %vm456_vm0, %v389_v36  ;;  %v507_v48 = vld [vmem:[#allocation2 + $0xd8] sm:$0xff]  ;;  %2070 = vmatpush.msrb.mxu1 %v1442_v32  ;;  %v308_v36 = vmul.f32 %v3031_v16, %v272_v35  ;;  %v328_v28 = vmul.f32 %v3031_v16, %v292_v26 }
  0x4c   : > { %1678 = vmatmul.f32.gmra.mxu3 %v570_v39  ;;  %460 = vst.msk [vmem:[#allocation2 + $0x39] sm:$0xff] %vm456_vm0, %v372_v41  ;;  %v571_v49 = vld [vmem:[#allocation2 + $0xd9] sm:$0xff]  ;;  %v572_v5 = vld [vmem:[#allocation2 + $0xe1] sm:$0xff]  ;;  %v361_v39 = vadd.f32 %v3042_v19, %v325_v34 }
  0x4d   : > { %v3240_v43 = vld [vmem:[#allocation2 + $0x18] sm:$0xff]  ;;  %478 = vst.msk [vmem:[#allocation2 + $0x111] sm:$0xff] %vm456_vm0, %v390_v61  ;;  %v508_v3 = vld [vmem:[#allocation2 + $0xe0] sm:$0xff]  ;;  %v344_v40 = vadd.f32 %v3042_v19, %v308_v36  ;;  %1846 = vmatpush.msrb.mxu3 %v1408_v47  ;;  %2071 = vmatpush.msrb.mxu1 %v1441_v50  ;;  %v394_v61 = vmax.f32 %v362_v59, 0.0  ;;  %v364_v33 = vadd.f32 %v3042_v19, %v328_v28  ;;  %v1387_v21 = vld [vmem:[%s4228_s3 + $0x108] sm:$0xff] }
  0x4e   : > { %v3242_v44 = vld [vmem:[#allocation2 + $0x19] sm:$0xff]  ;;  %1520 = vmatmul.f32.gmra.mxu0 %v3240_v43  ;;  %461 = vst.msk [vmem:[#allocation2 + $0x49] sm:$0xff] %vm456_vm0, %v373_v62  ;;  %v509_v23 = vld [vmem:[#allocation2 + $0xf0] sm:$0xff]  ;;  %v393_v45 = vmax.f32 %v361_v39, 0.0  ;;  %v278_v26 = vld [vmem:[%s3009_s23 + $0x68] sm:$0xff] }
  0x4f   : > { %1633 = vmatmul.f32.gmra.mxu1 %v3242_v44  ;;  %v3257_v53 = vld [vmem:[#allocation2 + $0x20] sm:$0xff]  ;;  %479 = vst.msk [vmem:[#allocation2 + $0x121] sm:$0xff] %vm456_vm0, %v391_v10  ;;  %v573_v24 = vld [vmem:[#allocation2 + $0xf1] sm:$0xff]  ;;  %1847 = vmatpush.msrb.mxu3 %v1407_v2  ;;  %v274_v10 = vld [vmem:[%s3009_s23 + $0x48] sm:$0xff]  ;;  %v396_v35 = vmax.f32 %v364_v33, 0.0  ;;  %v314_v28 = vmul.f32 %v3031_v16, %v278_v26 }
  0x50   : > { %v3259_v54 = vld [vmem:[#allocation2 + $0x21] sm:$0xff]  ;;  %462 = vst.msk [vmem:[#allocation2 + $0x51] sm:$0xff] %vm456_vm0, %v374_v14  ;;  %v510_v37 = vld [vmem:[#allocation2 + $0xf8] sm:$0xff]  ;;  %v310_v11 = vmul.f32 %v3031_v16, %v274_v10  ;;  %v363_v14 = vadd.f32 %v3042_v19, %v327_v7  ;;  %v313_v7 = vmul.f32 %v3031_v16, %v277_v6 }
  0x51   : > { %v3285_v8 = vld [vmem:[#allocation2 + $0x30] sm:$0xff]  ;;  %480 = vst.msk [vmem:[#allocation2 + $0x129] sm:$0xff] %vm456_vm0, %v392_v25  ;;  %v574_v38 = vld [vmem:[#allocation2 + $0xf9] sm:$0xff]  ;;  %v1439_v25 = vld [vmem:[%s4228_s3 + $0x2a8] sm:$0xff] }
  0x52   : > { %v3287_v9 = vld [vmem:[#allocation2 + $0x31] sm:$0xff]  ;;  %463 = vst.msk [vmem:[#allocation2 + $0x61] sm:$0xff] %vm456_vm0, %v375_v29  ;;  %v511_v57 = vld [vmem:[#allocation2 + $0x108] sm:$0xff]  ;;  %v346_v15 = vadd.f32 %v3042_v19, %v310_v11  ;;  %v395_v17 = vmax.f32 %v363_v14, 0.0  ;;  %v293_v47 = vld [vmem:[%s3009_s23 + $0xe0] sm:$0xff] }
  0x53   : > { %1568 = vmatmul.f32.gmra.mxu2 %v507_v48  ;;  %v3311_v27 = vld [vmem:[#allocation2 + $0x38] sm:$0xff]  ;;  %481 = vst.msk [vmem:[#allocation2 + $0x139] sm:$0xff] %vm456_vm0, %v393_v45  ;;  %v575_v58 = vld [vmem:[#allocation2 + $0x109] sm:$0xff]  ;;  %v1422_v45 = vld [vmem:[%s4228_s3 + $0x220] sm:$0xff] }
  0x54   : > { %1681 = vmatmul.f32.gmra.mxu3 %v571_v49  ;;  %v3313_v4 = vld [vmem:[#allocation2 + $0x39] sm:$0xff]  ;;  %v376_v49 = vmax.f32 %v344_v40, 0.0  ;;  %482 = vst.msk [vmem:[#allocation2 + $0x141] sm:$0xff] %vm456_vm0, %v394_v61  ;;  %v512_v12 = vld [vmem:[#allocation2 + $0x110] sm:$0xff]  ;;  %v378_v22 = vmax.f32 %v346_v15, 0.0 }
  0x55   : > { %v3337_v41 = vld [vmem:[#allocation2 + $0x48] sm:$0xff]  ;;  %v1425_v48 = vld [vmem:[%s4228_s3 + $0x238] sm:$0xff]  ;;  %465 = vst.msk [vmem:[#allocation2 + $0x79] sm:$0xff] %vm456_vm0, %v377_v1  ;;  %v275_v29 = vld [vmem:[%s3009_s23 + $0x50] sm:$0xff] }
  0x56   : > { %1523 = vmatmul.f32.gmra.mxu0 %v3257_v53  ;;  %v3339_v42 = vld [vmem:[#allocation2 + $0x49] sm:$0xff]  ;;  %464 = vst.msk [vmem:[#allocation2 + $0x69] sm:$0xff] %vm456_vm0, %v376_v49  ;;  %v576_v13 = vld [vmem:[#allocation2 + $0x111] sm:$0xff]  ;;  %v311_v30 = vmul.f32 %v3031_v16, %v275_v29  ;;  %v513_v31 = vld [vmem:[#allocation2 + $0x120] sm:$0xff] }
  0x57   : > { %1636 = vmatmul.f32.gmra.mxu1 %v3259_v54  ;;  %1958 = vmatpush.msrb.mxu0 %v1425_v48  ;;  %v3363_v62 = vld [vmem:[#allocation2 + $0x50] sm:$0xff]  ;;  %483 = vst.msk [vmem:[#allocation2 + $0x151] sm:$0xff] %vm456_vm0, %v395_v17  ;;  %v577_v32 = vld [vmem:[#allocation2 + $0x121] sm:$0xff]  ;;  %v1405_v40 = vld [vmem:[%s4228_s3 + $0x198] sm:$0xff]  ;;  %v329_v48 = vmul.f32 %v3031_v16, %v293_v47 }
  0x58   : > { %v3365_v63 = vld [vmem:[#allocation2 + $0x51] sm:$0xff]  ;;  %466 = vst.msk [vmem:[#allocation2 + $0x81] sm:$0xff] %vm456_vm0, %v378_v22  ;;  %v347_v34 = vadd.f32 %v3042_v19, %v311_v30  ;;  %v514_v51 = vld [vmem:[#allocation2 + $0x128] sm:$0xff] }
  0x59   : > { %v3389_v18 = vld [vmem:[#allocation2 + $0x60] sm:$0xff]  ;;  %484 = vst.msk [vmem:[#allocation2 + $0x159] sm:$0xff] %vm456_vm0, %v396_v35  ;;  %v276_v49 = vld [vmem:[%s3009_s23 + $0x58] sm:$0xff]  ;;  %v578_v52 = vld [vmem:[#allocation2 + $0x129] sm:$0xff]  ;;  %v365_v55 = vadd.f32 %v3042_v19, %v329_v48 }
  0x5a   : > { %v3391_v20 = vld [vmem:[#allocation2 + $0x61] sm:$0xff]  ;;  %v379_v39 = vmax.f32 %v347_v34, 0.0  ;;  %v312_v50 = vmul.f32 %v3031_v16, %v276_v49  ;;  %v1421_v1 = vld [vmem:[%s4228_s3 + $0x218] sm:$0xff] }
  0x5b   : > { %1571 = vmatmul.f32.gmra.mxu2 %v508_v3  ;;  %v1424_v3 = vld [vmem:[%s4228_s3 + $0x230] sm:$0xff]  ;;  %v1437_v2 = vld [vmem:[%s4228_s3 + $0x298] sm:$0xff]  ;;  %v516_v29 = vld [vmem:[#allocation2 + $0x140] sm:$0xff] }
  0x5c   : > { %1684 = vmatmul.f32.gmra.mxu3 %v572_v5  ;;  %v1440_v5 = vld [vmem:[%s4228_s3 + $0x2b0] sm:$0xff]  ;;  %1959 = vmatpush.msrb.mxu0 %v1424_v3  ;;  %467 = vst.msk [vmem:[#allocation2 + $0x91] sm:$0xff] %vm456_vm0, %v379_v39  ;;  %v348_v56 = vadd.f32 %v3042_v19, %v312_v50  ;;  %v3443_v59 = vld [vmem:[#allocation2 + $0x79] sm:$0xff]  ;;  %v294_v3 = vld [vmem:[%s3009_s23 + $0xe8] sm:$0xff] }
  0x5d   : > { %2072 = vmatpush.msrb.mxu1 %v1440_v5  ;;  %v3415_v36 = vld [vmem:[#allocation2 + $0x68] sm:$0xff]  ;;  %v330_v5 = vmul.f32 %v3031_v16, %v294_v3  ;;  %v515_v10 = vld [vmem:[#allocation2 + $0x138] sm:$0xff]  ;;  %v1386_v34 = vld [vmem:[%s4228_s3 + $0x100] sm:$0xff] }
  0x5e   : > { %1526 = vmatmul.f32.gmra.mxu0 %v3285_v8  ;;  %v380_v61 = vmax.f32 %v348_v56, 0.0  ;;  %v579_v11 = vld [vmem:[#allocation2 + $0x139] sm:$0xff]  ;;  %v580_v30 = vld [vmem:[#allocation2 + $0x141] sm:$0xff]  ;;  %v517_v39 = vld [vmem:[#allocation2 + $0x150] sm:$0xff] }
  0x5f   : > { %1639 = vmatmul.f32.gmra.mxu1 %v3287_v9  ;;  %v3467_v15 = vld [vmem:[#allocation2 + $0x80] sm:$0xff]  ;;  %v1465_v47 = vld [vmem:[%s4228_s3 + $0x378] sm:$0xff]  ;;  %v1464_v3 = vld [vmem:[%s4228_s3 + $0x370] sm:$0xff] }
  0x60   : > { %2073 = vmatpush.msrb.mxu1 %v1439_v25  ;;  %468 = vst.msk [vmem:[#allocation2 + $0x99] sm:$0xff] %vm456_vm0, %v380_v61  ;;  %v3469_v17 = vld [vmem:[#allocation2 + $0x81] sm:$0xff]  ;;  %v1436_v25 = vld [vmem:[%s4228_s3 + $0x290] sm:$0xff]  ;;  %v1481_v49 = vld [vmem:[%s4228_s3 + $0x3f8] sm:$0xff] }
  0x61   : > { %v1402_v16 = vld [vmem:[%s4228_s3 + $0x180] sm:$0xff] }
  0x62   : > { %2074 = vmatpush.msrb.mxu1 %v1438_v46  ;;  %v1418_v48 = vld [vmem:[%s4228_s3 + $0x200] sm:$0xff] }
  0x63   : > { %1574 = vmatmul.f32.gmra.mxu2 %v509_v23  ;;  %v1406_v23 = vld [vmem:[%s4228_s3 + $0x1a0] sm:$0xff]  ;;  %v3492_v33 = vld [vmem:[#allocation2 + $0x91] sm:$0xff] }
  0x64   : > { %1687 = vmatmul.f32.gmra.mxu3 %v573_v24  ;;  %v1423_v24 = vld [vmem:[%s4228_s3 + $0x228] sm:$0xff]  ;;  %2075 = vmatpush.msrb.mxu1 %v1437_v2  ;;  %v1434_v50 = vld [vmem:[%s4228_s3 + $0x280] sm:$0xff] }
  0x65   : > { %1848 = vmatpush.msrb.mxu3 %v1406_v23  ;;  %1960 = vmatpush.msrb.mxu0 %v1423_v24  ;;  %v1403_v23 = vld [vmem:[%s4228_s3 + $0x188] sm:$0xff]  ;;  %v1420_v24 = vld [vmem:[%s4228_s3 + $0x210] sm:$0xff] }
  0x66   : > { %1529 = vmatmul.f32.gmra.mxu0 %v3311_v27  ;;  %2076 = vmatpush.msrb.mxu1 %v1436_v25  ;;  %v1463_v25 = vld [vmem:[%s4228_s3 + $0x368] sm:$0xff] }
  0x67   : > { %1642 = vmatmul.f32.gmra.mxu1 %v3313_v4  ;;  %1849 = vmatpush.msrb.mxu3 %v1405_v40  ;;  %v581_v40 = vld [vmem:[#allocation2 + $0x151] sm:$0xff]  ;;  %v3511_v46 = vld [vmem:[#allocation2 + $0x99] sm:$0xff] }
  0x68   : > { %1961 = vmatpush.msrb.mxu0 %v1422_v45  ;;  %v3509_v45 = vld [vmem:[#allocation2 + $0x98] sm:$0xff] }
  0x69   : > { %1850 = vmatpush.msrb.mxu3 %v1404_v0 }
  0x6a   : > { %1962 = vmatpush.msrb.mxu0 %v1421_v1 }
  0x6b   : > { %1577 = vmatmul.f32.gmra.mxu2 %v510_v37  ;;  %v3417_v37 = vld [vmem:[#allocation2 + $0x69] sm:$0xff]  ;;  %1851 = vmatpush.msrb.mxu3 %v1403_v23 }
  0x6c   : > { %1690 = vmatmul.f32.gmra.mxu3 %v574_v38  ;;  %v1389_v38 = vld [vmem:[%s4228_s3 + $0x118] sm:$0xff]  ;;  %1963 = vmatpush.msrb.mxu0 %v1420_v24  ;;  %v810_v24 = vld [vmem:[#allocation2 + $0x22] sm:$0xff] }
  0x6d   : > { %1736 = vmatpush.msrb.mxu2 %v1389_v38  ;;  %1852 = vmatpush.msrb.mxu3 %v1402_v16  ;;  %v1435_v38 = vld [vmem:[%s4228_s3 + $0x288] sm:$0xff] }
  0x6e   : > { %1532 = vmatmul.f32.gmra.mxu0 %v3337_v41  ;;  %2077 = vmatpush.msrb.mxu1 %v1435_v38 }
  0x6f   : > { %1645 = vmatmul.f32.gmra.mxu1 %v3339_v42  ;;  %1737 = vmatpush.msrb.mxu2 %v1388_v60  ;;  %v2594_v60 = vld [vmem:[%s4229_s4 + $0x78] sm:$0xff] }
  0x70   : > { %2289 = vmatpush.msra.mxu3 %v1481_v49  ;;  %2078 = vmatpush.msrb.mxu1 %v1434_v50 }
  0x71   : > { %1738 = vmatpush.msrb.mxu2 %v1387_v21  ;;  %v617_v21 = vld [vmem:[#allocation2 + $0x2] sm:$0xff] }
  0x72   : > { %2595 = vmatpush.msra.mxu1 %v2594_v60 }
  0x73   : > { %1580 = vmatmul.f32.gmra.mxu2 %v511_v57  ;;  %v397_v57 = vmax.f32 %v365_v55, 0.0 }
  0x74   : > { %1693 = vmatmul.f32.gmra.mxu3 %v575_v58  ;;  %v3441_v58 = vld [vmem:[#allocation2 + $0x78] sm:$0xff]  ;;  %1739 = vmatpush.msrb.mxu2 %v1386_v34  ;;  %v1495_v34 = vld [vmem:[%s4228_s3 + $0x468] sm:$0xff] }
  0x75   : > { %485 = vst.msk [vmem:[#allocation2 + $0x169] sm:$0xff] %vm456_vm0, %v397_v57  ;;  %v1497_v57 = vld [vmem:[%s4228_s3 + $0x478] sm:$0xff] }
  0x76   : > { %1535 = vmatmul.f32.gmra.mxu0 %v3363_v62  ;;  %2176 = vmatpush.msra.mxu2 %v1465_v47 }
  0x77   : > { %1648 = vmatmul.f32.gmra.mxu1 %v3365_v63 }
  0x78   : > { %2177 = vmatpush.msra.mxu2 %v1464_v3  ;;  %v814_v3 = vld [vmem:[#allocation2 + $0x52] sm:$0xff] }
  0x7a   : > { %2178 = vmatpush.msra.mxu2 %v1463_v25 }
  0x7b   : > { %1583 = vmatmul.f32.gmra.mxu2 %v512_v12  ;;  %v366_v12 = vadd.f32 %v3042_v19, %v330_v5  ;;  %v1480_v5 = vld [vmem:[%s4228_s3 + $0x3f0] sm:$0xff] }
  0x7c   : > { %1696 = vmatmul.f32.gmra.mxu3 %v576_v13  ;;  %v349_v13 = vadd.f32 %v3042_v19, %v313_v7  ;;  %v519_v61 = vld [vmem:[#allocation2 + $0x168] sm:$0xff] }
  0x7d   : > { %v398_v14 = vmax.f32 %v366_v12, 0.0  ;;  %v583_v0 = vld [vmem:[#allocation2 + $0x169] sm:$0xff]  ;;  %2290 = vmatpush.msra.mxu3 %v1480_v5  ;;  %v809_v12 = vld [vmem:[#allocation2 + $0x1a] sm:$0xff] }
  0x7e   : > { %1538 = vmatmul.f32.gmra.mxu0 %v3389_v18  ;;  %v381_v22 = vmax.f32 %v349_v13, 0.0  ;;  %v1496_v13 = vld [vmem:[%s4228_s3 + $0x470] sm:$0xff]  ;;  %v1477_v5 = vld [vmem:[%s4228_s3 + $0x3d8] sm:$0xff] }
  0x7f   : > { %1651 = vmatmul.f32.gmra.mxu1 %v3391_v20  ;;  %486 = vst.msk [vmem:[#allocation2 + $0x171] sm:$0xff] %vm456_vm0, %v398_v14  ;;  %v2593_v14 = vld [vmem:[%s4229_s4 + $0x70] sm:$0xff] }
  0x80   : > { %469 = vst.msk [vmem:[#allocation2 + $0xa9] sm:$0xff] %vm456_vm0, %v381_v22  ;;  %2596 = vmatpush.msra.mxu1 %v2593_v14  ;;  %v815_v14 = vld [vmem:[#allocation2 + $0x62] sm:$0xff] }
  0x83   : > { %1586 = vmatmul.f32.gmra.mxu2 %v513_v31  ;;  %v350_v31 = vadd.f32 %v3042_v19, %v314_v28  ;;  %v1419_v19 = vld [vmem:[%s4228_s3 + $0x208] sm:$0xff] }
  0x84   : > { %1699 = vmatmul.f32.gmra.mxu3 %v577_v32  ;;  %v3490_v32 = vld [vmem:[#allocation2 + $0x90] sm:$0xff]  ;;  %1964 = vmatpush.msrb.mxu0 %v1419_v19 }
  0x85   : > { %v382_v35 = vmax.f32 %v350_v31, 0.0  ;;  %v811_v31 = vld [vmem:[#allocation2 + $0x32] sm:$0xff] }
  0x86   : > { %1541 = vmatmul.f32.gmra.mxu0 %v3415_v36 }
  0x87   : > { %1654 = vmatmul.f32.gmra.mxu1 %v3417_v37  ;;  %470 = vst.msk [vmem:[#allocation2 + $0xb1] sm:$0xff] %vm456_vm0, %v382_v35  ;;  %1965 = vmatpush.msrb.mxu0 %v1418_v48  ;;  %v3527_v55 = vld [vmem:[#allocation2 + $0xa8] sm:$0xff] }
  0x88   : > { %v3529_v56 = vld [vmem:[#allocation2 + $0xa9] sm:$0xff] }
  0x89   : > { %2402 = vmatpush.msra.mxu0 %v1497_v57 }
  0x8b   : > { %1589 = vmatmul.f32.gmra.mxu2 %v514_v51  ;;  %v518_v51 = vld [vmem:[#allocation2 + $0x158] sm:$0xff]  ;;  %2403 = vmatpush.msra.mxu0 %v1496_v13 }
  0x8c   : > { %1702 = vmatmul.f32.gmra.mxu3 %v578_v52  ;;  %v582_v52 = vld [vmem:[#allocation2 + $0x159] sm:$0xff] }
  0x8d   : > { %2404 = vmatpush.msra.mxu0 %v1495_v34  ;;  %v1476_v34 = vld [vmem:[%s4228_s3 + $0x3d0] sm:$0xff] }
  0x8e   : > { %1544 = vmatmul.f32.gmra.mxu0 %v3441_v58  ;;  %v3539_v1 = vld [vmem:[#allocation2 + $0xb0] sm:$0xff] }
  0x8f   : > { %1657 = vmatmul.f32.gmra.mxu1 %v3443_v59  ;;  %v3541_v2 = vld [vmem:[#allocation2 + $0xb1] sm:$0xff] }
  0x93   : > { %1592 = vmatmul.f32.gmra.mxu2 %v515_v10  ;;  %v520_v10 = vld [vmem:[#allocation2 + $0x170] sm:$0xff] }
  0x94   : > { %1705 = vmatmul.f32.gmra.mxu3 %v579_v11  ;;  %v584_v11 = vld [vmem:[#allocation2 + $0x171] sm:$0xff] }
  0x96   : > { %1547 = vmatmul.f32.gmra.mxu0 %v3467_v15 }
  0x97   : > { %1660 = vmatmul.f32.gmra.mxu1 %v3469_v17 }
  0x9b   : > { %1595 = vmatmul.f32.gmra.mxu2 %v516_v29  ;;  %v618_v29 = vld [vmem:[#allocation2 + $0xa] sm:$0xff] }
  0x9c   : > { %1708 = vmatmul.f32.gmra.mxu3 %v580_v30 }
  0x9e   : > { %1550 = vmatmul.f32.gmra.mxu0 %v3490_v32 }
  0x9f   : > { %1663 = vmatmul.f32.gmra.mxu1 %v3492_v33 }
  0xa3   : > { %1598 = vmatmul.f32.gmra.mxu2 %v517_v39  ;;  %v812_v39 = vld [vmem:[#allocation2 + $0x3a] sm:$0xff] }
  0xa4   : > { %1711 = vmatmul.f32.gmra.mxu3 %v581_v40  ;;  %v1478_v40 = vld [vmem:[%s4228_s3 + $0x3e0] sm:$0xff] }
  0xa6   : > { %1553 = vmatmul.f32.gmra.mxu0 %v3509_v45 }
  0xa7   : > { %1666 = vmatmul.f32.gmra.mxu1 %v3511_v46 }
  0xab   : > { %1601 = vmatmul.f32.gmra.mxu2 %v518_v51  ;;  %v3551_v6 = vpop.f32.mrf.mxu0  ;;  %v813_v51 = vld [vmem:[#allocation2 + $0x4a] sm:$0xff] }
  0xac   : > { %1714 = vmatmul.f32.gmra.mxu3 %v582_v52  ;;  %v3553_v7 = vpop.f32.mrf.mxu1  ;;  %v1494_v52 = vld [vmem:[%s4228_s3 + $0x460] sm:$0xff] }
  0xad   : > { %2405 = vmatpush.msra.mxu0 %v1494_v52 }
  0xae   : > { %1556 = vmatmul.f32.gmra.mxu0 %v3527_v55  ;;  %v3573_v26 = vpop.f32.mrf.mxu2 }
  0xaf   : > { %1669 = vmatmul.f32.gmra.mxu1 %v3529_v56  ;;  %v3575_v28 = vpop.f32.mrf.mxu3 }
  0xb3   : > { %1604 = vmatmul.f32.gmra.mxu2 %v519_v61  ;;  %v3562_v22 = vpop.f32.mrf.mxu0 }
  0xb4   : > { %1717 = vmatmul.f32.gmra.mxu3 %v583_v0  ;;  %v3564_v23 = vpop.f32.mrf.mxu1 }
  0xb6   : > { %1559 = vmatmul.f32.gmra.mxu0 %v3539_v1 }
  0xb7   : > { %1672 = vmatmul.f32.gmra.mxu1 %v3541_v2 }
  0xbb   : > { %1607 = vmatmul.f32.gmra.mxu2 %v520_v10 }
  0xbc   : > { %1720 = vmatmul.f32.gmra.mxu3 %v584_v11 }
  0xbe   : > { %1966 = vmatmul.f32.vlgmr.msrb.gmra.mxu0 %v3242_v44  ;;  %v1479_v44 = vld [vmem:[%s4228_s3 + $0x3e8] sm:$0xff] }
  0xbf   : > { %2079 = vmatmul.f32.vlgmr.msrb.gmra.mxu1 %v809_v12  ;;  %2291 = vmatpush.msra.mxu3 %v1479_v44 }
  0xc1   : > { %2292 = vmatpush.msra.mxu3 %v1478_v40  ;;  %v1492_v40 = vld [vmem:[%s4228_s3 + $0x450] sm:$0xff] }
  0xc3   : > { %1740 = vmatmul.f32.vlgmr.msrb.gmra.mxu2 %v617_v21  ;;  %2293 = vmatpush.msra.mxu3 %v1477_v5  ;;  %v1493_v21 = vld [vmem:[%s4228_s3 + $0x458] sm:$0xff] }
  0xc4   : > { %1853 = vmatmul.f32.vlgmr.msrb.gmra.mxu3 %v3240_v43  ;;  %2406 = vmatpush.msra.mxu0 %v1493_v21 }
  0xc5   : > { %2294 = vmatpush.msra.mxu3 %v1476_v34 }
  0xc6   : > { %1969 = vmatmul.f32.gmra.mxu0 %v3259_v54 }
  0xc7   : > { %2082 = vmatmul.f32.gmra.mxu1 %v810_v24  ;;  %2407 = vmatpush.msra.mxu0 %v1492_v40  ;;  %v1490_v40 = vld [vmem:[%s4228_s3 + $0x440] sm:$0xff] }
  0xcb   : > { %1743 = vmatmul.f32.gmra.mxu2 %v618_v29  ;;  %v3579_v43 = vpop.f32.mrf.mxu0 }
  0xcc   : > { %1856 = vmatmul.f32.gmra.mxu3 %v3257_v53  ;;  %v3581_v30 = vpop.f32.mrf.mxu1  ;;  %v2592_v53 = vld [vmem:[%s4229_s4 + $0x68] sm:$0xff] }
  0xcd   : > { %2597 = vmatpush.msra.mxu1 %v2592_v53 }
  0xce   : > { %v1566_v35 = vpop.f32.mrf.mxu2  ;;  %1972 = vmatmul.f32.gmra.mxu0 %v3287_v9  ;;  %v1462_v9 = vld [vmem:[%s4228_s3 + $0x360] sm:$0xff] }
  0xcf   : > { %v1679_v16 = vpop.f32.mrf.mxu3  ;;  %2085 = vmatmul.f32.gmra.mxu1 %v811_v31  ;;  %2179 = vmatpush.msra.mxu2 %v1462_v9  ;;  %v817_v9 = vld [vmem:[#allocation2 + $0x7a] sm:$0xff] }
  0xd0   : > { %v3587_v54 = vadd.f32 %v1679_v16, %v1566_v35 }
  0xd3   : > { %1746 = vmatmul.f32.gmra.mxu2 %v809_v12  ;;  %v3593_v19 = vpop.f32.mrf.mxu0 }
  0xd4   : > { %1859 = vmatmul.f32.gmra.mxu3 %v3285_v8  ;;  %v3595_v38 = vpop.f32.mrf.mxu1 }
  0xd6   : > { %v1569_v47 = vpop.f32.mrf.mxu2  ;;  %1975 = vmatmul.f32.gmra.mxu0 %v3313_v4 }
  0xd7   : > { %v1682_v48 = vpop.f32.mrf.mxu3  ;;  %2088 = vmatmul.f32.gmra.mxu1 %v812_v39 }
  0xd8   : > { %v3604_v8 = vadd.f32 %v1682_v48, %v1569_v47 }
  0xdb   : > { %1749 = vmatmul.f32.gmra.mxu2 %v810_v24  ;;  %v3607_v49 = vpop.f32.mrf.mxu0 }
  0xdc   : > { %1862 = vmatmul.f32.gmra.mxu3 %v3311_v27  ;;  %v3609_v50 = vpop.f32.mrf.mxu1  ;;  %v2591_v27 = vld [vmem:[%s4229_s4 + $0x60] sm:$0xff] }
  0xdd   : > { %2598 = vmatpush.msra.mxu1 %v2591_v27 }
  0xde   : > { %v1572_v57 = vpop.f32.mrf.mxu2  ;;  %1978 = vmatmul.f32.gmra.mxu0 %v3339_v42  ;;  %v1461_v42 = vld [vmem:[%s4228_s3 + $0x358] sm:$0xff] }
  0xdf   : > { %v1685_v60 = vpop.f32.mrf.mxu3  ;;  %2091 = vmatmul.f32.gmra.mxu1 %v813_v51  ;;  %2180 = vmatpush.msra.mxu2 %v1461_v42 }
  0xe0   : > { %v3615_v4 = vadd.f32 %v1685_v60, %v1572_v57  ;;  %v818_v57 = vld [vmem:[#allocation2 + $0x82] sm:$0xff] }
  0xe1   : > { %v1475_v60 = vld [vmem:[%s4228_s3 + $0x3c8] sm:$0xff] }
  0xe2   : > { %2295 = vmatpush.msra.mxu3 %v1475_v60  ;;  %v1473_v60 = vld [vmem:[%s4228_s3 + $0x3b8] sm:$0xff] }
  0xe3   : > { %1752 = vmatmul.f32.gmra.mxu2 %v811_v31  ;;  %v3621_v61 = vpop.f32.mrf.mxu0  ;;  %v816_v31 = vld [vmem:[#allocation2 + $0x6a] sm:$0xff] }
  0xe4   : > { %1865 = vmatmul.f32.gmra.mxu3 %v3337_v41  ;;  %v3623_v0 = vpop.f32.mrf.mxu1 }
  0xe6   : > { %v1575_v10 = vpop.f32.mrf.mxu2  ;;  %1981 = vmatmul.f32.gmra.mxu0 %v3365_v63 }
  0xe7   : > { %v1688_v11 = vpop.f32.mrf.mxu3  ;;  %2094 = vmatmul.f32.gmra.mxu1 %v814_v3 }
  0xe8   : > { %v3632_v41 = vadd.f32 %v1688_v11, %v1575_v10  ;;  %v819_v10 = vld [vmem:[#allocation2 + $0x92] sm:$0xff]  ;;  %v1491_v11 = vld [vmem:[%s4228_s3 + $0x448] sm:$0xff] }
  0xe9   : > { %2408 = vmatpush.msra.mxu0 %v1491_v11 }
  0xeb   : > { %1755 = vmatmul.f32.gmra.mxu2 %v812_v39  ;;  %v3635_v12 = vpop.f32.mrf.mxu0  ;;  %2409 = vmatpush.msra.mxu0 %v1490_v40  ;;  %v760_v40 = vld [vmem:[#allocation2 + $0xc9] sm:$0xff] }
  0xec   : > { %1868 = vmatmul.f32.gmra.mxu3 %v3363_v62  ;;  %v3637_v13 = vpop.f32.mrf.mxu1  ;;  %v2590_v62 = vld [vmem:[%s4229_s4 + $0x58] sm:$0xff] }
  0xed   : > { %2599 = vmatpush.msra.mxu1 %v2590_v62  ;;  %v820_v62 = vld [vmem:[#allocation2 + $0x9a] sm:$0xff] }
  0xee   : > { %v1578_v24 = vpop.f32.mrf.mxu2  ;;  %1984 = vmatmul.f32.gmra.mxu0 %v3391_v20  ;;  %v1460_v20 = vld [vmem:[%s4228_s3 + $0x350] sm:$0xff] }
  0xef   : > { %v1691_v25 = vpop.f32.mrf.mxu3  ;;  %2097 = vmatmul.f32.gmra.mxu1 %v815_v14  ;;  %2181 = vmatpush.msra.mxu2 %v1460_v20 }
  0xf0   : > { %v3643_v63 = vadd.f32 %v1691_v25, %v1578_v24 }
  0xf3   : > { %1758 = vmatmul.f32.gmra.mxu2 %v813_v51  ;;  %v3649_v44 = vpop.f32.mrf.mxu0 }
  0xf4   : > { %1871 = vmatmul.f32.gmra.mxu3 %v3389_v18  ;;  %v3651_v29 = vpop.f32.mrf.mxu1 }
  0xf6   : > { %v1581_v35 = vpop.f32.mrf.mxu2  ;;  %1987 = vmatmul.f32.gmra.mxu0 %v3417_v37 }
  0xf7   : > { %v1694_v16 = vpop.f32.mrf.mxu3  ;;  %2100 = vmatmul.f32.gmra.mxu1 %v816_v31 }
  0xf8   : > { %v3660_v18 = vadd.f32 %v1694_v16, %v1581_v35 }
  0xfb   : > { %1761 = vmatmul.f32.gmra.mxu2 %v814_v3  ;;  %v3663_v53 = vpop.f32.mrf.mxu0 }
  0xfc   : > { %1874 = vmatmul.f32.gmra.mxu3 %v3415_v36  ;;  %v3665_v39 = vpop.f32.mrf.mxu1  ;;  %v2589_v36 = vld [vmem:[%s4229_s4 + $0x50] sm:$0xff] }
  0xfd   : > { %2600 = vmatpush.msra.mxu1 %v2589_v36 }
  0xfe   : > { %v1584_v47 = vpop.f32.mrf.mxu2  ;;  %1990 = vmatmul.f32.gmra.mxu0 %v3443_v59  ;;  %v1459_v59 = vld [vmem:[%s4228_s3 + $0x348] sm:$0xff] }
  0xff   : > { %v1697_v48 = vpop.f32.mrf.mxu3  ;;  %2103 = vmatmul.f32.gmra.mxu1 %v817_v9  ;;  %2182 = vmatpush.msra.mxu2 %v1459_v59  ;;  %v822_v59 = vld [vmem:[#allocation2 + $0xb2] sm:$0xff] }
 0x100   : > { %v3671_v37 = vadd.f32 %v1697_v48, %v1584_v47 }
 0x103   : > { %1764 = vmatmul.f32.gmra.mxu2 %v815_v14  ;;  %v3677_v51 = vpop.f32.mrf.mxu0 }
 0x104   : > { %1877 = vmatmul.f32.gmra.mxu3 %v3441_v58  ;;  %v3679_v52 = vpop.f32.mrf.mxu1 }
 0x106   : > { %v1587_v27 = vpop.f32.mrf.mxu2  ;;  %1993 = vmatmul.f32.gmra.mxu0 %v3469_v17 }
 0x107   : > { %v1700_v3 = vpop.f32.mrf.mxu3  ;;  %2106 = vmatmul.f32.gmra.mxu1 %v818_v57 }
 0x108   : > { %v3688_v58 = vadd.f32 %v1700_v3, %v1587_v27 }
 0x10b   : > { %1767 = vmatmul.f32.gmra.mxu2 %v816_v31  ;;  %v3691_v42 = vpop.f32.mrf.mxu0  ;;  %v1474_v31 = vld [vmem:[%s4228_s3 + $0x3c0] sm:$0xff] }
 0x10c   : > { %1880 = vmatmul.f32.gmra.mxu3 %v3467_v15  ;;  %v3693_v5 = vpop.f32.mrf.mxu1  ;;  %v2588_v15 = vld [vmem:[%s4229_s4 + $0x48] sm:$0xff] }
 0x10d   : > { %2601 = vmatpush.msra.mxu1 %v2588_v15  ;;  %2296 = vmatpush.msra.mxu3 %v1474_v31  ;;  %v1489_v15 = vld [vmem:[%s4228_s3 + $0x438] sm:$0xff] }
 0x10e   : > { %v1590_v14 = vpop.f32.mrf.mxu2  ;;  %1996 = vmatmul.f32.gmra.mxu0 %v3492_v33  ;;  %v1458_v33 = vld [vmem:[%s4228_s3 + $0x340] sm:$0xff] }
 0x10f   : > { %v1703_v21 = vpop.f32.mrf.mxu3  ;;  %2109 = vmatmul.f32.gmra.mxu1 %v819_v10  ;;  %2183 = vmatpush.msra.mxu2 %v1458_v33 }
 0x110   : > { %v3699_v17 = vadd.f32 %v1703_v21, %v1590_v14  ;;  %2297 = vmatpush.msra.mxu3 %v1473_v60  ;;  %v759_v14 = vld [vmem:[#allocation2 + $0xc1] sm:$0xff]  ;;  %2410 = vmatpush.msra.mxu0 %v1489_v15  ;;  %v761_v15 = vld [vmem:[#allocation2 + $0xd9] sm:$0xff] }
 0x111   : > { %v823_v21 = vld [vmem:[#allocation2 + $0xc2] sm:$0xff] }
 0x113   : > { %1770 = vmatmul.f32.gmra.mxu2 %v817_v9  ;;  %v3705_v24 = vpop.f32.mrf.mxu0  ;;  %v821_v9 = vld [vmem:[#allocation2 + $0xaa] sm:$0xff] }
 0x114   : > { %1883 = vmatmul.f32.gmra.mxu3 %v3490_v32  ;;  %v3707_v25 = vpop.f32.mrf.mxu1 }
 0x116   : > { %v1593_v20 = vpop.f32.mrf.mxu2  ;;  %1999 = vmatmul.f32.gmra.mxu0 %v3511_v46 }
 0x117   : > { %v1706_v34 = vpop.f32.mrf.mxu3  ;;  %2112 = vmatmul.f32.gmra.mxu1 %v820_v62 }
 0x118   : > { %v3716_v32 = vadd.f32 %v1706_v34, %v1593_v20 }
 0x11b   : > { %1773 = vmatmul.f32.gmra.mxu2 %v818_v57  ;;  %v3719_v35 = vpop.f32.mrf.mxu0 }
 0x11c   : > { %1886 = vmatmul.f32.gmra.mxu3 %v3509_v45  ;;  %v3721_v16 = vpop.f32.mrf.mxu1  ;;  %v2587_v45 = vld [vmem:[%s4229_s4 + $0x40] sm:$0xff] }
 0x11d   : > { %2602 = vmatpush.msra.mxu1 %v2587_v45  ;;  %v1472_v45 = vld [vmem:[%s4228_s3 + $0x3b0] sm:$0xff] }
 0x11e   : > { %v1596_v47 = vpop.f32.mrf.mxu2  ;;  %2002 = vmatmul.f32.gmra.mxu0 %v3529_v56  ;;  %v1457_v56 = vld [vmem:[%s4228_s3 + $0x338] sm:$0xff]  ;;  %2298 = vmatpush.msra.mxu3 %v1472_v45 }
 0x11f   : > { %v1709_v48 = vpop.f32.mrf.mxu3  ;;  %2115 = vmatmul.f32.gmra.mxu1 %v821_v9  ;;  %2184 = vmatpush.msra.mxu2 %v1457_v56 }
 0x120   : > { %v3727_v46 = vadd.f32 %v1709_v48, %v1596_v47  ;;  %v824_v47 = vld [vmem:[#allocation2 + $0xca] sm:$0xff] }
 0x121   : > { %v1456_v48 = vld [vmem:[%s4228_s3 + $0x330] sm:$0xff] }
 0x122   : > { %4247 = vst [vmem:[#allocation4_spill] sm:$0xff] %v3727_v46  ;;  %2185 = vmatpush.msra.mxu2 %v1456_v48  ;;  %v697_v48 = vld [vmem:[#allocation2 + $0xd8] sm:$0xff] }
 0x123   : > { %1776 = vmatmul.f32.gmra.mxu2 %v819_v10  ;;  %v3733_v36 = vpop.f32.mrf.mxu0  ;;  %v827_v46 = vld [vmem:[#allocation2 + $0xf2] sm:$0xff] }
 0x124   : > { %1889 = vmatmul.f32.gmra.mxu3 %v3527_v55  ;;  %v3735_v57 = vpop.f32.mrf.mxu1 }
 0x126   : > { %v1599_v27 = vpop.f32.mrf.mxu2  ;;  %2005 = vmatmul.f32.gmra.mxu0 %v3541_v2 }
 0x127   : > { %v1712_v3 = vpop.f32.mrf.mxu3  ;;  %2118 = vmatmul.f32.gmra.mxu1 %v822_v59 }
 0x128   : > { %v3744_v55 = vadd.f32 %v1712_v3, %v1599_v27  ;;  %v696_v27 = vld [vmem:[#allocation2 + $0xc8] sm:$0xff] }
 0x12a   : > { %4248 = vst [vmem:[#allocation5_spill] sm:$0xff] %v3744_v55  ;;  %v763_v55 = vld [vmem:[#allocation2 + $0xf1] sm:$0xff] }
 0x12b   : > { %1779 = vmatmul.f32.gmra.mxu2 %v820_v62  ;;  %v3747_v10 = vpop.f32.mrf.mxu0  ;;  %v695_v62 = vld [vmem:[#allocation2 + $0xc0] sm:$0xff] }
 0x12c   : > { %1892 = vmatmul.f32.gmra.mxu3 %v3539_v1  ;;  %v3749_v11 = vpop.f32.mrf.mxu1  ;;  %v2586_v1 = vld [vmem:[%s4229_s4 + $0x38] sm:$0xff] }
 0x12d   : > { %2603 = vmatpush.msra.mxu1 %v2586_v1 }
 0x12e   : > { %v1602_v33 = vpop.f32.mrf.mxu2  ;;  %2008 = vmatmul.f32.gmra.mxu0 %v759_v14 }
 0x12f   : > { %v1715_v31 = vpop.f32.mrf.mxu3  ;;  %2121 = vmatmul.f32.gmra.mxu1 %v823_v21 }
 0x130   : > { %v3754_v2 = vadd.f32 %v1715_v31, %v1602_v33  ;;  %v825_v33 = vld [vmem:[#allocation2 + $0xda] sm:$0xff]  ;;  %v1488_v31 = vld [vmem:[%s4228_s3 + $0x430] sm:$0xff] }
 0x131   : > { %2411 = vmatpush.msra.mxu0 %v1488_v31  ;;  %v1629_v31 = vadd.f32 %v3553_v7, %v3551_v6  ;;  %v1632_v6 = vadd.f32 %v3564_v23, %v3562_v22 }
 0x132   : > { %4249 = vst [vmem:[#allocation6_spill] sm:$0xff] %v3754_v2 }
 0x133   : > { %1782 = vmatmul.f32.gmra.mxu2 %v821_v9  ;;  %v3759_v20 = vpop.f32.mrf.mxu0 }
 0x134   : > { %1895 = vmatmul.f32.gmra.mxu3 %v695_v62  ;;  %v3761_v34 = vpop.f32.mrf.mxu1 }
 0x136   : > { %v1605_v56 = vpop.f32.mrf.mxu2  ;;  %2011 = vmatmul.f32.gmra.mxu0 %v760_v40 }
 0x137   : > { %v1718_v60 = vpop.f32.mrf.mxu3  ;;  %2124 = vmatmul.f32.gmra.mxu1 %v824_v47 }
 0x138   : > { %v3769_v9 = vadd.f32 %v1718_v60, %v1605_v56  ;;  %v762_v60 = vld [vmem:[#allocation2 + $0xe1] sm:$0xff] }
 0x13a   : > { %4250 = vst [vmem:[#allocation7_spill] sm:$0xff] %v3769_v9 }
 0x13b   : > { %1785 = vmatmul.f32.gmra.mxu2 %v822_v59  ;;  %v1967_v3 = vpop.f32.mrf.mxu0  ;;  %v2585_v59 = vld [vmem:[%s4229_s4 + $0x30] sm:$0xff] }
 0x13c   : > { %1898 = vmatmul.f32.gmra.mxu3 %v696_v27  ;;  %v2080_v14 = vpop.f32.mrf.mxu1  ;;  %2604 = vmatpush.msra.mxu1 %v2585_v59  ;;  %v826_v27 = vld [vmem:[#allocation2 + $0xe2] sm:$0xff] }
 0x13e   : > { %v1608_v1 = vpop.f32.mrf.mxu2  ;;  %2014 = vmatmul.f32.gmra.mxu0 %v761_v15  ;;  %v1455_v15 = vld [vmem:[%s4228_s3 + $0x328] sm:$0xff] }
 0x13f   : > { %v1721_v62 = vpop.f32.mrf.mxu3  ;;  %2127 = vmatmul.f32.gmra.mxu1 %v825_v33  ;;  %2186 = vmatpush.msra.mxu2 %v1455_v15 }
 0x140   : > { %v3774_v40 = vadd.f32 %v1721_v62, %v1608_v1  ;;  %v1471_v1 = vld [vmem:[%s4228_s3 + $0x3a8] sm:$0xff] }
 0x141   : > { %2299 = vmatpush.msra.mxu3 %v1471_v1 }
 0x142   : > { %4251 = vst [vmem:[#allocation8_spill] sm:$0xff] %v3774_v40 }
 0x143   : > { %1788 = vmatmul.f32.gmra.mxu2 %v823_v21  ;;  %v1970_v45 = vpop.f32.mrf.mxu0 }
 0x144   : > { %1901 = vmatmul.f32.gmra.mxu3 %v697_v48  ;;  %v2083_v56 = vpop.f32.mrf.mxu1  ;;  %v698_v48 = vld [vmem:[#allocation2 + $0xe0] sm:$0xff] }
 0x146   : > { %v1741_v62 = vpop.f32.mrf.mxu2  ;;  %2017 = vmatmul.f32.gmra.mxu0 %v762_v60  ;;  %v1487_v60 = vld [vmem:[%s4228_s3 + $0x428] sm:$0xff] }
 0x147   : > { %v1854_v59 = vpop.f32.mrf.mxu3  ;;  %2130 = vmatmul.f32.gmra.mxu1 %v826_v27  ;;  %v1742_v21 = vadd.f32 %v1741_v62, %v1629_v31  ;;  %2412 = vmatpush.msra.mxu0 %v1487_v60 }
 0x149   : > { %v1855_v40 = vadd.f32 %v1854_v59, %v1742_v21  ;;  %v828_v59 = vld [vmem:[#allocation2 + $0xfa] sm:$0xff]  ;;  %v1635_v21 = vadd.f32 %v3581_v30, %v3579_v43  ;;  %v765_v43 = vld [vmem:[#allocation2 + $0x109] sm:$0xff] }
 0x14a   : > { %v829_v30 = vld [vmem:[#allocation2 + $0x10a] sm:$0xff] }
 0x14b   : > { %v1968_v9 = vadd.f32 %v1967_v3, %v1855_v40  ;;  %1791 = vmatmul.f32.gmra.mxu2 %v824_v47  ;;  %v1973_v2 = vpop.f32.mrf.mxu0  ;;  %v2584_v47 = vld [vmem:[%s4229_s4 + $0x28] sm:$0xff]  ;;  %v699_v40 = vld [vmem:[#allocation2 + $0xf0] sm:$0xff] }
 0x14c   : > { %1904 = vmatmul.f32.gmra.mxu3 %v698_v48  ;;  %v2086_v15 = vpop.f32.mrf.mxu1  ;;  %2605 = vmatpush.msra.mxu1 %v2584_v47 }
 0x14d   : > { %v3789_v7 = vadd.f32 %v2080_v14, %v1968_v9  ;;  %v764_v14 = vld [vmem:[#allocation2 + $0xf9] sm:$0xff] }
 0x14e   : > { %v1744_v31 = vpop.f32.mrf.mxu2  ;;  %2020 = vmatmul.f32.gmra.mxu0 %v763_v55  ;;  %v1454_v55 = vld [vmem:[%s4228_s3 + $0x320] sm:$0xff] }
 0x14f   : > { %v1857_v1 = vpop.f32.mrf.mxu3  ;;  %2133 = vmatmul.f32.gmra.mxu1 %v827_v46  ;;  %v1745_v3 = vadd.f32 %v1744_v31, %v1632_v6  ;;  %2187 = vmatpush.msra.mxu2 %v1454_v55  ;;  %v700_v31 = vld [vmem:[#allocation2 + $0xf8] sm:$0xff] }
 0x151   : > { %v1858_v62 = vadd.f32 %v1857_v1, %v1745_v3 }
 0x153   : > { %v1971_v22 = vadd.f32 %v1970_v45, %v1858_v62  ;;  %1794 = vmatmul.f32.gmra.mxu2 %v825_v33  ;;  %v1976_v23 = vpop.f32.mrf.mxu0  ;;  %v1470_v45 = vld [vmem:[%s4228_s3 + $0x3a0] sm:$0xff] }
 0x154   : > { %1907 = vmatmul.f32.gmra.mxu3 %v699_v40  ;;  %v2089_v9 = vpop.f32.mrf.mxu1 }
 0x155   : > { %v3802_v48 = vadd.f32 %v2083_v56, %v1971_v22  ;;  %2300 = vmatpush.msra.mxu3 %v1470_v45  ;;  %v1638_v56 = vadd.f32 %v3595_v38, %v3593_v19  ;;  %v1486_v22 = vld [vmem:[%s4228_s3 + $0x420] sm:$0xff] }
 0x156   : > { %v1747_v33 = vpop.f32.mrf.mxu2  ;;  %2023 = vmatmul.f32.gmra.mxu0 %v764_v14 }
 0x157   : > { %v1860_v6 = vpop.f32.mrf.mxu3  ;;  %2136 = vmatmul.f32.gmra.mxu1 %v828_v59  ;;  %v1748_v60 = vadd.f32 %v1747_v33, %v1635_v21  ;;  %2413 = vmatpush.msra.mxu0 %v1486_v22  ;;  %v701_v21 = vld [vmem:[#allocation2 + $0x108] sm:$0xff]  ;;  %v766_v33 = vld [vmem:[#allocation2 + $0x111] sm:$0xff] }
 0x159   : > { %v1861_v1 = vadd.f32 %v1860_v6, %v1748_v60  ;;  %v3817_v6 = vld [vmem:[#allocation2 + $0x112] sm:$0xff] }
 0x15a   : > { %v1453_v60 = vld [vmem:[%s4228_s3 + $0x318] sm:$0xff] }
 0x15b   : > { %v1974_v3 = vadd.f32 %v1973_v2, %v1861_v1  ;;  %1797 = vmatmul.f32.gmra.mxu2 %v826_v27  ;;  %v1979_v47 = vpop.f32.mrf.mxu0  ;;  %v2583_v27 = vld [vmem:[%s4229_s4 + $0x20] sm:$0xff] }
 0x15c   : > { %1910 = vmatmul.f32.gmra.mxu3 %v700_v31  ;;  %v2092_v40 = vpop.f32.mrf.mxu1  ;;  %2606 = vmatpush.msra.mxu1 %v2583_v27  ;;  %v1641_v31 = vadd.f32 %v3609_v50, %v3607_v49  ;;  %v3830_v50 = vld [vmem:[#allocation2 + $0x121] sm:$0xff] }
 0x15d   : > { %v3809_v62 = vadd.f32 %v2086_v15, %v1974_v3  ;;  %2188 = vmatpush.msra.mxu2 %v1453_v60 }
 0x15e   : > { %v1750_v14 = vpop.f32.mrf.mxu2  ;;  %2026 = vmatmul.f32.gmra.mxu0 %v765_v43 }
 0x15f   : > { %v1863_v55 = vpop.f32.mrf.mxu3  ;;  %2139 = vmatmul.f32.gmra.mxu1 %v829_v30  ;;  %v1751_v2 = vadd.f32 %v1750_v14, %v1638_v56  ;;  %v702_v56 = vld [vmem:[#allocation2 + $0x110] sm:$0xff] }
 0x161   : > { %v1864_v45 = vadd.f32 %v1863_v55, %v1751_v2  ;;  %v1644_v2 = vadd.f32 %v3623_v0, %v3621_v61 }
 0x163   : > { %v1977_v19 = vadd.f32 %v1976_v23, %v1864_v45  ;;  %1800 = vmatmul.f32.gmra.mxu2 %v827_v46  ;;  %v1982_v38 = vpop.f32.mrf.mxu0  ;;  %v1469_v46 = vld [vmem:[%s4228_s3 + $0x398] sm:$0xff] }
 0x164   : > { %1913 = vmatmul.f32.gmra.mxu3 %v701_v21  ;;  %v2095_v15 = vpop.f32.mrf.mxu1  ;;  %v1485_v21 = vld [vmem:[%s4228_s3 + $0x418] sm:$0xff] }
 0x165   : > { %v3824_v1 = vadd.f32 %v2089_v9, %v1977_v19  ;;  %2301 = vmatpush.msra.mxu3 %v1469_v46  ;;  %v3832_v9 = vld [vmem:[#allocation2 + $0x122] sm:$0xff]  ;;  %2414 = vmatpush.msra.mxu0 %v1485_v21  ;;  %v3851_v46 = vld [vmem:[#allocation2 + $0x12a] sm:$0xff] }
 0x166   : > { %v1753_v23 = vpop.f32.mrf.mxu2  ;;  %2029 = vmatmul.f32.gmra.mxu0 %v766_v33  ;;  %v3846_v33 = vld [vmem:[#allocation2 + $0x120] sm:$0xff] }
 0x167   : > { %v1866_v3 = vpop.f32.mrf.mxu3  ;;  %2142 = vmatmul.f32.gmra.mxu1 %v3817_v6  ;;  %v1754_v43 = vadd.f32 %v1753_v23, %v1641_v31  ;;  %v3849_v31 = vld [vmem:[#allocation2 + $0x129] sm:$0xff] }
 0x168   : > { %v1452_v23 = vld [vmem:[%s4228_s3 + $0x310] sm:$0xff] }
 0x169   : > { %v1867_v22 = vadd.f32 %v1866_v3, %v1754_v43  ;;  %2189 = vmatpush.msra.mxu2 %v1452_v23  ;;  %v1647_v3 = vadd.f32 %v3637_v13, %v3635_v12  ;;  %v2581_v23 = vld [vmem:[%s4229_s4 + $0x10] sm:$0xff] }
 0x16b   : > { %v1980_v14 = vadd.f32 %v1979_v47, %v1867_v22  ;;  %1803 = vmatmul.f32.gmra.mxu2 %v828_v59  ;;  %v1985_v55 = vpop.f32.mrf.mxu0  ;;  %v2582_v47 = vld [vmem:[%s4229_s4 + $0x18] sm:$0xff] }
 0x16c   : > { %1916 = vmatmul.f32.gmra.mxu3 %v702_v56  ;;  %v2098_v49 = vpop.f32.mrf.mxu1  ;;  %2607 = vmatpush.msra.mxu1 %v2582_v47  ;;  %v1484_v47 = vld [vmem:[%s4228_s3 + $0x410] sm:$0xff] }
 0x16d   : > { %v3836_v27 = vadd.f32 %v2092_v40, %v1980_v14  ;;  %v3865_v14 = vld [vmem:[#allocation2 + $0x128] sm:$0xff]  ;;  %2415 = vmatpush.msra.mxu0 %v1484_v47 }
 0x16e   : > { %v1756_v45 = vpop.f32.mrf.mxu2  ;;  %2032 = vmatmul.f32.gmra.mxu0 %v3830_v50  ;;  %2608 = vmatpush.msra.mxu1 %v2581_v23  ;;  %v2888_v23 = vld [vmem:[%s4227_s2] ss:$0 sm:$0xff] }
 0x16f   : > { %v1869_v19 = vpop.f32.mrf.mxu3  ;;  %2145 = vmatmul.f32.gmra.mxu1 %v3832_v9  ;;  %v1757_v59 = vadd.f32 %v1756_v45, %v1644_v2  ;;  %v3871_v45 = vld [vmem:[#allocation2 + $0x13a] sm:$0xff] }
 0x171   : > { %v1870_v61 = vadd.f32 %v1869_v19, %v1757_v59  ;;  %v1650_v19 = vadd.f32 %v3651_v29, %v3649_v44 }
 0x173   : > { %v1983_v0 = vadd.f32 %v1982_v38, %v1870_v61  ;;  %1806 = vmatmul.f32.gmra.mxu2 %v829_v30  ;;  %v1988_v40 = vpop.f32.mrf.mxu0  ;;  %v1468_v30 = vld [vmem:[%s4228_s3 + $0x390] sm:$0xff] }
 0x174   : > { %1919 = vmatmul.f32.gmra.mxu3 %v3846_v33  ;;  %v2101_v60 = vpop.f32.mrf.mxu1 }
 0x175   : > { %v3858_v43 = vadd.f32 %v2095_v15, %v1983_v0  ;;  %2302 = vmatpush.msra.mxu3 %v1468_v30  ;;  %v3869_v15 = vld [vmem:[#allocation2 + $0x139] sm:$0xff] }
 0x176   : > { %v1759_v38 = vpop.f32.mrf.mxu2  ;;  %2035 = vmatmul.f32.gmra.mxu0 %v3849_v31 }
 0x177   : > { %v1872_v56 = vpop.f32.mrf.mxu3  ;;  %2148 = vmatmul.f32.gmra.mxu1 %v3851_v46  ;;  %v1760_v22 = vadd.f32 %v1759_v38, %v1647_v3  ;;  %v3885_v3 = vld [vmem:[#allocation2 + $0x138] sm:$0xff]  ;;  %v3889_v38 = vld [vmem:[#allocation2 + $0x141] sm:$0xff] }
 0x178   : > { %4252 = vst [vmem:[#allocation9_spill] sm:$0xff] %v3889_v38 }
 0x179   : > { %v1873_v2 = vadd.f32 %v1872_v56, %v1760_v22  ;;  %v3891_v56 = vld [vmem:[#allocation2 + $0x142] sm:$0xff] }
 0x17a   : > { %v1451_v22 = vld [vmem:[%s4228_s3 + $0x308] sm:$0xff] }
 0x17b   : > { %v1986_v21 = vadd.f32 %v1985_v55, %v1873_v2  ;;  %1809 = vmatmul.f32.gmra.mxu2 %v3817_v6  ;;  %v1991_v12 = vpop.f32.mrf.mxu0  ;;  %v1653_v2 = vadd.f32 %v3665_v39, %v3663_v53  ;;  %v3909_v39 = vld [vmem:[#allocation2 + $0x140] sm:$0xff] }
 0x17c   : > { %1922 = vmatmul.f32.gmra.mxu3 %v3865_v14  ;;  %v2104_v13 = vpop.f32.mrf.mxu1  ;;  %2190 = vmatpush.msra.mxu2 %v1451_v22  ;;  %4254 = vst [vmem:[#allocation11_spill] sm:$0xff] %v3909_v39 }
 0x17d   : > { %v3875_v59 = vadd.f32 %v2098_v49, %v1986_v21  ;;  %v1467_v21 = vld [vmem:[%s4228_s3 + $0x388] sm:$0xff] }
 0x17e   : > { %v1762_v55 = vpop.f32.mrf.mxu2  ;;  %2038 = vmatmul.f32.gmra.mxu0 %v3869_v15  ;;  %2303 = vmatpush.msra.mxu3 %v1467_v21  ;;  %v3916_v21 = vld [vmem:[#allocation2 + $0x151] sm:$0xff] }
 0x17f   : > { %v1875_v61 = vpop.f32.mrf.mxu3  ;;  %2151 = vmatmul.f32.gmra.mxu1 %v3871_v45  ;;  %v1763_v0 = vadd.f32 %v1762_v55, %v1650_v19  ;;  %v295_v55 = vld [vmem:[%s3009_s23 + $0xf0] sm:$0xff]  ;;  %4255 = vst [vmem:[#allocation12_spill] sm:$0xff] %v3916_v21 }
 0x181   : > { %v1876_v44 = vadd.f32 %v1875_v61, %v1763_v0  ;;  %v2887_v0 = vld [vmem:[%s4226_s1] ss:$0 sm:$0xff] }
 0x182   : > { %v331_v53 = vmul.f32 %v2887_v0, %v295_v55 }
 0x183   : > { %v1989_v29 = vadd.f32 %v1988_v40, %v1876_v44  ;;  %1812 = vmatmul.f32.gmra.mxu2 %v3832_v9  ;;  %v1994_v49 = vpop.f32.mrf.mxu0 }
 0x184   : > { %1925 = vmatmul.f32.gmra.mxu3 %v3885_v3  ;;  %v2107_v30 = vpop.f32.mrf.mxu1  ;;  %v367_v44 = vadd.f32 %v2888_v23, %v331_v53 }
 0x185   : > { %v3898_v40 = vadd.f32 %v2101_v60, %v1989_v29 }
 0x186   : > { %v1765_v19 = vpop.f32.mrf.mxu2  ;;  %2041 = vmatmul.f32.gmra.mxu0 %v3889_v38  ;;  %v399_v55 = vmax.f32 %v367_v44, 0.0 }
 0x187   : > { %4253 = vst [vmem:[#allocation10_spill] sm:$0xff] %v3898_v40  ;;  %v1878_v47 = vpop.f32.mrf.mxu3  ;;  %2154 = vmatmul.f32.gmra.mxu1 %v3891_v56  ;;  %v1766_v61 = vadd.f32 %v1765_v19, %v1653_v2  ;;  %v3918_v19 = vld [vmem:[#allocation2 + $0x152] sm:$0xff] }
 0x188   : > { %487 = vst.msk [vmem:[#allocation2 + $0x181] sm:$0xff] %vm456_vm0, %v399_v55  ;;  %v296_v40 = vld [vmem:[%s3009_s23 + $0xf8] sm:$0xff] }
 0x189   : > { %v1879_v60 = vadd.f32 %v1878_v47, %v1766_v61  ;;  %v1656_v47 = vadd.f32 %v3679_v52, %v3677_v51  ;;  %v2580_v51 = vld [vmem:[%s4229_s4 + $0x8] sm:$0xff]  ;;  %v332_v52 = vmul.f32 %v2887_v0, %v296_v40  ;;  %v1450_v40 = vld [vmem:[%s4228_s3 + $0x300] sm:$0xff] }
 0x18a   : > { %2609 = vmatpush.msra.mxu1 %v2580_v51  ;;  %2191 = vmatpush.msra.mxu2 %v1450_v40  ;;  %v3955_v51 = vld [vmem:[#allocation2 + $0x158] sm:$0xff] }
 0x18b   : > { %v1992_v29 = vadd.f32 %v1991_v12, %v1879_v60  ;;  %1815 = vmatmul.f32.gmra.mxu2 %v3851_v46  ;;  %v1997_v22 = vpop.f32.mrf.mxu0  ;;  %v1483_v12 = vld [vmem:[%s4228_s3 + $0x408] sm:$0xff] }
 0x18c   : > { %1928 = vmatmul.f32.gmra.mxu3 %v3909_v39  ;;  %v2110_v2 = vpop.f32.mrf.mxu1  ;;  %2416 = vmatpush.msra.mxu0 %v1483_v12  ;;  %v3938_v39 = vld [vmem:[#allocation2 + $0x159] sm:$0xff] }
 0x18d   : > { %v3922_v61 = vadd.f32 %v2104_v13, %v1992_v29  ;;  %v3934_v13 = vld [vmem:[#allocation2 + $0x150] sm:$0xff]  ;;  %v368_v29 = vadd.f32 %v2888_v23, %v332_v52  ;;  %v1466_v23 = vld [vmem:[%s4228_s3 + $0x380] sm:$0xff] }
 0x18e   : > { %v1768_v53 = vpop.f32.mrf.mxu2  ;;  %2044 = vmatmul.f32.gmra.mxu0 %v3916_v21  ;;  %2304 = vmatpush.msra.mxu3 %v1466_v23 }
 0x18f   : > { %4256 = vst [vmem:[#allocation13_spill] sm:$0xff] %v3922_v61  ;;  %v1881_v60 = vpop.f32.mrf.mxu3  ;;  %2157 = vmatmul.f32.gmra.mxu1 %v3918_v19  ;;  %v1769_v38 = vadd.f32 %v1768_v53, %v1656_v47  ;;  %v3940_v47 = vld [vmem:[#allocation2 + $0x15a] sm:$0xff]  ;;  %v400_v0 = vmax.f32 %v368_v29, 0.0  ;;  %v3961_v29 = vld [vmem:[#allocation2 + $0x16a] sm:$0xff] }
 0x191   : > { %v1882_v44 = vadd.f32 %v1881_v60, %v1769_v38  ;;  %v1659_v38 = vadd.f32 %v3693_v5, %v3691_v42  ;;  %488 = vst.msk [vmem:[#allocation2 + $0x189] sm:$0xff] %vm456_vm0, %v400_v0  ;;  %v1482_v0 = vld [vmem:[%s4228_s3 + $0x400] sm:$0xff] }
 0x192   : > { %2417 = vmatpush.msra.mxu0 %v1482_v0 }
 0x193   : > { %v1995_v55 = vadd.f32 %v1994_v49, %v1882_v44  ;;  %1818 = vmatmul.f32.gmra.mxu2 %v3871_v45  ;;  %v2000_v61 = vpop.f32.mrf.mxu0  ;;  %v3959_v44 = vld [vmem:[#allocation2 + $0x169] sm:$0xff] }
 0x194   : > { %1931 = vmatmul.f32.gmra.mxu3 %v3934_v13  ;;  %v2113_v21 = vpop.f32.mrf.mxu1  ;;  %4257 = vst [vmem:[#allocation14_spill] sm:$0xff] %v3959_v44 }
 0x195   : > { %v3947_v49 = vadd.f32 %v2107_v30, %v1995_v55  ;;  %v1662_v55 = vadd.f32 %v3707_v25, %v3705_v24 }
 0x196   : > { %v1771_v12 = vpop.f32.mrf.mxu2  ;;  %2047 = vmatmul.f32.gmra.mxu0 %v3938_v39 }
 0x197   : > { %v1884_v53 = vpop.f32.mrf.mxu3  ;;  %2160 = vmatmul.f32.gmra.mxu1 %v3940_v47  ;;  %v1772_v60 = vadd.f32 %v1771_v12, %v1659_v38  ;;  %v2579_v12 = vld [vmem:[%s4229_s4] sm:$0xff] }
 0x198   : > { %2610 = vmatpush.msra.mxu1 %v2579_v12 }
 0x199   : > { %v1885_v52 = vadd.f32 %v1884_v53, %v1772_v60  ;;  %v3975_v53 = vld [vmem:[#allocation2 + $0x168] sm:$0xff] }
 0x19b   : > { %v1998_v42 = vadd.f32 %v1997_v22, %v1885_v52  ;;  %1821 = vmatmul.f32.gmra.mxu2 %v3891_v56  ;;  %v2003_v5 = vpop.f32.mrf.mxu0  ;;  %v3979_v52 = vld [vmem:[#allocation2 + $0x171] sm:$0xff] }
 0x19c   : > { %1934 = vmatmul.f32.gmra.mxu3 %v3955_v51  ;;  %v2116_v30 = vpop.f32.mrf.mxu1  ;;  %4259 = vst [vmem:[#allocation16_spill] sm:$0xff] %v3979_v52 }
 0x19d   : > { %v3965_v40 = vadd.f32 %v2110_v2, %v1998_v42  ;;  %v3981_v42 = vld [vmem:[#allocation2 + $0x172] sm:$0xff] }
 0x19e   : > { %v1774_v22 = vpop.f32.mrf.mxu2  ;;  %2050 = vmatmul.f32.gmra.mxu0 %v3959_v44 }
 0x19f   : > { %4258 = vst [vmem:[#allocation15_spill] sm:$0xff] %v3965_v40  ;;  %v1887_v38 = vpop.f32.mrf.mxu3  ;;  %2163 = vmatmul.f32.gmra.mxu1 %v3961_v29  ;;  %v1775_v23 = vadd.f32 %v1774_v22, %v1662_v55  ;;  %v1665_v55 = vadd.f32 %v3721_v16, %v3719_v35  ;;  %v3993_v35 = vld [vmem:[#allocation2 + $0x181] sm:$0xff] }
 0x1a0   : > { %4261 = vst [vmem:[#allocation18_spill] sm:$0xff] %v3993_v35  ;;  %v3995_v16 = vld [vmem:[#allocation2 + $0x182] sm:$0xff] }
 0x1a1   : > { %v1888_v24 = vadd.f32 %v1887_v38, %v1775_v23  ;;  %v3989_v38 = vld [vmem:[#allocation2 + $0x170] sm:$0xff] }
 0x1a3   : > { %v2001_v25 = vadd.f32 %v2000_v61, %v1888_v24  ;;  %1824 = vmatmul.f32.gmra.mxu2 %v3918_v19  ;;  %v2006_v2 = vpop.f32.mrf.mxu0 }
 0x1a4   : > { %1937 = vmatmul.f32.gmra.mxu3 %v3975_v53  ;;  %v2119_v60 = vpop.f32.mrf.mxu1 }
 0x1a5   : > { %v3985_v0 = vadd.f32 %v2113_v21, %v2001_v25  ;;  %v1668_v21 = vadd.f32 %v3735_v57, %v3733_v36  ;;  %v4007_v36 = vld [vmem:[#allocation2 + $0x189] sm:$0xff] }
 0x1a6   : > { %v1777_v22 = vpop.f32.mrf.mxu2  ;;  %2053 = vmatmul.f32.gmra.mxu0 %v3979_v52  ;;  %4263 = vst [vmem:[#allocation20_spill] sm:$0xff] %v4007_v36  ;;  %v4009_v57 = vld [vmem:[#allocation2 + $0x18a] sm:$0xff] }
 0x1a7   : > { %4260 = vst [vmem:[#allocation17_spill] sm:$0xff] %v3985_v0  ;;  %v1890_v40 = vpop.f32.mrf.mxu3  ;;  %2166 = vmatmul.f32.gmra.mxu1 %v3981_v42  ;;  %v1778_v61 = vadd.f32 %v1777_v22, %v1665_v55 }
 0x1a8   : > { %4264 = vst [vmem:[#allocation21_spill] sm:$0xff] %v4009_v57 }
 0x1a9   : > { %v1891_v23 = vadd.f32 %v1890_v40, %v1778_v61  ;;  %v4003_v40 = vld [vmem:[#allocation2 + $0x180] sm:$0xff] }
 0x1ab   : > { %v2004_v12 = vadd.f32 %v2003_v5, %v1891_v23  ;;  %1827 = vmatmul.f32.gmra.mxu2 %v3940_v47  ;;  %v2009_v24 = vpop.f32.mrf.mxu0 }
 0x1ac   : > { %1940 = vmatmul.f32.gmra.mxu3 %v3989_v38  ;;  %v2122_v44 = vpop.f32.mrf.mxu1 }
 0x1ad   : > { %v3999_v25 = vadd.f32 %v2116_v30, %v2004_v12  ;;  %v1671_v30 = vadd.f32 %v3749_v11, %v3747_v10  ;;  %v1002_v10 = vld [vmem:[#allocation2 + $0x32] sm:$0xff]  ;;  %v1674_v11 = vadd.f32 %v3761_v34, %v3759_v20  ;;  %v1677_v20 = vadd.f32 %v3575_v28, %v3573_v26 }
 0x1ae   : > { %v1780_v55 = vpop.f32.mrf.mxu2  ;;  %2056 = vmatmul.f32.gmra.mxu0 %v3993_v35 }
 0x1af   : > { %4262 = vst [vmem:[#allocation19_spill] sm:$0xff] %v3999_v25  ;;  %v1893_v22 = vpop.f32.mrf.mxu3  ;;  %2169 = vmatmul.f32.gmra.mxu1 %v3995_v16  ;;  %v1781_v5 = vadd.f32 %v1780_v55, %v1668_v21 }
 0x1b1   : > { %v1894_v61 = vadd.f32 %v1893_v22, %v1781_v5  ;;  %v4017_v22 = vld [vmem:[#allocation2 + $0x188] sm:$0xff] }
 0x1b2   : > { %4266 = vst [vmem:[#allocation23_spill] sm:$0xff] %v4017_v22 }
 0x1b3   : > { %v2007_v23 = vadd.f32 %v2006_v2, %v1894_v61  ;;  %1830 = vmatmul.f32.gmra.mxu2 %v3961_v29  ;;  %v2012_v0 = vpop.f32.mrf.mxu0 }
 0x1b4   : > { %1943 = vmatmul.f32.gmra.mxu3 %v4003_v40  ;;  %v2125_v52 = vpop.f32.mrf.mxu1 }
 0x1b5   : > { %v4013_v12 = vadd.f32 %v2119_v60, %v2007_v23 }
 0x1b6   : > { %v1783_v21 = vpop.f32.mrf.mxu2  ;;  %2059 = vmatmul.f32.gmra.mxu0 %v4007_v36 }
 0x1b7   : > { %4265 = vst [vmem:[#allocation22_spill] sm:$0xff] %v4013_v12  ;;  %v1896_v55 = vpop.f32.mrf.mxu3  ;;  %2172 = vmatmul.f32.gmra.mxu1 %v4009_v57  ;;  %v1784_v2 = vadd.f32 %v1783_v21, %v1671_v30  ;;  %v2889_v30 = vld [vmem:[#allocation2 + $0x19] sm:$0xff] }
 0x1b8   : > { %v1003_v57 = vld [vmem:[#allocation2 + $0x3a] sm:$0xff] }
 0x1b9   : > { %v1897_v5 = vadd.f32 %v1896_v55, %v1784_v2  ;;  %v874_v55 = vld [vmem:[#allocation2 + $0x30] sm:$0xff] }
 0x1bb   : > { %v2010_v61 = vadd.f32 %v2009_v24, %v1897_v5  ;;  %1833 = vmatmul.f32.gmra.mxu2 %v3981_v42  ;;  %v2015_v25 = vpop.f32.mrf.mxu0  ;;  %v938_v24 = vld [vmem:[#allocation2 + $0x31] sm:$0xff] }
 0x1bc   : > { %1946 = vmatmul.f32.gmra.mxu3 %v4017_v22  ;;  %v2128_v35 = vpop.f32.mrf.mxu1 }
 0x1bd   : > { %v4023_v60 = vadd.f32 %v2122_v44, %v2010_v61 }
 0x1be   : > { %v1786_v23 = vpop.f32.mrf.mxu2  ;;  %2418 = vmatmul.f32.vlgmr.msra.gmra.mxu0 %v1002_v10  ;;  %v2890_v10 = vld [vmem:[#allocation2 + $0x21] sm:$0xff] }
 0x1bf   : > { %v1899_v12 = vpop.f32.mrf.mxu3  ;;  %2611 = vmatmul.f32.vlgmr.msra.gmra.mxu1 %v2889_v30  ;;  %v1787_v21 = vadd.f32 %v1786_v23, %v1674_v11  ;;  %v875_v23 = vld [vmem:[#allocation2 + $0x38] sm:$0xff] }
 0x1c0   : > { %v939_v30 = vld [vmem:[#allocation2 + $0x39] sm:$0xff] }
 0x1c1   : > { %v1900_v2 = vadd.f32 %v1899_v12, %v1787_v21 }
 0x1c3   : > { %v2013_v5 = vadd.f32 %v2012_v0, %v1900_v2  ;;  %2192 = vmatmul.f32.vlgmr.msra.gmra.mxu2 %v874_v55  ;;  %v2018_v36 = vpop.f32.mrf.mxu0 }
 0x1c4   : > { %2305 = vmatmul.f32.vlgmr.msra.gmra.mxu3 %v938_v24  ;;  %v2131_v22 = vpop.f32.mrf.mxu1  ;;  %v1004_v24 = vld [vmem:[#allocation2 + $0x4a] sm:$0xff] }
 0x1c5   : > { %v4027_v34 = vadd.f32 %v2125_v52, %v2013_v5  ;;  %v2891_v52 = vld [vmem:[#allocation2 + $0x31] sm:$0xff]  ;;  %v876_v5 = vld [vmem:[#allocation2 + $0x48] sm:$0xff] }
 0x1c6   : > { %v1789_v44 = vpop.f32.mrf.mxu2  ;;  %2421 = vmatmul.f32.gmra.mxu0 %v1003_v57 }
 0x1c7   : > { %v1902_v61 = vpop.f32.mrf.mxu3  ;;  %2614 = vmatmul.f32.gmra.mxu1 %v2890_v10  ;;  %v1790_v11 = vadd.f32 %v1789_v44, %v1677_v20  ;;  %v940_v20 = vld [vmem:[#allocation2 + $0x49] sm:$0xff] }
 0x1c9   : > { %v1903_v12 = vadd.f32 %v1902_v61, %v1790_v11  ;;  %v1005_v11 = vld [vmem:[#allocation2 + $0x52] sm:$0xff] }
 0x1cb   : > { %v2016_v0 = vadd.f32 %v2015_v25, %v1903_v12  ;;  %2195 = vmatmul.f32.gmra.mxu2 %v875_v23  ;;  %v2021_v21 = vpop.f32.mrf.mxu0  ;;  %v2892_v12 = vld [vmem:[#allocation2 + $0x39] sm:$0xff] }
 0x1cc   : > { %2308 = vmatmul.f32.gmra.mxu3 %v939_v30  ;;  %v2134_v55 = vpop.f32.mrf.mxu1 }
 0x1cd   : > { %v4029_v2 = vadd.f32 %v2128_v35, %v2016_v0 }
 0x1ce   : > { %v1792_v26 = vpop.f32.mrf.mxu2  ;;  %2424 = vmatmul.f32.gmra.mxu0 %v1004_v24  ;;  %v877_v24 = vld [vmem:[#allocation2 + $0x50] sm:$0xff] }
 0x1cf   : > { %v1905_v28 = vpop.f32.mrf.mxu3  ;;  %2617 = vmatmul.f32.gmra.mxu1 %v2891_v52  ;;  %v1793_v57 = vadd.f32 %v1792_v26, %v3587_v54  ;;  %v941_v54 = vld [vmem:[#allocation2 + $0x51] sm:$0xff] }
 0x1d1   : > { %v1906_v44 = vadd.f32 %v1905_v28, %v1793_v57  ;;  %v1006_v57 = vld [vmem:[#allocation2 + $0x62] sm:$0xff] }
 0x1d3   : > { %v2019_v10 = vadd.f32 %v2018_v36, %v1906_v44  ;;  %2198 = vmatmul.f32.gmra.mxu2 %v876_v5  ;;  %v2024_v25 = vpop.f32.mrf.mxu0  ;;  %v2893_v44 = vld [vmem:[#allocation2 + $0x49] sm:$0xff] }
 0x1d4   : > { %2311 = vmatmul.f32.gmra.mxu3 %v940_v20  ;;  %v2137_v61 = vpop.f32.mrf.mxu1 }
 0x1d5   : > { %v4032_v23 = vadd.f32 %v2131_v22, %v2019_v10 }
 0x1d6   : > { %v1795_v35 = vpop.f32.mrf.mxu2  ;;  %2427 = vmatmul.f32.gmra.mxu0 %v1005_v11  ;;  %v878_v11 = vld [vmem:[#allocation2 + $0x60] sm:$0xff] }
 0x1d7   : > { %v1908_v30 = vpop.f32.mrf.mxu3  ;;  %2620 = vmatmul.f32.gmra.mxu1 %v2892_v12  ;;  %v1796_v0 = vadd.f32 %v1795_v35, %v3604_v8  ;;  %v942_v8 = vld [vmem:[#allocation2 + $0x61] sm:$0xff] }
 0x1d9   : > { %v1909_v26 = vadd.f32 %v1908_v30, %v1796_v0  ;;  %v1007_v0 = vld [vmem:[#allocation2 + $0x6a] sm:$0xff] }
 0x1db   : > { %v2022_v52 = vadd.f32 %v2021_v21, %v1909_v26  ;;  %2201 = vmatmul.f32.gmra.mxu2 %v877_v24  ;;  %v2027_v36 = vpop.f32.mrf.mxu0  ;;  %v2894_v26 = vld [vmem:[#allocation2 + $0x51] sm:$0xff] }
 0x1dc   : > { %2314 = vmatmul.f32.gmra.mxu3 %v941_v54  ;;  %v2140_v28 = vpop.f32.mrf.mxu1 }
 0x1dd   : > { %v4035_v5 = vadd.f32 %v2134_v55, %v2022_v52 }
 0x1de   : > { %v1798_v22 = vpop.f32.mrf.mxu2  ;;  %2430 = vmatmul.f32.gmra.mxu0 %v1006_v57  ;;  %v879_v57 = vld [vmem:[#allocation2 + $0x68] sm:$0xff] }
 0x1df   : > { %v1911_v20 = vpop.f32.mrf.mxu3  ;;  %2623 = vmatmul.f32.gmra.mxu1 %v2893_v44  ;;  %v1799_v10 = vadd.f32 %v1798_v22, %v3615_v4  ;;  %v943_v4 = vld [vmem:[#allocation2 + $0x69] sm:$0xff] }
 0x1e1   : > { %v1912_v35 = vadd.f32 %v1911_v20, %v1799_v10  ;;  %v1008_v10 = vld [vmem:[#allocation2 + $0x7a] sm:$0xff] }
 0x1e3   : > { %v2025_v12 = vadd.f32 %v2024_v25, %v1912_v35  ;;  %2204 = vmatmul.f32.gmra.mxu2 %v878_v11  ;;  %v2030_v21 = vpop.f32.mrf.mxu0  ;;  %v2895_v35 = vld [vmem:[#allocation2 + $0x61] sm:$0xff] }
 0x1e4   : > { %2317 = vmatmul.f32.gmra.mxu3 %v942_v8  ;;  %v2143_v30 = vpop.f32.mrf.mxu1 }
 0x1e5   : > { %v4038_v24 = vadd.f32 %v2137_v61, %v2025_v12 }
 0x1e6   : > { %v1801_v55 = vpop.f32.mrf.mxu2  ;;  %2433 = vmatmul.f32.gmra.mxu0 %v1007_v0  ;;  %v880_v0 = vld [vmem:[#allocation2 + $0x78] sm:$0xff] }
 0x1e7   : > { %v1914_v54 = vpop.f32.mrf.mxu3  ;;  %2626 = vmatmul.f32.gmra.mxu1 %v2894_v26  ;;  %v1802_v52 = vadd.f32 %v1801_v55, %v3632_v41  ;;  %v944_v41 = vld [vmem:[#allocation2 + $0x79] sm:$0xff] }
 0x1e9   : > { %v1915_v22 = vadd.f32 %v1914_v54, %v1802_v52  ;;  %v1009_v52 = vld [vmem:[#allocation2 + $0x82] sm:$0xff] }
 0x1eb   : > { %v2028_v44 = vadd.f32 %v2027_v36, %v1915_v22  ;;  %2207 = vmatmul.f32.gmra.mxu2 %v879_v57  ;;  %v2033_v25 = vpop.f32.mrf.mxu0  ;;  %v2896_v22 = vld [vmem:[#allocation2 + $0x69] sm:$0xff] }
 0x1ec   : > { %2320 = vmatmul.f32.gmra.mxu3 %v943_v4  ;;  %v2146_v20 = vpop.f32.mrf.mxu1 }
 0x1ed   : > { %v4041_v11 = vadd.f32 %v2140_v28, %v2028_v44 }
 0x1ee   : > { %v1804_v61 = vpop.f32.mrf.mxu2  ;;  %2436 = vmatmul.f32.gmra.mxu0 %v1008_v10  ;;  %v881_v10 = vld [vmem:[#allocation2 + $0x80] sm:$0xff] }
 0x1ef   : > { %v1917_v8 = vpop.f32.mrf.mxu3  ;;  %2629 = vmatmul.f32.gmra.mxu1 %v2895_v35  ;;  %v1805_v12 = vadd.f32 %v1804_v61, %v3643_v63  ;;  %v945_v63 = vld [vmem:[#allocation2 + $0x81] sm:$0xff] }
 0x1f1   : > { %v1918_v55 = vadd.f32 %v1917_v8, %v1805_v12  ;;  %v1010_v12 = vld [vmem:[#allocation2 + $0x92] sm:$0xff] }
 0x1f3   : > { %v2031_v26 = vadd.f32 %v2030_v21, %v1918_v55  ;;  %2210 = vmatmul.f32.gmra.mxu2 %v880_v0  ;;  %v2036_v36 = vpop.f32.mrf.mxu0  ;;  %v2897_v55 = vld [vmem:[#allocation2 + $0x79] sm:$0xff] }
 0x1f4   : > { %2323 = vmatmul.f32.gmra.mxu3 %v944_v41  ;;  %v2149_v54 = vpop.f32.mrf.mxu1 }
 0x1f5   : > { %v4044_v57 = vadd.f32 %v2143_v30, %v2031_v26 }
 0x1f6   : > { %v1807_v28 = vpop.f32.mrf.mxu2  ;;  %2439 = vmatmul.f32.gmra.mxu0 %v1009_v52  ;;  %v882_v52 = vld [vmem:[#allocation2 + $0x90] sm:$0xff] }
 0x1f7   : > { %v1920_v4 = vpop.f32.mrf.mxu3  ;;  %2632 = vmatmul.f32.gmra.mxu1 %v2896_v22  ;;  %v1808_v44 = vadd.f32 %v1807_v28, %v3660_v18  ;;  %v946_v18 = vld [vmem:[#allocation2 + $0x91] sm:$0xff] }
 0x1f9   : > { %v1921_v61 = vadd.f32 %v1920_v4, %v1808_v44  ;;  %v1011_v44 = vld [vmem:[#allocation2 + $0x9a] sm:$0xff] }
 0x1fb   : > { %v2034_v35 = vadd.f32 %v2033_v25, %v1921_v61  ;;  %2213 = vmatmul.f32.gmra.mxu2 %v881_v10  ;;  %v2039_v21 = vpop.f32.mrf.mxu0  ;;  %v2898_v61 = vld [vmem:[#allocation2 + $0x81] sm:$0xff] }
 0x1fc   : > { %2326 = vmatmul.f32.gmra.mxu3 %v945_v63  ;;  %v2152_v8 = vpop.f32.mrf.mxu1 }
 0x1fd   : > { %v4047_v0 = vadd.f32 %v2146_v20, %v2034_v35 }
 0x1fe   : > { %v1810_v30 = vpop.f32.mrf.mxu2  ;;  %2442 = vmatmul.f32.gmra.mxu0 %v1010_v12  ;;  %v883_v12 = vld [vmem:[#allocation2 + $0x98] sm:$0xff] }
 0x1ff   : > { %v1923_v41 = vpop.f32.mrf.mxu3  ;;  %2635 = vmatmul.f32.gmra.mxu1 %v2897_v55  ;;  %v1811_v26 = vadd.f32 %v1810_v30, %v3671_v37  ;;  %v947_v37 = vld [vmem:[#allocation2 + $0x99] sm:$0xff] }
 0x201   : > { %v1924_v28 = vadd.f32 %v1923_v41, %v1811_v26  ;;  %v1012_v26 = vld [vmem:[#allocation2 + $0xaa] sm:$0xff] }
 0x203   : > { %v2037_v22 = vadd.f32 %v2036_v36, %v1924_v28  ;;  %2216 = vmatmul.f32.gmra.mxu2 %v882_v52  ;;  %v2042_v25 = vpop.f32.mrf.mxu0  ;;  %v2899_v28 = vld [vmem:[#allocation2 + $0x91] sm:$0xff] }
 0x204   : > { %2329 = vmatmul.f32.gmra.mxu3 %v946_v18  ;;  %v2155_v4 = vpop.f32.mrf.mxu1 }
 0x205   : > { %v4050_v10 = vadd.f32 %v2149_v54, %v2037_v22 }
 0x206   : > { %v1813_v20 = vpop.f32.mrf.mxu2  ;;  %2445 = vmatmul.f32.gmra.mxu0 %v1011_v44  ;;  %v884_v44 = vld [vmem:[#allocation2 + $0xa8] sm:$0xff] }
 0x207   : > { %v1926_v63 = vpop.f32.mrf.mxu3  ;;  %2638 = vmatmul.f32.gmra.mxu1 %v2898_v61  ;;  %v1814_v35 = vadd.f32 %v1813_v20, %v3688_v58  ;;  %v948_v58 = vld [vmem:[#allocation2 + $0xa9] sm:$0xff] }
 0x209   : > { %v1927_v30 = vadd.f32 %v1926_v63, %v1814_v35  ;;  %v1013_v35 = vld [vmem:[#allocation2 + $0xb2] sm:$0xff] }
 0x20b   : > { %v2040_v55 = vadd.f32 %v2039_v21, %v1927_v30  ;;  %2219 = vmatmul.f32.gmra.mxu2 %v883_v12  ;;  %v2045_v36 = vpop.f32.mrf.mxu0  ;;  %v2900_v30 = vld [vmem:[#allocation2 + $0x99] sm:$0xff] }
 0x20c   : > { %2332 = vmatmul.f32.gmra.mxu3 %v947_v37  ;;  %v2158_v41 = vpop.f32.mrf.mxu1 }
 0x20d   : > { %v4053_v52 = vadd.f32 %v2152_v8, %v2040_v55 }
 0x20e   : > { %v1816_v54 = vpop.f32.mrf.mxu2  ;;  %2448 = vmatmul.f32.gmra.mxu0 %v1012_v26  ;;  %v885_v26 = vld [vmem:[#allocation2 + $0xb0] sm:$0xff] }
 0x20f   : > { %v1929_v18 = vpop.f32.mrf.mxu3  ;;  %2641 = vmatmul.f32.gmra.mxu1 %v2899_v28  ;;  %v1817_v22 = vadd.f32 %v1816_v54, %v3699_v17  ;;  %v949_v17 = vld [vmem:[#allocation2 + $0xb1] sm:$0xff] }
 0x211   : > { %v1930_v20 = vadd.f32 %v1929_v18, %v1817_v22  ;;  %v1014_v22 = vld [vmem:[#allocation2 + $0xc2] sm:$0xff] }
 0x213   : > { %v2043_v61 = vadd.f32 %v2042_v25, %v1930_v20  ;;  %2222 = vmatmul.f32.gmra.mxu2 %v884_v44  ;;  %v2048_v21 = vpop.f32.mrf.mxu0  ;;  %v2901_v20 = vld [vmem:[#allocation2 + $0xa9] sm:$0xff] }
 0x214   : > { %2335 = vmatmul.f32.gmra.mxu3 %v948_v58  ;;  %v2161_v63 = vpop.f32.mrf.mxu1 }
 0x215   : > { %v4056_v12 = vadd.f32 %v2155_v4, %v2043_v61  ;;  %v4269_v61 = vld [vmem:[#allocation4_spill] sm:$0xff] }
 0x216   : > { %v1819_v8 = vpop.f32.mrf.mxu2  ;;  %2451 = vmatmul.f32.gmra.mxu0 %v1013_v35 }
 0x217   : > { %4267 = vst [vmem:[#allocation24_spill] sm:$0xff] %v4056_v12  ;;  %v1932_v37 = vpop.f32.mrf.mxu3  ;;  %2644 = vmatmul.f32.gmra.mxu1 %v2900_v30  ;;  %v1820_v55 = vadd.f32 %v1819_v8, %v3716_v32  ;;  %v886_v30 = vld [vmem:[#allocation2 + $0xc0] sm:$0xff] }
 0x218   : > { %v950_v32 = vld [vmem:[#allocation2 + $0xc1] sm:$0xff] }
 0x219   : > { %v1933_v54 = vadd.f32 %v1932_v37, %v1820_v55  ;;  %v1015_v55 = vld [vmem:[#allocation2 + $0xca] sm:$0xff] }
 0x21b   : > { %v2046_v28 = vadd.f32 %v2045_v36, %v1933_v54  ;;  %2225 = vmatmul.f32.gmra.mxu2 %v885_v26  ;;  %v2051_v25 = vpop.f32.mrf.mxu0  ;;  %v2902_v54 = vld [vmem:[#allocation2 + $0xb1] sm:$0xff] }
 0x21c   : > { %2338 = vmatmul.f32.gmra.mxu3 %v949_v17  ;;  %v2164_v18 = vpop.f32.mrf.mxu1 }
 0x21d   : > { %v4059_v44 = vadd.f32 %v2158_v41, %v2046_v28  ;;  %v4270_v28 = vld [vmem:[#allocation5_spill] sm:$0xff] }
 0x21e   : > { %v1822_v4 = vpop.f32.mrf.mxu2  ;;  %2454 = vmatmul.f32.gmra.mxu0 %v1014_v22 }
 0x21f   : > { %4268 = vst [vmem:[#allocation25_spill] sm:$0xff] %v4059_v44  ;;  %v1935_v58 = vpop.f32.mrf.mxu3  ;;  %2647 = vmatmul.f32.gmra.mxu1 %v2901_v20  ;;  %v1823_v35 = vadd.f32 %v1822_v4, %v4269_v61  ;;  %v887_v20 = vld [vmem:[#allocation2 + $0xc8] sm:$0xff] }
 0x220   : > { %v951_v4 = vld [vmem:[#allocation2 + $0xc9] sm:$0xff] }
 0x221   : > { %v1936_v8 = vadd.f32 %v1935_v58, %v1823_v35  ;;  %v1016_v35 = vld [vmem:[#allocation2 + $0xda] sm:$0xff] }
 0x223   : > { %v2049_v12 = vadd.f32 %v2048_v21, %v1936_v8  ;;  %2228 = vmatmul.f32.gmra.mxu2 %v886_v30  ;;  %v2054_v36 = vpop.f32.mrf.mxu0  ;;  %v4271_v8 = vld [vmem:[#allocation6_spill] sm:$0xff] }
 0x224   : > { %2341 = vmatmul.f32.gmra.mxu3 %v950_v32  ;;  %v2167_v37 = vpop.f32.mrf.mxu1  ;;  %v2903_v32 = vld [vmem:[#allocation2 + $0xc1] sm:$0xff] }
 0x225   : > { %v4062_v26 = vadd.f32 %v2161_v63, %v2049_v12 }
 0x226   : > { %v1825_v41 = vpop.f32.mrf.mxu2  ;;  %2457 = vmatmul.f32.gmra.mxu0 %v1015_v55 }
 0x227   : > { %v1938_v17 = vpop.f32.mrf.mxu3  ;;  %2650 = vmatmul.f32.gmra.mxu1 %v2902_v54  ;;  %v1826_v22 = vadd.f32 %v1825_v41, %v4270_v28  ;;  %v888_v54 = vld [vmem:[#allocation2 + $0xd8] sm:$0xff] }
 0x228   : > { %v952_v41 = vld [vmem:[#allocation2 + $0xd9] sm:$0xff] }
 0x229   : > { %v1939_v61 = vadd.f32 %v1938_v17, %v1826_v22 }
 0x22b   : > { %v2052_v44 = vadd.f32 %v2051_v25, %v1939_v61  ;;  %2231 = vmatmul.f32.gmra.mxu2 %v887_v20  ;;  %v2057_v21 = vpop.f32.mrf.mxu0  ;;  %v1017_v20 = vld [vmem:[#allocation2 + $0xe2] sm:$0xff] }
 0x22c   : > { %2344 = vmatmul.f32.gmra.mxu3 %v951_v4  ;;  %v2170_v58 = vpop.f32.mrf.mxu1  ;;  %v2904_v61 = vld [vmem:[#allocation2 + $0xc9] sm:$0xff] }
 0x22d   : > { %v4065_v30 = vadd.f32 %v2164_v18, %v2052_v44 }
 0x22e   : > { %v1828_v63 = vpop.f32.mrf.mxu2  ;;  %2460 = vmatmul.f32.gmra.mxu0 %v1016_v35  ;;  %v4272_v35 = vld [vmem:[#allocation7_spill] sm:$0xff] }
 0x22f   : > { %v1941_v12 = vpop.f32.mrf.mxu3  ;;  %2653 = vmatmul.f32.gmra.mxu1 %v2903_v32  ;;  %v1829_v55 = vadd.f32 %v1828_v63, %v4271_v8  ;;  %v889_v63 = vld [vmem:[#allocation2 + $0xe0] sm:$0xff] }
 0x231   : > { %v1942_v28 = vadd.f32 %v1941_v12, %v1829_v55  ;;  %v2905_v12 = vld [vmem:[#allocation2 + $0xe1] sm:$0xff] }
 0x233   : > { %v2055_v17 = vadd.f32 %v2054_v36, %v1942_v28  ;;  %2234 = vmatmul.f32.gmra.mxu2 %v888_v54  ;;  %v2060_v25 = vpop.f32.mrf.mxu0  ;;  %v1018_v54 = vld [vmem:[#allocation2 + $0xf2] sm:$0xff] }
 0x234   : > { %2347 = vmatmul.f32.gmra.mxu3 %v952_v41  ;;  %v2173_v22 = vpop.f32.mrf.mxu1 }
 0x235   : > { %v4068_v4 = vadd.f32 %v2167_v37, %v2055_v17 }
 0x236   : > { %v1831_v18 = vpop.f32.mrf.mxu2  ;;  %2463 = vmatmul.f32.gmra.mxu0 %v1017_v20  ;;  %v2906_v20 = vld [vmem:[#allocation2 + $0xd9] sm:$0xff] }
 0x237   : > { %v1944_v44 = vpop.f32.mrf.mxu3  ;;  %2656 = vmatmul.f32.gmra.mxu1 %v2904_v61  ;;  %v1832_v32 = vadd.f32 %v1831_v18, %v4272_v35  ;;  %v4273_v18 = vld [vmem:[#allocation8_spill] sm:$0xff] }
 0x238   : > { %v890_v61 = vld [vmem:[#allocation2 + $0xf0] sm:$0xff] }
 0x239   : > { %v1945_v8 = vadd.f32 %v1944_v44, %v1832_v32  ;;  %v2907_v32 = vld [vmem:[#allocation2 + $0xf1] sm:$0xff] }
 0x23b   : > { %v2058_v36 = vadd.f32 %v2057_v21, %v1945_v8  ;;  %2237 = vmatmul.f32.gmra.mxu2 %v889_v63  ;;  %v2419_v37 = vpop.f32.mrf.mxu0 }
 0x23c   : > { %2350 = vmatmul.f32.gmra.mxu3 %v2905_v12  ;;  %v2612_v55 = vpop.f32.mrf.mxu1 }
 0x23d   : > { %2708 = vst [vmem:[%s4075_s16] sm:$0xff] %v2612_v55  ;;  %v4078_v41 = vadd.f32 %v2170_v58, %v2058_v36  ;;  %v1019_v55 = vld [vmem:[#allocation2 + $0xfa] sm:$0xff] }
 0x23e   : > { %v1834_v28 = vpop.f32.mrf.mxu2  ;;  %2466 = vmatmul.f32.gmra.mxu0 %v1018_v54 }
 0x23f   : > { %v1947_v17 = vpop.f32.mrf.mxu3  ;;  %2659 = vmatmul.f32.gmra.mxu1 %v2906_v20  ;;  %v1835_v44 = vadd.f32 %v1834_v28, %v4273_v18  ;;  %v891_v20 = vld [vmem:[#allocation2 + $0xf8] sm:$0xff] }
 0x240   : > { %v2908_v18 = vld [vmem:[#allocation2 + $0xf9] sm:$0xff] }
 0x241   : > { %v1948_v35 = vadd.f32 %v1947_v17, %v1835_v44 }
 0x243   : > { %v2061_v21 = vadd.f32 %v2060_v25, %v1948_v35  ;;  %2240 = vmatmul.f32.gmra.mxu2 %v890_v61  ;;  %v2422_v63 = vpop.f32.mrf.mxu0  ;;  %v1020_v61 = vld [vmem:[#allocation2 + $0x10a] sm:$0xff] }
 0x244   : > { %2353 = vmatmul.f32.gmra.mxu3 %v2907_v32  ;;  %v2615_v8 = vpop.f32.mrf.mxu1 }
 0x245   : > { %2709 = vst [vmem:[%s4075_s16 + $0x8] sm:$0xff] %v2615_v8  ;;  %v4082_v58 = vadd.f32 %v2173_v22, %v2061_v21  ;;  %v892_v21 = vld [vmem:[#allocation2 + $0x108] sm:$0xff] }
 0x246   : > { %v2193_v36 = vpop.f32.mrf.mxu2  ;;  %2469 = vmatmul.f32.gmra.mxu0 %v1019_v55 }
 0x247   : > { %v2306_v54 = vpop.f32.mrf.mxu3  ;;  %2662 = vmatmul.f32.gmra.mxu1 %v2905_v12  ;;  %v2194_v28 = vadd.f32 %v2193_v36, %v3789_v7 }
 0x249   : > { %v2307_v17 = vadd.f32 %v2306_v54, %v2194_v28 }
 0x24b   : > { %v2420_v25 = vadd.f32 %v2419_v37, %v2307_v17  ;;  %2243 = vmatmul.f32.gmra.mxu2 %v891_v20  ;;  %v2425_v22 = vpop.f32.mrf.mxu0  ;;  %v2909_v37 = vld [vmem:[#allocation2 + $0x109] sm:$0xff] }
 0x24c   : > { %2356 = vmatmul.f32.gmra.mxu3 %v2908_v18  ;;  %v2618_v44 = vpop.f32.mrf.mxu1 }
 0x24d   : > { %2710 = vst [vmem:[%s4075_s16 + $0x10] sm:$0xff] %v2618_v44 }
 0x24e   : > { %2515 = vst [vmem:[%s4089_s19] sm:$0xff] %v2420_v25  ;;  %v2196_v7 = vpop.f32.mrf.mxu2  ;;  %2472 = vmatmul.f32.gmra.mxu0 %v1020_v61 }
 0x24f   : > { %v2309_v12 = vpop.f32.mrf.mxu3  ;;  %2665 = vmatmul.f32.gmra.mxu1 %v2907_v32  ;;  %v2197_v35 = vadd.f32 %v2196_v7, %v3802_v48  ;;  %v893_v48 = vld [vmem:[#allocation2 + $0x110] sm:$0xff] }
 0x251   : > { %v2310_v8 = vadd.f32 %v2309_v12, %v2197_v35 }
 0x253   : > { %v2423_v55 = vadd.f32 %v2422_v63, %v2310_v8  ;;  %2246 = vmatmul.f32.gmra.mxu2 %v892_v21  ;;  %v2428_v36 = vpop.f32.mrf.mxu0  ;;  %v2910_v63 = vld [vmem:[#allocation2 + $0x111] sm:$0xff] }
 0x254   : > { %2359 = vmatmul.f32.gmra.mxu3 %v2909_v37  ;;  %v2621_v54 = vpop.f32.mrf.mxu1 }
 0x255   : > { %2711 = vst [vmem:[%s4075_s16 + $0x18] sm:$0xff] %v2621_v54 }
 0x256   : > { %2516 = vst [vmem:[%s4089_s19 + $0x8] sm:$0xff] %v2423_v55  ;;  %v2199_v28 = vpop.f32.mrf.mxu2  ;;  %2475 = vmatmul.f32.gmra.mxu0 %v3817_v6 }
 0x257   : > { %v2312_v20 = vpop.f32.mrf.mxu3  ;;  %2668 = vmatmul.f32.gmra.mxu1 %v2908_v18  ;;  %v2200_v32 = vadd.f32 %v2199_v28, %v3809_v62 }
 0x259   : > { %v2313_v17 = vadd.f32 %v2312_v20, %v2200_v32 }
 0x25b   : > { %v2426_v25 = vadd.f32 %v2425_v22, %v2313_v17  ;;  %2249 = vmatmul.f32.gmra.mxu2 %v893_v48  ;;  %v2431_v44 = vpop.f32.mrf.mxu0 }
 0x25c   : > { %2362 = vmatmul.f32.gmra.mxu3 %v2910_v63  ;;  %v2624_v61 = vpop.f32.mrf.mxu1 }
 0x25d   : > { %2712 = vst [vmem:[%s4075_s16 + $0x20] sm:$0xff] %v2624_v61 }
 0x25e   : > { %2517 = vst [vmem:[%s4089_s19 + $0x10] sm:$0xff] %v2426_v25  ;;  %v2202_v7 = vpop.f32.mrf.mxu2  ;;  %2478 = vmatmul.f32.gmra.mxu0 %v3832_v9  ;;  %v4274_v25 = vld [vmem:[#allocation11_spill] sm:$0xff] }
 0x25f   : > { %v2315_v12 = vpop.f32.mrf.mxu3  ;;  %2671 = vmatmul.f32.gmra.mxu1 %v2909_v37  ;;  %v2203_v6 = vadd.f32 %v2202_v7, %v3824_v1  ;;  %v4276_v7 = vld [vmem:[#allocation10_spill] sm:$0xff] }
 0x261   : > { %v2316_v62 = vadd.f32 %v2315_v12, %v2203_v6 }
 0x263   : > { %v2429_v18 = vadd.f32 %v2428_v36, %v2316_v62  ;;  %2252 = vmatmul.f32.gmra.mxu2 %v3846_v33  ;;  %v2434_v22 = vpop.f32.mrf.mxu0  ;;  %v4277_v62 = vld [vmem:[#allocation12_spill] sm:$0xff] }
 0x264   : > { %2365 = vmatmul.f32.gmra.mxu3 %v3830_v50  ;;  %v2627_v35 = vpop.f32.mrf.mxu1 }
 0x265   : > { %2713 = vst [vmem:[%s4075_s16 + $0x28] sm:$0xff] %v2627_v35 }
 0x266   : > { %2518 = vst [vmem:[%s4089_s19 + $0x18] sm:$0xff] %v2429_v18  ;;  %v2205_v21 = vpop.f32.mrf.mxu2  ;;  %2481 = vmatmul.f32.gmra.mxu0 %v3851_v46  ;;  %v2911_v46 = vld [vmem:[#allocation2 + $0x121] sm:$0xff] }
 0x267   : > { %v2318_v8 = vpop.f32.mrf.mxu3  ;;  %2674 = vmatmul.f32.gmra.mxu1 %v2910_v63  ;;  %v2206_v9 = vadd.f32 %v2205_v21, %v3836_v27 }
 0x269   : > { %v2319_v1 = vadd.f32 %v2318_v8, %v2206_v9 }
 0x26b   : > { %v2432_v55 = vadd.f32 %v2431_v44, %v2319_v1  ;;  %2255 = vmatmul.f32.gmra.mxu2 %v3865_v14  ;;  %v2437_v50 = vpop.f32.mrf.mxu0 }
 0x26c   : > { %2368 = vmatmul.f32.gmra.mxu3 %v3849_v31  ;;  %v2630_v33 = vpop.f32.mrf.mxu1 }
 0x26d   : > { %2714 = vst [vmem:[%s4075_s16 + $0x30] sm:$0xff] %v2630_v33 }
 0x26e   : > { %2519 = vst [vmem:[%s4089_s19 + $0x20] sm:$0xff] %v2432_v55  ;;  %v2208_v37 = vpop.f32.mrf.mxu2  ;;  %2484 = vmatmul.f32.gmra.mxu0 %v3871_v45  ;;  %v2912_v45 = vld [vmem:[#allocation2 + $0x129] sm:$0xff] }
 0x26f   : > { %v2321_v36 = vpop.f32.mrf.mxu3  ;;  %2677 = vmatmul.f32.gmra.mxu1 %v2911_v46  ;;  %v2209_v27 = vadd.f32 %v2208_v37, %v3858_v43 }
 0x271   : > { %v2322_v54 = vadd.f32 %v2321_v36, %v2209_v27 }
 0x273   : > { %v2435_v28 = vadd.f32 %v2434_v22, %v2322_v54  ;;  %2258 = vmatmul.f32.gmra.mxu2 %v3885_v3  ;;  %v2440_v31 = vpop.f32.mrf.mxu0  ;;  %v4275_v3 = vld [vmem:[#allocation9_spill] sm:$0xff] }
 0x274   : > { %2371 = vmatmul.f32.gmra.mxu3 %v3869_v15  ;;  %v2633_v14 = vpop.f32.mrf.mxu1 }
 0x275   : > { %2715 = vst [vmem:[%s4075_s16 + $0x38] sm:$0xff] %v2633_v14 }
 0x276   : > { %2520 = vst [vmem:[%s4089_s19 + $0x28] sm:$0xff] %v2435_v28  ;;  %v2211_v20 = vpop.f32.mrf.mxu2  ;;  %2487 = vmatmul.f32.gmra.mxu0 %v3891_v56  ;;  %v2913_v56 = vld [vmem:[#allocation2 + $0x139] sm:$0xff] }
 0x277   : > { %v2324_v32 = vpop.f32.mrf.mxu3  ;;  %2680 = vmatmul.f32.gmra.mxu1 %v2912_v45  ;;  %v2212_v43 = vadd.f32 %v2211_v20, %v3875_v59 }
 0x279   : > { %v2325_v48 = vadd.f32 %v2324_v32, %v2212_v43 }
 0x27b   : > { %v2438_v17 = vadd.f32 %v2437_v50, %v2325_v48  ;;  %2261 = vmatmul.f32.gmra.mxu2 %v4274_v25  ;;  %v2443_v15 = vpop.f32.mrf.mxu0 }
 0x27c   : > { %2374 = vmatmul.f32.gmra.mxu3 %v4275_v3  ;;  %v2636_v63 = vpop.f32.mrf.mxu1 }
 0x27d   : > { %2716 = vst [vmem:[%s4075_s16 + $0x40] sm:$0xff] %v2636_v63 }
 0x27e   : > { %2521 = vst [vmem:[%s4089_s19 + $0x30] sm:$0xff] %v2438_v17  ;;  %v2214_v44 = vpop.f32.mrf.mxu2  ;;  %2490 = vmatmul.f32.gmra.mxu0 %v3918_v19  ;;  %v4278_v19 = vld [vmem:[#allocation13_spill] sm:$0xff] }
 0x27f   : > { %v2327_v61 = vpop.f32.mrf.mxu3  ;;  %2683 = vmatmul.f32.gmra.mxu1 %v2913_v56  ;;  %v2215_v59 = vadd.f32 %v2214_v44, %v4276_v7  ;;  %v4284_v44 = vld [vmem:[#allocation21_spill] sm:$0xff] }
 0x281   : > { %v2328_v12 = vadd.f32 %v2327_v61, %v2215_v59  ;;  %v4286_v59 = vld [vmem:[#allocation23_spill] sm:$0xff] }
 0x283   : > { %v2441_v6 = vadd.f32 %v2440_v31, %v2328_v12  ;;  %2264 = vmatmul.f32.gmra.mxu2 %v3934_v13  ;;  %v2446_v18 = vpop.f32.mrf.mxu0 }
 0x284   : > { %2377 = vmatmul.f32.gmra.mxu3 %v4277_v62  ;;  %v2639_v22 = vpop.f32.mrf.mxu1 }
 0x285   : > { %2717 = vst [vmem:[%s4075_s16 + $0x48] sm:$0xff] %v2639_v22 }
 0x286   : > { %2522 = vst [vmem:[%s4089_s19 + $0x38] sm:$0xff] %v2441_v6  ;;  %v2217_v35 = vpop.f32.mrf.mxu2  ;;  %2493 = vmatmul.f32.gmra.mxu0 %v3940_v47 }
 0x287   : > { %v2330_v21 = vpop.f32.mrf.mxu3  ;;  %2686 = vmatmul.f32.gmra.mxu1 %v4275_v3  ;;  %v2218_v8 = vadd.f32 %v2217_v35, %v4278_v19  ;;  %v4288_v35 = vld [vmem:[#allocation22_spill] sm:$0xff] }
 0x288   : > { %v968_v19 = vld [vmem:[#allocation2 + $0x199] sm:$0xff] }
 0x289   : > { %v2331_v9 = vadd.f32 %v2330_v21, %v2218_v8 }
 0x28b   : > { %v2444_v1 = vadd.f32 %v2443_v15, %v2331_v9  ;;  %2267 = vmatmul.f32.gmra.mxu2 %v3955_v51  ;;  %v2449_v13 = vpop.f32.mrf.mxu0  ;;  %v4279_v51 = vld [vmem:[#allocation14_spill] sm:$0xff] }
 0x28c   : > { %2380 = vmatmul.f32.gmra.mxu3 %v3938_v39  ;;  %v2642_v55 = vpop.f32.mrf.mxu1 }
 0x28d   : > { %2718 = vst [vmem:[%s4075_s16 + $0x50] sm:$0xff] %v2642_v55 }
 0x28e   : > { %2523 = vst [vmem:[%s4089_s19 + $0x40] sm:$0xff] %v2444_v1  ;;  %v2220_v50 = vpop.f32.mrf.mxu2  ;;  %2496 = vmatmul.f32.gmra.mxu0 %v3961_v29  ;;  %v4280_v29 = vld [vmem:[#allocation15_spill] sm:$0xff]  ;;  %v2914_v1 = vld [vmem:[#allocation2] sm:$0xff] }
 0x28f   : > { %v2333_v33 = vpop.f32.mrf.mxu3  ;;  %2689 = vmatmul.f32.gmra.mxu1 %v4277_v62  ;;  %v2221_v47 = vadd.f32 %v2220_v50, %v3947_v49  ;;  %v1032_v62 = vld [vmem:[#allocation2 + $0x19a] sm:$0xff]  ;;  %v1033_v50 = vld [vmem:[#allocation2 + $0x1a2] sm:$0xff] }
 0x291   : > { %v2334_v37 = vadd.f32 %v2333_v33, %v2221_v47 }
 0x293   : > { %v2447_v36 = vadd.f32 %v2446_v18, %v2334_v37  ;;  %2270 = vmatmul.f32.gmra.mxu2 %v3975_v53  ;;  %v2452_v46 = vpop.f32.mrf.mxu0  ;;  %v4281_v53 = vld [vmem:[#allocation16_spill] sm:$0xff] }
 0x294   : > { %2383 = vmatmul.f32.gmra.mxu3 %v4279_v51  ;;  %v2645_v27 = vpop.f32.mrf.mxu1 }
 0x295   : > { %2719 = vst [vmem:[%s4075_s16 + $0x58] sm:$0xff] %v2645_v27 }
 0x296   : > { %2524 = vst [vmem:[%s4089_s19 + $0x48] sm:$0xff] %v2447_v36  ;;  %v2223_v54 = vpop.f32.mrf.mxu2  ;;  %2499 = vmatmul.f32.gmra.mxu0 %v3981_v42  ;;  %v969_v36 = vld [vmem:[#allocation2 + $0x1a1] sm:$0xff] }
 0x297   : > { %v2336_v28 = vpop.f32.mrf.mxu3  ;;  %2692 = vmatmul.f32.gmra.mxu1 %v3938_v39  ;;  %v2224_v49 = vadd.f32 %v2223_v54, %v4280_v29  ;;  %v4282_v39 = vld [vmem:[#allocation17_spill] sm:$0xff] }
 0x299   : > { %v2337_v31 = vadd.f32 %v2336_v28, %v2224_v49 }
 0x29b   : > { %v2450_v14 = vadd.f32 %v2449_v13, %v2337_v31  ;;  %2273 = vmatmul.f32.gmra.mxu2 %v3989_v38  ;;  %v2455_v20 = vpop.f32.mrf.mxu0  ;;  %v4283_v38 = vld [vmem:[#allocation18_spill] sm:$0xff] }
 0x29c   : > { %2386 = vmatmul.f32.gmra.mxu3 %v4281_v53  ;;  %v2648_v32 = vpop.f32.mrf.mxu1 }
 0x29d   : > { %2720 = vst [vmem:[%s4075_s16 + $0x60] sm:$0xff] %v2648_v32 }
 0x29e   : > { %2525 = vst [vmem:[%s4089_s19 + $0x50] sm:$0xff] %v2450_v14  ;;  %v2226_v45 = vpop.f32.mrf.mxu2  ;;  %2502 = vmatmul.f32.gmra.mxu0 %v3995_v16  ;;  %v4285_v16 = vld [vmem:[#allocation19_spill] sm:$0xff] }
 0x29f   : > { %v2339_v43 = vpop.f32.mrf.mxu3  ;;  %2695 = vmatmul.f32.gmra.mxu1 %v4279_v51  ;;  %v2227_v42 = vadd.f32 %v2226_v45, %v4282_v39 }
 0x2a1   : > { %v2340_v48 = vadd.f32 %v2339_v43, %v2227_v42 }
 0x2a3   : > { %v2453_v17 = vadd.f32 %v2452_v46, %v2340_v48  ;;  %2276 = vmatmul.f32.gmra.mxu2 %v4003_v40  ;;  %v2458_v25 = vpop.f32.mrf.mxu0  ;;  %v4287_v40 = vld [vmem:[#allocation20_spill] sm:$0xff] }
 0x2a4   : > { %2389 = vmatmul.f32.gmra.mxu3 %v4283_v38  ;;  %v2651_v3 = vpop.f32.mrf.mxu1 }
 0x2a5   : > { %2721 = vst [vmem:[%s4075_s16 + $0x68] sm:$0xff] %v2651_v3 }
 0x2a6   : > { %2526 = vst [vmem:[%s4089_s19 + $0x58] sm:$0xff] %v2453_v17  ;;  %v2229_v15 = vpop.f32.mrf.mxu2  ;;  %2505 = vmatmul.f32.gmra.mxu0 %v4284_v44 }
 0x2a7   : > { %v2342_v63 = vpop.f32.mrf.mxu3  ;;  %2698 = vmatmul.f32.gmra.mxu1 %v4281_v53  ;;  %v2230_v61 = vadd.f32 %v2229_v15, %v4285_v16 }
 0x2a9   : > { %v2343_v56 = vadd.f32 %v2342_v63, %v2230_v61 }
 0x2ab   : > { %v2456_v7 = vadd.f32 %v2455_v20, %v2343_v56  ;;  %2279 = vmatmul.f32.gmra.mxu2 %v4286_v59  ;;  %v2461_v12 = vpop.f32.mrf.mxu0 }
 0x2ac   : > { %2392 = vmatmul.f32.gmra.mxu3 %v4287_v40  ;;  %v2654_v6 = vpop.f32.mrf.mxu1 }
 0x2ad   : > { %2722 = vst [vmem:[%s4075_s16 + $0x70] sm:$0xff] %v2654_v6 }
 0x2ae   : > { %2527 = vst [vmem:[%s4089_s19 + $0x60] sm:$0xff] %v2456_v7  ;;  %v2232_v18 = vpop.f32.mrf.mxu2  ;;  %2508 = vmatmul.f32.gmra.mxu0 %v1032_v62 }
 0x2af   : > { %v2345_v22 = vpop.f32.mrf.mxu3  ;;  %2701 = vmatmul.f32.gmra.mxu1 %v4283_v38  ;;  %v2233_v21 = vadd.f32 %v2232_v18, %v4288_v35 }
 0x2b1   : > { %v2346_v8 = vadd.f32 %v2345_v22, %v2233_v21 }
 0x2b3   : > { %v2459_v9 = vadd.f32 %v2458_v25, %v2346_v8  ;;  %2282 = vmatmul.f32.gmra.mxu2 %v2914_v1  ;;  %v2464_v13 = vpop.f32.mrf.mxu0 }
 0x2b4   : > { %2395 = vmatmul.f32.gmra.mxu3 %v968_v19  ;;  %v2657_v55 = vpop.f32.mrf.mxu1 }
 0x2b5   : > { %2723 = vst [vmem:[%s4075_s16 + $0x78] sm:$0xff] %v2657_v55 }
 0x2b6   : > { %2528 = vst [vmem:[%s4089_s19 + $0x68] sm:$0xff] %v2459_v9  ;;  %v2235_v33 = vpop.f32.mrf.mxu2  ;;  %2511 = vmatmul.f32.gmra.mxu0 %v1033_v50 }
 0x2b7   : > { %v2348_v47 = vpop.f32.mrf.mxu3  ;;  %2704 = vmatmul.f32.gmra.mxu1 %v4287_v40  ;;  %v2236_v37 = vadd.f32 %v2235_v33, %v4023_v60 }
 0x2b9   : > { %v2349_v51 = vadd.f32 %v2348_v47, %v2236_v37 }
 0x2bb   : > { %v2462_v46 = vadd.f32 %v2461_v12, %v2349_v51  ;;  %2285 = vmatmul.f32.gmra.mxu2 %v2914_v1  ;;  %v2467_v27 = vpop.f32.mrf.mxu0 }
 0x2bc   : > { %2398 = vmatmul.f32.gmra.mxu3 %v969_v36  ;;  %v2660_v54 = vpop.f32.mrf.mxu1 }
 0x2bd   : > { %2724 = vst [vmem:[%s4075_s16 + $0x80] sm:$0xff] %v2660_v54 }
 0x2be   : > { %2529 = vst [vmem:[%s4089_s19 + $0x70] sm:$0xff] %v2462_v46  ;;  %v2238_v28 = vpop.f32.mrf.mxu2 }
 0x2bf   : > { %v2351_v29 = vpop.f32.mrf.mxu3  ;;  %v2239_v49 = vadd.f32 %v2238_v28, %v4027_v34 }
 0x2c1   : > { %v2352_v31 = vadd.f32 %v2351_v29, %v2239_v49 }
 0x2c3   : > { %v2465_v14 = vadd.f32 %v2464_v13, %v2352_v31  ;;  %v2470_v60 = vpop.f32.mrf.mxu0 }
 0x2c4   : > { %v2663_v53 = vpop.f32.mrf.mxu1 }
 0x2c5   : > { %2725 = vst [vmem:[%s4075_s16 + $0x88] sm:$0xff] %v2663_v53 }
 0x2c6   : > { %2530 = vst [vmem:[%s4089_s19 + $0x78] sm:$0xff] %v2465_v14  ;;  %v2241_v20 = vpop.f32.mrf.mxu2 }
 0x2c7   : > { %v2354_v32 = vpop.f32.mrf.mxu3  ;;  %v2242_v45 = vadd.f32 %v2241_v20, %v4029_v2 }
 0x2c9   : > { %v2355_v43 = vadd.f32 %v2354_v32, %v2242_v45 }
 0x2cb   : > { %v2468_v39 = vadd.f32 %v2467_v27, %v2355_v43  ;;  %v2473_v42 = vpop.f32.mrf.mxu0 }
 0x2cc   : > { %v2666_v48 = vpop.f32.mrf.mxu1 }
 0x2cd   : > { %2726 = vst [vmem:[%s4075_s16 + $0x90] sm:$0xff] %v2666_v48 }
 0x2ce   : > { %2531 = vst [vmem:[%s4089_s19 + $0x80] sm:$0xff] %v2468_v39  ;;  %v2244_v17 = vpop.f32.mrf.mxu2 }
 0x2cf   : > { %v2357_v34 = vpop.f32.mrf.mxu3  ;;  %v2245_v38 = vadd.f32 %v2244_v17, %v4032_v23  ;;  %v4289_v17 = vld [vmem:[#allocation24_spill] sm:$0xff] }
 0x2d1   : > { %v2358_v25 = vadd.f32 %v2357_v34, %v2245_v38 }
 0x2d3   : > { %v2471_v3 = vadd.f32 %v2470_v60, %v2358_v25  ;;  %v2476_v15 = vpop.f32.mrf.mxu0 }
 0x2d4   : > { %v2669_v63 = vpop.f32.mrf.mxu1 }
 0x2d5   : > { %2727 = vst [vmem:[%s4075_s16 + $0x98] sm:$0xff] %v2669_v63  ;;  %v4290_v63 = vld [vmem:[#allocation25_spill] sm:$0xff] }
 0x2d6   : > { %2532 = vst [vmem:[%s4089_s19 + $0x88] sm:$0xff] %v2471_v3  ;;  %v2247_v44 = vpop.f32.mrf.mxu2 }
 0x2d7   : > { %v2360_v2 = vpop.f32.mrf.mxu3  ;;  %v2248_v16 = vadd.f32 %v2247_v44, %v4035_v5 }
 0x2d9   : > { %v2361_v61 = vadd.f32 %v2360_v2, %v2248_v16 }
 0x2db   : > { %v2474_v56 = vadd.f32 %v2473_v42, %v2361_v61  ;;  %v2479_v7 = vpop.f32.mrf.mxu0 }
 0x2dc   : > { %v2672_v59 = vpop.f32.mrf.mxu1 }
 0x2dd   : > { %2728 = vst [vmem:[%s4075_s16 + $0xa0] sm:$0xff] %v2672_v59 }
 0x2de   : > { %2533 = vst [vmem:[%s4089_s19 + $0x90] sm:$0xff] %v2474_v56  ;;  %v2250_v40 = vpop.f32.mrf.mxu2 }
 0x2df   : > { %v2363_v23 = vpop.f32.mrf.mxu3  ;;  %v2251_v12 = vadd.f32 %v2250_v40, %v4038_v24 }
 0x2e1   : > { %v2364_v6 = vadd.f32 %v2363_v23, %v2251_v12 }
 0x2e3   : > { %v2477_v62 = vadd.f32 %v2476_v15, %v2364_v6  ;;  %v2482_v18 = vpop.f32.mrf.mxu0 }
 0x2e4   : > { %v2675_v22 = vpop.f32.mrf.mxu1 }
 0x2e5   : > { %2729 = vst [vmem:[%s4075_s16 + $0xa8] sm:$0xff] %v2675_v22 }
 0x2e6   : > { %2534 = vst [vmem:[%s4089_s19 + $0x98] sm:$0xff] %v2477_v62  ;;  %v2253_v35 = vpop.f32.mrf.mxu2 }
 0x2e7   : > { %v2366_v5 = vpop.f32.mrf.mxu3  ;;  %v2254_v21 = vadd.f32 %v2253_v35, %v4041_v11 }
 0x2e9   : > { %v2367_v19 = vadd.f32 %v2366_v5, %v2254_v21 }
 0x2eb   : > { %v2480_v8 = vadd.f32 %v2479_v7, %v2367_v19  ;;  %v2485_v9 = vpop.f32.mrf.mxu0 }
 0x2ec   : > { %v2678_v1 = vpop.f32.mrf.mxu1 }
 0x2ed   : > { %2730 = vst [vmem:[%s4075_s16 + $0xb0] sm:$0xff] %v2678_v1 }
 0x2ee   : > { %2535 = vst [vmem:[%s4089_s19 + $0xa0] sm:$0xff] %v2480_v8  ;;  %v2256_v13 = vpop.f32.mrf.mxu2 }
 0x2ef   : > { %v2369_v24 = vpop.f32.mrf.mxu3  ;;  %v2257_v55 = vadd.f32 %v2256_v13, %v4044_v57 }
 0x2f1   : > { %v2370_v50 = vadd.f32 %v2369_v24, %v2257_v55 }
 0x2f3   : > { %v2483_v33 = vadd.f32 %v2482_v18, %v2370_v50  ;;  %v2488_v47 = vpop.f32.mrf.mxu0 }
 0x2f4   : > { %v2681_v37 = vpop.f32.mrf.mxu1 }
 0x2f5   : > { %2731 = vst [vmem:[%s4075_s16 + $0xb8] sm:$0xff] %v2681_v37 }
 0x2f6   : > { %2536 = vst [vmem:[%s4089_s19 + $0xa8] sm:$0xff] %v2483_v33  ;;  %v2259_v36 = vpop.f32.mrf.mxu2 }
 0x2f7   : > { %v2372_v11 = vpop.f32.mrf.mxu3  ;;  %v2260_v51 = vadd.f32 %v2259_v36, %v4047_v0 }
 0x2f9   : > { %v2373_v46 = vadd.f32 %v2372_v11, %v2260_v51 }
 0x2fb   : > { %v2486_v27 = vadd.f32 %v2485_v9, %v2373_v46  ;;  %v2491_v54 = vpop.f32.mrf.mxu0 }
 0x2fc   : > { %v2684_v28 = vpop.f32.mrf.mxu1 }
 0x2fd   : > { %2732 = vst [vmem:[%s4075_s16 + $0xc0] sm:$0xff] %v2684_v28 }
 0x2fe   : > { %2537 = vst [vmem:[%s4089_s19 + $0xb0] sm:$0xff] %v2486_v27  ;;  %v2262_v57 = vpop.f32.mrf.mxu2 }
 0x2ff   : > { %v2375_v29 = vpop.f32.mrf.mxu3  ;;  %v2263_v49 = vadd.f32 %v2262_v57, %v4050_v10 }
 0x301   : > { %v2376_v31 = vadd.f32 %v2375_v29, %v2263_v49 }
 0x303   : > { %v2489_v14 = vadd.f32 %v2488_v47, %v2376_v31  ;;  %v2494_v60 = vpop.f32.mrf.mxu0 }
 0x304   : > { %v2687_v53 = vpop.f32.mrf.mxu1 }
 0x305   : > { %2733 = vst [vmem:[%s4075_s16 + $0xc8] sm:$0xff] %v2687_v53 }
 0x306   : > { %2538 = vst [vmem:[%s4089_s19 + $0xb8] sm:$0xff] %v2489_v14  ;;  %v2265_v0 = vpop.f32.mrf.mxu2 }
 0x307   : > { %v2378_v20 = vpop.f32.mrf.mxu3  ;;  %v2266_v32 = vadd.f32 %v2265_v0, %v4053_v52 }
 0x309   : > { %v2379_v45 = vadd.f32 %v2378_v20, %v2266_v32 }
 0x30b   : > { %v2492_v43 = vadd.f32 %v2491_v54, %v2379_v45  ;;  %v2497_v42 = vpop.f32.mrf.mxu0 }
 0x30c   : > { %v2690_v39 = vpop.f32.mrf.mxu1 }
 0x30d   : > { %2734 = vst [vmem:[%s4075_s16 + $0xd0] sm:$0xff] %v2690_v39 }
 0x30e   : > { %2539 = vst [vmem:[%s4089_s19 + $0xc0] sm:$0xff] %v2492_v43  ;;  %v2268_v10 = vpop.f32.mrf.mxu2 }
 0x30f   : > { %v2381_v48 = vpop.f32.mrf.mxu3  ;;  %v2269_v34 = vadd.f32 %v2268_v10, %v4289_v17 }
 0x311   : > { %v2382_v38 = vadd.f32 %v2381_v48, %v2269_v34 }
 0x313   : > { %v2495_v25 = vadd.f32 %v2494_v60, %v2382_v38  ;;  %v2500_v2 = vpop.f32.mrf.mxu0 }
 0x314   : > { %v2693_v3 = vpop.f32.mrf.mxu1 }
 0x315   : > { %2735 = vst [vmem:[%s4075_s16 + $0xd8] sm:$0xff] %v2693_v3 }
 0x316   : > { %2540 = vst [vmem:[%s4089_s19 + $0xc8] sm:$0xff] %v2495_v25  ;;  %v2271_v15 = vpop.f32.mrf.mxu2 }
 0x317   : > { %v2384_v52 = vpop.f32.mrf.mxu3  ;;  %v2272_v44 = vadd.f32 %v2271_v15, %v4290_v63 }
 0x319   : > { %v2385_v16 = vadd.f32 %v2384_v52, %v2272_v44 }
 0x31b   : > { %v2498_v61 = vadd.f32 %v2497_v42, %v2385_v16  ;;  %v2503_v12 = vpop.f32.mrf.mxu0 }
 0x31c   : > { %v2696_v56 = vpop.f32.mrf.mxu1 }
 0x31d   : > { %2736 = vst [vmem:[%s4075_s16 + $0xe0] sm:$0xff] %v2696_v56 }
 0x31e   : > { %2541 = vst [vmem:[%s4089_s19 + $0xd0] sm:$0xff] %v2498_v61  ;;  %v2274_v7 = vpop.f32.mrf.mxu2 }
 0x31f   : > { %v2387_v59 = vpop.f32.mrf.mxu3  ;;  %v2275_v40 = vadd.f32 %v2274_v7, %v4062_v26 }
 0x321   : > { %v2388_v23 = vadd.f32 %v2387_v59, %v2275_v40 }
 0x323   : > { %v2501_v6 = vadd.f32 %v2500_v2, %v2388_v23  ;;  %v2506_v19 = vpop.f32.mrf.mxu0 }
 0x324   : > { %v2699_v62 = vpop.f32.mrf.mxu1 }
 0x325   : > { %2737 = vst [vmem:[%s4075_s16 + $0xe8] sm:$0xff] %v2699_v62 }
 0x326   : > { %2542 = vst [vmem:[%s4089_s19 + $0xd8] sm:$0xff] %v2501_v6  ;;  %v2277_v18 = vpop.f32.mrf.mxu2 }
 0x327   : > { %v2390_v22 = vpop.f32.mrf.mxu3  ;;  %v2278_v35 = vadd.f32 %v2277_v18, %v4065_v30 }
 0x329   : > { %v2391_v5 = vadd.f32 %v2390_v22, %v2278_v35 }
 0x32b   : > { %v2504_v21 = vadd.f32 %v2503_v12, %v2391_v5  ;;  %v2509_v50 = vpop.f32.mrf.mxu0 }
 0x32c   : > { %v2702_v8 = vpop.f32.mrf.mxu1 }
 0x32d   : > { %2738 = vst [vmem:[%s4075_s16 + $0xf0] sm:$0xff] %v2702_v8 }
 0x32e   : > { %2543 = vst [vmem:[%s4089_s19 + $0xe0] sm:$0xff] %v2504_v21  ;;  %v2280_v26 = vpop.f32.mrf.mxu2 }
 0x32f   : > { %v2393_v9 = vpop.f32.mrf.mxu3  ;;  %v2281_v1 = vadd.f32 %v2280_v26, %v4068_v4 }
 0x331   : > { %v2394_v13 = vadd.f32 %v2393_v9, %v2281_v1 }
 0x333   : > { %v2507_v24 = vadd.f32 %v2506_v19, %v2394_v13  ;;  %v2512_v27 = vpop.f32.mrf.mxu0 }
 0x334   : > { %v2705_v55 = vpop.f32.mrf.mxu1 }
 0x335   : > { %2739 = vst [vmem:[%s4075_s16 + $0xf8] sm:$0xff] %v2705_v55 }
 0x336   : > { %2544 = vst [vmem:[%s4089_s19 + $0xe8] sm:$0xff] %v2507_v24  ;;  %v2283_v33 = vpop.f32.mrf.mxu2 }
 0x337   : > { %v2396_v30 = vpop.f32.mrf.mxu3  ;;  %v2284_v47 = vadd.f32 %v2283_v33, %v4078_v41 }
 0x339   : > { %v2397_v37 = vadd.f32 %v2396_v30, %v2284_v47 }
 0x33b   : > { %v2510_v36 = vadd.f32 %v2509_v50, %v2397_v37 }
 0x33d   : > { %2545 = vst [vmem:[%s4089_s19 + $0xf0] sm:$0xff] %v2510_v36 }
 0x33e   : > { %v2286_v11 = vpop.f32.mrf.mxu2 }
 0x33f   : > { %v2399_v51 = vpop.f32.mrf.mxu3  ;;  %v2287_v46 = vadd.f32 %v2286_v11, %v4082_v58 }
 0x341   : > { %v2400_v4 = vadd.f32 %v2399_v51, %v2287_v46 }
 0x343   : > { %v2513_v54 = vadd.f32 %v2512_v27, %v2400_v4 }
 0x345   : > { %2546 = vst [vmem:[%s4089_s19 + $0xf8] sm:$0xff] %v2513_v54 }
 0x346 PF: > { %s17_s21 = sadd.s32 1, %s2921_s21  }
 0x347   : > { %p14_p4 = scmp.ge.s32.totalorder %s17_s21, 4  }
 0x349   :  { %16 = sbr.rel (!%p14_p4) target bundleno = 1 (0x1), region = 84 }

// kernel: preact_block_forward.7
= control target key start
LH: loop header
LB: loop body
LE: loop exit
PB: predicated region body
PF: predicated region fallthrough
CT: control target
= control target key end

     0   :  { %s2775_s18 = smov 0   ;;  %s3854_s0 = inlined_call_operand.vmem [shape: f32[2,16,16,128], index: 0, kind: input, shape index: {}]   ;;  %s3855_s1 = inlined_call_operand.vmem [shape: f32[1,128], index: 1, kind: input, shape index: {}]   ;;  %s3856_s2 = inlined_call_operand.vmem [shape: f32[1,128], index: 2, kind: input, shape index: {}]   ;;  %s3857_s3 = inlined_call_operand.vmem [shape: f32[1152,128], index: 3, kind: input, shape index: {}]   ;;  %s3858_s4 = inlined_call_operand.vmem [shape: f32[2,16,16,128], index: 4, kind: input, shape index: {}]   ;;  %s3859_s5 = inlined_call_operand.vmem [shape: f32[2,16,16,128], index: 5, kind: output, shape index: {}]  }
   0x1 LB: > { %s2657_s19 = sadd.s32 4294967295, %s2742_s18   ;;  %p2661_p0 = scmp.ge.s32.totalorder %s2742_s18, 1  ;;  %s2742_s18 = sphi %s2775_s18, %s15_s18  }
   0x2   : > { %p197_p1 = scmp.lt.s32.totalorder %s2742_s18, 3 }
   0x4   : > { %p198_p2 = pnand %p2661_p0, %p197_p1 }
   0x5   : > { %p230_p3 = scmp.lt.s32.totalorder (!%p198_p2), %s2657_s19, 1 }
   0x6   : > { %201 = sbr.rel (%p198_p2) target bundleno = 784 (0x310), region = 40 }
   0xb   : > { %v1348_v0 = vld [vmem:[%s3857_s3 + $0x78] sm:$0xff]  ;;  %v1347_v1 = vld [vmem:[%s3857_s3 + $0x70] sm:$0xff]  ;;  %v2744_v2 = vmov 0.0   ;;  %v1346_v3 = vld [vmem:[%s3857_s3 + $0x68] sm:$0xff]  ;;  %s3861_s19 = smov (!%p230_p3, %s2657_s19), 1 }
   0xc   : > { %2673 = vmatpush.msra.mxu1 %v1348_v0  ;;  %2674 = vmatpush.msra.mxu2 %v1348_v0  ;;  %393 = vst [vmem:[#allocation2 + $0x60] sm:$0xff] %v2744_v2  ;;  %v1345_v4 = vld [vmem:[%s3857_s3 + $0x60] sm:$0xff]  ;;  %s2798_s28 = sshll.u32 %s3861_s19, 8  ;;  %v1344_v5 = vld [vmem:[%s3857_s3 + $0x58] sm:$0xff]  ;;  %v1343_v10 = vld [vmem:[%s3857_s3 + $0x50] sm:$0xff] }
   0xd   : > { %2675 = vmatpush.msra.mxu3 %v1348_v0  ;;  %1477 = vmatpush.msra.mxu0 %v1348_v0  ;;  %394 = vst [vmem:[#allocation2 + $0x68] sm:$0xff] %v2744_v2  ;;  %s2808_s8 = scalar_lea.vmem %s3854_s0, %s2798_s28  ;;  %v2813_v6 = vld [vmem:[%s3855_s1] ss:$0 sm:$0xff]  ;;  %v1342_v12 = vld [vmem:[%s3857_s3 + $0x48] sm:$0xff]  ;;  %v1340_v15 = vld [vmem:[%s3857_s3 + $0x38] sm:$0xff]  ;;  %s3747_s10 = scalar_lea.vmem %s3858_s4, %s2798_s28 }
   0xe   : > { %2676 = vmatpush.msra.mxu1 %v1347_v1  ;;  %2677 = vmatpush.msra.mxu2 %v1347_v1  ;;  %381 = vst [vmem:[#allocation2] sm:$0xff] %v2744_v2  ;;  %v251_v7 = vld [vmem:[%s2808_s8 + $0x30] sm:$0xff]  ;;  %v2820_v8 = vld [vmem:[%s3856_s2] ss:$0 sm:$0xff]  ;;  %v1338_v17 = vld [vmem:[%s3857_s3 + $0x28] sm:$0xff]  ;;  %s3754_s13 = scalar_lea.vmem %s3859_s5, %s2798_s28 }
   0xf   : > { %2678 = vmatpush.msra.mxu3 %v1347_v1  ;;  %1478 = vmatpush.msra.mxu0 %v1347_v1  ;;  %382 = vst [vmem:[#allocation2 + $0x8] sm:$0xff] %v2744_v2  ;;  %v287_v9 = vmul.f32 %v2813_v6, %v251_v7  ;;  %v1341_v14 = vld [vmem:[%s3857_s3 + $0x40] sm:$0xff]  ;;  %v1339_v16 = vld [vmem:[%s3857_s3 + $0x30] sm:$0xff]  ;;  %v1336_v19 = vld [vmem:[%s3857_s3 + $0x18] sm:$0xff] }
  0x10   : > { %2679 = vmatpush.msra.mxu1 %v1346_v3  ;;  %2680 = vmatpush.msra.mxu2 %v1346_v3  ;;  %384 = vst [vmem:[#allocation2 + $0x18] sm:$0xff] %v2744_v2  ;;  %v1337_v18 = vld [vmem:[%s3857_s3 + $0x20] sm:$0xff]  ;;  %v1335_v20 = vld [vmem:[%s3857_s3 + $0x10] sm:$0xff]  ;;  %v1334_v21 = vld [vmem:[%s3857_s3 + $0x8] sm:$0xff] }
  0x11   : > { %2681 = vmatpush.msra.mxu3 %v1346_v3  ;;  %1479 = vmatpush.msra.mxu0 %v1346_v3  ;;  %385 = vst [vmem:[#allocation2 + $0x20] sm:$0xff] %v2744_v2  ;;  %v2830_v11 = vadd.f32 %v2820_v8, %v287_v9  ;;  %v1333_v22 = vld [vmem:[%s3857_s3] sm:$0xff]  ;;  %v1380_v24 = vld [vmem:[%s3857_s3 + $0x178] sm:$0xff]  ;;  %v1379_v27 = vld [vmem:[%s3857_s3 + $0x170] sm:$0xff] }
  0x12   : > { %2682 = vmatpush.msra.mxu1 %v1345_v4  ;;  %2683 = vmatpush.msra.mxu2 %v1345_v4  ;;  %383 = vst [vmem:[#allocation2 + $0x10] sm:$0x3] %v2744_v2  ;;  %v1396_v25 = vld [vmem:[%s3857_s3 + $0x1f8] sm:$0xff]  ;;  %v1395_v28 = vld [vmem:[%s3857_s3 + $0x1f0] sm:$0xff]  ;;  %v1378_v32 = vld [vmem:[%s3857_s3 + $0x168] sm:$0xff] }
  0x13   : > { %2684 = vmatpush.msra.mxu3 %v1345_v4  ;;  %1480 = vmatpush.msra.mxu0 %v1345_v4  ;;  %386 = vst [vmem:[#allocation2 + $0x28] sm:$0x3] %v2744_v2  ;;  %v355_v13 = vmax.f32 %v2830_v11, 0.0  ;;  %v1364_v26 = vld [vmem:[%s3857_s3 + $0xf8] sm:$0xff]  ;;  %v259_v29 = vld [vmem:[%s2808_s8 + $0x70] sm:$0xff]  ;;  %v1394_v33 = vld [vmem:[%s3857_s3 + $0x1e8] sm:$0xff] }
  0x14   : > { %2685 = vmatpush.msra.mxu1 %v1344_v5  ;;  %2686 = vmatpush.msra.mxu2 %v1344_v5  ;;  %387 = vst [vmem:[#allocation2 + $0x30] sm:$0xff] %v2744_v2  ;;  %v267_v30 = vld [vmem:[%s2808_s8 + $0xb0] sm:$0xff]  ;;  %v1412_v34 = vld [vmem:[%s3857_s3 + $0x278] sm:$0xff]  ;;  %v1362_v35 = vld [vmem:[%s3857_s3 + $0xe8] sm:$0xff]  ;;  %v295_v40 = vmul.f32 %v2813_v6, %v259_v29 }
  0x15   : > { %2687 = vmatpush.msra.mxu3 %v1344_v5  ;;  %1481 = vmatpush.msra.mxu0 %v1344_v5  ;;  %388 = vst [vmem:[#allocation2 + $0x38] sm:$0xff] %v2744_v2  ;;  %v1363_v31 = vld [vmem:[%s3857_s3 + $0xf0] sm:$0xff]  ;;  %v1377_v36 = vld [vmem:[%s3857_s3 + $0x160] sm:$0xff]  ;;  %v252_v39 = vld [vmem:[%s2808_s8 + $0x38] sm:$0xff]  ;;  %v303_v42 = vmul.f32 %v2813_v6, %v267_v30 }
  0x16   : > { %2688 = vmatpush.msra.mxu1 %v1343_v10  ;;  %2689 = vmatpush.msra.mxu2 %v1343_v10  ;;  %389 = vst [vmem:[#allocation2 + $0x40] sm:$0x3] %v2744_v2  ;;  %v1393_v37 = vld [vmem:[%s3857_s3 + $0x1e0] sm:$0xff]  ;;  %v1411_v38 = vld [vmem:[%s3857_s3 + $0x270] sm:$0xff]  ;;  %v260_v41 = vld [vmem:[%s2808_s8 + $0x78] sm:$0xff]  ;;  %v288_v44 = vmul.f32 %v2813_v6, %v252_v39  ;;  %v331_v50 = vadd.f32 %v2820_v8, %v295_v40 }
  0x17   : > { %2690 = vmatpush.msra.mxu3 %v1343_v10  ;;  %1482 = vmatpush.msra.mxu0 %v1343_v10  ;;  %390 = vst [vmem:[#allocation2 + $0x48] sm:$0xff] %v2744_v2  ;;  %v268_v43 = vld [vmem:[%s2808_s8 + $0xb8] sm:$0xff]  ;;  %v253_v45 = vld [vmem:[%s2808_s8 + $0x40] sm:$0xff]  ;;  %v296_v46 = vmul.f32 %v2813_v6, %v260_v41  ;;  %v254_v49 = vld [vmem:[%s2808_s8 + $0x48] sm:$0xff]  ;;  %v339_v55 = vadd.f32 %v2820_v8, %v303_v42 }
  0x18   : > { %2691 = vmatpush.msra.mxu1 %v1342_v12  ;;  %2692 = vmatpush.msra.mxu2 %v1342_v12  ;;  %442 = vst [vmem:[#allocation2 + $0x61] sm:$0xff] %v355_v13  ;;  %v261_v47 = vld [vmem:[%s2808_s8 + $0x80] sm:$0xff]  ;;  %v304_v51 = vmul.f32 %v2813_v6, %v268_v43  ;;  %v1376_v53 = vld [vmem:[%s3857_s3 + $0x158] sm:$0xff]  ;;  %v262_v54 = vld [vmem:[%s2808_s8 + $0x88] sm:$0xff]  ;;  %v289_v56 = vmul.f32 %v2813_v6, %v253_v45  ;;  %v363_v5 = vmax.f32 %v331_v50, 0.0 }
  0x19   : > { %2693 = vmatpush.msra.mxu3 %v1342_v12  ;;  %1483 = vmatpush.msra.mxu0 %v1342_v12  ;;  %391 = vst [vmem:[#allocation2 + $0x50] sm:$0xff] %v2744_v2  ;;  %v269_v48 = vld [vmem:[%s2808_s8 + $0xc0] sm:$0xff]  ;;  %v1392_v57 = vld [vmem:[%s3857_s3 + $0x1d8] sm:$0xff]  ;;  %v1410_v58 = vld [vmem:[%s3857_s3 + $0x268] sm:$0xff]  ;;  %v324_v60 = vadd.f32 %v2820_v8, %v288_v44  ;;  %v297_v61 = vmul.f32 %v2813_v6, %v261_v47  ;;  %v371_v12 = vmax.f32 %v339_v55, 0.0 }
  0x1a   : > { %2694 = vmatpush.msra.mxu1 %v1341_v14  ;;  %2695 = vmatpush.msra.mxu2 %v1341_v14  ;;  %392 = vst [vmem:[#allocation2 + $0x58] sm:$0x3] %v2744_v2  ;;  %v1361_v52 = vld [vmem:[%s3857_s3 + $0xe0] sm:$0xff]  ;;  %v1360_v59 = vld [vmem:[%s3857_s3 + $0xd8] sm:$0xff]  ;;  %v1375_v62 = vld [vmem:[%s3857_s3 + $0x150] sm:$0xff]  ;;  %v332_v1 = vadd.f32 %v2820_v8, %v296_v46  ;;  %v305_v3 = vmul.f32 %v2813_v6, %v269_v48 }
  0x1b   : > { %2696 = vmatpush.msra.mxu3 %v1341_v14  ;;  %1484 = vmatpush.msra.mxu0 %v1341_v14  ;;  %395 = vst [vmem:[#allocation2 + $0x70] sm:$0x3] %v2744_v2  ;;  %v1391_v63 = vld [vmem:[%s3857_s3 + $0x1d0] sm:$0xff]  ;;  %v1409_v0 = vld [vmem:[%s3857_s3 + $0x260] sm:$0xff]  ;;  %v340_v7 = vadd.f32 %v2820_v8, %v304_v51  ;;  %v290_v9 = vmul.f32 %v2813_v6, %v254_v49  ;;  %v270_v10 = vld [vmem:[%s2808_s8 + $0xc8] sm:$0xff] }
  0x1c   : > { %2697 = vmatpush.msra.mxu1 %v1340_v15  ;;  %2698 = vmatpush.msra.mxu2 %v1340_v15  ;;  %396 = vst [vmem:[#allocation2 + $0x78] sm:$0xff] %v2744_v2  ;;  %v245_v4 = vld [vmem:[%s2808_s8] sm:$0xff]  ;;  %v325_v14 = vadd.f32 %v2820_v8, %v289_v56  ;;  %v1374_v29 = vld [vmem:[%s3857_s3 + $0x148] sm:$0xff]  ;;  %v271_v30 = vld [vmem:[%s2808_s8 + $0xd0] sm:$0xff] }
  0x1d   : > { %2699 = vmatpush.msra.mxu3 %v1340_v15  ;;  %1485 = vmatpush.msra.mxu0 %v1340_v15  ;;  %397 = vst [vmem:[#allocation2 + $0x80] sm:$0xff] %v2744_v2  ;;  %v298_v15 = vmul.f32 %v2813_v6, %v262_v54  ;;  %v1373_v39 = vld [vmem:[%s3857_s3 + $0x140] sm:$0xff]  ;;  %v1407_v41 = vld [vmem:[%s3857_s3 + $0x250] sm:$0xff]  ;;  %v307_v45 = vmul.f32 %v2813_v6, %v271_v30  ;;  %v256_v46 = vld [vmem:[%s2808_s8 + $0x58] sm:$0xff] }
  0x1e   : > { %2700 = vmatpush.msra.mxu1 %v1339_v16  ;;  %2701 = vmatpush.msra.mxu2 %v1339_v16  ;;  %398 = vst [vmem:[#allocation2 + $0x88] sm:$0x3] %v2744_v2  ;;  %v1389_v40 = vld [vmem:[%s3857_s3 + $0x1c0] sm:$0xff]  ;;  %v264_v47 = vld [vmem:[%s2808_s8 + $0x98] sm:$0xff]  ;;  %v247_v48 = vld [vmem:[%s2808_s8 + $0x10] sm:$0xff]  ;;  %v292_v51 = vmul.f32 %v2813_v6, %v256_v46 }
  0x1f   : > { %2702 = vmatpush.msra.mxu3 %v1339_v16  ;;  %1486 = vmatpush.msra.mxu0 %v1339_v16  ;;  %399 = vst [vmem:[#allocation2 + $0x90] sm:$0xff] %v2744_v2  ;;  %v2884_v23 = vld [vmem:[#allocation2 + $0x60] sm:$0xff]  ;;  %v255_v16 = vld [vmem:[%s2808_s8 + $0x50] sm:$0xff]  ;;  %v300_v55 = vmul.f32 %v2813_v6, %v264_v47  ;;  %v248_v30 = vld [vmem:[%s2808_s8 + $0x18] sm:$0xff] }
  0x20   : > { %2703 = vmatpush.msra.mxu1 %v1338_v17  ;;  %2704 = vmatpush.msra.mxu2 %v1338_v17  ;;  %400 = vst [vmem:[#allocation2 + $0x98] sm:$0xff] %v2744_v2  ;;  %v1386_v46 = vld [vmem:[%s3857_s3 + $0x1a8] sm:$0xff]  ;;  %v1404_v47 = vld [vmem:[%s3857_s3 + $0x238] sm:$0xff] }
  0x21   : > { %2705 = vmatpush.msra.mxu3 %v1338_v17  ;;  %1487 = vmatpush.msra.mxu0 %v1338_v17  ;;  %401 = vst [vmem:[#allocation2 + $0xa0] sm:$0x3] %v2744_v2  ;;  %v3007_v17 = vmax.f32 %v324_v60, 0.0 }
  0x22   : > { %2706 = vmatpush.msra.mxu1 %v1337_v18  ;;  %2707 = vmatpush.msra.mxu2 %v1337_v18  ;;  %402 = vst [vmem:[#allocation2 + $0xa8] sm:$0xff] %v2744_v2 }
  0x23   : > { %2708 = vmatpush.msra.mxu3 %v1337_v18  ;;  %403 = vst [vmem:[#allocation2 + $0xb0] sm:$0xff] %v2744_v2  ;;  %1488 = vmatpush.msra.mxu0 %v1337_v18  ;;  %v333_v18 = vadd.f32 %v2820_v8, %v297_v61  ;;  %v343_v61 = vadd.f32 %v2820_v8, %v307_v45 }
  0x24   : > { %2709 = vmatpush.msra.mxu1 %v1336_v19  ;;  %2710 = vmatpush.msra.mxu2 %v1336_v19  ;;  %404 = vst [vmem:[#allocation2 + $0xb8] sm:$0x3] %v2744_v2 }
  0x25   : > { %2711 = vmatpush.msra.mxu3 %v1336_v19  ;;  %405 = vst [vmem:[#allocation2 + $0xc0] sm:$0xff] %v2744_v2  ;;  %1489 = vmatpush.msra.mxu0 %v1336_v19  ;;  %v281_v19 = vmul.f32 %v2813_v6, %v245_v4  ;;  %v328_v4 = vadd.f32 %v2820_v8, %v292_v51  ;;  %v1354_v51 = vld [vmem:[%s3857_s3 + $0xa8] sm:$0xff] }
  0x26   : > { %2712 = vmatpush.msra.mxu1 %v1335_v20  ;;  %2713 = vmatpush.msra.mxu2 %v1335_v20  ;;  %406 = vst [vmem:[#allocation2 + $0xc8] sm:$0xff] %v2744_v2 }
  0x27   : > { %2714 = vmatpush.msra.mxu3 %v1335_v20  ;;  %407 = vst [vmem:[#allocation2 + $0xd0] sm:$0x3] %v2744_v2  ;;  %1490 = vmatpush.msra.mxu0 %v1335_v20  ;;  %v263_v20 = vld [vmem:[%s2808_s8 + $0x90] sm:$0xff] }
  0x28   : > { %2715 = vmatpush.msra.mxu1 %v1334_v21  ;;  %2716 = vmatpush.msra.mxu2 %v1334_v21  ;;  %408 = vst [vmem:[#allocation2 + $0xd8] sm:$0xff] %v2744_v2 }
  0x29   : > { %2717 = vmatpush.msra.mxu3 %v1334_v21  ;;  %409 = vst [vmem:[#allocation2 + $0xe0] sm:$0xff] %v2744_v2  ;;  %1491 = vmatpush.msra.mxu0 %v1334_v21  ;;  %v364_v21 = vmax.f32 %v332_v1, 0.0  ;;  %v1357_v1 = vld [vmem:[%s3857_s3 + $0xc0] sm:$0xff] }
  0x2a   : > { %2718 = vmatpush.msra.mxu1 %v1333_v22  ;;  %2719 = vmatpush.msra.mxu2 %v1333_v22  ;;  %410 = vst [vmem:[#allocation2 + $0xe8] sm:$0x3] %v2744_v2 }
  0x2b   : > { %1517 = vmatmul.f32.vlgmr.msra.gmra.mxu1 %v2884_v23  ;;  %411 = vst [vmem:[#allocation2 + $0xf0] sm:$0xff] %v2744_v2  ;;  %2720 = vmatpush.msra.mxu3 %v1333_v22 }
  0x2c   : > { %412 = vst [vmem:[#allocation2 + $0xf8] sm:$0xff] %v2744_v2  ;;  %1703 = vmatpush.msrb.mxu2 %v1380_v24  ;;  %1492 = vmatpush.msra.mxu0 %v1333_v22  ;;  %v341_v22 = vadd.f32 %v2820_v8, %v305_v3  ;;  %v306_v24 = vmul.f32 %v2813_v6, %v270_v10  ;;  %v1372_v3 = vld [vmem:[%s3857_s3 + $0x138] sm:$0xff]  ;;  %v1406_v10 = vld [vmem:[%s3857_s3 + $0x248] sm:$0xff] }
  0x2d   : > { %413 = vst [vmem:[#allocation2 + $0x100] sm:$0x3] %v2744_v2  ;;  %1816 = vmatpush.msrb.mxu3 %v1396_v25  ;;  %1590 = vmatpush.msrb.mxu1 %v1364_v26  ;;  %v246_v25 = vld [vmem:[%s2808_s8 + $0x8] sm:$0xff]  ;;  %v372_v26 = vmax.f32 %v340_v7, 0.0 }
  0x2e   : > { %414 = vst [vmem:[#allocation2 + $0x108] sm:$0xff] %v2744_v2  ;;  %1704 = vmatpush.msrb.mxu2 %v1379_v27  ;;  %1493 = vmatmul.f32.vlgmr.msra.gmra.mxu0 %v2744_v2  ;;  %v326_v27 = vadd.f32 %v2820_v8, %v290_v9  ;;  %v282_v42 = vmul.f32 %v2813_v6, %v246_v25  ;;  %v373_v43 = vmax.f32 %v341_v22, 0.0  ;;  %v1388_v9 = vld [vmem:[%s3857_s3 + $0x1b8] sm:$0xff]  ;;  %v257_v25 = vld [vmem:[%s2808_s8 + $0x60] sm:$0xff] }
  0x2f   : > { %415 = vst [vmem:[#allocation2 + $0x110] sm:$0xff] %v2744_v2  ;;  %1817 = vmatpush.msrb.mxu3 %v1395_v28  ;;  %1591 = vmatpush.msrb.mxu1 %v1363_v31  ;;  %v1359_v28 = vld [vmem:[%s3857_s3 + $0xd0] sm:$0xff]  ;;  %v3025_v31 = vmax.f32 %v325_v14, 0.0  ;;  %v342_v44 = vadd.f32 %v2820_v8, %v306_v24  ;;  %v3112_v24 = vmax.f32 %v328_v4, 0.0 }
  0x30   : > { %416 = vst [vmem:[#allocation2 + $0x118] sm:$0x3] %v2744_v2  ;;  %1705 = vmatpush.msrb.mxu2 %v1378_v32  ;;  %1929 = vmatpush.msrb.mxu0 %v1412_v34  ;;  %v334_v32 = vadd.f32 %v2820_v8, %v298_v15  ;;  %v1408_v34 = vld [vmem:[%s3857_s3 + $0x258] sm:$0xff]  ;;  %v3055_v49 = vmax.f32 %v326_v27, 0.0 }
  0x31   : > { %417 = vst [vmem:[#allocation2 + $0x120] sm:$0xff] %v2744_v2  ;;  %1818 = vmatpush.msrb.mxu3 %v1394_v33  ;;  %1592 = vmatpush.msrb.mxu1 %v1362_v35  ;;  %v1390_v33 = vld [vmem:[%s3857_s3 + $0x1c8] sm:$0xff]  ;;  %v374_v60 = vmax.f32 %v342_v44, 0.0  ;;  %v1356_v15 = vld [vmem:[%s3857_s3 + $0xb8] sm:$0xff] }
  0x32   : > { %418 = vst [vmem:[#allocation2 + $0x128] sm:$0xff] %v2744_v2  ;;  %1706 = vmatpush.msrb.mxu2 %v1377_v36  ;;  %1930 = vmatpush.msrb.mxu0 %v1411_v38  ;;  %v1358_v35 = vld [vmem:[%s3857_s3 + $0xc8] sm:$0xff]  ;;  %v299_v36 = vmul.f32 %v2813_v6, %v263_v20  ;;  %v317_v38 = vadd.f32 %v2820_v8, %v281_v19  ;;  %v375_v19 = vmax.f32 %v343_v61, 0.0  ;;  %v1387_v20 = vld [vmem:[%s3857_s3 + $0x1b0] sm:$0xff] }
  0x33   : > { %419 = vst [vmem:[#allocation2 + $0x130] sm:$0x3] %v2744_v2  ;;  %1819 = vmatpush.msrb.mxu3 %v1393_v37  ;;  %1593 = vmatpush.msrb.mxu1 %v1361_v52  ;;  %v365_v37 = vmax.f32 %v333_v18, 0.0  ;;  %v272_v52 = vld [vmem:[%s2808_s8 + $0xd8] sm:$0xff] }
  0x34   : > { %420 = vst [vmem:[#allocation2 + $0x138] sm:$0xff] %v2744_v2  ;;  %1707 = vmatpush.msrb.mxu2 %v1376_v53  ;;  %1931 = vmatpush.msrb.mxu0 %v1410_v58  ;;  %v3061_v53 = vmax.f32 %v334_v32, 0.0  ;;  %v335_v54 = vadd.f32 %v2820_v8, %v299_v36  ;;  %v3065_v56 = vmax.f32 %v317_v38, 0.0  ;;  %v283_v58 = vmul.f32 %v2813_v6, %v247_v48  ;;  %v273_v32 = vld [vmem:[%s2808_s8 + $0xe0] sm:$0xff] }
  0x35   : > { %421 = vst [vmem:[#allocation2 + $0x140] sm:$0xff] %v2744_v2  ;;  %1820 = vmatpush.msrb.mxu3 %v1392_v57  ;;  %1594 = vmatpush.msrb.mxu1 %v1360_v59  ;;  %v318_v57 = vadd.f32 %v2820_v8, %v282_v42  ;;  %v309_v36 = vmul.f32 %v2813_v6, %v273_v32  ;;  %v1370_v42 = vld [vmem:[%s3857_s3 + $0x128] sm:$0xff] }
  0x36   : > { %422 = vst [vmem:[#allocation2 + $0x148] sm:$0x3] %v2744_v2  ;;  %1496 = vmatmul.f32.gmra.mxu0 %v2744_v2  ;;  %1708 = vmatpush.msrb.mxu2 %v1375_v62  ;;  %v308_v62 = vmul.f32 %v2813_v6, %v272_v52  ;;  %v3084_v7 = vmax.f32 %v335_v54, 0.0  ;;  %v319_v18 = vadd.f32 %v2820_v8, %v283_v58  ;;  %v1369_v52 = vld [vmem:[%s3857_s3 + $0x120] sm:$0xff] }
  0x37   : > { %423 = vst [vmem:[#allocation2 + $0x150] sm:$0xff] %v2744_v2  ;;  %1821 = vmatpush.msrb.mxu3 %v1391_v63  ;;  %1932 = vmatpush.msrb.mxu0 %v1409_v0  ;;  %v3095_v14 = vmax.f32 %v318_v57, 0.0  ;;  %v345_v44 = vadd.f32 %v2820_v8, %v309_v36  ;;  %v1403_v57 = vld [vmem:[%s3857_s3 + $0x230] sm:$0xff]  ;;  %v1401_v36 = vld [vmem:[%s3857_s3 + $0x220] sm:$0xff] }
  0x38   : > { %424 = vst [vmem:[#allocation2 + $0x158] sm:$0xff] %v2744_v2  ;;  %1595 = vmatpush.msrb.mxu1 %v1359_v28  ;;  %1709 = vmatpush.msrb.mxu2 %v1374_v29  ;;  %v344_v22 = vadd.f32 %v2820_v8, %v308_v62  ;;  %v293_v29 = vmul.f32 %v2813_v6, %v257_v25  ;;  %v1384_v25 = vld [vmem:[%s3857_s3 + $0x198] sm:$0xff] }
  0x39   : > { %425 = vst [vmem:[#allocation2 + $0x160] sm:$0x3] %v2744_v2  ;;  %1822 = vmatpush.msrb.mxu3 %v1390_v33  ;;  %1933 = vmatpush.msrb.mxu0 %v1408_v34  ;;  %v3124_v34 = vmax.f32 %v319_v18, 0.0  ;;  %v377_v58 = vmax.f32 %v345_v44, 0.0 }
  0x3a   : > { %426 = vst [vmem:[#allocation2 + $0x168] sm:$0xff] %v2744_v2  ;;  %1596 = vmatpush.msrb.mxu1 %v1358_v35  ;;  %1710 = vmatpush.msrb.mxu2 %v1373_v39  ;;  %v284_v35 = vmul.f32 %v2813_v6, %v248_v30  ;;  %v376_v38 = vmax.f32 %v344_v22, 0.0  ;;  %v329_v39 = vadd.f32 %v2820_v8, %v293_v29  ;;  %v1367_v30 = vld [vmem:[%s3857_s3 + $0x110] sm:$0xff] }
  0x3b   : > { %427 = vst [vmem:[#allocation2 + $0x170] sm:$0xff] %v2744_v2  ;;  %1823 = vmatpush.msrb.mxu3 %v1389_v40  ;;  %1934 = vmatpush.msrb.mxu0 %v1407_v41  ;;  %v1355_v41 = vld [vmem:[%s3857_s3 + $0xb0] sm:$0xff] }
  0x3c   : > { %428 = vst [vmem:[#allocation2 + $0x178] sm:$0x3] %v2744_v2  ;;  %1597 = vmatpush.msrb.mxu1 %v1357_v1  ;;  %1711 = vmatpush.msrb.mxu2 %v1372_v3  ;;  %v3150_v48 = vmax.f32 %v329_v39, 0.0  ;;  %v249_v1 = vld [vmem:[%s2808_s8 + $0x20] sm:$0xff]  ;;  %v274_v3 = vld [vmem:[%s2808_s8 + $0xe8] sm:$0xff] }
  0x3d   : > { %429 = vst [vmem:[#allocation2 + $0x180] sm:$0xff] %v2744_v2  ;;  %1824 = vmatpush.msrb.mxu3 %v1388_v9  ;;  %1935 = vmatpush.msrb.mxu0 %v1406_v10  ;;  %v285_v9 = vmul.f32 %v2813_v6, %v249_v1  ;;  %v310_v10 = vmul.f32 %v2813_v6, %v274_v3  ;;  %v1444_v3 = vld [vmem:[%s3857_s3 + $0x378] sm:$0xff] }
  0x3e   : > { %430 = vst [vmem:[#allocation2 + $0x188] sm:$0xff] %v2744_v2  ;;  %1598 = vmatpush.msrb.mxu1 %v1356_v15 }
  0x3f   : > { %431 = vst [vmem:[#allocation2 + $0x190] sm:$0x3] %v2744_v2  ;;  %1825 = vmatpush.msrb.mxu3 %v1387_v20  ;;  %v1368_v20 = vld [vmem:[%s3857_s3 + $0x118] sm:$0xff]  ;;  %v346_v22 = vadd.f32 %v2820_v8, %v310_v10 }
  0x40   : > { %432 = vst [vmem:[#allocation2 + $0x198] sm:$0xff] %v2744_v2  ;;  %1599 = vmatpush.msrb.mxu1 %v1355_v41  ;;  %v1428_v10 = vld [vmem:[%s3857_s3 + $0x2f8] sm:$0xff] }
  0x41   : > { %433 = vst [vmem:[#allocation2 + $0x1a0] sm:$0xff] %v2744_v2  ;;  %1826 = vmatpush.msrb.mxu3 %v1386_v46  ;;  %v1351_v46 = vld [vmem:[%s3857_s3 + $0x90] sm:$0xff] }
  0x42   : > { %434 = vst [vmem:[#allocation2 + $0x1a8] sm:$0x3] %v2744_v2  ;;  %v291_v2 = vmul.f32 %v2813_v6, %v255_v16  ;;  %v1371_v16 = vld [vmem:[%s3857_s3 + $0x130] sm:$0xff]  ;;  %1600 = vmatpush.msrb.mxu1 %v1354_v51  ;;  %v1350_v51 = vld [vmem:[%s3857_s3 + $0x88] sm:$0xff] }
  0x43   : > { %450 = vst [vmem:[#allocation2 + $0xc1] sm:$0xff] %v363_v5  ;;  %1712 = vmatpush.msrb.mxu2 %v1371_v16 }
  0x44   : > { %458 = vst [vmem:[#allocation2 + $0x121] sm:$0xff] %v371_v12  ;;  %v327_v50 = vadd.f32 %v2820_v8, %v291_v2  ;;  %v336_v12 = vadd.f32 %v2820_v8, %v300_v55  ;;  %v1385_v55 = vld [vmem:[%s3857_s3 + $0x1a0] sm:$0xff] }
  0x45   : > { %443 = vst [vmem:[#allocation2 + $0x69] sm:$0xff] %v3007_v17  ;;  %1713 = vmatpush.msrb.mxu2 %v1370_v42  ;;  %1827 = vmatpush.msrb.mxu3 %v1385_v55  ;;  %v1365_v55 = vld [vmem:[%s3857_s3 + $0x100] sm:$0xff] }
  0x46   : > { %451 = vst [vmem:[#allocation2 + $0xc9] sm:$0xff] %v364_v21  ;;  %v3072_v0 = vmax.f32 %v327_v50, 0.0  ;;  %v1405_v21 = vld [vmem:[%s3857_s3 + $0x240] sm:$0xff]  ;;  %v3117_v28 = vmax.f32 %v336_v12, 0.0 }
  0x47   : > { %459 = vst [vmem:[#allocation2 + $0x129] sm:$0xff] %v372_v26  ;;  %v265_v26 = vld [vmem:[%s2808_s8 + $0xa0] sm:$0xff]  ;;  %1936 = vmatpush.msrb.mxu0 %v1405_v21  ;;  %1714 = vmatpush.msrb.mxu2 %v1369_v52  ;;  %v321_v21 = vadd.f32 %v2820_v8, %v285_v9  ;;  %v1460_v9 = vld [vmem:[%s3857_s3 + $0x3f8] sm:$0xff] }
  0x48   : > { %444 = vst [vmem:[#allocation2 + $0x79] sm:$0xff] %v3025_v31  ;;  %v301_v2 = vmul.f32 %v2813_v6, %v265_v26  ;;  %v1402_v26 = vld [vmem:[%s3857_s3 + $0x228] sm:$0xff]  ;;  %1828 = vmatpush.msrb.mxu3 %v1384_v25 }
  0x49   : > { %452 = vst [vmem:[#allocation2 + $0xd9] sm:$0xff] %v365_v37  ;;  %1937 = vmatpush.msrb.mxu0 %v1404_v47  ;;  %v3217_v32 = vmax.f32 %v321_v21, 0.0  ;;  %1715 = vmatpush.msrb.mxu2 %v1368_v20  ;;  %v1366_v47 = vld [vmem:[%s3857_s3 + $0x108] sm:$0xff] }
  0x4a   : > { %v484_v59 = vld [vmem:[#allocation2 + $0xc0] sm:$0xff]  ;;  %460 = vst [vmem:[#allocation2 + $0x139] sm:$0xff] %v373_v43  ;;  %v337_v40 = vadd.f32 %v2820_v8, %v301_v2  ;;  %v320_v43 = vadd.f32 %v2820_v8, %v284_v35  ;;  %v1352_v2 = vld [vmem:[%s3857_s3 + $0x98] sm:$0xff]  ;;  %v1383_v35 = vld [vmem:[%s3857_s3 + $0x190] sm:$0xff] }
  0x4b   : > { %1541 = vmatmul.f32.vlgmr.msra.gmra.mxu2 %v484_v59  ;;  %v492_v63 = vld [vmem:[#allocation2 + $0x120] sm:$0xff]  ;;  %445 = vst [vmem:[#allocation2 + $0x81] sm:$0xff] %v3055_v49  ;;  %v258_v59 = vld [vmem:[%s2808_s8 + $0x68] sm:$0xff]  ;;  %1938 = vmatpush.msrb.mxu0 %v1403_v57 }
  0x4c   : > { %1565 = vmatmul.f32.vlgmr.msra.gmra.mxu3 %v492_v63  ;;  %v3081_v5 = vld [vmem:[#allocation2 + $0x68] sm:$0xff]  ;;  %453 = vst [vmem:[#allocation2 + $0xe1] sm:$0xff] %v3061_v53  ;;  %v3152_v50 = vmax.f32 %v337_v40, 0.0  ;;  %v3163_v54 = vmax.f32 %v320_v43, 0.0  ;;  %v294_v62 = vmul.f32 %v2813_v6, %v258_v59  ;;  %1716 = vmatpush.msrb.mxu2 %v1367_v30  ;;  %v1381_v57 = vld [vmem:[%s3857_s3 + $0x180] sm:$0xff] }
  0x4d   : > { %1520 = vmatmul.f32.gmra.mxu1 %v3081_v5  ;;  %436 = vst [vmem:[#allocation2 + $0x19] sm:$0xff] %v3065_v56  ;;  %v485_v27 = vld [vmem:[#allocation2 + $0xc8] sm:$0xff]  ;;  %1939 = vmatpush.msrb.mxu0 %v1402_v26  ;;  %v1349_v59 = vld [vmem:[%s3857_s3 + $0x80] sm:$0xff] }
  0x4e   : > { %461 = vst [vmem:[#allocation2 + $0x141] sm:$0xff] %v374_v60  ;;  %v493_v33 = vld [vmem:[#allocation2 + $0x128] sm:$0xff]  ;;  %v330_v16 = vadd.f32 %v2820_v8, %v294_v62  ;;  %1829 = vmatpush.msrb.mxu3 %v1383_v35  ;;  %1717 = vmatpush.msrb.mxu2 %v1366_v47  ;;  %v1459_v35 = vld [vmem:[%s3857_s3 + $0x3f0] sm:$0xff] }
  0x4f   : > { %446 = vst [vmem:[#allocation2 + $0x91] sm:$0xff] %v3072_v0  ;;  %v3128_v37 = vld [vmem:[#allocation2 + $0x78] sm:$0xff]  ;;  %v266_v60 = vld [vmem:[%s2808_s8 + $0xa8] sm:$0xff]  ;;  %1940 = vmatpush.msrb.mxu0 %v1401_v36  ;;  %v1427_v36 = vld [vmem:[%s3857_s3 + $0x2f0] sm:$0xff] }
  0x50   : > { %454 = vst [vmem:[#allocation2 + $0xf1] sm:$0xff] %v3084_v7  ;;  %v3174_v61 = vld [vmem:[#allocation2 + $0xd8] sm:$0xff]  ;;  %v302_v63 = vmul.f32 %v2813_v6, %v266_v60  ;;  %1718 = vmatpush.msrb.mxu2 %v1365_v55  ;;  %v533_v47 = vld [vmem:[#allocation2 + $0x9] sm:$0xff] }
  0x51   : > { %437 = vst [vmem:[#allocation2 + $0x21] sm:$0xff] %v3095_v14  ;;  %v494_v4 = vld [vmem:[#allocation2 + $0x138] sm:$0xff]  ;;  %v597_v55 = vld [vmem:[#allocation2 + $0xa] sm:$0xff] }
  0x52   : > { %462 = vst [vmem:[#allocation2 + $0x151] sm:$0xff] %v375_v19  ;;  %v3184_v12 = vld [vmem:[#allocation2 + $0x80] sm:$0xff]  ;;  %v338_v18 = vadd.f32 %v2820_v8, %v302_v63  ;;  %2155 = vmatpush.msra.mxu2 %v1444_v3 }
  0x53   : > { %1544 = vmatmul.f32.gmra.mxu2 %v485_v27  ;;  %447 = vst [vmem:[#allocation2 + $0x99] sm:$0xff] %v3112_v24  ;;  %v1353_v19 = vld [vmem:[%s3857_s3 + $0xa0] sm:$0xff]  ;;  %v3205_v27 = vmax.f32 %v330_v16, 0.0 }
  0x54   : > { %1568 = vmatmul.f32.gmra.mxu3 %v493_v33  ;;  %v3141_v45 = vld [vmem:[#allocation2 + $0x18] sm:$0xff]  ;;  %455 = vst [vmem:[#allocation2 + $0xf9] sm:$0xff] %v3117_v28  ;;  %1601 = vmatpush.msrb.mxu1 %v1353_v19  ;;  %v3207_v29 = vmax.f32 %v338_v18, 0.0  ;;  %v378_v33 = vmax.f32 %v346_v22, 0.0  ;;  %v3228_v39 = vld [vmem:[#allocation2 + $0xe0] sm:$0xff] }
  0x55   : > { %1523 = vmatmul.f32.gmra.mxu1 %v3128_v37  ;;  %1499 = vmatmul.f32.gmra.mxu0 %v3141_v45  ;;  %438 = vst [vmem:[#allocation2 + $0x31] sm:$0xff] %v3124_v34  ;;  %v495_v41 = vld [vmem:[#allocation2 + $0x140] sm:$0xff]  ;;  %v1476_v22 = vld [vmem:[%s3857_s3 + $0x478] sm:$0xff] }
  0x56   : > { %463 = vst [vmem:[#allocation2 + $0x159] sm:$0xff] %v376_v38  ;;  %1602 = vmatpush.msrb.mxu1 %v1352_v2  ;;  %v250_v38 = vld [vmem:[%s2808_s8 + $0x28] sm:$0xff]  ;;  %v3232_v42 = vld [vmem:[#allocation2 + $0x90] sm:$0xff]  ;;  %v1397_v16 = vld [vmem:[%s3857_s3 + $0x200] sm:$0xff] }
  0x57   : > { %448 = vst [vmem:[#allocation2 + $0xa9] sm:$0xff] %v3150_v48  ;;  %v286_v40 = vmul.f32 %v2813_v6, %v250_v38  ;;  %v1382_v6 = vld [vmem:[%s3857_s3 + $0x188] sm:$0xff]  ;;  %v3270_v60 = vld [vmem:[#allocation2 + $0xf0] sm:$0xff] }
  0x58   : > { %456 = vst [vmem:[#allocation2 + $0x109] sm:$0xff] %v3152_v50  ;;  %v3186_v15 = vld [vmem:[#allocation2 + $0x20] sm:$0xff]  ;;  %1603 = vmatpush.msrb.mxu1 %v1351_v46  ;;  %1830 = vmatpush.msrb.mxu3 %v1382_v6  ;;  %v1442_v6 = vld [vmem:[%s3857_s3 + $0x368] sm:$0xff] }
  0x59   : > { %439 = vst [vmem:[#allocation2 + $0x39] sm:$0xff] %v3163_v54  ;;  %v322_v44 = vadd.f32 %v2820_v8, %v286_v40  ;;  %v1400_v8 = vld [vmem:[%s3857_s3 + $0x218] sm:$0xff]  ;;  %v496_v62 = vld [vmem:[#allocation2 + $0x150] sm:$0xff]  ;;  %v596_v46 = vld [vmem:[#allocation2 + $0x2] sm:$0xff] }
  0x5a   : > { %464 = vst [vmem:[#allocation2 + $0x169] sm:$0xff] %v377_v58  ;;  %v1399_v58 = vld [vmem:[%s3857_s3 + $0x210] sm:$0xff]  ;;  %1941 = vmatpush.msrb.mxu0 %v1400_v8  ;;  %1604 = vmatpush.msrb.mxu1 %v1350_v51  ;;  %v3272_v63 = vld [vmem:[#allocation2 + $0x98] sm:$0xff]  ;;  %v1458_v8 = vld [vmem:[%s3857_s3 + $0x3e8] sm:$0xff] }
  0x5b   : > { %1547 = vmatmul.f32.gmra.mxu2 %v3174_v61  ;;  %449 = vst [vmem:[#allocation2 + $0xb1] sm:$0xff] %v3205_v27  ;;  %v3253_v52 = vmax.f32 %v322_v44, 0.0  ;;  %1831 = vmatpush.msrb.mxu3 %v1381_v57  ;;  %v3294_v18 = vld [vmem:[#allocation2 + $0xf8] sm:$0xff]  ;;  %v1475_v44 = vld [vmem:[%s3857_s3 + $0x470] sm:$0xff]  ;;  %v1426_v51 = vld [vmem:[%s3857_s3 + $0x2e8] sm:$0xff] }
  0x5c   : > { %1571 = vmatmul.f32.gmra.mxu3 %v494_v4  ;;  %457 = vst [vmem:[#allocation2 + $0x111] sm:$0xff] %v3207_v29  ;;  %v3234_v43 = vld [vmem:[#allocation2 + $0x30] sm:$0xff]  ;;  %1942 = vmatpush.msrb.mxu0 %v1399_v58  ;;  %v1398_v4 = vld [vmem:[%s3857_s3 + $0x208] sm:$0xff]  ;;  %v598_v57 = vld [vmem:[#allocation2 + $0x1a] sm:$0xff] }
  0x5d   : > { %1526 = vmatmul.f32.gmra.mxu1 %v3184_v12  ;;  %1502 = vmatmul.f32.gmra.mxu0 %v3186_v15  ;;  %440 = vst [vmem:[#allocation2 + $0x49] sm:$0xff] %v3217_v32  ;;  %v497_v19 = vld [vmem:[#allocation2 + $0x158] sm:$0xff]  ;;  %v1441_v58 = vld [vmem:[%s3857_s3 + $0x360] sm:$0xff] }
  0x5e   : > { %465 = vst [vmem:[#allocation2 + $0x171] sm:$0xff] %v378_v33  ;;  %1605 = vmatpush.msrb.mxu1 %v1349_v59  ;;  %1943 = vmatpush.msrb.mxu0 %v1398_v4  ;;  %v3296_v20 = vld [vmem:[#allocation2 + $0xa8] sm:$0xff]  ;;  %v1443_v33 = vld [vmem:[%s3857_s3 + $0x370] sm:$0xff]  ;;  %v1472_v4 = vld [vmem:[%s3857_s3 + $0x458] sm:$0xff] }
  0x5f   : > { %441 = vst [vmem:[#allocation2 + $0x51] sm:$0xff] %v3253_v52  ;;  %2268 = vmatpush.msra.mxu3 %v1460_v9  ;;  %v3306_v25 = vld [vmem:[#allocation2 + $0x108] sm:$0xff]  ;;  %2156 = vmatpush.msra.mxu2 %v1443_v33  ;;  %v1439_v9 = vld [vmem:[%s3857_s3 + $0x350] sm:$0xff] }
  0x60   : > { %v3274_v1 = vld [vmem:[#allocation2 + $0x38] sm:$0xff]  ;;  %2042 = vmatpush.msra.mxu1 %v1428_v10  ;;  %1944 = vmatpush.msrb.mxu0 %v1397_v16  ;;  %v599_v59 = vld [vmem:[#allocation2 + $0x22] sm:$0xff]  ;;  %v1455_v10 = vld [vmem:[%s3857_s3 + $0x3d0] sm:$0xff] }
  0x61   : > { %v498_v26 = vld [vmem:[#allocation2 + $0x168] sm:$0xff]  ;;  %2269 = vmatpush.msra.mxu3 %v1459_v35  ;;  %2157 = vmatpush.msra.mxu2 %v1442_v6  ;;  %v601_v3 = vld [vmem:[#allocation2 + $0x3a] sm:$0xff] }
  0x62   : > { %2381 = vmatpush.msra.mxu0 %v1476_v22  ;;  %v3308_v2 = vld [vmem:[#allocation2 + $0xb0] sm:$0xff]  ;;  %2043 = vmatpush.msra.mxu1 %v1427_v36  ;;  %v1422_v33 = vld [vmem:[%s3857_s3 + $0x2c8] sm:$0xff] }
  0x63   : > { %1550 = vmatmul.f32.gmra.mxu2 %v3228_v39  ;;  %v3324_v38 = vld [vmem:[#allocation2 + $0x110] sm:$0xff]  ;;  %2270 = vmatpush.msra.mxu3 %v1458_v8 }
  0x64   : > { %1574 = vmatmul.f32.gmra.mxu3 %v495_v41  ;;  %v3298_v21 = vld [vmem:[#allocation2 + $0x48] sm:$0xff]  ;;  %2382 = vmatpush.msra.mxu0 %v1475_v44 }
  0x65   : > { %1529 = vmatmul.f32.gmra.mxu1 %v3232_v42  ;;  %1505 = vmatmul.f32.gmra.mxu0 %v3234_v43  ;;  %v499_v40 = vld [vmem:[#allocation2 + $0x170] sm:$0xff]  ;;  %v532_v41 = vld [vmem:[#allocation2 + $0x1] sm:$0xff] }
  0x66   : > { %v3310_v30 = vld [vmem:[#allocation2 + $0x50] sm:$0xff]  ;;  %2044 = vmatpush.msra.mxu1 %v1426_v51  ;;  %2158 = vmatpush.msra.mxu2 %v1441_v58  ;;  %v1421_v51 = vld [vmem:[%s3857_s3 + $0x2c0] sm:$0xff] }
  0x6b   : > { %1553 = vmatmul.f32.gmra.mxu2 %v3270_v60 }
  0x6c   : > { %1577 = vmatmul.f32.gmra.mxu3 %v496_v62  ;;  %v600_v62 = vld [vmem:[#allocation2 + $0x32] sm:$0xff] }
  0x6d   : > { %1532 = vmatmul.f32.gmra.mxu1 %v3272_v63  ;;  %1508 = vmatmul.f32.gmra.mxu0 %v3274_v1 }
  0x73   : > { %1556 = vmatmul.f32.gmra.mxu2 %v3294_v18 }
  0x74   : > { %1580 = vmatmul.f32.gmra.mxu3 %v497_v19  ;;  %v604_v19 = vld [vmem:[#allocation2 + $0x62] sm:$0xff] }
  0x75   : > { %1535 = vmatmul.f32.gmra.mxu1 %v3296_v20  ;;  %1511 = vmatmul.f32.gmra.mxu0 %v3298_v21 }
  0x7b   : > { %1559 = vmatmul.f32.gmra.mxu2 %v3306_v25 }
  0x7c   : > { %1583 = vmatmul.f32.gmra.mxu3 %v498_v26  ;;  %v1438_v26 = vld [vmem:[%s3857_s3 + $0x348] sm:$0xff] }
  0x7d   : > { %1538 = vmatmul.f32.gmra.mxu1 %v3308_v2  ;;  %1514 = vmatmul.f32.gmra.mxu0 %v3310_v30 }
  0x83   : > { %1562 = vmatmul.f32.gmra.mxu2 %v3324_v38 }
  0x84   : > { %1586 = vmatmul.f32.gmra.mxu3 %v499_v40 }
  0x85   : > { %1606 = vmatmul.f32.vlgmr.msrb.gmra.mxu1 %v532_v41  ;;  %1945 = vmatmul.f32.vlgmr.msrb.gmra.mxu0 %v3065_v56 }
  0x8b   : > { %1719 = vmatmul.f32.vlgmr.msrb.gmra.mxu2 %v596_v46  ;;  %v606_v46 = vld [vmem:[#allocation2 + $0x7a] sm:$0xff] }
  0x8c   : > { %1832 = vmatmul.f32.vlgmr.msrb.gmra.mxu3 %v3141_v45  ;;  %v1474_v45 = vld [vmem:[%s3857_s3 + $0x468] sm:$0xff] }
  0x8d   : > { %1609 = vmatmul.f32.gmra.mxu1 %v533_v47  ;;  %1948 = vmatmul.f32.gmra.mxu0 %v3095_v14 }
  0x8e   : > { %2383 = vmatpush.msra.mxu0 %v1474_v45 }
  0x93   : > { %1722 = vmatmul.f32.gmra.mxu2 %v597_v55 }
  0x94   : > { %1835 = vmatmul.f32.gmra.mxu3 %v3186_v15  ;;  %v1457_v15 = vld [vmem:[%s3857_s3 + $0x3e0] sm:$0xff] }
  0x95   : > { %1612 = vmatmul.f32.gmra.mxu1 %v3065_v56  ;;  %1951 = vmatmul.f32.gmra.mxu0 %v3124_v34  ;;  %v1425_v56 = vld [vmem:[%s3857_s3 + $0x2e0] sm:$0xff] }
  0x96   : > { %2271 = vmatpush.msra.mxu3 %v1457_v15  ;;  %2045 = vmatpush.msra.mxu1 %v1425_v56  ;;  %v608_v56 = vld [vmem:[#allocation2 + $0x92] sm:$0xff] }
  0x9b   : > { %1725 = vmatmul.f32.gmra.mxu2 %v598_v57 }
  0x9c   : > { %1838 = vmatmul.f32.gmra.mxu3 %v3234_v43  ;;  %v1473_v43 = vld [vmem:[%s3857_s3 + $0x460] sm:$0xff] }
  0x9d   : > { %1615 = vmatmul.f32.gmra.mxu1 %v3095_v14  ;;  %1954 = vmatmul.f32.gmra.mxu0 %v3163_v54  ;;  %v1440_v14 = vld [vmem:[%s3857_s3 + $0x358] sm:$0xff] }
  0x9e   : > { %2384 = vmatpush.msra.mxu0 %v1473_v43  ;;  %2159 = vmatpush.msra.mxu2 %v1440_v14 }
  0xa0   : > { %2385 = vmatpush.msra.mxu0 %v1472_v4  ;;  %2160 = vmatpush.msra.mxu2 %v1439_v9  ;;  %v738_v4 = vld [vmem:[#allocation2 + $0xc1] sm:$0xff] }
  0xa2   : > { %2161 = vmatpush.msra.mxu2 %v1438_v26 }
  0xa3   : > { %1728 = vmatmul.f32.gmra.mxu2 %v599_v59 }
  0xa4   : > { %1841 = vmatmul.f32.gmra.mxu3 %v3274_v1  ;;  %v1456_v1 = vld [vmem:[%s3857_s3 + $0x3d8] sm:$0xff] }
  0xa5   : > { %1618 = vmatmul.f32.gmra.mxu1 %v3124_v34  ;;  %1957 = vmatmul.f32.gmra.mxu0 %v3217_v32  ;;  %v1424_v34 = vld [vmem:[%s3857_s3 + $0x2d8] sm:$0xff] }
  0xa6   : > { %2272 = vmatpush.msra.mxu3 %v1456_v1  ;;  %2046 = vmatpush.msra.mxu1 %v1424_v34  ;;  %v1420_v1 = vld [vmem:[%s3857_s3 + $0x2b8] sm:$0xff] }
  0xa7   : > { %v609_v34 = vld [vmem:[#allocation2 + $0x9a] sm:$0xff] }
  0xa8   : > { %2273 = vmatpush.msra.mxu3 %v1455_v10  ;;  %v3399_v16 = vpop.f32.mrf.mxu1  ;;  %v610_v10 = vld [vmem:[#allocation2 + $0xaa] sm:$0xff] }
  0xab   : > { %1731 = vmatmul.f32.gmra.mxu2 %v600_v62  ;;  %v3394_v11 = vpop.f32.mrf.mxu0 }
  0xac   : > { %1844 = vmatmul.f32.gmra.mxu3 %v3298_v21 }
  0xad   : > { %1621 = vmatmul.f32.gmra.mxu1 %v3163_v54  ;;  %1960 = vmatmul.f32.gmra.mxu0 %v3253_v52  ;;  %v602_v54 = vld [vmem:[#allocation2 + $0x4a] sm:$0xff] }
  0xb3   : > { %1734 = vmatmul.f32.gmra.mxu2 %v601_v3  ;;  %v3406_v21 = vpop.f32.mrf.mxu0 }
  0xb4   : > { %1847 = vmatmul.f32.gmra.mxu3 %v3310_v30 }
  0xb5   : > { %1624 = vmatmul.f32.gmra.mxu1 %v3217_v32  ;;  %1963 = vmatmul.f32.gmra.mxu0 %v355_v13  ;;  %v1423_v13 = vld [vmem:[%s3857_s3 + $0x2d0] sm:$0xff] }
  0xb6   : > { %2047 = vmatpush.msra.mxu1 %v1423_v13  ;;  %v603_v32 = vld [vmem:[#allocation2 + $0x52] sm:$0xff]  ;;  %v674_v13 = vld [vmem:[#allocation2 + $0xc0] sm:$0xff] }
  0xb8   : > { %2048 = vmatpush.msra.mxu1 %v1422_v33  ;;  %v611_v33 = vld [vmem:[#allocation2 + $0xb2] sm:$0xff] }
  0xba   : > { %2049 = vmatpush.msra.mxu1 %v1421_v51 }
  0xbb   : > { %1737 = vmatmul.f32.gmra.mxu2 %v602_v54 }
  0xbc   : > { %1850 = vmatmul.f32.gmra.mxu3 %v2884_v23  ;;  %v1471_v23 = vld [vmem:[%s3857_s3 + $0x450] sm:$0xff]  ;;  %2050 = vmatpush.msra.mxu1 %v1420_v1 }
  0xbd   : > { %1627 = vmatmul.f32.gmra.mxu1 %v3253_v52  ;;  %1966 = vmatmul.f32.gmra.mxu0 %v3007_v17  ;;  %v2732_v52 = vld [vmem:[#allocation2 + $0x61] sm:$0xff] }
  0xbe   : > { %2386 = vmatpush.msra.mxu0 %v1471_v23 }
  0xc3   : > { %1740 = vmatmul.f32.gmra.mxu2 %v603_v32 }
  0xc4   : > { %1853 = vmatmul.f32.gmra.mxu3 %v3081_v5  ;;  %v1454_v5 = vld [vmem:[%s3857_s3 + $0x3c8] sm:$0xff] }
  0xc5   : > { %1630 = vmatmul.f32.gmra.mxu1 %v2732_v52  ;;  %1969 = vmatmul.f32.gmra.mxu0 %v3025_v31  ;;  %v739_v52 = vld [vmem:[#allocation2 + $0xc9] sm:$0xff] }
  0xc6   : > { %2274 = vmatpush.msra.mxu3 %v1454_v5  ;;  %v1419_v5 = vld [vmem:[%s3857_s3 + $0x2b0] sm:$0xff] }
  0xc7   : > { %2051 = vmatpush.msra.mxu1 %v1419_v5 }
  0xca   : > { %v3408_v22 = vpop.f32.mrf.mxu1 }
  0xcb   : > { %1743 = vmatmul.f32.gmra.mxu2 %v604_v19 }
  0xcc   : > { %1856 = vmatmul.f32.gmra.mxu3 %v3128_v37  ;;  %v605_v37 = vld [vmem:[#allocation2 + $0x6a] sm:$0xff] }
  0xcd   : > { %1633 = vmatmul.f32.gmra.mxu1 %v3007_v17  ;;  %1972 = vmatmul.f32.gmra.mxu0 %v3055_v49  ;;  %v1470_v17 = vld [vmem:[%s3857_s3 + $0x448] sm:$0xff] }
  0xce   : > { %v3419_v30 = vpop.f32.mrf.mxu2  ;;  %2387 = vmatpush.msra.mxu0 %v1470_v17 }
  0xcf   : > { %v3424_v35 = vpop.f32.mrf.mxu3 }
  0xd2   : > { %v3426_v36 = vpop.f32.mrf.mxu1  ;;  %v3428_v40 = vpop.f32.mrf.mxu0 }
  0xd3   : > { %1746 = vmatmul.f32.gmra.mxu2 %v605_v37  ;;  %v675_v37 = vld [vmem:[#allocation2 + $0xc8] sm:$0xff] }
  0xd4   : > { %1859 = vmatmul.f32.gmra.mxu3 %v3184_v12  ;;  %v1437_v12 = vld [vmem:[%s3857_s3 + $0x340] sm:$0xff] }
  0xd5   : > { %1636 = vmatmul.f32.gmra.mxu1 %v3025_v31  ;;  %1975 = vmatmul.f32.gmra.mxu0 %v3072_v0  ;;  %v1453_v31 = vld [vmem:[%s3857_s3 + $0x3c0] sm:$0xff] }
  0xd6   : > { %v3436_v41 = vpop.f32.mrf.mxu2  ;;  %2162 = vmatpush.msra.mxu2 %v1437_v12  ;;  %2275 = vmatpush.msra.mxu3 %v1453_v31  ;;  %v740_v12 = vld [vmem:[#allocation2 + $0xd9] sm:$0xff] }
  0xd7   : > { %v3438_v44 = vpop.f32.mrf.mxu3 }
  0xda   : > { %v3440_v47 = vpop.f32.mrf.mxu1  ;;  %v3442_v6 = vpop.f32.mrf.mxu0 }
  0xdb   : > { %1749 = vmatmul.f32.gmra.mxu2 %v606_v46 }
  0xdc   : > { %1862 = vmatmul.f32.gmra.mxu3 %v3232_v42  ;;  %v607_v42 = vld [vmem:[#allocation2 + $0x82] sm:$0xff] }
  0xdd   : > { %1639 = vmatmul.f32.gmra.mxu1 %v3055_v49  ;;  %1978 = vmatmul.f32.gmra.mxu0 %v3112_v24  ;;  %v1469_v49 = vld [vmem:[%s3857_s3 + $0x440] sm:$0xff] }
  0xde   : > { %v3453_v8 = vpop.f32.mrf.mxu2  ;;  %2388 = vmatpush.msra.mxu0 %v1469_v49 }
  0xdf   : > { %v3458_v55 = vpop.f32.mrf.mxu3 }
  0xe2   : > { %v3460_v45 = vpop.f32.mrf.mxu1  ;;  %v3462_v57 = vpop.f32.mrf.mxu0 }
  0xe3   : > { %1752 = vmatmul.f32.gmra.mxu2 %v607_v42  ;;  %v612_v42 = vld [vmem:[#allocation2 + $0xc2] sm:$0xff] }
  0xe4   : > { %1865 = vmatmul.f32.gmra.mxu3 %v3272_v63  ;;  %v1436_v63 = vld [vmem:[%s3857_s3 + $0x338] sm:$0xff] }
  0xe5   : > { %1642 = vmatmul.f32.gmra.mxu1 %v3072_v0  ;;  %1981 = vmatmul.f32.gmra.mxu0 %v3150_v48  ;;  %v1452_v0 = vld [vmem:[%s3857_s3 + $0x3b8] sm:$0xff] }
  0xe6   : > { %v3470_v58 = vpop.f32.mrf.mxu2  ;;  %2163 = vmatpush.msra.mxu2 %v1436_v63  ;;  %2276 = vmatpush.msra.mxu3 %v1452_v0  ;;  %v1434_v63 = vld [vmem:[%s3857_s3 + $0x328] sm:$0xff] }
  0xe7   : > { %v3472_v15 = vpop.f32.mrf.mxu3  ;;  %v1450_v0 = vld [vmem:[%s3857_s3 + $0x3a8] sm:$0xff] }
  0xea   : > { %v3474_v59 = vpop.f32.mrf.mxu1  ;;  %v3476_v43 = vpop.f32.mrf.mxu0 }
  0xeb   : > { %1755 = vmatmul.f32.gmra.mxu2 %v608_v56 }
  0xec   : > { %1868 = vmatmul.f32.gmra.mxu3 %v3296_v20 }
  0xed   : > { %1645 = vmatmul.f32.gmra.mxu1 %v3112_v24  ;;  %1984 = vmatmul.f32.gmra.mxu0 %v3205_v27  ;;  %v1468_v24 = vld [vmem:[%s3857_s3 + $0x438] sm:$0xff] }
  0xee   : > { %v3487_v62 = vpop.f32.mrf.mxu2  ;;  %2389 = vmatpush.msra.mxu0 %v1468_v24 }
  0xef   : > { %v3489_v14 = vpop.f32.mrf.mxu3 }
  0xf2   : > { %v3494_v20 = vpop.f32.mrf.mxu1  ;;  %v3496_v3 = vpop.f32.mrf.mxu0 }
  0xf3   : > { %1758 = vmatmul.f32.gmra.mxu2 %v609_v34 }
  0xf4   : > { %1871 = vmatmul.f32.gmra.mxu3 %v3308_v2  ;;  %v1435_v2 = vld [vmem:[%s3857_s3 + $0x330] sm:$0xff] }
  0xf5   : > { %1648 = vmatmul.f32.gmra.mxu1 %v3150_v48  ;;  %1987 = vmatmul.f32.gmra.mxu0 %v738_v4  ;;  %v1451_v48 = vld [vmem:[%s3857_s3 + $0x3b0] sm:$0xff] }
  0xf6   : > { %v3503_v54 = vpop.f32.mrf.mxu2  ;;  %2164 = vmatpush.msra.mxu2 %v1435_v2  ;;  %2277 = vmatpush.msra.mxu3 %v1451_v48 }
  0xf7   : > { %v3505_v9 = vpop.f32.mrf.mxu3 }
  0xf8   : > { %2165 = vmatpush.msra.mxu2 %v1434_v63  ;;  %2278 = vmatpush.msra.mxu3 %v1450_v0 }
  0xfa   : > { %v3507_v32 = vpop.f32.mrf.mxu1  ;;  %v3509_v23 = vpop.f32.mrf.mxu0 }
  0xfb   : > { %1761 = vmatmul.f32.gmra.mxu2 %v610_v10  ;;  %v1418_v10 = vld [vmem:[%s3857_s3 + $0x2a8] sm:$0xff] }
  0xfc   : > { %1874 = vmatmul.f32.gmra.mxu3 %v674_v13  ;;  %v613_v13 = vld [vmem:[#allocation2 + $0xca] sm:$0xff]  ;;  %2052 = vmatpush.msra.mxu1 %v1418_v10 }
  0xfd   : > { %1651 = vmatmul.f32.gmra.mxu1 %v3205_v27  ;;  %1990 = vmatmul.f32.gmra.mxu0 %v739_v52  ;;  %v1467_v27 = vld [vmem:[%s3857_s3 + $0x430] sm:$0xff] }
  0xfe   : > { %v3518_v19 = vpop.f32.mrf.mxu2  ;;  %2390 = vmatpush.msra.mxu0 %v1467_v27  ;;  %v614_v27 = vld [vmem:[#allocation2 + $0xda] sm:$0xff] }
  0xff   : > { %v3520_v26 = vpop.f32.mrf.mxu3 }
 0x102   : > { %v1607_v17 = vpop.f32.mrf.mxu1  ;;  %v1946_v46 = vpop.f32.mrf.mxu0 }
 0x103   : > { %1764 = vmatmul.f32.gmra.mxu2 %v611_v33  ;;  %v1608_v1 = vadd.f32 %v1607_v17, %v3394_v11  ;;  %v1466_v11 = vld [vmem:[%s3857_s3 + $0x428] sm:$0xff] }
 0x104   : > { %1877 = vmatmul.f32.gmra.mxu3 %v675_v37  ;;  %2391 = vmatpush.msra.mxu0 %v1466_v11 }
 0x105   : > { %1654 = vmatmul.f32.gmra.mxu1 %v738_v4  ;;  %1993 = vmatmul.f32.gmra.mxu0 %v740_v12 }
 0x106   : > { %v3528_v31 = vpop.f32.mrf.mxu2 }
 0x107   : > { %v3530_v51 = vpop.f32.mrf.mxu3 }
 0x10a   : > { %v1610_v49 = vpop.f32.mrf.mxu1  ;;  %v1949_v56 = vpop.f32.mrf.mxu0 }
 0x10b   : > { %1767 = vmatmul.f32.gmra.mxu2 %v612_v42 }
 0x10c   : > { %1880 = vmatmul.f32.gmra.mxu3 %v3174_v61 }
 0x10d   : > { %1657 = vmatmul.f32.gmra.mxu1 %v739_v52  ;;  %1996 = vmatmul.f32.gmra.mxu0 %v3061_v53  ;;  %v1611_v52 = vadd.f32 %v1610_v49, %v3406_v21  ;;  %v1449_v21 = vld [vmem:[%s3857_s3 + $0x3a0] sm:$0xff] }
 0x10e   : > { %v1720_v34 = vpop.f32.mrf.mxu2  ;;  %2279 = vmatpush.msra.mxu3 %v1449_v21 }
 0x10f   : > { %v1721_v4 = vadd.f32 %v1720_v34, %v1608_v1  ;;  %v1833_v24 = vpop.f32.mrf.mxu3  ;;  %v1417_v34 = vld [vmem:[%s3857_s3 + $0x2a0] sm:$0xff] }
 0x110   : > { %2053 = vmatpush.msra.mxu1 %v1417_v34 }
 0x111   : > { %v1834_v61 = vadd.f32 %v1833_v24, %v1721_v4 }
 0x112   : > { %v1613_v2 = vpop.f32.mrf.mxu1  ;;  %v1952_v48 = vpop.f32.mrf.mxu0 }
 0x113   : > { %v3544_v5 = vadd.f32 %v1946_v46, %v1834_v61  ;;  %1770 = vmatmul.f32.gmra.mxu2 %v613_v13 }
 0x114   : > { %1883 = vmatmul.f32.gmra.mxu3 %v3228_v39  ;;  %v1433_v39 = vld [vmem:[%s3857_s3 + $0x320] sm:$0xff] }
 0x115   : > { %1660 = vmatmul.f32.gmra.mxu1 %v740_v12  ;;  %1999 = vmatmul.f32.gmra.mxu0 %v3084_v7  ;;  %v1614_v12 = vadd.f32 %v1613_v2, %v3428_v40 }
 0x116   : > { %v1723_v33 = vpop.f32.mrf.mxu2  ;;  %2166 = vmatpush.msra.mxu2 %v1433_v39 }
 0x117   : > { %v1724_v37 = vadd.f32 %v1723_v33, %v1611_v52  ;;  %v1836_v17 = vpop.f32.mrf.mxu3  ;;  %v616_v52 = vld [vmem:[#allocation2 + $0xf2] sm:$0xff] }
 0x119   : > { %v1837_v42 = vadd.f32 %v1836_v17, %v1724_v37 }
 0x11a   : > { %v1616_v46 = vpop.f32.mrf.mxu1  ;;  %v1955_v63 = vpop.f32.mrf.mxu0 }
 0x11b   : > { %v3552_v0 = vadd.f32 %v1949_v56, %v1837_v42  ;;  %1773 = vmatmul.f32.gmra.mxu2 %v614_v27  ;;  %v1617_v40 = vadd.f32 %v1616_v46, %v3442_v6 }
 0x11c   : > { %1886 = vmatmul.f32.gmra.mxu3 %v3270_v60  ;;  %v615_v60 = vld [vmem:[#allocation2 + $0xe2] sm:$0xff] }
 0x11d   : > { %1663 = vmatmul.f32.gmra.mxu1 %v3061_v53  ;;  %2002 = vmatmul.f32.gmra.mxu0 %v3117_v28  ;;  %v1465_v53 = vld [vmem:[%s3857_s3 + $0x420] sm:$0xff] }
 0x11e   : > { %v1726_v49 = vpop.f32.mrf.mxu2  ;;  %2392 = vmatpush.msra.mxu0 %v1465_v53 }
 0x11f   : > { %v1727_v56 = vadd.f32 %v1726_v49, %v1614_v12  ;;  %v1839_v1 = vpop.f32.mrf.mxu3  ;;  %v746_v49 = vld [vmem:[#allocation2 + $0x121] sm:$0xff] }
 0x121   : > { %v1840_v4 = vadd.f32 %v1839_v1, %v1727_v56 }
 0x122   : > { %v1619_v24 = vpop.f32.mrf.mxu1  ;;  %v1958_v10 = vpop.f32.mrf.mxu0 }
 0x123   : > { %v3567_v13 = vadd.f32 %v1952_v48, %v1840_v4  ;;  %1776 = vmatmul.f32.gmra.mxu2 %v615_v60  ;;  %v1620_v6 = vadd.f32 %v1619_v24, %v3462_v57  ;;  %v618_v4 = vld [vmem:[#allocation2 + $0x10a] sm:$0xff] }
 0x124   : > { %1889 = vmatmul.f32.gmra.mxu3 %v3294_v18  ;;  %v1432_v18 = vld [vmem:[%s3857_s3 + $0x318] sm:$0xff] }
 0x125   : > { %1666 = vmatmul.f32.gmra.mxu1 %v3084_v7  ;;  %2005 = vmatmul.f32.gmra.mxu0 %v3152_v50  ;;  %v1448_v7 = vld [vmem:[%s3857_s3 + $0x398] sm:$0xff] }
 0x126   : > { %v1729_v61 = vpop.f32.mrf.mxu2  ;;  %2167 = vmatpush.msra.mxu2 %v1432_v18  ;;  %2280 = vmatpush.msra.mxu3 %v1448_v7  ;;  %v683_v7 = vld [vmem:[#allocation2 + $0x128] sm:$0xff] }
 0x127   : > { %v1730_v2 = vadd.f32 %v1729_v61, %v1617_v40  ;;  %v1842_v11 = vpop.f32.mrf.mxu3  ;;  %v747_v61 = vld [vmem:[#allocation2 + $0x129] sm:$0xff] }
 0x129   : > { %v1843_v48 = vadd.f32 %v1842_v11, %v1730_v2 }
 0x12a   : > { %v1622_v33 = vpop.f32.mrf.mxu1  ;;  %v1961_v37 = vpop.f32.mrf.mxu0 }
 0x12b   : > { %v3576_v17 = vadd.f32 %v1955_v63, %v1843_v48  ;;  %1779 = vmatmul.f32.gmra.mxu2 %v616_v52  ;;  %v1416_v63 = vld [vmem:[%s3857_s3 + $0x298] sm:$0xff]  ;;  %v1623_v57 = vadd.f32 %v1622_v33, %v3476_v43  ;;  %v1431_v43 = vld [vmem:[%s3857_s3 + $0x310] sm:$0xff] }
 0x12c   : > { %1892 = vmatmul.f32.gmra.mxu3 %v3306_v25  ;;  %v617_v25 = vld [vmem:[#allocation2 + $0xfa] sm:$0xff]  ;;  %2054 = vmatpush.msra.mxu1 %v1416_v63  ;;  %v1415_v33 = vld [vmem:[%s3857_s3 + $0x290] sm:$0xff] }
 0x12d   : > { %1669 = vmatmul.f32.gmra.mxu1 %v3117_v28  ;;  %2008 = vmatmul.f32.gmra.mxu0 %v3207_v29  ;;  %v1464_v28 = vld [vmem:[%s3857_s3 + $0x418] sm:$0xff] }
 0x12e   : > { %v1732_v27 = vpop.f32.mrf.mxu2  ;;  %2393 = vmatpush.msra.mxu0 %v1464_v28  ;;  %2168 = vmatpush.msra.mxu2 %v1431_v43  ;;  %v1414_v43 = vld [vmem:[%s3857_s3 + $0x288] sm:$0xff] }
 0x12f   : > { %v1733_v42 = vadd.f32 %v1732_v27, %v1620_v6  ;;  %v1845_v46 = vpop.f32.mrf.mxu3  ;;  %2055 = vmatpush.msra.mxu1 %v1415_v33 }
 0x131   : > { %v1846_v39 = vadd.f32 %v1845_v46, %v1733_v42  ;;  %v748_v42 = vld [vmem:[#allocation2 + $0x139] sm:$0xff]  ;;  %2056 = vmatpush.msra.mxu1 %v1414_v43 }
 0x132   : > { %v1625_v21 = vpop.f32.mrf.mxu1  ;;  %v1964_v12 = vpop.f32.mrf.mxu0 }
 0x133   : > { %v3591_v56 = vadd.f32 %v1958_v10, %v1846_v39  ;;  %1782 = vmatmul.f32.gmra.mxu2 %v617_v25  ;;  %v682_v10 = vld [vmem:[#allocation2 + $0x120] sm:$0xff]  ;;  %v1626_v2 = vadd.f32 %v1625_v21, %v3496_v3 }
 0x134   : > { %1895 = vmatmul.f32.gmra.mxu3 %v3324_v38  ;;  %v620_v21 = vld [vmem:[#allocation2 + $0x122] sm:$0xff] }
 0x135   : > { %1672 = vmatmul.f32.gmra.mxu1 %v3152_v50  ;;  %2011 = vmatmul.f32.gmra.mxu0 %v746_v49  ;;  %v1447_v50 = vld [vmem:[%s3857_s3 + $0x390] sm:$0xff] }
 0x136   : > { %v1735_v1 = vpop.f32.mrf.mxu2  ;;  %2281 = vmatpush.msra.mxu3 %v1447_v50  ;;  %v2733_v50 = vld [vmem:[%s3855_s1] ss:$0 sm:$0xff] }
 0x137   : > { %v1736_v34 = vadd.f32 %v1735_v1, %v1623_v57  ;;  %v1848_v60 = vpop.f32.mrf.mxu3  ;;  %v684_v57 = vld [vmem:[#allocation2 + $0x138] sm:$0xff] }
 0x139   : > { %v1849_v24 = vadd.f32 %v1848_v60, %v1736_v34  ;;  %v749_v34 = vld [vmem:[#allocation2 + $0x141] sm:$0xff] }
 0x13a   : > { %v1628_v53 = vpop.f32.mrf.mxu1  ;;  %v1967_v40 = vpop.f32.mrf.mxu0 }
 0x13b   : > { %v3599_v38 = vadd.f32 %v1961_v37, %v1849_v24  ;;  %1785 = vmatmul.f32.gmra.mxu2 %v618_v4  ;;  %v619_v37 = vld [vmem:[#allocation2 + $0x112] sm:$0xff]  ;;  %v1629_v3 = vadd.f32 %v1628_v53, %v3509_v23  ;;  %v1430_v23 = vld [vmem:[%s3857_s3 + $0x308] sm:$0xff] }
 0x13c   : > { %1898 = vmatmul.f32.gmra.mxu3 %v682_v10  ;;  %2169 = vmatpush.msra.mxu2 %v1430_v23  ;;  %v275_v10 = vld [vmem:[%s2808_s8 + $0xf0] sm:$0xff] }
 0x13d   : > { %1675 = vmatmul.f32.gmra.mxu1 %v3207_v29  ;;  %2014 = vmatmul.f32.gmra.mxu0 %v747_v61  ;;  %v1463_v29 = vld [vmem:[%s3857_s3 + $0x410] sm:$0xff] }
 0x13e   : > { %v1738_v11 = vpop.f32.mrf.mxu2  ;;  %2394 = vmatpush.msra.mxu0 %v1463_v29  ;;  %v1462_v29 = vld [vmem:[%s3857_s3 + $0x408] sm:$0xff]  ;;  %v686_v23 = vld [vmem:[#allocation2 + $0x150] sm:$0xff] }
 0x13f   : > { %v1739_v52 = vadd.f32 %v1738_v11, %v1626_v2  ;;  %v1851_v48 = vpop.f32.mrf.mxu3  ;;  %v311_v2 = vmul.f32 %v2733_v50, %v275_v10  ;;  %v621_v11 = vld [vmem:[#allocation2 + $0x12a] sm:$0xff]  ;;  %v751_v10 = vld [vmem:[#allocation2 + $0x159] sm:$0xff] }
 0x140   : > { %2395 = vmatpush.msra.mxu0 %v1462_v29 }
 0x141   : > { %v1852_v18 = vadd.f32 %v1851_v48, %v1739_v52 }
 0x142   : > { %v1631_v6 = vpop.f32.mrf.mxu1  ;;  %v1970_v27 = vpop.f32.mrf.mxu0 }
 0x143   : > { %v3612_v46 = vadd.f32 %v1964_v12, %v1852_v18  ;;  %1788 = vmatmul.f32.gmra.mxu2 %v619_v37  ;;  %v1632_v4 = vadd.f32 %v1631_v6, %v3399_v16  ;;  %v685_v16 = vld [vmem:[#allocation2 + $0x140] sm:$0xff]  ;;  %v750_v18 = vld [vmem:[#allocation2 + $0x151] sm:$0xff] }
 0x144   : > { %1901 = vmatmul.f32.gmra.mxu3 %v683_v7 }
 0x145   : > { %1678 = vmatmul.f32.gmra.mxu1 %v746_v49  ;;  %2017 = vmatmul.f32.gmra.mxu0 %v748_v42  ;;  %v1446_v49 = vld [vmem:[%s3857_s3 + $0x388] sm:$0xff] }
 0x146   : > { %v1741_v63 = vpop.f32.mrf.mxu2  ;;  %2282 = vmatpush.msra.mxu3 %v1446_v49 }
 0x147   : > { %v1742_v25 = vadd.f32 %v1741_v63, %v1629_v3  ;;  %v1854_v39 = vpop.f32.mrf.mxu3 }
 0x149   : > { %v1855_v28 = vadd.f32 %v1854_v39, %v1742_v25  ;;  %v276_v25 = vld [vmem:[%s2808_s8 + $0xf8] sm:$0xff] }
 0x14a   : > { %v1634_v12 = vpop.f32.mrf.mxu1  ;;  %v1973_v1 = vpop.f32.mrf.mxu0 }
 0x14b   : > { %v3618_v60 = vadd.f32 %v1967_v40, %v1855_v28  ;;  %1791 = vmatmul.f32.gmra.mxu2 %v620_v21  ;;  %v1635_v3 = vadd.f32 %v1634_v12, %v3408_v22  ;;  %v312_v21 = vmul.f32 %v2733_v50, %v276_v25  ;;  %v622_v28 = vld [vmem:[#allocation2 + $0x13a] sm:$0xff] }
 0x14c   : > { %1904 = vmatmul.f32.gmra.mxu3 %v684_v57 }
 0x14d   : > { %1681 = vmatmul.f32.gmra.mxu1 %v747_v61  ;;  %2020 = vmatmul.f32.gmra.mxu0 %v749_v34  ;;  %v2734_v61 = vld [vmem:[%s3856_s2] ss:$0 sm:$0xff] }
 0x14e   : > { %v1744_v24 = vpop.f32.mrf.mxu2  ;;  %v3637_v48 = vadd.f32 %v2734_v61, %v311_v2  ;;  %v3649_v49 = vadd.f32 %v2734_v61, %v312_v21  ;;  %v1413_v2 = vld [vmem:[%s3857_s3 + $0x280] sm:$0xff] }
 0x14f   : > { %v1745_v53 = vadd.f32 %v1744_v24, %v1632_v4  ;;  %v1857_v40 = vpop.f32.mrf.mxu3  ;;  %2057 = vmatpush.msra.mxu1 %v1413_v2 }
 0x150   : > { %v379_v6 = vmax.f32 %v3637_v48, 0.0  ;;  %v380_v12 = vmax.f32 %v3649_v49, 0.0 }
 0x151   : > { %v1858_v52 = vadd.f32 %v1857_v40, %v1745_v53  ;;  %v1445_v53 = vld [vmem:[%s3857_s3 + $0x380] sm:$0xff] }
 0x152   : > { %v1637_v33 = vpop.f32.mrf.mxu1  ;;  %v1976_v37 = vpop.f32.mrf.mxu0  ;;  %466 = vst [vmem:[#allocation2 + $0x181] sm:$0xff] %v379_v6  ;;  %2283 = vmatpush.msra.mxu3 %v1445_v53 }
 0x153   : > { %v3639_v7 = vadd.f32 %v1970_v27, %v1858_v52  ;;  %1794 = vmatmul.f32.gmra.mxu2 %v621_v11  ;;  %v1638_v40 = vadd.f32 %v1637_v33, %v3426_v36  ;;  %467 = vst [vmem:[#allocation2 + $0x189] sm:$0xff] %v380_v12  ;;  %v623_v11 = vld [vmem:[#allocation2 + $0x142] sm:$0xff] }
 0x154   : > { %1907 = vmatmul.f32.gmra.mxu3 %v685_v16  ;;  %v687_v16 = vld [vmem:[#allocation2 + $0x158] sm:$0xff]  ;;  %v752_v36 = vld [vmem:[#allocation2 + $0x169] sm:$0xff]  ;;  %v1461_v33 = vld [vmem:[%s3857_s3 + $0x400] sm:$0xff] }
 0x155   : > { %1684 = vmatmul.f32.gmra.mxu1 %v748_v42  ;;  %2023 = vmatmul.f32.gmra.mxu0 %v750_v18  ;;  %v1429_v42 = vld [vmem:[%s3857_s3 + $0x300] sm:$0xff] }
 0x156   : > { %v1747_v63 = vpop.f32.mrf.mxu2  ;;  %2170 = vmatpush.msra.mxu2 %v1429_v42  ;;  %2396 = vmatpush.msra.mxu0 %v1461_v33 }
 0x157   : > { %v1748_v27 = vadd.f32 %v1747_v63, %v1635_v3  ;;  %v1860_v39 = vpop.f32.mrf.mxu3 }
 0x159   : > { %v1861_v57 = vadd.f32 %v1860_v39, %v1748_v27  ;;  %v624_v39 = vld [vmem:[#allocation2 + $0x152] sm:$0xff]  ;;  %v690_v33 = vld [vmem:[#allocation2 + $0x180] sm:$0xff] }
 0x15a   : > { %v1640_v4 = vpop.f32.mrf.mxu1  ;;  %v1979_v24 = vpop.f32.mrf.mxu0 }
 0x15b   : > { %v3651_v22 = vadd.f32 %v1973_v1, %v1861_v57  ;;  %1797 = vmatmul.f32.gmra.mxu2 %v622_v28  ;;  %v1641_v3 = vadd.f32 %v1640_v4, %v3440_v47  ;;  %v688_v28 = vld [vmem:[#allocation2 + $0x168] sm:$0xff] }
 0x15c   : > { %1910 = vmatmul.f32.gmra.mxu3 %v686_v23  ;;  %v3672_v23 = vld [vmem:[#allocation2 + $0x171] sm:$0xff] }
 0x15d   : > { %1687 = vmatmul.f32.gmra.mxu1 %v749_v34  ;;  %2026 = vmatmul.f32.gmra.mxu0 %v751_v10 }
 0x15e   : > { %v1750_v1 = vpop.f32.mrf.mxu2 }
 0x15f   : > { %v1751_v43 = vadd.f32 %v1750_v1, %v1638_v40  ;;  %v1863_v50 = vpop.f32.mrf.mxu3  ;;  %v625_v40 = vld [vmem:[#allocation2 + $0x15a] sm:$0xff] }
 0x161   : > { %v1864_v52 = vadd.f32 %v1863_v50, %v1751_v43  ;;  %v689_v43 = vld [vmem:[#allocation2 + $0x170] sm:$0xff] }
 0x162   : > { %v1643_v61 = vpop.f32.mrf.mxu1  ;;  %v1982_v29 = vpop.f32.mrf.mxu0 }
 0x163   : > { %v3666_v34 = vadd.f32 %v1976_v37, %v1864_v52  ;;  %1800 = vmatmul.f32.gmra.mxu2 %v623_v11  ;;  %v1644_v53 = vadd.f32 %v1643_v61, %v3460_v45 }
 0x164   : > { %1913 = vmatmul.f32.gmra.mxu3 %v687_v16  ;;  %v626_v16 = vld [vmem:[#allocation2 + $0x16a] sm:$0xff] }
 0x165   : > { %1690 = vmatmul.f32.gmra.mxu1 %v750_v18  ;;  %2029 = vmatmul.f32.gmra.mxu0 %v752_v36 }
 0x166   : > { %v1753_v63 = vpop.f32.mrf.mxu2 }
 0x167   : > { %v1754_v25 = vadd.f32 %v1753_v63, %v1641_v3  ;;  %v1866_v27 = vpop.f32.mrf.mxu3 }
 0x169   : > { %v1867_v21 = vadd.f32 %v1866_v27, %v1754_v25 }
 0x16a   : > { %v1646_v57 = vpop.f32.mrf.mxu1  ;;  %v1985_v37 = vpop.f32.mrf.mxu0 }
 0x16b   : > { %v3674_v42 = vadd.f32 %v1979_v24, %v1867_v21  ;;  %1803 = vmatmul.f32.gmra.mxu2 %v624_v39  ;;  %v1647_v24 = vadd.f32 %v1646_v57, %v3474_v59  ;;  %v691_v39 = vld [vmem:[#allocation2 + $0x188] sm:$0xff] }
 0x16c   : > { %1916 = vmatmul.f32.gmra.mxu3 %v688_v28  ;;  %v788_v28 = vld [vmem:[#allocation2 + $0x1a] sm:$0xff] }
 0x16d   : > { %1693 = vmatmul.f32.gmra.mxu1 %v751_v10  ;;  %2032 = vmatmul.f32.gmra.mxu0 %v3672_v23 }
 0x16e   : > { %v1756_v47 = vpop.f32.mrf.mxu2 }
 0x16f   : > { %v1757_v18 = vadd.f32 %v1756_v47, %v1644_v53  ;;  %v1869_v4 = vpop.f32.mrf.mxu3 }
 0x171   : > { %v1870_v1 = vadd.f32 %v1869_v4, %v1757_v18  ;;  %v853_v18 = vld [vmem:[#allocation2 + $0x30] sm:$0xff] }
 0x172   : > { %v1649_v50 = vpop.f32.mrf.mxu1  ;;  %v1988_v2 = vpop.f32.mrf.mxu0 }
 0x173   : > { %v3678_v11 = vadd.f32 %v1982_v29, %v1870_v1  ;;  %1806 = vmatmul.f32.gmra.mxu2 %v625_v40  ;;  %v1650_v29 = vadd.f32 %v1649_v50, %v3494_v20  ;;  %v917_v40 = vld [vmem:[#allocation2 + $0x31] sm:$0xff] }
 0x174   : > { %1919 = vmatmul.f32.gmra.mxu3 %v689_v43  ;;  %v789_v43 = vld [vmem:[#allocation2 + $0x22] sm:$0xff] }
 0x175   : > { %1696 = vmatmul.f32.gmra.mxu1 %v752_v36  ;;  %2035 = vmatmul.f32.gmra.mxu0 %v379_v6  ;;  %v627_v36 = vld [vmem:[#allocation2 + $0x172] sm:$0xff] }
 0x176   : > { %v1759_v45 = vpop.f32.mrf.mxu2 }
 0x177   : > { %v1760_v10 = vadd.f32 %v1759_v45, %v1647_v24  ;;  %v1872_v52 = vpop.f32.mrf.mxu3  ;;  %v982_v24 = vld [vmem:[#allocation2 + $0x3a] sm:$0xff] }
 0x179   : > { %v1873_v61 = vadd.f32 %v1872_v52, %v1760_v10 }
 0x17a   : > { %v1652_v3 = vpop.f32.mrf.mxu1  ;;  %v1991_v63 = vpop.f32.mrf.mxu0 }
 0x17b   : > { %v3683_v25 = vadd.f32 %v1985_v37, %v1873_v61  ;;  %1809 = vmatmul.f32.gmra.mxu2 %v626_v16  ;;  %v981_v37 = vld [vmem:[#allocation2 + $0x32] sm:$0xff]  ;;  %v1653_v20 = vadd.f32 %v1652_v3, %v3507_v32 }
 0x17c   : > { %1922 = vmatmul.f32.gmra.mxu3 %v690_v33  ;;  %v854_v16 = vld [vmem:[#allocation2 + $0x38] sm:$0xff] }
 0x17d   : > { %1699 = vmatmul.f32.gmra.mxu1 %v3672_v23  ;;  %2038 = vmatmul.f32.gmra.mxu0 %v380_v12  ;;  %v918_v33 = vld [vmem:[#allocation2 + $0x39] sm:$0xff] }
 0x17e   : > { %v1762_v59 = vpop.f32.mrf.mxu2 }
 0x17f   : > { %v1763_v48 = vadd.f32 %v1762_v59, %v1650_v29  ;;  %v1875_v6 = vpop.f32.mrf.mxu3  ;;  %v983_v59 = vld [vmem:[#allocation2 + $0x4a] sm:$0xff] }
 0x181   : > { %v1876_v27 = vadd.f32 %v1875_v6, %v1763_v48 }
 0x182   : > { %v1655_v21 = vpop.f32.mrf.mxu1  ;;  %v1994_v57 = vpop.f32.mrf.mxu0 }
 0x183   : > { %v3689_v53 = vadd.f32 %v1988_v2, %v1876_v27  ;;  %1812 = vmatmul.f32.gmra.mxu2 %v627_v36  ;;  %v1656_v2 = vadd.f32 %v1655_v21, %v3419_v30  ;;  %v855_v27 = vld [vmem:[#allocation2 + $0x48] sm:$0xff] }
 0x184   : > { %1925 = vmatmul.f32.gmra.mxu3 %v691_v39  ;;  %v919_v21 = vld [vmem:[#allocation2 + $0x49] sm:$0xff] }
 0x185   : > { %2058 = vmatmul.f32.vlgmr.msra.gmra.mxu1 %v788_v28  ;;  %2397 = vmatmul.f32.vlgmr.msra.gmra.mxu0 %v981_v37 }
 0x186   : > { %v1765_v49 = vpop.f32.mrf.mxu2 }
 0x187   : > { %v1766_v12 = vadd.f32 %v1765_v49, %v1653_v20  ;;  %v1878_v47 = vpop.f32.mrf.mxu3  ;;  %v984_v49 = vld [vmem:[#allocation2 + $0x52] sm:$0xff] }
 0x189   : > { %v1879_v4 = vadd.f32 %v1878_v47, %v1766_v12 }
 0x18a   : > { %v1658_v1 = vpop.f32.mrf.mxu1  ;;  %v1997_v50 = vpop.f32.mrf.mxu0 }
 0x18b   : > { %v3692_v45 = vadd.f32 %v1991_v63, %v1879_v4  ;;  %2171 = vmatmul.f32.vlgmr.msra.gmra.mxu2 %v853_v18  ;;  %v1659_v63 = vadd.f32 %v1658_v1, %v3436_v41  ;;  %v856_v18 = vld [vmem:[#allocation2 + $0x50] sm:$0xff] }
 0x18c   : > { %2284 = vmatmul.f32.vlgmr.msra.gmra.mxu3 %v917_v40  ;;  %v920_v40 = vld [vmem:[#allocation2 + $0x51] sm:$0xff] }
 0x18d   : > { %2061 = vmatmul.f32.gmra.mxu1 %v789_v43  ;;  %2400 = vmatmul.f32.gmra.mxu0 %v982_v24 }
 0x18e   : > { %v1768_v32 = vpop.f32.mrf.mxu2 }
 0x18f   : > { %v1769_v10 = vadd.f32 %v1768_v32, %v1656_v2  ;;  %v1881_v52 = vpop.f32.mrf.mxu3  ;;  %v985_v2 = vld [vmem:[#allocation2 + $0x62] sm:$0xff] }
 0x191   : > { %v1882_v61 = vadd.f32 %v1881_v52, %v1769_v10  ;;  %v857_v52 = vld [vmem:[#allocation2 + $0x60] sm:$0xff] }
 0x192   : > { %v1661_v3 = vpop.f32.mrf.mxu1  ;;  %v2000_v29 = vpop.f32.mrf.mxu0 }
 0x193   : > { %v3695_v48 = vadd.f32 %v1994_v57, %v1882_v61  ;;  %2174 = vmatmul.f32.gmra.mxu2 %v854_v16  ;;  %v1662_v57 = vadd.f32 %v1661_v3, %v3453_v8  ;;  %v921_v61 = vld [vmem:[#allocation2 + $0x61] sm:$0xff] }
 0x194   : > { %2287 = vmatmul.f32.gmra.mxu3 %v918_v33 }
 0x195   : > { %2064 = vmatmul.f32.gmra.mxu1 %v981_v37  ;;  %2403 = vmatmul.f32.gmra.mxu0 %v983_v59 }
 0x196   : > { %v1771_v30 = vpop.f32.mrf.mxu2 }
 0x197   : > { %v1772_v6 = vadd.f32 %v1771_v30, %v1659_v63  ;;  %v1884_v36 = vpop.f32.mrf.mxu3  ;;  %v986_v63 = vld [vmem:[#allocation2 + $0x6a] sm:$0xff] }
 0x199   : > { %v1885_v39 = vadd.f32 %v1884_v36, %v1772_v6  ;;  %v858_v36 = vld [vmem:[#allocation2 + $0x68] sm:$0xff] }
 0x19a   : > { %v1664_v28 = vpop.f32.mrf.mxu1  ;;  %v2003_v20 = vpop.f32.mrf.mxu0 }
 0x19b   : > { %v3698_v12 = vadd.f32 %v1997_v50, %v1885_v39  ;;  %2177 = vmatmul.f32.gmra.mxu2 %v855_v27  ;;  %v1665_v50 = vadd.f32 %v1664_v28, %v3470_v58  ;;  %v922_v39 = vld [vmem:[#allocation2 + $0x69] sm:$0xff] }
 0x19c   : > { %2290 = vmatmul.f32.gmra.mxu3 %v919_v21 }
 0x19d   : > { %2067 = vmatmul.f32.gmra.mxu1 %v982_v24  ;;  %2406 = vmatmul.f32.gmra.mxu0 %v984_v49 }
 0x19e   : > { %v1774_v41 = vpop.f32.mrf.mxu2 }
 0x19f   : > { %v1775_v37 = vadd.f32 %v1774_v41, %v1662_v57  ;;  %v1887_v47 = vpop.f32.mrf.mxu3  ;;  %v987_v57 = vld [vmem:[#allocation2 + $0x7a] sm:$0xff] }
 0x1a1   : > { %v1888_v4 = vadd.f32 %v1887_v47, %v1775_v37  ;;  %v859_v47 = vld [vmem:[#allocation2 + $0x78] sm:$0xff] }
 0x1a2   : > { %v1667_v1 = vpop.f32.mrf.mxu1  ;;  %v2006_v43 = vpop.f32.mrf.mxu0 }
 0x1a3   : > { %v3701_v32 = vadd.f32 %v2000_v29, %v1888_v4  ;;  %2180 = vmatmul.f32.gmra.mxu2 %v856_v18  ;;  %v1668_v29 = vadd.f32 %v1667_v1, %v3487_v62  ;;  %v923_v4 = vld [vmem:[#allocation2 + $0x79] sm:$0xff] }
 0x1a4   : > { %2293 = vmatmul.f32.gmra.mxu3 %v920_v40 }
 0x1a5   : > { %2070 = vmatmul.f32.gmra.mxu1 %v983_v59  ;;  %2409 = vmatmul.f32.gmra.mxu0 %v985_v2 }
 0x1a6   : > { %v1777_v8 = vpop.f32.mrf.mxu2 }
 0x1a7   : > { %v1778_v24 = vadd.f32 %v1777_v8, %v1665_v50  ;;  %v1890_v10 = vpop.f32.mrf.mxu3  ;;  %v988_v50 = vld [vmem:[#allocation2 + $0x82] sm:$0xff] }
 0x1a9   : > { %v1891_v16 = vadd.f32 %v1890_v10, %v1778_v24  ;;  %v860_v10 = vld [vmem:[#allocation2 + $0x80] sm:$0xff] }
 0x1aa   : > { %v1670_v33 = vpop.f32.mrf.mxu1  ;;  %v2009_v3 = vpop.f32.mrf.mxu0 }
 0x1ab   : > { %v3704_v30 = vadd.f32 %v2003_v20, %v1891_v16  ;;  %2183 = vmatmul.f32.gmra.mxu2 %v857_v52  ;;  %v1671_v20 = vadd.f32 %v1670_v33, %v3503_v54  ;;  %v924_v16 = vld [vmem:[#allocation2 + $0x81] sm:$0xff] }
 0x1ac   : > { %2296 = vmatmul.f32.gmra.mxu3 %v921_v61 }
 0x1ad   : > { %2073 = vmatmul.f32.gmra.mxu1 %v984_v49  ;;  %2412 = vmatmul.f32.gmra.mxu0 %v986_v63 }
 0x1ae   : > { %v1780_v58 = vpop.f32.mrf.mxu2 }
 0x1af   : > { %v1781_v59 = vadd.f32 %v1780_v58, %v1668_v29  ;;  %v1893_v6 = vpop.f32.mrf.mxu3  ;;  %v989_v29 = vld [vmem:[#allocation2 + $0x92] sm:$0xff] }
 0x1b1   : > { %v1894_v27 = vadd.f32 %v1893_v6, %v1781_v59  ;;  %v861_v6 = vld [vmem:[#allocation2 + $0x90] sm:$0xff] }
 0x1b2   : > { %v1673_v21 = vpop.f32.mrf.mxu1  ;;  %v2012_v28 = vpop.f32.mrf.mxu0 }
 0x1b3   : > { %v3707_v41 = vadd.f32 %v2006_v43, %v1894_v27  ;;  %2186 = vmatmul.f32.gmra.mxu2 %v858_v36  ;;  %v1674_v43 = vadd.f32 %v1673_v21, %v3518_v19  ;;  %v925_v27 = vld [vmem:[#allocation2 + $0x91] sm:$0xff] }
 0x1b4   : > { %2299 = vmatmul.f32.gmra.mxu3 %v922_v39 }
 0x1b5   : > { %2076 = vmatmul.f32.gmra.mxu1 %v985_v2  ;;  %2415 = vmatmul.f32.gmra.mxu0 %v987_v57 }
 0x1b6   : > { %v1783_v62 = vpop.f32.mrf.mxu2 }
 0x1b7   : > { %v1784_v49 = vadd.f32 %v1783_v62, %v1671_v20  ;;  %v1896_v37 = vpop.f32.mrf.mxu3  ;;  %v990_v20 = vld [vmem:[#allocation2 + $0x9a] sm:$0xff] }
 0x1b9   : > { %v1897_v18 = vadd.f32 %v1896_v37, %v1784_v49  ;;  %v862_v37 = vld [vmem:[#allocation2 + $0x98] sm:$0xff] }
 0x1ba   : > { %v1676_v40 = vpop.f32.mrf.mxu1  ;;  %v2015_v1 = vpop.f32.mrf.mxu0 }
 0x1bb   : > { %v3710_v8 = vadd.f32 %v2009_v3, %v1897_v18  ;;  %2189 = vmatmul.f32.gmra.mxu2 %v859_v47  ;;  %v1677_v3 = vadd.f32 %v1676_v40, %v3528_v31  ;;  %v926_v18 = vld [vmem:[#allocation2 + $0x99] sm:$0xff] }
 0x1bc   : > { %2302 = vmatmul.f32.gmra.mxu3 %v923_v4 }
 0x1bd   : > { %2079 = vmatmul.f32.gmra.mxu1 %v986_v63  ;;  %2418 = vmatmul.f32.gmra.mxu0 %v988_v50 }
 0x1be   : > { %v1786_v54 = vpop.f32.mrf.mxu2 }
 0x1bf   : > { %v1787_v2 = vadd.f32 %v1786_v54, %v1674_v43  ;;  %v1899_v24 = vpop.f32.mrf.mxu3  ;;  %v991_v43 = vld [vmem:[#allocation2 + $0xaa] sm:$0xff] }
 0x1c1   : > { %v1900_v52 = vadd.f32 %v1899_v24, %v1787_v2  ;;  %v863_v24 = vld [vmem:[#allocation2 + $0xa8] sm:$0xff] }
 0x1c2   : > { %v1679_v61 = vpop.f32.mrf.mxu1  ;;  %v2018_v33 = vpop.f32.mrf.mxu0 }
 0x1c3   : > { %v3713_v58 = vadd.f32 %v2012_v28, %v1900_v52  ;;  %2192 = vmatmul.f32.gmra.mxu2 %v860_v10  ;;  %v1680_v28 = vadd.f32 %v1679_v61, %v3424_v35  ;;  %v927_v52 = vld [vmem:[#allocation2 + $0xa9] sm:$0xff] }
 0x1c4   : > { %2305 = vmatmul.f32.gmra.mxu3 %v924_v16 }
 0x1c5   : > { %2082 = vmatmul.f32.gmra.mxu1 %v987_v57  ;;  %2421 = vmatmul.f32.gmra.mxu0 %v989_v29 }
 0x1c6   : > { %v1789_v19 = vpop.f32.mrf.mxu2 }
 0x1c7   : > { %v1790_v63 = vadd.f32 %v1789_v19, %v1677_v3  ;;  %v1902_v59 = vpop.f32.mrf.mxu3  ;;  %v992_v3 = vld [vmem:[#allocation2 + $0xb2] sm:$0xff] }
 0x1c9   : > { %v1903_v36 = vadd.f32 %v1902_v59, %v1790_v63  ;;  %v864_v59 = vld [vmem:[#allocation2 + $0xb0] sm:$0xff] }
 0x1ca   : > { %v1682_v39 = vpop.f32.mrf.mxu1  ;;  %v2021_v21 = vpop.f32.mrf.mxu0 }
 0x1cb   : > { %v3716_v62 = vadd.f32 %v2015_v1, %v1903_v36  ;;  %2195 = vmatmul.f32.gmra.mxu2 %v861_v6  ;;  %v1683_v1 = vadd.f32 %v1682_v39, %v3438_v44  ;;  %v928_v36 = vld [vmem:[#allocation2 + $0xb1] sm:$0xff] }
 0x1cc   : > { %2308 = vmatmul.f32.gmra.mxu3 %v925_v27 }
 0x1cd   : > { %2085 = vmatmul.f32.gmra.mxu1 %v988_v50  ;;  %2424 = vmatmul.f32.gmra.mxu0 %v990_v20 }
 0x1ce   : > { %v1792_v31 = vpop.f32.mrf.mxu2 }
 0x1cf   : > { %v1793_v57 = vadd.f32 %v1792_v31, %v1680_v28  ;;  %v1905_v49 = vpop.f32.mrf.mxu3  ;;  %v993_v28 = vld [vmem:[#allocation2 + $0xc2] sm:$0xff] }
 0x1d1   : > { %v1906_v47 = vadd.f32 %v1905_v49, %v1793_v57  ;;  %v865_v49 = vld [vmem:[#allocation2 + $0xc0] sm:$0xff] }
 0x1d2   : > { %v1685_v4 = vpop.f32.mrf.mxu1  ;;  %v2024_v40 = vpop.f32.mrf.mxu0 }
 0x1d3   : > { %v3719_v54 = vadd.f32 %v2018_v33, %v1906_v47  ;;  %2198 = vmatmul.f32.gmra.mxu2 %v862_v37  ;;  %v1686_v33 = vadd.f32 %v1685_v4, %v3458_v55  ;;  %v929_v47 = vld [vmem:[#allocation2 + $0xc1] sm:$0xff] }
 0x1d4   : > { %2311 = vmatmul.f32.gmra.mxu3 %v926_v18 }
 0x1d5   : > { %2088 = vmatmul.f32.gmra.mxu1 %v989_v29  ;;  %2427 = vmatmul.f32.gmra.mxu0 %v991_v43 }
 0x1d6   : > { %v1795_v35 = vpop.f32.mrf.mxu2 }
 0x1d7   : > { %v1796_v50 = vadd.f32 %v1795_v35, %v1683_v1  ;;  %v1908_v2 = vpop.f32.mrf.mxu3  ;;  %v994_v1 = vld [vmem:[#allocation2 + $0xca] sm:$0xff] }
 0x1d9   : > { %v1909_v10 = vadd.f32 %v1908_v2, %v1796_v50  ;;  %v866_v2 = vld [vmem:[#allocation2 + $0xc8] sm:$0xff] }
 0x1da   : > { %v1688_v16 = vpop.f32.mrf.mxu1  ;;  %v2027_v61 = vpop.f32.mrf.mxu0 }
 0x1db   : > { %v3722_v19 = vadd.f32 %v2021_v21, %v1909_v10  ;;  %2201 = vmatmul.f32.gmra.mxu2 %v863_v24  ;;  %v1689_v21 = vadd.f32 %v1688_v16, %v3472_v15  ;;  %v930_v10 = vld [vmem:[#allocation2 + $0xc9] sm:$0xff] }
 0x1dc   : > { %2314 = vmatmul.f32.gmra.mxu3 %v927_v52 }
 0x1dd   : > { %2091 = vmatmul.f32.gmra.mxu1 %v990_v20  ;;  %2430 = vmatmul.f32.gmra.mxu0 %v992_v3 }
 0x1de   : > { %v1798_v44 = vpop.f32.mrf.mxu2 }
 0x1df   : > { %v1799_v29 = vadd.f32 %v1798_v44, %v1686_v33  ;;  %v1911_v63 = vpop.f32.mrf.mxu3  ;;  %v995_v33 = vld [vmem:[#allocation2 + $0xda] sm:$0xff] }
 0x1e1   : > { %v1912_v6 = vadd.f32 %v1911_v63, %v1799_v29  ;;  %v867_v63 = vld [vmem:[#allocation2 + $0xd8] sm:$0xff] }
 0x1e2   : > { %v1691_v27 = vpop.f32.mrf.mxu1  ;;  %v2030_v39 = vpop.f32.mrf.mxu0 }
 0x1e3   : > { %v3725_v31 = vadd.f32 %v2024_v40, %v1912_v6  ;;  %2204 = vmatmul.f32.gmra.mxu2 %v864_v59  ;;  %v1692_v40 = vadd.f32 %v1691_v27, %v3489_v14  ;;  %v931_v6 = vld [vmem:[#allocation2 + $0xd9] sm:$0xff] }
 0x1e4   : > { %2317 = vmatmul.f32.gmra.mxu3 %v928_v36 }
 0x1e5   : > { %2094 = vmatmul.f32.gmra.mxu1 %v991_v43  ;;  %2433 = vmatmul.f32.gmra.mxu0 %v993_v28 }
 0x1e6   : > { %v1801_v55 = vpop.f32.mrf.mxu2 }
 0x1e7   : > { %v1802_v20 = vadd.f32 %v1801_v55, %v1689_v21  ;;  %v1914_v57 = vpop.f32.mrf.mxu3  ;;  %v996_v21 = vld [vmem:[#allocation2 + $0xe2] sm:$0xff] }
 0x1e9   : > { %v1915_v37 = vadd.f32 %v1914_v57, %v1802_v20  ;;  %v868_v57 = vld [vmem:[#allocation2 + $0xe0] sm:$0xff] }
 0x1ea   : > { %v1694_v18 = vpop.f32.mrf.mxu1  ;;  %v2033_v4 = vpop.f32.mrf.mxu0 }
 0x1eb   : > { %v3728_v35 = vadd.f32 %v2027_v61, %v1915_v37  ;;  %2207 = vmatmul.f32.gmra.mxu2 %v865_v49  ;;  %v1695_v61 = vadd.f32 %v1694_v18, %v3505_v9  ;;  %v932_v37 = vld [vmem:[#allocation2 + $0xe1] sm:$0xff] }
 0x1ec   : > { %2320 = vmatmul.f32.gmra.mxu3 %v929_v47 }
 0x1ed   : > { %2097 = vmatmul.f32.gmra.mxu1 %v992_v3  ;;  %2436 = vmatmul.f32.gmra.mxu0 %v994_v1 }
 0x1ee   : > { %v1804_v15 = vpop.f32.mrf.mxu2 }
 0x1ef   : > { %v1805_v43 = vadd.f32 %v1804_v15, %v1692_v40  ;;  %v1917_v50 = vpop.f32.mrf.mxu3  ;;  %v997_v40 = vld [vmem:[#allocation2 + $0xf2] sm:$0xff] }
 0x1f1   : > { %v1918_v24 = vadd.f32 %v1917_v50, %v1805_v43  ;;  %v869_v50 = vld [vmem:[#allocation2 + $0xf0] sm:$0xff] }
 0x1f2   : > { %v1697_v52 = vpop.f32.mrf.mxu1  ;;  %v2036_v16 = vpop.f32.mrf.mxu0 }
 0x1f3   : > { %v3731_v44 = vadd.f32 %v2030_v39, %v1918_v24  ;;  %2210 = vmatmul.f32.gmra.mxu2 %v866_v2  ;;  %v1698_v39 = vadd.f32 %v1697_v52, %v3520_v26  ;;  %v933_v24 = vld [vmem:[#allocation2 + $0xf1] sm:$0xff] }
 0x1f4   : > { %2323 = vmatmul.f32.gmra.mxu3 %v930_v10 }
 0x1f5   : > { %2100 = vmatmul.f32.gmra.mxu1 %v993_v28  ;;  %2439 = vmatmul.f32.gmra.mxu0 %v995_v33 }
 0x1f6   : > { %v1807_v14 = vpop.f32.mrf.mxu2 }
 0x1f7   : > { %v1808_v3 = vadd.f32 %v1807_v14, %v1695_v61  ;;  %v1920_v29 = vpop.f32.mrf.mxu3  ;;  %v998_v61 = vld [vmem:[#allocation2 + $0xfa] sm:$0xff] }
 0x1f9   : > { %v1921_v59 = vadd.f32 %v1920_v29, %v1808_v3  ;;  %v870_v29 = vld [vmem:[#allocation2 + $0xf8] sm:$0xff] }
 0x1fa   : > { %v1700_v36 = vpop.f32.mrf.mxu1  ;;  %v2039_v27 = vpop.f32.mrf.mxu0 }
 0x1fb   : > { %v3734_v55 = vadd.f32 %v2033_v4, %v1921_v59  ;;  %2213 = vmatmul.f32.gmra.mxu2 %v867_v63  ;;  %v1701_v4 = vadd.f32 %v1700_v36, %v3530_v51  ;;  %v934_v59 = vld [vmem:[#allocation2 + $0xf9] sm:$0xff] }
 0x1fc   : > { %2326 = vmatmul.f32.gmra.mxu3 %v931_v6  ;;  %v2494_v6 = vld [vmem:[%s3747_s10] sm:$0xff] }
 0x1fd   : > { %2103 = vmatmul.f32.gmra.mxu1 %v994_v1  ;;  %2442 = vmatmul.f32.gmra.mxu0 %v996_v21 }
 0x1fe   : > { %v1810_v9 = vpop.f32.mrf.mxu2 }
 0x1ff   : > { %v1811_v28 = vadd.f32 %v1810_v9, %v1698_v39  ;;  %v1923_v20 = vpop.f32.mrf.mxu3  ;;  %v999_v39 = vld [vmem:[#allocation2 + $0x10a] sm:$0xff] }
 0x201   : > { %v1924_v49 = vadd.f32 %v1923_v20, %v1811_v28 }
 0x202   : > { %v2059_v47 = vpop.f32.mrf.mxu1  ;;  %v2398_v18 = vpop.f32.mrf.mxu0 }
 0x203   : > { %v3737_v15 = vadd.f32 %v2036_v16, %v1924_v49  ;;  %2216 = vmatmul.f32.gmra.mxu2 %v868_v57  ;;  %v2060_v16 = vadd.f32 %v2059_v47, %v3544_v5  ;;  %v871_v49 = vld [vmem:[#allocation2 + $0x108] sm:$0xff] }
 0x204   : > { %2329 = vmatmul.f32.gmra.mxu3 %v932_v37  ;;  %v935_v47 = vld [vmem:[#allocation2 + $0x109] sm:$0xff] }
 0x205   : > { %2106 = vmatmul.f32.gmra.mxu1 %v995_v33  ;;  %2445 = vmatmul.f32.gmra.mxu0 %v997_v40 }
 0x206   : > { %v1813_v26 = vpop.f32.mrf.mxu2 }
 0x207   : > { %v1814_v1 = vadd.f32 %v1813_v26, %v1701_v4  ;;  %v1926_v43 = vpop.f32.mrf.mxu3 }
 0x209   : > { %v1927_v2 = vadd.f32 %v1926_v43, %v1814_v1  ;;  %v1000_v1 = vld [vmem:[#allocation2 + $0x112] sm:$0xff] }
 0x20a   : > { %v2062_v10 = vpop.f32.mrf.mxu1  ;;  %v2401_v52 = vpop.f32.mrf.mxu0 }
 0x20b   : > { %v3740_v14 = vadd.f32 %v2039_v27, %v1927_v2  ;;  %2219 = vmatmul.f32.gmra.mxu2 %v869_v50 }
 0x20c   : > { %2332 = vmatmul.f32.gmra.mxu3 %v933_v24 }
 0x20d   : > { %2109 = vmatmul.f32.gmra.mxu1 %v996_v21  ;;  %2448 = vmatmul.f32.gmra.mxu0 %v998_v61  ;;  %v2063_v21 = vadd.f32 %v2062_v10, %v3552_v0  ;;  %v872_v10 = vld [vmem:[#allocation2 + $0x110] sm:$0xff] }
 0x20e   : > { %v2172_v51 = vpop.f32.mrf.mxu2 }
 0x20f   : > { %v2173_v33 = vadd.f32 %v2172_v51, %v2060_v16  ;;  %v2285_v3 = vpop.f32.mrf.mxu3  ;;  %v936_v51 = vld [vmem:[#allocation2 + $0x111] sm:$0xff] }
 0x211   : > { %v2286_v63 = vadd.f32 %v2285_v3, %v2173_v33  ;;  %v2496_v33 = vld [vmem:[%s3747_s10 + $0x10] sm:$0xff] }
 0x212   : > { %v2065_v36 = vpop.f32.mrf.mxu1  ;;  %v2404_v27 = vpop.f32.mrf.mxu0 }
 0x213   : > { %v2399_v5 = vadd.f32 %v2398_v18, %v2286_v63  ;;  %2222 = vmatmul.f32.gmra.mxu2 %v870_v29  ;;  %v2495_v18 = vld [vmem:[%s3747_s10 + $0x8] sm:$0xff]  ;;  %v2066_v0 = vadd.f32 %v2065_v36, %v3567_v13 }
 0x214   : > { %2335 = vmatmul.f32.gmra.mxu3 %v934_v59 }
 0x215   : > { %v2526_v9 = vadd.f32 %v2494_v6, %v2399_v5  ;;  %2112 = vmatmul.f32.gmra.mxu1 %v997_v40  ;;  %2451 = vmatmul.f32.gmra.mxu0 %v999_v39  ;;  %v873_v5 = vld [vmem:[#allocation2 + $0x120] sm:$0xff] }
 0x216   : > { %v2175_v28 = vpop.f32.mrf.mxu2 }
 0x217   : > { %2558 = vst [vmem:[%s3754_s13] sm:$0xff] %v2526_v9  ;;  %v2176_v20 = vadd.f32 %v2175_v28, %v2063_v21  ;;  %v2288_v57 = vpop.f32.mrf.mxu3  ;;  %v937_v9 = vld [vmem:[#allocation2 + $0x121] sm:$0xff]  ;;  %v2497_v28 = vld [vmem:[%s3747_s10 + $0x18] sm:$0xff] }
 0x219   : > { %v2289_v37 = vadd.f32 %v2288_v57, %v2176_v20 }
 0x21a   : > { %v2068_v4 = vpop.f32.mrf.mxu1  ;;  %v2407_v26 = vpop.f32.mrf.mxu0 }
 0x21b   : > { %v2402_v43 = vadd.f32 %v2401_v52, %v2289_v37  ;;  %2225 = vmatmul.f32.gmra.mxu2 %v871_v49  ;;  %v1001_v52 = vld [vmem:[#allocation2 + $0x122] sm:$0xff]  ;;  %v2069_v13 = vadd.f32 %v2068_v4, %v3576_v17 }
 0x21c   : > { %2338 = vmatmul.f32.gmra.mxu3 %v935_v47  ;;  %v874_v4 = vld [vmem:[#allocation2 + $0x128] sm:$0xff] }
 0x21d   : > { %v2527_v40 = vadd.f32 %v2495_v18, %v2402_v43  ;;  %2115 = vmatmul.f32.gmra.mxu1 %v998_v61  ;;  %2454 = vmatmul.f32.gmra.mxu0 %v1000_v1 }
 0x21e   : > { %v2178_v50 = vpop.f32.mrf.mxu2 }
 0x21f   : > { %2559 = vst [vmem:[%s3754_s13 + $0x8] sm:$0xff] %v2527_v40  ;;  %v2179_v2 = vadd.f32 %v2178_v50, %v2066_v0  ;;  %v2291_v24 = vpop.f32.mrf.mxu3  ;;  %v938_v0 = vld [vmem:[#allocation2 + $0x129] sm:$0xff]  ;;  %v2498_v40 = vld [vmem:[%s3747_s10 + $0x20] sm:$0xff] }
 0x221   : > { %v2292_v16 = vadd.f32 %v2291_v24, %v2179_v2 }
 0x222   : > { %v2071_v3 = vpop.f32.mrf.mxu1  ;;  %v2410_v29 = vpop.f32.mrf.mxu0 }
 0x223   : > { %v2405_v63 = vadd.f32 %v2404_v27, %v2292_v16  ;;  %2228 = vmatmul.f32.gmra.mxu2 %v872_v10  ;;  %v1002_v27 = vld [vmem:[#allocation2 + $0x12a] sm:$0xff]  ;;  %v2072_v17 = vadd.f32 %v2071_v3, %v3591_v56 }
 0x224   : > { %2341 = vmatmul.f32.gmra.mxu3 %v936_v51 }
 0x225   : > { %v2528_v61 = vadd.f32 %v2496_v33, %v2405_v63  ;;  %2118 = vmatmul.f32.gmra.mxu1 %v999_v39  ;;  %2457 = vmatmul.f32.gmra.mxu0 %v1001_v52  ;;  %v875_v33 = vld [vmem:[#allocation2 + $0x138] sm:$0xff] }
 0x226   : > { %v2181_v59 = vpop.f32.mrf.mxu2  ;;  %v939_v63 = vld [vmem:[#allocation2 + $0x139] sm:$0xff] }
 0x227   : > { %2560 = vst [vmem:[%s3754_s13 + $0x10] sm:$0xff] %v2528_v61  ;;  %v2182_v6 = vadd.f32 %v2181_v59, %v2069_v13  ;;  %v2294_v36 = vpop.f32.mrf.mxu3  ;;  %v2499_v13 = vld [vmem:[%s3747_s10 + $0x28] sm:$0xff] }
 0x229   : > { %v2295_v21 = vadd.f32 %v2294_v36, %v2182_v6 }
 0x22a   : > { %v2074_v20 = vpop.f32.mrf.mxu1  ;;  %v2413_v57 = vpop.f32.mrf.mxu0 }
 0x22b   : > { %v2408_v49 = vadd.f32 %v2407_v26, %v2295_v21  ;;  %2231 = vmatmul.f32.gmra.mxu2 %v873_v5  ;;  %v1003_v26 = vld [vmem:[#allocation2 + $0x13a] sm:$0xff]  ;;  %v2075_v56 = vadd.f32 %v2074_v20, %v3599_v38 }
 0x22c   : > { %2344 = vmatmul.f32.gmra.mxu3 %v937_v9  ;;  %v876_v9 = vld [vmem:[#allocation2 + $0x140] sm:$0xff] }
 0x22d   : > { %v2529_v39 = vadd.f32 %v2497_v28, %v2408_v49  ;;  %2121 = vmatmul.f32.gmra.mxu1 %v1000_v1  ;;  %2460 = vmatmul.f32.gmra.mxu0 %v1002_v27  ;;  %v940_v20 = vld [vmem:[#allocation2 + $0x141] sm:$0xff]  ;;  %v2500_v49 = vld [vmem:[%s3747_s10 + $0x30] sm:$0xff] }
 0x22e   : > { %v2184_v37 = vpop.f32.mrf.mxu2 }
 0x22f   : > { %2561 = vst [vmem:[%s3754_s13 + $0x18] sm:$0xff] %v2529_v39  ;;  %v2185_v47 = vadd.f32 %v2184_v37, %v2072_v17  ;;  %v2297_v18 = vpop.f32.mrf.mxu3 }
 0x231   : > { %v2298_v43 = vadd.f32 %v2297_v18, %v2185_v47 }
 0x232   : > { %v2077_v50 = vpop.f32.mrf.mxu1  ;;  %v2416_v2 = vpop.f32.mrf.mxu0 }
 0x233   : > { %v2411_v24 = vadd.f32 %v2410_v29, %v2298_v43  ;;  %2234 = vmatmul.f32.gmra.mxu2 %v874_v4  ;;  %v1004_v29 = vld [vmem:[#allocation2 + $0x142] sm:$0xff]  ;;  %v2078_v38 = vadd.f32 %v2077_v50, %v3612_v46  ;;  %v877_v43 = vld [vmem:[#allocation2 + $0x150] sm:$0xff]  ;;  %v2501_v50 = vld [vmem:[%s3747_s10 + $0x38] sm:$0xff] }
 0x234   : > { %2347 = vmatmul.f32.gmra.mxu3 %v938_v0 }
 0x235   : > { %v2530_v1 = vadd.f32 %v2498_v40, %v2411_v24  ;;  %2124 = vmatmul.f32.gmra.mxu1 %v1001_v52  ;;  %2463 = vmatmul.f32.gmra.mxu0 %v1003_v26  ;;  %v941_v40 = vld [vmem:[#allocation2 + $0x151] sm:$0xff] }
 0x236   : > { %v2187_v10 = vpop.f32.mrf.mxu2 }
 0x237   : > { %2562 = vst [vmem:[%s3754_s13 + $0x20] sm:$0xff] %v2530_v1  ;;  %v2188_v16 = vadd.f32 %v2187_v10, %v2075_v56  ;;  %v2300_v51 = vpop.f32.mrf.mxu3 }
 0x239   : > { %v2301_v3 = vadd.f32 %v2300_v51, %v2188_v16 }
 0x23a   : > { %v2080_v61 = vpop.f32.mrf.mxu1  ;;  %v2419_v59 = vpop.f32.mrf.mxu0 }
 0x23b   : > { %v2414_v6 = vadd.f32 %v2413_v57, %v2301_v3  ;;  %2237 = vmatmul.f32.gmra.mxu2 %v875_v33  ;;  %v1005_v57 = vld [vmem:[#allocation2 + $0x152] sm:$0xff]  ;;  %v2081_v46 = vadd.f32 %v2080_v61, %v3618_v60 }
 0x23c   : > { %2350 = vmatmul.f32.gmra.mxu3 %v939_v63  ;;  %v878_v33 = vld [vmem:[#allocation2 + $0x158] sm:$0xff] }
 0x23d   : > { %v2531_v52 = vadd.f32 %v2499_v13, %v2414_v6  ;;  %2127 = vmatmul.f32.gmra.mxu1 %v1002_v27  ;;  %2466 = vmatmul.f32.gmra.mxu0 %v1004_v29  ;;  %v942_v63 = vld [vmem:[#allocation2 + $0x159] sm:$0xff] }
 0x23e   : > { %v2190_v36 = vpop.f32.mrf.mxu2  ;;  %v2502_v13 = vld [vmem:[%s3747_s10 + $0x40] sm:$0xff] }
 0x23f   : > { %2563 = vst [vmem:[%s3754_s13 + $0x28] sm:$0xff] %v2531_v52  ;;  %v2191_v5 = vadd.f32 %v2190_v36, %v2078_v38  ;;  %v2303_v21 = vpop.f32.mrf.mxu3 }
 0x241   : > { %v2304_v28 = vadd.f32 %v2303_v21, %v2191_v5  ;;  %v879_v21 = vld [vmem:[#allocation2 + $0x168] sm:$0xff] }
 0x242   : > { %v2083_v17 = vpop.f32.mrf.mxu1  ;;  %v2422_v39 = vpop.f32.mrf.mxu0 }
 0x243   : > { %v2417_v37 = vadd.f32 %v2416_v2, %v2304_v28  ;;  %2240 = vmatmul.f32.gmra.mxu2 %v876_v9  ;;  %v1006_v2 = vld [vmem:[#allocation2 + $0x15a] sm:$0xff]  ;;  %v2084_v60 = vadd.f32 %v2083_v17, %v3639_v7  ;;  %v943_v28 = vld [vmem:[#allocation2 + $0x169] sm:$0xff] }
 0x244   : > { %2353 = vmatmul.f32.gmra.mxu3 %v940_v20  ;;  %v2503_v20 = vld [vmem:[%s3747_s10 + $0x48] sm:$0xff] }
 0x245   : > { %v2532_v27 = vadd.f32 %v2500_v49, %v2417_v37  ;;  %2130 = vmatmul.f32.gmra.mxu1 %v1003_v26  ;;  %2469 = vmatmul.f32.gmra.mxu0 %v1005_v57 }
 0x246   : > { %v2193_v47 = vpop.f32.mrf.mxu2 }
 0x247   : > { %2564 = vst [vmem:[%s3754_s13 + $0x30] sm:$0xff] %v2532_v27  ;;  %v2194_v18 = vadd.f32 %v2193_v47, %v2081_v46  ;;  %v2306_v4 = vpop.f32.mrf.mxu3 }
 0x249   : > { %v2307_v0 = vadd.f32 %v2306_v4, %v2194_v18  ;;  %v880_v18 = vld [vmem:[#allocation2 + $0x170] sm:$0xff] }
 0x24a   : > { %v2086_v24 = vpop.f32.mrf.mxu1  ;;  %v2425_v56 = vpop.f32.mrf.mxu0 }
 0x24b   : > { %v2420_v1 = vadd.f32 %v2419_v59, %v2307_v0  ;;  %2243 = vmatmul.f32.gmra.mxu2 %v877_v43  ;;  %v1007_v59 = vld [vmem:[#allocation2 + $0x16a] sm:$0xff]  ;;  %v2087_v7 = vadd.f32 %v2086_v24, %v3651_v22 }
 0x24c   : > { %2356 = vmatmul.f32.gmra.mxu3 %v941_v40  ;;  %v2504_v43 = vld [vmem:[%s3747_s10 + $0x50] sm:$0xff] }
 0x24d   : > { %v2533_v26 = vadd.f32 %v2501_v50, %v2420_v1  ;;  %2133 = vmatmul.f32.gmra.mxu1 %v1004_v29  ;;  %2472 = vmatmul.f32.gmra.mxu0 %v1006_v2  ;;  %v1009_v50 = vld [vmem:[#allocation2 + $0x182] sm:$0xff] }
 0x24e   : > { %v2196_v10 = vpop.f32.mrf.mxu2 }
 0x24f   : > { %2565 = vst [vmem:[%s3754_s13 + $0x38] sm:$0xff] %v2533_v26  ;;  %v2197_v16 = vadd.f32 %v2196_v10, %v2084_v60  ;;  %v2309_v51 = vpop.f32.mrf.mxu3  ;;  %v881_v26 = vld [vmem:[#allocation2 + $0x180] sm:$0xff] }
 0x251   : > { %v2310_v3 = vadd.f32 %v2309_v51, %v2197_v16  ;;  %v945_v16 = vld [vmem:[#allocation2 + $0x181] sm:$0xff]  ;;  %v2505_v51 = vld [vmem:[%s3747_s10 + $0x58] sm:$0xff] }
 0x252   : > { %v2089_v61 = vpop.f32.mrf.mxu1  ;;  %v2428_v6 = vpop.f32.mrf.mxu0 }
 0x253   : > { %v2423_v38 = vadd.f32 %v2422_v39, %v2310_v3  ;;  %2246 = vmatmul.f32.gmra.mxu2 %v878_v33  ;;  %v1008_v39 = vld [vmem:[#allocation2 + $0x172] sm:$0xff]  ;;  %v2090_v22 = vadd.f32 %v2089_v61, %v3666_v34 }
 0x254   : > { %2359 = vmatmul.f32.gmra.mxu3 %v942_v63  ;;  %v1010_v63 = vld [vmem:[#allocation2 + $0x18a] sm:$0xff] }
 0x255   : > { %v2534_v29 = vadd.f32 %v2502_v13, %v2423_v38  ;;  %2136 = vmatmul.f32.gmra.mxu1 %v1005_v57  ;;  %2475 = vmatmul.f32.gmra.mxu0 %v1007_v59  ;;  %v882_v38 = vld [vmem:[#allocation2 + $0x188] sm:$0xff] }
 0x256   : > { %v2199_v52 = vpop.f32.mrf.mxu2 }
 0x257   : > { %2566 = vst [vmem:[%s3754_s13 + $0x40] sm:$0xff] %v2534_v29  ;;  %v2200_v36 = vadd.f32 %v2199_v52, %v2087_v7  ;;  %v2312_v5 = vpop.f32.mrf.mxu3  ;;  %v946_v29 = vld [vmem:[#allocation2 + $0x189] sm:$0xff]  ;;  %v2506_v52 = vld [vmem:[%s3747_s10 + $0x60] sm:$0xff] }
 0x259   : > { %v2313_v9 = vadd.f32 %v2312_v5, %v2200_v36 }
 0x25a   : > { %v2092_v49 = vpop.f32.mrf.mxu1  ;;  %v2431_v17 = vpop.f32.mrf.mxu0 }
 0x25b   : > { %v2426_v37 = vadd.f32 %v2425_v56, %v2313_v9  ;;  %2249 = vmatmul.f32.gmra.mxu2 %v879_v21  ;;  %v2093_v34 = vadd.f32 %v2092_v49, %v3674_v42  ;;  %v1011_v21 = vld [vmem:[#allocation2 + $0x19a] sm:$0xff] }
 0x25c   : > { %2362 = vmatmul.f32.gmra.mxu3 %v943_v28 }
 0x25d   : > { %v2535_v57 = vadd.f32 %v2503_v20, %v2426_v37  ;;  %2139 = vmatmul.f32.gmra.mxu1 %v1006_v2  ;;  %2478 = vmatmul.f32.gmra.mxu0 %v1008_v39  ;;  %v947_v37 = vld [vmem:[#allocation2 + $0x199] sm:$0xff] }
 0x25e   : > { %v2202_v46 = vpop.f32.mrf.mxu2 }
 0x25f   : > { %2567 = vst [vmem:[%s3754_s13 + $0x48] sm:$0xff] %v2535_v57  ;;  %v2203_v27 = vadd.f32 %v2202_v46, %v2090_v22  ;;  %v2315_v47 = vpop.f32.mrf.mxu3  ;;  %v2507_v22 = vld [vmem:[%s3747_s10 + $0x68] sm:$0xff] }
 0x261   : > { %v2316_v4 = vadd.f32 %v2315_v47, %v2203_v27  ;;  %v1012_v27 = vld [vmem:[#allocation2 + $0x1a2] sm:$0xff] }
 0x262   : > { %v2095_v0 = vpop.f32.mrf.mxu1  ;;  %v2434_v40 = vpop.f32.mrf.mxu0 }
 0x263   : > { %v2429_v24 = vadd.f32 %v2428_v6, %v2316_v4  ;;  %2252 = vmatmul.f32.gmra.mxu2 %v880_v18  ;;  %v2735_v18 = vld [vmem:[#allocation2] sm:$0xff] }
 0x264   : > { %2365 = vmatmul.f32.gmra.mxu3 %v3672_v23  ;;  %v2096_v23 = vadd.f32 %v2095_v0, %v3678_v11 }
 0x265   : > { %v2536_v56 = vadd.f32 %v2504_v43, %v2429_v24  ;;  %2142 = vmatmul.f32.gmra.mxu1 %v1007_v59  ;;  %2481 = vmatmul.f32.gmra.mxu0 %v1009_v50  ;;  %v948_v24 = vld [vmem:[#allocation2 + $0x1a1] sm:$0xff] }
 0x266   : > { %v2205_v2 = vpop.f32.mrf.mxu2 }
 0x267   : > { %2568 = vst [vmem:[%s3754_s13 + $0x50] sm:$0xff] %v2536_v56  ;;  %v2206_v1 = vadd.f32 %v2205_v2, %v2093_v34  ;;  %v2318_v60 = vpop.f32.mrf.mxu3  ;;  %v2508_v34 = vld [vmem:[%s3747_s10 + $0x70] sm:$0xff] }
 0x269   : > { %v2319_v10 = vadd.f32 %v2318_v60, %v2206_v1 }
 0x26a   : > { %v2098_v33 = vpop.f32.mrf.mxu1  ;;  %v2437_v3 = vpop.f32.mrf.mxu0 }
 0x26b   : > { %v2432_v13 = vadd.f32 %v2431_v17, %v2319_v10  ;;  %2255 = vmatmul.f32.gmra.mxu2 %v881_v26  ;;  %v2099_v11 = vadd.f32 %v2098_v33, %v3683_v25  ;;  %v2509_v33 = vld [vmem:[%s3747_s10 + $0x78] sm:$0xff] }
 0x26c   : > { %2368 = vmatmul.f32.gmra.mxu3 %v945_v16 }
 0x26d   : > { %v2537_v42 = vadd.f32 %v2505_v51, %v2432_v13  ;;  %2145 = vmatmul.f32.gmra.mxu1 %v1008_v39  ;;  %2484 = vmatmul.f32.gmra.mxu0 %v1010_v63 }
 0x26e   : > { %v2208_v61 = vpop.f32.mrf.mxu2 }
 0x26f   : > { %2569 = vst [vmem:[%s3754_s13 + $0x58] sm:$0xff] %v2537_v42  ;;  %v2209_v6 = vadd.f32 %v2208_v61, %v2096_v23  ;;  %v2321_v59 = vpop.f32.mrf.mxu3 }
 0x271   : > { %v2322_v7 = vadd.f32 %v2321_v59, %v2209_v6 }
 0x272   : > { %v2101_v36 = vpop.f32.mrf.mxu1  ;;  %v2440_v5 = vpop.f32.mrf.mxu0 }
 0x273   : > { %v2435_v9 = vadd.f32 %v2434_v40, %v2322_v7  ;;  %2258 = vmatmul.f32.gmra.mxu2 %v882_v38  ;;  %v2102_v25 = vadd.f32 %v2101_v36, %v3689_v53  ;;  %v2510_v38 = vld [vmem:[%s3747_s10 + $0x80] sm:$0xff] }
 0x274   : > { %2371 = vmatmul.f32.gmra.mxu3 %v946_v29 }
 0x275   : > { %v2538_v28 = vadd.f32 %v2506_v52, %v2435_v9  ;;  %2148 = vmatmul.f32.gmra.mxu1 %v1009_v50  ;;  %2487 = vmatmul.f32.gmra.mxu0 %v1011_v21 }
 0x276   : > { %v2211_v20 = vpop.f32.mrf.mxu2 }
 0x277   : > { %2570 = vst [vmem:[%s3754_s13 + $0x60] sm:$0xff] %v2538_v28  ;;  %v2212_v49 = vadd.f32 %v2211_v20, %v2099_v11  ;;  %v2324_v17 = vpop.f32.mrf.mxu3  ;;  %v2511_v28 = vld [vmem:[%s3747_s10 + $0x88] sm:$0xff] }
 0x279   : > { %v2325_v39 = vadd.f32 %v2324_v17, %v2212_v49 }
 0x27a   : > { %v2104_v57 = vpop.f32.mrf.mxu1  ;;  %v2443_v46 = vpop.f32.mrf.mxu0 }
 0x27b   : > { %v2438_v47 = vadd.f32 %v2437_v3, %v2325_v39  ;;  %2261 = vmatmul.f32.gmra.mxu2 %v2735_v18  ;;  %v2105_v53 = vadd.f32 %v2104_v57, %v3692_v45 }
 0x27c   : > { %2374 = vmatmul.f32.gmra.mxu3 %v947_v37 }
 0x27d   : > { %v2539_v4 = vadd.f32 %v2507_v22, %v2438_v47  ;;  %2151 = vmatmul.f32.gmra.mxu1 %v1010_v63  ;;  %2490 = vmatmul.f32.gmra.mxu0 %v1012_v27  ;;  %v2512_v27 = vld [vmem:[%s3747_s10 + $0x90] sm:$0xff] }
 0x27e   : > { %v2214_v43 = vpop.f32.mrf.mxu2 }
 0x27f   : > { %2571 = vst [vmem:[%s3754_s13 + $0x68] sm:$0xff] %v2539_v4  ;;  %v2215_v0 = vadd.f32 %v2214_v43, %v2102_v25  ;;  %v2327_v40 = vpop.f32.mrf.mxu3 }
 0x281   : > { %v2328_v50 = vadd.f32 %v2327_v40, %v2215_v0 }
 0x282   : > { %v2107_v56 = vpop.f32.mrf.mxu1  ;;  %v2446_v2 = vpop.f32.mrf.mxu0 }
 0x283   : > { %v2441_v1 = vadd.f32 %v2440_v5, %v2328_v50  ;;  %2264 = vmatmul.f32.gmra.mxu2 %v2735_v18  ;;  %v2108_v23 = vadd.f32 %v2107_v56, %v3695_v48 }
 0x284   : > { %2377 = vmatmul.f32.gmra.mxu3 %v948_v24  ;;  %v2513_v24 = vld [vmem:[%s3747_s10 + $0x98] sm:$0xff] }
 0x285   : > { %v2540_v60 = vadd.f32 %v2508_v34, %v2441_v1 }
 0x286   : > { %v2217_v26 = vpop.f32.mrf.mxu2 }
 0x287   : > { %2572 = vst [vmem:[%s3754_s13 + $0x70] sm:$0xff] %v2540_v60  ;;  %v2218_v10 = vadd.f32 %v2217_v26, %v2105_v53  ;;  %v2330_v16 = vpop.f32.mrf.mxu3 }
 0x289   : > { %v2331_v51 = vadd.f32 %v2330_v16, %v2218_v10  ;;  %v2514_v16 = vld [vmem:[%s3747_s10 + $0xa0] sm:$0xff] }
 0x28a   : > { %v2110_v3 = vpop.f32.mrf.mxu1  ;;  %v2449_v63 = vpop.f32.mrf.mxu0 }
 0x28b   : > { %v2444_v13 = vadd.f32 %v2443_v46, %v2331_v51  ;;  %v2111_v36 = vadd.f32 %v2110_v3, %v3698_v12 }
 0x28d   : > { %v2541_v42 = vadd.f32 %v2509_v33, %v2444_v13 }
 0x28e   : > { %v2220_v61 = vpop.f32.mrf.mxu2 }
 0x28f   : > { %2573 = vst [vmem:[%s3754_s13 + $0x78] sm:$0xff] %v2541_v42  ;;  %v2221_v6 = vadd.f32 %v2220_v61, %v2108_v23  ;;  %v2333_v45 = vpop.f32.mrf.mxu3 }
 0x291   : > { %v2334_v59 = vadd.f32 %v2333_v45, %v2221_v6  ;;  %v2515_v6 = vld [vmem:[%s3747_s10 + $0xa8] sm:$0xff] }
 0x292   : > { %v2113_v7 = vpop.f32.mrf.mxu1  ;;  %v2452_v29 = vpop.f32.mrf.mxu0 }
 0x293   : > { %v2447_v52 = vadd.f32 %v2446_v2, %v2334_v59  ;;  %v2114_v39 = vadd.f32 %v2113_v7, %v3701_v32 }
 0x295   : > { %v2542_v5 = vadd.f32 %v2510_v38, %v2447_v52 }
 0x296   : > { %v2223_v21 = vpop.f32.mrf.mxu2 }
 0x297   : > { %2574 = vst [vmem:[%s3754_s13 + $0x80] sm:$0xff] %v2542_v5  ;;  %v2224_v9 = vadd.f32 %v2223_v21, %v2111_v36  ;;  %v2336_v48 = vpop.f32.mrf.mxu3  ;;  %v2516_v21 = vld [vmem:[%s3747_s10 + $0xb0] sm:$0xff] }
 0x299   : > { %v2337_v11 = vadd.f32 %v2336_v48, %v2224_v9 }
 0x29a   : > { %v2116_v20 = vpop.f32.mrf.mxu1  ;;  %v2455_v49 = vpop.f32.mrf.mxu0 }
 0x29b   : > { %v2450_v17 = vadd.f32 %v2449_v63, %v2337_v11  ;;  %v2117_v4 = vadd.f32 %v2116_v20, %v3704_v30 }
 0x29d   : > { %v2543_v37 = vadd.f32 %v2511_v28, %v2450_v17 }
 0x29e   : > { %v2226_v22 = vpop.f32.mrf.mxu2 }
 0x29f   : > { %2575 = vst [vmem:[%s3754_s13 + $0x88] sm:$0xff] %v2543_v37  ;;  %v2227_v57 = vadd.f32 %v2226_v22, %v2114_v39  ;;  %v2339_v12 = vpop.f32.mrf.mxu3  ;;  %v2517_v37 = vld [vmem:[%s3747_s10 + $0xb8] sm:$0xff] }
 0x2a1   : > { %v2340_v46 = vadd.f32 %v2339_v12, %v2227_v57 }
 0x2a2   : > { %v2119_v47 = vpop.f32.mrf.mxu1  ;;  %v2458_v18 = vpop.f32.mrf.mxu0 }
 0x2a3   : > { %v2453_v25 = vadd.f32 %v2452_v29, %v2340_v46  ;;  %v2120_v1 = vadd.f32 %v2119_v47, %v3707_v41 }
 0x2a5   : > { %v2544_v43 = vadd.f32 %v2512_v27, %v2453_v25 }
 0x2a6   : > { %v2229_v0 = vpop.f32.mrf.mxu2 }
 0x2a7   : > { %2576 = vst [vmem:[%s3754_s13 + $0x90] sm:$0xff] %v2544_v43  ;;  %v2230_v40 = vadd.f32 %v2229_v0, %v2117_v4  ;;  %v2342_v32 = vpop.f32.mrf.mxu3  ;;  %v2518_v4 = vld [vmem:[%s3747_s10 + $0xc0] sm:$0xff] }
 0x2a9   : > { %v2343_v50 = vadd.f32 %v2342_v32, %v2230_v40 }
 0x2aa   : > { %v2122_v34 = vpop.f32.mrf.mxu1  ;;  %v2461_v56 = vpop.f32.mrf.mxu0 }
 0x2ab   : > { %v2456_v2 = vadd.f32 %v2455_v49, %v2343_v50  ;;  %v2123_v63 = vadd.f32 %v2122_v34, %v3710_v8 }
 0x2ad   : > { %v2545_v53 = vadd.f32 %v2513_v24, %v2456_v2  ;;  %v2519_v2 = vld [vmem:[%s3747_s10 + $0xc8] sm:$0xff] }
 0x2ae   : > { %v2232_v60 = vpop.f32.mrf.mxu2 }
 0x2af   : > { %2577 = vst [vmem:[%s3754_s13 + $0x98] sm:$0xff] %v2545_v53  ;;  %v2233_v26 = vadd.f32 %v2232_v60, %v2120_v1  ;;  %v2345_v30 = vpop.f32.mrf.mxu3 }
 0x2b1   : > { %v2346_v10 = vadd.f32 %v2345_v30, %v2233_v26 }
 0x2b2   : > { %v2125_v51 = vpop.f32.mrf.mxu1  ;;  %v2464_v33 = vpop.f32.mrf.mxu0 }
 0x2b3   : > { %v2459_v3 = vadd.f32 %v2458_v18, %v2346_v10  ;;  %v2126_v7 = vadd.f32 %v2125_v51, %v3713_v58 }
 0x2b5   : > { %v2546_v13 = vadd.f32 %v2514_v16, %v2459_v3 }
 0x2b6   : > { %v2235_v23 = vpop.f32.mrf.mxu2 }
 0x2b7   : > { %2578 = vst [vmem:[%s3754_s13 + $0xa0] sm:$0xff] %v2546_v13  ;;  %v2236_v42 = vadd.f32 %v2235_v23, %v2123_v63  ;;  %v2348_v41 = vpop.f32.mrf.mxu3 }
 0x2b9   : > { %v2349_v61 = vadd.f32 %v2348_v41, %v2236_v42 }
 0x2ba   : > { %v2128_v45 = vpop.f32.mrf.mxu1  ;;  %v2467_v59 = vpop.f32.mrf.mxu0 }
 0x2bb   : > { %v2462_v38 = vadd.f32 %v2461_v56, %v2349_v61  ;;  %v2129_v28 = vadd.f32 %v2128_v45, %v3716_v62 }
 0x2bd   : > { %v2547_v29 = vadd.f32 %v2515_v6, %v2462_v38  ;;  %v2521_v6 = vld [vmem:[%s3747_s10 + $0xd8] sm:$0xff] }
 0x2be   : > { %v2238_v52 = vpop.f32.mrf.mxu2 }
 0x2bf   : > { %2579 = vst [vmem:[%s3754_s13 + $0xa8] sm:$0xff] %v2547_v29  ;;  %v2239_v36 = vadd.f32 %v2238_v52, %v2126_v7  ;;  %v2351_v8 = vpop.f32.mrf.mxu3 }
 0x2c1   : > { %v2352_v5 = vadd.f32 %v2351_v8, %v2239_v36 }
 0x2c2   : > { %v2131_v9 = vpop.f32.mrf.mxu1  ;;  %v2470_v48 = vpop.f32.mrf.mxu0 }
 0x2c3   : > { %v2465_v11 = vadd.f32 %v2464_v33, %v2352_v5  ;;  %v2132_v46 = vadd.f32 %v2131_v9, %v3719_v54  ;;  %v2520_v33 = vld [vmem:[%s3747_s10 + $0xd0] sm:$0xff]  ;;  %v2522_v5 = vld [vmem:[%s3747_s10 + $0xe0] sm:$0xff] }
 0x2c5   : > { %v2548_v20 = vadd.f32 %v2516_v21, %v2465_v11 }
 0x2c6   : > { %v2241_v49 = vpop.f32.mrf.mxu2 }
 0x2c7   : > { %2580 = vst [vmem:[%s3754_s13 + $0xb0] sm:$0xff] %v2548_v20  ;;  %v2242_v17 = vadd.f32 %v2241_v49, %v2129_v28  ;;  %v2354_v58 = vpop.f32.mrf.mxu3 }
 0x2c9   : > { %v2355_v39 = vadd.f32 %v2354_v58, %v2242_v17  ;;  %v2523_v58 = vld [vmem:[%s3747_s10 + $0xe8] sm:$0xff] }
 0x2ca   : > { %v2134_v22 = vpop.f32.mrf.mxu1  ;;  %v2473_v12 = vpop.f32.mrf.mxu0 }
 0x2cb   : > { %v2468_v57 = vadd.f32 %v2467_v59, %v2355_v39  ;;  %v2135_v40 = vadd.f32 %v2134_v22, %v3722_v19 }
 0x2cd   : > { %v2549_v27 = vadd.f32 %v2517_v37, %v2468_v57 }
 0x2ce   : > { %v2244_v47 = vpop.f32.mrf.mxu2 }
 0x2cf   : > { %2581 = vst [vmem:[%s3754_s13 + $0xb8] sm:$0xff] %v2549_v27  ;;  %v2245_v18 = vadd.f32 %v2244_v47, %v2132_v46  ;;  %v2357_v62 = vpop.f32.mrf.mxu3 }
 0x2d1   : > { %v2358_v25 = vadd.f32 %v2357_v62, %v2245_v18  ;;  %v2524_v18 = vld [vmem:[%s3747_s10 + $0xf0] sm:$0xff] }
 0x2d2   : > { %v2137_v43 = vpop.f32.mrf.mxu1  ;;  %v2476_v24 = vpop.f32.mrf.mxu0 }
 0x2d3   : > { %v2471_v0 = vadd.f32 %v2470_v48, %v2358_v25  ;;  %v2138_v60 = vadd.f32 %v2137_v43, %v3725_v31 }
 0x2d5   : > { %v2550_v32 = vadd.f32 %v2518_v4, %v2471_v0 }
 0x2d6   : > { %v2247_v50 = vpop.f32.mrf.mxu2 }
 0x2d7   : > { %2582 = vst [vmem:[%s3754_s13 + $0xc0] sm:$0xff] %v2550_v32  ;;  %v2248_v34 = vadd.f32 %v2247_v50, %v2135_v40  ;;  %v2360_v54 = vpop.f32.mrf.mxu3  ;;  %v2525_v50 = vld [vmem:[%s3747_s10 + $0xf8] sm:$0xff] }
 0x2d9   : > { %v2361_v56 = vadd.f32 %v2360_v54, %v2248_v34 }
 0x2da   : > { %v2140_v1 = vpop.f32.mrf.mxu1  ;;  %v2479_v16 = vpop.f32.mrf.mxu0 }
 0x2db   : > { %v2474_v53 = vadd.f32 %v2473_v12, %v2361_v56  ;;  %v2141_v13 = vadd.f32 %v2140_v1, %v3728_v35 }
 0x2dd   : > { %v2551_v26 = vadd.f32 %v2519_v2, %v2474_v53 }
 0x2de   : > { %v2250_v30 = vpop.f32.mrf.mxu2 }
 0x2df   : > { %2583 = vst [vmem:[%s3754_s13 + $0xc8] sm:$0xff] %v2551_v26  ;;  %v2251_v10 = vadd.f32 %v2250_v30, %v2138_v60  ;;  %v2363_v19 = vpop.f32.mrf.mxu3 }
 0x2e1   : > { %v2364_v51 = vadd.f32 %v2363_v19, %v2251_v10 }
 0x2e2   : > { %v2143_v63 = vpop.f32.mrf.mxu1  ;;  %v2482_v45 = vpop.f32.mrf.mxu0 }
 0x2e3   : > { %v2477_v3 = vadd.f32 %v2476_v24, %v2364_v51  ;;  %v2144_v38 = vadd.f32 %v2143_v63, %v3731_v44 }
 0x2e5   : > { %v2552_v23 = vadd.f32 %v2520_v33, %v2477_v3 }
 0x2e6   : > { %v2253_v42 = vpop.f32.mrf.mxu2 }
 0x2e7   : > { %2584 = vst [vmem:[%s3754_s13 + $0xd0] sm:$0xff] %v2552_v23  ;;  %v2254_v41 = vadd.f32 %v2253_v42, %v2141_v13  ;;  %v2366_v31 = vpop.f32.mrf.mxu3 }
 0x2e9   : > { %v2367_v61 = vadd.f32 %v2366_v31, %v2254_v41 }
 0x2ea   : > { %v2146_v52 = vpop.f32.mrf.mxu1  ;;  %v2485_v9 = vpop.f32.mrf.mxu0 }
 0x2eb   : > { %v2480_v59 = vadd.f32 %v2479_v16, %v2367_v61  ;;  %v2147_v48 = vadd.f32 %v2146_v52, %v3734_v55 }
 0x2ed   : > { %v2553_v7 = vadd.f32 %v2521_v6, %v2480_v59 }
 0x2ee   : > { %v2256_v29 = vpop.f32.mrf.mxu2 }
 0x2ef   : > { %2585 = vst [vmem:[%s3754_s13 + $0xd8] sm:$0xff] %v2553_v7  ;;  %v2257_v36 = vadd.f32 %v2256_v29, %v2144_v38  ;;  %v2369_v35 = vpop.f32.mrf.mxu3 }
 0x2f1   : > { %v2370_v8 = vadd.f32 %v2369_v35, %v2257_v36 }
 0x2f2   : > { %v2149_v49 = vpop.f32.mrf.mxu1  ;;  %v2488_v12 = vpop.f32.mrf.mxu0 }
 0x2f3   : > { %v2483_v21 = vadd.f32 %v2482_v45, %v2370_v8  ;;  %v2150_v37 = vadd.f32 %v2149_v49, %v3737_v15 }
 0x2f5   : > { %v2554_v11 = vadd.f32 %v2522_v5, %v2483_v21 }
 0x2f6   : > { %v2259_v28 = vpop.f32.mrf.mxu2 }
 0x2f7   : > { %2586 = vst [vmem:[%s3754_s13 + $0xe0] sm:$0xff] %v2554_v11  ;;  %v2260_v20 = vadd.f32 %v2259_v28, %v2147_v48  ;;  %v2372_v44 = vpop.f32.mrf.mxu3 }
 0x2f9   : > { %v2373_v17 = vadd.f32 %v2372_v44, %v2260_v20 }
 0x2fa   : > { %v2152_v47 = vpop.f32.mrf.mxu1  ;;  %v2491_v15 = vpop.f32.mrf.mxu0 }
 0x2fb   : > { %v2486_v39 = vadd.f32 %v2485_v9, %v2373_v17  ;;  %v2153_v25 = vadd.f32 %v2152_v47, %v3740_v14 }
 0x2fd   : > { %v2555_v22 = vadd.f32 %v2523_v58, %v2486_v39 }
 0x2fe   : > { %v2262_v57 = vpop.f32.mrf.mxu2 }
 0x2ff   : > { %2587 = vst [vmem:[%s3754_s13 + $0xe8] sm:$0xff] %v2555_v22  ;;  %v2263_v46 = vadd.f32 %v2262_v57, %v2150_v37  ;;  %v2375_v55 = vpop.f32.mrf.mxu3 }
 0x301   : > { %v2376_v27 = vadd.f32 %v2375_v55, %v2263_v46 }
 0x303   : > { %v2489_v62 = vadd.f32 %v2488_v12, %v2376_v27 }
 0x305   : > { %v2556_v4 = vadd.f32 %v2524_v18, %v2489_v62 }
 0x306   : > { %v2265_v43 = vpop.f32.mrf.mxu2 }
 0x307   : > { %2588 = vst [vmem:[%s3754_s13 + $0xf0] sm:$0xff] %v2556_v4  ;;  %v2266_v0 = vadd.f32 %v2265_v43, %v2153_v25  ;;  %v2378_v40 = vpop.f32.mrf.mxu3 }
 0x309   : > { %v2379_v32 = vadd.f32 %v2378_v40, %v2266_v0 }
 0x30b   : > { %v2492_v24 = vadd.f32 %v2491_v15, %v2379_v32 }
 0x30d   : > { %v2557_v34 = vadd.f32 %v2525_v50, %v2492_v24 }
 0x30f   : > { %2589 = vst [vmem:[%s3754_s13 + $0xf8] sm:$0xff] %v2557_v34 }
 0x310 PF: > { %s15_s18 = sadd.s32 1, %s2742_s18  }
 0x311   : > { %p12_p4 = scmp.ge.s32.totalorder %s15_s18, 4  }
 0x313   :  { %14 = sbr.rel (!%p12_p4) target bundleno = 1 (0x1), region = 75 }

</bundles_post_ra>
